<compile_context>
chip_gen: v6e
topology: v6e:2x2x1
jax: 0.10.0
libtpu: 0.0.40
codegen_flags: <defaults>
</compile_context>

<pallas_src>
import jax
import jax.numpy as jnp
from jax.experimental import pallas as pl
from jax.experimental.pallas import tpu as pltpu

EPS_BN = 1e-5


# -----------------------------------------------------------------------------
# Fused kernel
# -----------------------------------------------------------------------------
def _build_kernel(N, W, C1, C2, C3, h1, h2, h3, n_fc):
    f32 = jnp.float32

    def bn_relu(z, gamma, beta):
        # torch BatchNorm2d train mode: biased batch variance, single-pass stats.
        mu = jnp.mean(z, axis=0, keepdims=True)
        ms = jnp.mean(z * z, axis=0, keepdims=True)
        var = ms - mu * mu
        zn = (z - mu) * jax.lax.rsqrt(var + EPS_BN)
        return jnp.maximum(zn * gamma + beta, 0.0)

    def conv_im2col(src4, col_ref, w_ref, gamma, beta, kh, kw, ph, pw):
        """src4: (N, h_in, W, cin) f32.  One matmul per layer via an im2col scratch.

        The scratch is pre-zeroed so the zero padding needs no explicit pad/concat;
        each tap is a single sliced store of the valid region.
        """
        n, h_in, w, cin = src4.shape
        h_out = h_in + 2 * ph - kh + 1
        col_ref[...] = jnp.zeros(col_ref.shape, f32)
        for i in range(kh):
            ho0, ho1 = max(0, ph - i), min(h_out, h_in + ph - i)
            for j in range(kw):
                wo0, wo1 = max(0, pw - j), min(w, w + pw - j)
                if ho1 <= ho0 or wo1 <= wo0:
                    continue
                t = i * kw + j
                col_ref[:, ho0:ho1, wo0:wo1, t * cin:(t + 1) * cin] = (
                    src4[:, ho0 + i - ph:ho1 + i - ph,
                         wo0 + j - pw:wo1 + j - pw, :])
        lhs = col_ref[...].reshape(n * h_out * w, kh * kw * cin)
        z = jnp.dot(lhs, w_ref[...], preferred_element_type=f32)
        return bn_relu(z, gamma, beta), h_out

    def kernel(x_ref, u_ref, w1_ref, w2_ref, w3_ref, wfc_ref, wh_ref,
               bn_ref, bias_ref, out_ref, col1_ref, col2_ref, col3_ref,
               flat_ref):
        # --- ConvBody: 3 x (conv -> BN(train stats) -> ReLU), one matmul each ---
        a1, _ = conv_im2col(x_ref[...], col1_ref, w1_ref,
                            bn_ref[0:1, 0:C1], bn_ref[1:2, 0:C1],
                            kh=2, kw=9, ph=1, pw=4)
        a2, _ = conv_im2col(a1.reshape(N, h1, W, C1), col2_ref, w2_ref,
                            bn_ref[2:3, 0:C2], bn_ref[3:4, 0:C2],
                            kh=2, kw=7, ph=0, pw=3)
        a3, _ = conv_im2col(a2.reshape(N, h2, W, C2), col3_ref, w3_ref,
                            bn_ref[4:5, 0:C3], bn_ref[5:6, 0:C3],
                            kh=2, kw=7, ph=0, pw=3)

        # --- flatten + FC + ReLU: one (N, 1024) @ (1024, 200) matmul ------------
        # torch's NCHW flatten is folded into the pre-permuted fc weight; the
        # (N*h3*W, C3) -> (N, h3*W*C3) relayout goes through a VMEM scratch with
        # lane-slice stores (Mosaic-safe alternative to a minor-dim-merging reshape).
        r3 = h3 * W
        a3_3 = a3.reshape(N, r3, C3)
        for r in range(r3):
            flat_ref[:, r * C3:(r + 1) * C3] = a3_3[:, r, :]
        yfc = jnp.maximum(
            jnp.dot(flat_ref[...], wfc_ref[...], preferred_element_type=f32)
            + bias_ref[0:1, 0:n_fc], 0.0)                         # (N, 200)

        # --- heads: one (200, 128) matmul, lanes already output-aligned ---------
        # lanes 0..2: actor logits, lane 3: value, lanes 4..127: zero weights.
        zh = (jnp.dot(yfc, wh_ref[...], preferred_element_type=f32)
              + bias_ref[1:2, 0:128])                             # (N, 128)
        prob = 1.0 / (1.0 + jnp.exp(-zh))                         # sigmoid
        action = (u_ref[...] < prob).astype(f32)                  # Bernoulli sample

        # logits-form softplus: log_prob(a) = a*z - softplus(z); H = softplus(z) - p*z
        sp_pos = jnp.maximum(zh, 0.0) + jnp.log(1.0 + jnp.exp(-jnp.abs(zh)))
        sp_neg = sp_pos - zh
        logp = -(action * sp_neg + (1.0 - action) * sp_pos)
        ent = sp_pos - zh * prob

        lane = jax.lax.broadcasted_iota(jnp.int32, (N, 128), 1)
        is_act = lane < 3
        logp_sum = jnp.sum(jnp.where(is_act, logp, 0.0), axis=1, keepdims=True)
        ent_sum = jnp.sum(jnp.where(is_act, ent, 0.0), axis=1, keepdims=True)
        value = zh[:, 3:4]

        # one unmasked full-width store: [action(3) | logp | ent | value | 0 ...]
        out_ref[...] = jnp.where(
            is_act, action,
            jnp.where(lane == 3, logp_sum,
                      jnp.where(lane == 4, ent_sum,
                                jnp.where(lane == 5, value, 0.0))))

    return kernel


# -----------------------------------------------------------------------------
# Parameter preparation (one-time, outside the jitted forward)
# -----------------------------------------------------------------------------
def init_params(key):
    """Synthetic parameters in the original torch layouts."""
    ks = jax.random.split(key, 10)
    f32 = jnp.float32
    return {
        "w1": jax.random.normal(ks[0], (16, 1, 2, 9), f32) * 0.10,
        "b1": jax.random.normal(ks[1], (16,), f32) * 0.05,
        "g1": jnp.ones((16,), f32), "be1": jnp.zeros((16,), f32),
        "w2": jax.random.normal(ks[2], (32, 16, 2, 7), f32) * 0.05,
        "b2": jax.random.normal(ks[3], (32,), f32) * 0.05,
        "g2": jnp.ones((32,), f32), "be2": jnp.zeros((32,), f32),
        "w3": jax.random.normal(ks[4], (32, 32, 2, 7), f32) * 0.05,
        "b3": jax.random.normal(ks[5], (32,), f32) * 0.05,
        "g3": jnp.ones((32,), f32), "be3": jnp.zeros((32,), f32),
        "wfc": jax.random.normal(ks[6], (200, 1024), f32) * 0.02,
        "bfc": jax.random.normal(ks[7], (200,), f32) * 0.02,
        "wa": jax.random.normal(ks[8], (3, 200), f32) * 0.05,
        "ba": jnp.zeros((3,), f32),
        "wv": jax.random.normal(ks[9], (1, 200), f32) * 0.05,
        "bv": jnp.zeros((1,), f32),
    }


def prepare_params(p, H, W):
    """Torch layouts -> kernel-ready layouts (permutes/packing done once).

    Conv biases b1/b2/b3 are dropped: with train-mode BatchNorm they are cancelled
    exactly by the batch-mean subtraction (numerically identical).
    """
    f32 = jnp.float32

    def conv_mat(w):
        cout, cin, kh, kw = w.shape
        # in-kernel im2col lane order: (i, j, cin) -> (i*kw + j)*cin + c
        return (jnp.transpose(w, (2, 3, 1, 0))
                .reshape(kh * kw * cin, cout).astype(f32))

    h1 = H + 2 - 2 + 1
    h2 = h1 - 2 + 1
    h3 = h2 - 2 + 1
    C1, C2, C3 = p["w1"].shape[0], p["w2"].shape[0], p["w3"].shape[0]
    n_fc = p["wfc"].shape[0]
    assert p["wfc"].shape[1] == C3 * h3 * W, "input shape inconsistent with fc"

    # torch flattens NCHW -> index c*h3*W + h*W + w; the kernel flattens (h, w, c),
    # so fold that permutation into the fc weight once.
    wfc = jnp.transpose(p["wfc"].reshape(n_fc, C3, h3, W), (2, 3, 1, 0))
    wfc = wfc.reshape(h3 * W * C3, n_fc).astype(f32)

    # actor(3) + value(1) heads merged and padded to a lane-dense (200, 128) matmul.
    wh = jnp.zeros((n_fc, 128), f32)
    wh = wh.at[:, 0:3].set(p["wa"].T).at[:, 3:4].set(p["wv"].T)

    # packed BN affine params: rows [g1, be1, g2, be2, g3, be3]
    bn = jnp.zeros((6, max(C1, C2, C3)), f32)
    bn = bn.at[0, :C1].set(p["g1"]).at[1, :C1].set(p["be1"])
    bn = bn.at[2, :C2].set(p["g2"]).at[3, :C2].set(p["be2"])
    bn = bn.at[4, :C3].set(p["g3"]).at[5, :C3].set(p["be3"])

    # packed biases: row 0 = fc bias (200 lanes), row 1 = [actor | value | 0 ...]
    bias = jnp.zeros((2, max(n_fc, 128)), f32)
    bias = bias.at[0, :n_fc].set(p["bfc"])
    bias = bias.at[1, 0:3].set(p["ba"]).at[1, 3:4].set(p["bv"])

    return {"w1": conv_mat(p["w1"]), "w2": conv_mat(p["w2"]),
            "w3": conv_mat(p["w3"]), "wfc": wfc, "wh": wh,
            "bn": bn, "bias": bias}


# -----------------------------------------------------------------------------
# Forward (one grid-less pallas_call)
# -----------------------------------------------------------------------------
@jax.jit
def actor_critic_forward(prep, x_nchw, u):
    N, cin, H, W = x_nchw.shape
    assert cin == 1
    C1 = prep["w1"].shape[1]
    C2 = prep["w2"].shape[1]
    C3 = prep["w3"].shape[1]
    h1 = H + 2 - 2 + 1
    h2 = h1 - 2 + 1
    h3 = h2 - 2 + 1
    n_fc = prep["wfc"].shape[1]
    n_flat = prep["wfc"].shape[0]
    assert h3 >= 1 and n_flat == h3 * W * C3
    assert u.shape == (N, 128)

    # NCHW with a single channel -> (N, H, W, 1): a pure reshape, no transpose.
    x4 = x_nchw.reshape(N, H, W, 1).astype(jnp.float32)

    kernel = _build_kernel(N, W, C1, C2, C3, h1, h2, h3, n_fc)
    args = (x4, u, prep["w1"], prep["w2"], prep["w3"], prep["wfc"],
            prep["wh"], prep["bn"], prep["bias"])

    flops = 2 * (N * h1 * W * 18 * C1
                 + N * h2 * W * 14 * C1 * C2
                 + N * h3 * W * 14 * C2 * C3
                 + N * n_flat * n_fc
                 + N * n_fc * 128)
    bytes_accessed = sum(a.size * a.dtype.itemsize for a in args) + N * 128 * 4

    out = pl.pallas_call(
        kernel,
        out_shape=jax.ShapeDtypeStruct((N, 128), jnp.float32),
        in_specs=[pl.BlockSpec(memory_space=pltpu.MemorySpace.VMEM)] * len(args),
        out_specs=pl.BlockSpec(memory_space=pltpu.MemorySpace.VMEM),
        scratch_shapes=[
            pltpu.VMEM((N, h1, W, 2 * 9 * 1), jnp.float32),    # im2col conv1
            pltpu.VMEM((N, h2, W, 2 * 7 * C1), jnp.float32),   # im2col conv2
            pltpu.VMEM((N, h3, W, 2 * 7 * C2), jnp.float32),   # im2col conv3
            pltpu.VMEM((N, n_flat), jnp.float32),              # fc flatten
        ],
        cost_estimate=pl.CostEstimate(flops=flops,
                                      transcendentals=6 * N * 128,
                                      bytes_accessed=bytes_accessed),
    )(*args)

    return {
        "action": out[:, 0:3],       # (N, 3)
        "log_prob": out[:, 3],       # (N,)
        "entropy": out[:, 4],        # (N,)
        "value": out[:, 5:6],        # (N, 1)
    }


# -----------------------------------------------------------------------------
if __name__ == "__main__":
    key = jax.random.PRNGKey(0)
    k_param, k_x, k_u = jax.random.split(key, 3)

    params = init_params(k_param)
    # Input consistent with fc(1024, 200): C3*h3*W = 32*(H-1)*W = 1024 -> H=2, W=32.
    x = jax.random.normal(k_x, (2, 1, 2, 32), jnp.float32)        # NCHW like torch
    prep = prepare_params(params, H=x.shape[2], W=x.shape[3])
    # TODO(synk): torch Bernoulli RNG stream is not reproducible; uniforms come
    # from jax.random and are consumed by the kernel (lanes 0..2 used).
    u = jax.random.uniform(k_u, (x.shape[0], 128), jnp.float32)

    out = actor_critic_forward(prep, x, u)
    out = jax.block_until_ready(out)

    assert out["action"].shape == (2, 3)
    assert out["log_prob"].shape == (2,)
    assert out["entropy"].shape == (2,)
    assert out["value"].shape == (2, 1)
    assert all(bool(jnp.all(jnp.isfinite(v))) for v in out.values())
    assert bool(jnp.all((out["action"] == 0.0) | (out["action"] == 1.0)))
    print("KERNEL_OK")
</pallas_src>

<mosaic_0001>
module attributes {stable_mosaic.version = 11 : i64} {
  func.func @kernel(%arg0: memref<2x2x32x1xf32, #tpu.memory_space<vmem>>, %arg1: memref<2x128xf32, #tpu.memory_space<vmem>>, %arg2: memref<18x16xf32, #tpu.memory_space<vmem>>, %arg3: memref<224x32xf32, #tpu.memory_space<vmem>>, %arg4: memref<448x32xf32, #tpu.memory_space<vmem>>, %arg5: memref<1024x200xf32, #tpu.memory_space<vmem>>, %arg6: memref<200x128xf32, #tpu.memory_space<vmem>>, %arg7: memref<6x32xf32, #tpu.memory_space<vmem>>, %arg8: memref<2x200xf32, #tpu.memory_space<vmem>>, %arg9: memref<2x128xf32, #tpu.memory_space<vmem>>, %arg10: memref<2x3x32x18xf32, #tpu.memory_space<vmem>>, %arg11: memref<2x2x32x224xf32, #tpu.memory_space<vmem>>, %arg12: memref<2x1x32x448xf32, #tpu.memory_space<vmem>>, %arg13: memref<2x1024xf32, #tpu.memory_space<vmem>>) attributes {dimension_semantics = [], scalar_prefetch = 0 : i64, scratch_operands = 4 : i64, tpu.core_type = #tpu.core_type<tc>} {
    %c0 = arith.constant 0 : index
    %c0_0 = arith.constant 0 : index
    %c0_1 = arith.constant 0 : index
    %c0_2 = arith.constant 0 : index
    %0 = vector.load %arg0[%c0, %c0_0, %c0_1, %c0_2] : memref<2x2x32x1xf32, #tpu.memory_space<vmem>>, vector<2x2x32x1xf32>
    %c0_3 = arith.constant 0 : index
    %c0_4 = arith.constant 0 : index
    %1 = vector.load %arg7[%c0_3, %c0_4] : memref<6x32xf32, #tpu.memory_space<vmem>>, vector<1x16xf32>
    %c1 = arith.constant 1 : index
    %c0_5 = arith.constant 0 : index
    %2 = vector.load %arg7[%c1, %c0_5] : memref<6x32xf32, #tpu.memory_space<vmem>>, vector<1x16xf32>
    %cst = arith.constant 0.000000e+00 : f32
    %3 = vector.broadcast %cst : f32 to vector<2x3x32x18xf32>
    %c0_6 = arith.constant 0 : index
    %c0_7 = arith.constant 0 : index
    %c0_8 = arith.constant 0 : index
    %c0_9 = arith.constant 0 : index
    %4 = vector.load %arg10[%c0_6, %c0_7, %c0_8, %c0_9] : memref<2x3x32x18xf32, #tpu.memory_space<vmem>>, vector<2x3x32x18xf32>
    tpu.vector_store %arg10[%c0_6, %c0_7, %c0_8, %c0_9], %3 {strides = array<i32>} : memref<2x3x32x18xf32, #tpu.memory_space<vmem>>, vector<2x3x32x18xf32>,
    %5 = vector.extract_strided_slice %0 {offsets = [0, 0, 0, 0], sizes = [2, 2, 28, 1], strides = [1, 1, 1, 1]} : vector<2x2x32x1xf32> to vector<2x2x28x1xf32>
    %c0_10 = arith.constant 0 : index
    %c1_11 = arith.constant 1 : index
    %c4 = arith.constant 4 : index
    %c0_12 = arith.constant 0 : index
    %6 = vector.load %arg10[%c0_10, %c1_11, %c4, %c0_12] : memref<2x3x32x18xf32, #tpu.memory_space<vmem>>, vector<2x2x28x1xf32>
    tpu.vector_store %arg10[%c0_10, %c1_11, %c4, %c0_12], %5 {strides = array<i32>} : memref<2x3x32x18xf32, #tpu.memory_space<vmem>>, vector<2x2x28x1xf32>,
    %7 = vector.extract_strided_slice %0 {offsets = [0, 0, 0, 0], sizes = [2, 2, 29, 1], strides = [1, 1, 1, 1]} : vector<2x2x32x1xf32> to vector<2x2x29x1xf32>
    %c0_13 = arith.constant 0 : index
    %c1_14 = arith.constant 1 : index
    %c3 = arith.constant 3 : index
    %c1_15 = arith.constant 1 : index
    %8 = vector.load %arg10[%c0_13, %c1_14, %c3, %c1_15] : memref<2x3x32x18xf32, #tpu.memory_space<vmem>>, vector<2x2x29x1xf32>
    tpu.vector_store %arg10[%c0_13, %c1_14, %c3, %c1_15], %7 {strides = array<i32>} : memref<2x3x32x18xf32, #tpu.memory_space<vmem>>, vector<2x2x29x1xf32>,
    %9 = vector.extract_strided_slice %0 {offsets = [0, 0, 0, 0], sizes = [2, 2, 30, 1], strides = [1, 1, 1, 1]} : vector<2x2x32x1xf32> to vector<2x2x30x1xf32>
    %c0_16 = arith.constant 0 : index
    %c1_17 = arith.constant 1 : index
    %c2 = arith.constant 2 : index
    %c2_18 = arith.constant 2 : index
    %10 = vector.load %arg10[%c0_16, %c1_17, %c2, %c2_18] : memref<2x3x32x18xf32, #tpu.memory_space<vmem>>, vector<2x2x30x1xf32>
    tpu.vector_store %arg10[%c0_16, %c1_17, %c2, %c2_18], %9 {strides = array<i32>} : memref<2x3x32x18xf32, #tpu.memory_space<vmem>>, vector<2x2x30x1xf32>,
    %11 = vector.extract_strided_slice %0 {offsets = [0, 0, 0, 0], sizes = [2, 2, 31, 1], strides = [1, 1, 1, 1]} : vector<2x2x32x1xf32> to vector<2x2x31x1xf32>
    %c0_19 = arith.constant 0 : index
    %c1_20 = arith.constant 1 : index
    %c1_21 = arith.constant 1 : index
    %c3_22 = arith.constant 3 : index
    %12 = vector.load %arg10[%c0_19, %c1_20, %c1_21, %c3_22] : memref<2x3x32x18xf32, #tpu.memory_space<vmem>>, vector<2x2x31x1xf32>
    tpu.vector_store %arg10[%c0_19, %c1_20, %c1_21, %c3_22], %11 {strides = array<i32>} : memref<2x3x32x18xf32, #tpu.memory_space<vmem>>, vector<2x2x31x1xf32>,
    %c0_23 = arith.constant 0 : index
    %c1_24 = arith.constant 1 : index
    %c0_25 = arith.constant 0 : index
    %c4_26 = arith.constant 4 : index
    %13 = vector.load %arg10[%c0_23, %c1_24, %c0_25, %c4_26] : memref<2x3x32x18xf32, #tpu.memory_space<vmem>>, vector<2x2x32x1xf32>
    tpu.vector_store %arg10[%c0_23, %c1_24, %c0_25, %c4_26], %0 {strides = array<i32>} : memref<2x3x32x18xf32, #tpu.memory_space<vmem>>, vector<2x2x32x1xf32>,
    %14 = vector.extract_strided_slice %0 {offsets = [0, 0, 1, 0], sizes = [2, 2, 31, 1], strides = [1, 1, 1, 1]} : vector<2x2x32x1xf32> to vector<2x2x31x1xf32>
    %c0_27 = arith.constant 0 : index
    %c1_28 = arith.constant 1 : index
    %c0_29 = arith.constant 0 : index
    %c5 = arith.constant 5 : index
    %15 = vector.load %arg10[%c0_27, %c1_28, %c0_29, %c5] : memref<2x3x32x18xf32, #tpu.memory_space<vmem>>, vector<2x2x31x1xf32>
    tpu.vector_store %arg10[%c0_27, %c1_28, %c0_29, %c5], %14 {strides = array<i32>} : memref<2x3x32x18xf32, #tpu.memory_space<vmem>>, vector<2x2x31x1xf32>,
    %16 = vector.extract_strided_slice %0 {offsets = [0, 0, 2, 0], sizes = [2, 2, 30, 1], strides = [1, 1, 1, 1]} : vector<2x2x32x1xf32> to vector<2x2x30x1xf32>
    %c0_30 = arith.constant 0 : index
    %c1_31 = arith.constant 1 : index
    %c0_32 = arith.constant 0 : index
    %c6 = arith.constant 6 : index
    %17 = vector.load %arg10[%c0_30, %c1_31, %c0_32, %c6] : memref<2x3x32x18xf32, #tpu.memory_space<vmem>>, vector<2x2x30x1xf32>
    tpu.vector_store %arg10[%c0_30, %c1_31, %c0_32, %c6], %16 {strides = array<i32>} : memref<2x3x32x18xf32, #tpu.memory_space<vmem>>, vector<2x2x30x1xf32>,
    %18 = vector.extract_strided_slice %0 {offsets = [0, 0, 3, 0], sizes = [2, 2, 29, 1], strides = [1, 1, 1, 1]} : vector<2x2x32x1xf32> to vector<2x2x29x1xf32>
    %c0_33 = arith.constant 0 : index
    %c1_34 = arith.constant 1 : index
    %c0_35 = arith.constant 0 : index
    %c7 = arith.constant 7 : index
    %19 = vector.load %arg10[%c0_33, %c1_34, %c0_35, %c7] : memref<2x3x32x18xf32, #tpu.memory_space<vmem>>, vector<2x2x29x1xf32>
    tpu.vector_store %arg10[%c0_33, %c1_34, %c0_35, %c7], %18 {strides = array<i32>} : memref<2x3x32x18xf32, #tpu.memory_space<vmem>>, vector<2x2x29x1xf32>,
    %20 = vector.extract_strided_slice %0 {offsets = [0, 0, 4, 0], sizes = [2, 2, 28, 1], strides = [1, 1, 1, 1]} : vector<2x2x32x1xf32> to vector<2x2x28x1xf32>
    %c0_36 = arith.constant 0 : index
    %c1_37 = arith.constant 1 : index
    %c0_38 = arith.constant 0 : index
    %c8 = arith.constant 8 : index
    %21 = vector.load %arg10[%c0_36, %c1_37, %c0_38, %c8] : memref<2x3x32x18xf32, #tpu.memory_space<vmem>>, vector<2x2x28x1xf32>
    tpu.vector_store %arg10[%c0_36, %c1_37, %c0_38, %c8], %20 {strides = array<i32>} : memref<2x3x32x18xf32, #tpu.memory_space<vmem>>, vector<2x2x28x1xf32>,
    %22 = vector.extract_strided_slice %0 {offsets = [0, 0, 0, 0], sizes = [2, 2, 28, 1], strides = [1, 1, 1, 1]} : vector<2x2x32x1xf32> to vector<2x2x28x1xf32>
    %c0_39 = arith.constant 0 : index
    %c0_40 = arith.constant 0 : index
    %c4_41 = arith.constant 4 : index
    %c9 = arith.constant 9 : index
    %23 = vector.load %arg10[%c0_39, %c0_40, %c4_41, %c9] : memref<2x3x32x18xf32, #tpu.memory_space<vmem>>, vector<2x2x28x1xf32>
    tpu.vector_store %arg10[%c0_39, %c0_40, %c4_41, %c9], %22 {strides = array<i32>} : memref<2x3x32x18xf32, #tpu.memory_space<vmem>>, vector<2x2x28x1xf32>,
    %24 = vector.extract_strided_slice %0 {offsets = [0, 0, 0, 0], sizes = [2, 2, 29, 1], strides = [1, 1, 1, 1]} : vector<2x2x32x1xf32> to vector<2x2x29x1xf32>
    %c0_42 = arith.constant 0 : index
    %c0_43 = arith.constant 0 : index
    %c3_44 = arith.constant 3 : index
    %c10 = arith.constant 10 : index
    %25 = vector.load %arg10[%c0_42, %c0_43, %c3_44, %c10] : memref<2x3x32x18xf32, #tpu.memory_space<vmem>>, vector<2x2x29x1xf32>
    tpu.vector_store %arg10[%c0_42, %c0_43, %c3_44, %c10], %24 {strides = array<i32>} : memref<2x3x32x18xf32, #tpu.memory_space<vmem>>, vector<2x2x29x1xf32>,
    %26 = vector.extract_strided_slice %0 {offsets = [0, 0, 0, 0], sizes = [2, 2, 30, 1], strides = [1, 1, 1, 1]} : vector<2x2x32x1xf32> to vector<2x2x30x1xf32>
    %c0_45 = arith.constant 0 : index
    %c0_46 = arith.constant 0 : index
    %c2_47 = arith.constant 2 : index
    %c11 = arith.constant 11 : index
    %27 = vector.load %arg10[%c0_45, %c0_46, %c2_47, %c11] : memref<2x3x32x18xf32, #tpu.memory_space<vmem>>, vector<2x2x30x1xf32>
    tpu.vector_store %arg10[%c0_45, %c0_46, %c2_47, %c11], %26 {strides = array<i32>} : memref<2x3x32x18xf32, #tpu.memory_space<vmem>>, vector<2x2x30x1xf32>,
    %28 = vector.extract_strided_slice %0 {offsets = [0, 0, 0, 0], sizes = [2, 2, 31, 1], strides = [1, 1, 1, 1]} : vector<2x2x32x1xf32> to vector<2x2x31x1xf32>
    %c0_48 = arith.constant 0 : index
    %c0_49 = arith.constant 0 : index
    %c1_50 = arith.constant 1 : index
    %c12 = arith.constant 12 : index
    %29 = vector.load %arg10[%c0_48, %c0_49, %c1_50, %c12] : memref<2x3x32x18xf32, #tpu.memory_space<vmem>>, vector<2x2x31x1xf32>
    tpu.vector_store %arg10[%c0_48, %c0_49, %c1_50, %c12], %28 {strides = array<i32>} : memref<2x3x32x18xf32, #tpu.memory_space<vmem>>, vector<2x2x31x1xf32>,
    %c0_51 = arith.constant 0 : index
    %c0_52 = arith.constant 0 : index
    %c0_53 = arith.constant 0 : index
    %c13 = arith.constant 13 : index
    %30 = vector.load %arg10[%c0_51, %c0_52, %c0_53, %c13] : memref<2x3x32x18xf32, #tpu.memory_space<vmem>>, vector<2x2x32x1xf32>
    tpu.vector_store %arg10[%c0_51, %c0_52, %c0_53, %c13], %0 {strides = array<i32>} : memref<2x3x32x18xf32, #tpu.memory_space<vmem>>, vector<2x2x32x1xf32>,
    %31 = vector.extract_strided_slice %0 {offsets = [0, 0, 1, 0], sizes = [2, 2, 31, 1], strides = [1, 1, 1, 1]} : vector<2x2x32x1xf32> to vector<2x2x31x1xf32>
    %c0_54 = arith.constant 0 : index
    %c0_55 = arith.constant 0 : index
    %c0_56 = arith.constant 0 : index
    %c14 = arith.constant 14 : index
    %32 = vector.load %arg10[%c0_54, %c0_55, %c0_56, %c14] : memref<2x3x32x18xf32, #tpu.memory_space<vmem>>, vector<2x2x31x1xf32>
    tpu.vector_store %arg10[%c0_54, %c0_55, %c0_56, %c14], %31 {strides = array<i32>} : memref<2x3x32x18xf32, #tpu.memory_space<vmem>>, vector<2x2x31x1xf32>,
    %33 = vector.extract_strided_slice %0 {offsets = [0, 0, 2, 0], sizes = [2, 2, 30, 1], strides = [1, 1, 1, 1]} : vector<2x2x32x1xf32> to vector<2x2x30x1xf32>
    %c0_57 = arith.constant 0 : index
    %c0_58 = arith.constant 0 : index
    %c0_59 = arith.constant 0 : index
    %c15 = arith.constant 15 : index
    %34 = vector.load %arg10[%c0_57, %c0_58, %c0_59, %c15] : memref<2x3x32x18xf32, #tpu.memory_space<vmem>>, vector<2x2x30x1xf32>
    tpu.vector_store %arg10[%c0_57, %c0_58, %c0_59, %c15], %33 {strides = array<i32>} : memref<2x3x32x18xf32, #tpu.memory_space<vmem>>, vector<2x2x30x1xf32>,
    %35 = vector.extract_strided_slice %0 {offsets = [0, 0, 3, 0], sizes = [2, 2, 29, 1], strides = [1, 1, 1, 1]} : vector<2x2x32x1xf32> to vector<2x2x29x1xf32>
    %c0_60 = arith.constant 0 : index
    %c0_61 = arith.constant 0 : index
    %c0_62 = arith.constant 0 : index
    %c16 = arith.constant 16 : index
    %36 = vector.load %arg10[%c0_60, %c0_61, %c0_62, %c16] : memref<2x3x32x18xf32, #tpu.memory_space<vmem>>, vector<2x2x29x1xf32>
    tpu.vector_store %arg10[%c0_60, %c0_61, %c0_62, %c16], %35 {strides = array<i32>} : memref<2x3x32x18xf32, #tpu.memory_space<vmem>>, vector<2x2x29x1xf32>,
    %37 = vector.extract_strided_slice %0 {offsets = [0, 0, 4, 0], sizes = [2, 2, 28, 1], strides = [1, 1, 1, 1]} : vector<2x2x32x1xf32> to vector<2x2x28x1xf32>
    %c0_63 = arith.constant 0 : index
    %c0_64 = arith.constant 0 : index
    %c0_65 = arith.constant 0 : index
    %c17 = arith.constant 17 : index
    %38 = vector.load %arg10[%c0_63, %c0_64, %c0_65, %c17] : memref<2x3x32x18xf32, #tpu.memory_space<vmem>>, vector<2x2x28x1xf32>
    tpu.vector_store %arg10[%c0_63, %c0_64, %c0_65, %c17], %37 {strides = array<i32>} : memref<2x3x32x18xf32, #tpu.memory_space<vmem>>, vector<2x2x28x1xf32>,
    %c0_66 = arith.constant 0 : index
    %c0_67 = arith.constant 0 : index
    %c0_68 = arith.constant 0 : index
    %c0_69 = arith.constant 0 : index
    %39 = vector.load %arg10[%c0_66, %c0_67, %c0_68, %c0_69] : memref<2x3x32x18xf32, #tpu.memory_space<vmem>>, vector<2x3x32x18xf32>
    %40 = vector.shape_cast %39 : vector<2x3x32x18xf32> to vector<192x18xf32>
    %c0_70 = arith.constant 0 : index
    %c0_71 = arith.constant 0 : index
    %41 = vector.load %arg2[%c0_70, %c0_71] : memref<18x16xf32, #tpu.memory_space<vmem>>, vector<18x16xf32>
    %cst_72 = arith.constant dense<0.000000e+00> : vector<192x16xf32>
    %42 = tpu.matmul %40, %41, %cst_72 {dimension_numbers = #tpu.dot_dimension_numbers<[1], [0], [0], [1], [0, 0, 1, 1], [], []>} : vector<192x18xf32>, vector<18x16xf32>, vector<192x16xf32> -> vector<192x16xf32>
    %cst_73 = arith.constant dense<0.000000e+00> : vector<16xf32>
    %43 = vector.multi_reduction <add>, %42, %cst_73 [0] : vector<192x16xf32> to vector<16xf32>
    %44 = vector.shape_cast %43 : vector<16xf32> to vector<1x16xf32>
    %cst_74 = arith.constant 1.920000e+02 : f32
    %45 = vector.broadcast %cst_74 : f32 to vector<1x16xf32>
    %46 = arith.divf %44, %45 : vector<1x16xf32>
    %47 = arith.mulf %42, %42 : vector<192x16xf32>
    %cst_75 = arith.constant dense<0.000000e+00> : vector<16xf32>
    %48 = vector.multi_reduction <add>, %47, %cst_75 [0] : vector<192x16xf32> to vector<16xf32>
    %49 = vector.shape_cast %48 : vector<16xf32> to vector<1x16xf32>
    %cst_76 = arith.constant 1.920000e+02 : f32
    %50 = vector.broadcast %cst_76 : f32 to vector<1x16xf32>
    %51 = arith.divf %49, %50 : vector<1x16xf32>
    %52 = arith.mulf %46, %46 : vector<1x16xf32>
    %53 = arith.subf %51, %52 : vector<1x16xf32>
    %54 = vector.broadcast %46 : vector<1x16xf32> to vector<192x16xf32>
    %55 = arith.subf %42, %54 : vector<192x16xf32>
    %cst_77 = arith.constant 9.99999974E-6 : f32
    %56 = vector.broadcast %cst_77 : f32 to vector<1x16xf32>
    %57 = arith.addf %53, %56 : vector<1x16xf32>
    %58 = math.rsqrt %57 : vector<1x16xf32>
    %59 = vector.broadcast %58 : vector<1x16xf32> to vector<192x16xf32>
    %60 = arith.mulf %55, %59 : vector<192x16xf32>
    %61 = vector.broadcast %1 : vector<1x16xf32> to vector<192x16xf32>
    %62 = arith.mulf %60, %61 : vector<192x16xf32>
    %63 = vector.broadcast %2 : vector<1x16xf32> to vector<192x16xf32>
    %64 = arith.addf %62, %63 : vector<192x16xf32>
    %cst_78 = arith.constant 0.000000e+00 : f32
    %65 = vector.broadcast %cst_78 : f32 to vector<192x16xf32>
    %66 = arith.maximumf %64, %65 : vector<192x16xf32>
    %67 = vector.shape_cast %66 : vector<192x16xf32> to vector<2x3x32x16xf32>
    %c2_79 = arith.constant 2 : index
    %c0_80 = arith.constant 0 : index
    %68 = vector.load %arg7[%c2_79, %c0_80] : memref<6x32xf32, #tpu.memory_space<vmem>>, vector<1x32xf32>
    %c3_81 = arith.constant 3 : index
    %c0_82 = arith.constant 0 : index
    %69 = vector.load %arg7[%c3_81, %c0_82] : memref<6x32xf32, #tpu.memory_space<vmem>>, vector<1x32xf32>
    %cst_83 = arith.constant 0.000000e+00 : f32
    %70 = vector.broadcast %cst_83 : f32 to vector<2x2x32x224xf32>
    %c0_84 = arith.constant 0 : index
    %c0_85 = arith.constant 0 : index
    %c0_86 = arith.constant 0 : index
    %c0_87 = arith.constant 0 : index
    %71 = vector.load %arg11[%c0_84, %c0_85, %c0_86, %c0_87] : memref<2x2x32x224xf32, #tpu.memory_space<vmem>>, vector<2x2x32x224xf32>
    tpu.vector_store %arg11[%c0_84, %c0_85, %c0_86, %c0_87], %70 {strides = array<i32>} : memref<2x2x32x224xf32, #tpu.memory_space<vmem>>, vector<2x2x32x224xf32>,
    %72 = vector.extract_strided_slice %67 {offsets = [0, 0, 0, 0], sizes = [2, 2, 29, 16], strides = [1, 1, 1, 1]} : vector<2x3x32x16xf32> to vector<2x2x29x16xf32>
    %c0_88 = arith.constant 0 : index
    %c0_89 = arith.constant 0 : index
    %c3_90 = arith.constant 3 : index
    %c0_91 = arith.constant 0 : index
    %73 = vector.load %arg11[%c0_88, %c0_89, %c3_90, %c0_91] : memref<2x2x32x224xf32, #tpu.memory_space<vmem>>, vector<2x2x29x16xf32>
    tpu.vector_store %arg11[%c0_88, %c0_89, %c3_90, %c0_91], %72 {strides = array<i32>} : memref<2x2x32x224xf32, #tpu.memory_space<vmem>>, vector<2x2x29x16xf32>,
    %74 = vector.extract_strided_slice %67 {offsets = [0, 0, 0, 0], sizes = [2, 2, 30, 16], strides = [1, 1, 1, 1]} : vector<2x3x32x16xf32> to vector<2x2x30x16xf32>
    %c0_92 = arith.constant 0 : index
    %c0_93 = arith.constant 0 : index
    %c2_94 = arith.constant 2 : index
    %c16_95 = arith.constant 16 : index
    %75 = vector.load %arg11[%c0_92, %c0_93, %c2_94, %c16_95] : memref<2x2x32x224xf32, #tpu.memory_space<vmem>>, vector<2x2x30x16xf32>
    tpu.vector_store %arg11[%c0_92, %c0_93, %c2_94, %c16_95], %74 {strides = array<i32>} : memref<2x2x32x224xf32, #tpu.memory_space<vmem>>, vector<2x2x30x16xf32>,
    %76 = vector.extract_strided_slice %67 {offsets = [0, 0, 0, 0], sizes = [2, 2, 31, 16], strides = [1, 1, 1, 1]} : vector<2x3x32x16xf32> to vector<2x2x31x16xf32>
    %c0_96 = arith.constant 0 : index
    %c0_97 = arith.constant 0 : index
    %c1_98 = arith.constant 1 : index
    %c32 = arith.constant 32 : index
    %77 = vector.load %arg11[%c0_96, %c0_97, %c1_98, %c32] : memref<2x2x32x224xf32, #tpu.memory_space<vmem>>, vector<2x2x31x16xf32>
    tpu.vector_store %arg11[%c0_96, %c0_97, %c1_98, %c32], %76 {strides = array<i32>} : memref<2x2x32x224xf32, #tpu.memory_space<vmem>>, vector<2x2x31x16xf32>,
    %78 = vector.extract_strided_slice %67 {offsets = [0, 0, 0, 0], sizes = [2, 2, 32, 16], strides = [1, 1, 1, 1]} : vector<2x3x32x16xf32> to vector<2x2x32x16xf32>
    %c0_99 = arith.constant 0 : index
    %c0_100 = arith.constant 0 : index
    %c0_101 = arith.constant 0 : index
    %c48 = arith.constant 48 : index
    %79 = vector.load %arg11[%c0_99, %c0_100, %c0_101, %c48] : memref<2x2x32x224xf32, #tpu.memory_space<vmem>>, vector<2x2x32x16xf32>
    tpu.vector_store %arg11[%c0_99, %c0_100, %c0_101, %c48], %78 {strides = array<i32>} : memref<2x2x32x224xf32, #tpu.memory_space<vmem>>, vector<2x2x32x16xf32>,
    %80 = vector.extract_strided_slice %67 {offsets = [0, 0, 1, 0], sizes = [2, 2, 31, 16], strides = [1, 1, 1, 1]} : vector<2x3x32x16xf32> to vector<2x2x31x16xf32>
    %c0_102 = arith.constant 0 : index
    %c0_103 = arith.constant 0 : index
    %c0_104 = arith.constant 0 : index
    %c64 = arith.constant 64 : index
    %81 = vector.load %arg11[%c0_102, %c0_103, %c0_104, %c64] : memref<2x2x32x224xf32, #tpu.memory_space<vmem>>, vector<2x2x31x16xf32>
    tpu.vector_store %arg11[%c0_102, %c0_103, %c0_104, %c64], %80 {strides = array<i32>} : memref<2x2x32x224xf32, #tpu.memory_space<vmem>>, vector<2x2x31x16xf32>,
    %82 = vector.extract_strided_slice %67 {offsets = [0, 0, 2, 0], sizes = [2, 2, 30, 16], strides = [1, 1, 1, 1]} : vector<2x3x32x16xf32> to vector<2x2x30x16xf32>
    %c0_105 = arith.constant 0 : index
    %c0_106 = arith.constant 0 : index
    %c0_107 = arith.constant 0 : index
    %c80 = arith.constant 80 : index
    %83 = vector.load %arg11[%c0_105, %c0_106, %c0_107, %c80] : memref<2x2x32x224xf32, #tpu.memory_space<vmem>>, vector<2x2x30x16xf32>
    tpu.vector_store %arg11[%c0_105, %c0_106, %c0_107, %c80], %82 {strides = array<i32>} : memref<2x2x32x224xf32, #tpu.memory_space<vmem>>, vector<2x2x30x16xf32>,
    %84 = vector.extract_strided_slice %67 {offsets = [0, 0, 3, 0], sizes = [2, 2, 29, 16], strides = [1, 1, 1, 1]} : vector<2x3x32x16xf32> to vector<2x2x29x16xf32>
    %c0_108 = arith.constant 0 : index
    %c0_109 = arith.constant 0 : index
    %c0_110 = arith.constant 0 : index
    %c96 = arith.constant 96 : index
    %85 = vector.load %arg11[%c0_108, %c0_109, %c0_110, %c96] : memref<2x2x32x224xf32, #tpu.memory_space<vmem>>, vector<2x2x29x16xf32>
    tpu.vector_store %arg11[%c0_108, %c0_109, %c0_110, %c96], %84 {strides = array<i32>} : memref<2x2x32x224xf32, #tpu.memory_space<vmem>>, vector<2x2x29x16xf32>,
    %86 = vector.extract_strided_slice %67 {offsets = [0, 1, 0, 0], sizes = [2, 2, 29, 16], strides = [1, 1, 1, 1]} : vector<2x3x32x16xf32> to vector<2x2x29x16xf32>
    %c0_111 = arith.constant 0 : index
    %c0_112 = arith.constant 0 : index
    %c3_113 = arith.constant 3 : index
    %c112 = arith.constant 112 : index
    %87 = vector.load %arg11[%c0_111, %c0_112, %c3_113, %c112] : memref<2x2x32x224xf32, #tpu.memory_space<vmem>>, vector<2x2x29x16xf32>
    tpu.vector_store %arg11[%c0_111, %c0_112, %c3_113, %c112], %86 {strides = array<i32>} : memref<2x2x32x224xf32, #tpu.memory_space<vmem>>, vector<2x2x29x16xf32>,
    %88 = vector.extract_strided_slice %67 {offsets = [0, 1, 0, 0], sizes = [2, 2, 30, 16], strides = [1, 1, 1, 1]} : vector<2x3x32x16xf32> to vector<2x2x30x16xf32>
    %c0_114 = arith.constant 0 : index
    %c0_115 = arith.constant 0 : index
    %c2_116 = arith.constant 2 : index
    %c128 = arith.constant 128 : index
    %89 = vector.load %arg11[%c0_114, %c0_115, %c2_116, %c128] : memref<2x2x32x224xf32, #tpu.memory_space<vmem>>, vector<2x2x30x16xf32>
    tpu.vector_store %arg11[%c0_114, %c0_115, %c2_116, %c128], %88 {strides = array<i32>} : memref<2x2x32x224xf32, #tpu.memory_space<vmem>>, vector<2x2x30x16xf32>,
    %90 = vector.extract_strided_slice %67 {offsets = [0, 1, 0, 0], sizes = [2, 2, 31, 16], strides = [1, 1, 1, 1]} : vector<2x3x32x16xf32> to vector<2x2x31x16xf32>
    %c0_117 = arith.constant 0 : index
    %c0_118 = arith.constant 0 : index
    %c1_119 = arith.constant 1 : index
    %c144 = arith.constant 144 : index
    %91 = vector.load %arg11[%c0_117, %c0_118, %c1_119, %c144] : memref<2x2x32x224xf32, #tpu.memory_space<vmem>>, vector<2x2x31x16xf32>
    tpu.vector_store %arg11[%c0_117, %c0_118, %c1_119, %c144], %90 {strides = array<i32>} : memref<2x2x32x224xf32, #tpu.memory_space<vmem>>, vector<2x2x31x16xf32>,
    %92 = vector.extract_strided_slice %67 {offsets = [0, 1, 0, 0], sizes = [2, 2, 32, 16], strides = [1, 1, 1, 1]} : vector<2x3x32x16xf32> to vector<2x2x32x16xf32>
    %c0_120 = arith.constant 0 : index
    %c0_121 = arith.constant 0 : index
    %c0_122 = arith.constant 0 : index
    %c160 = arith.constant 160 : index
    %93 = vector.load %arg11[%c0_120, %c0_121, %c0_122, %c160] : memref<2x2x32x224xf32, #tpu.memory_space<vmem>>, vector<2x2x32x16xf32>
    tpu.vector_store %arg11[%c0_120, %c0_121, %c0_122, %c160], %92 {strides = array<i32>} : memref<2x2x32x224xf32, #tpu.memory_space<vmem>>, vector<2x2x32x16xf32>,
    %94 = vector.extract_strided_slice %67 {offsets = [0, 1, 1, 0], sizes = [2, 2, 31, 16], strides = [1, 1, 1, 1]} : vector<2x3x32x16xf32> to vector<2x2x31x16xf32>
    %c0_123 = arith.constant 0 : index
    %c0_124 = arith.constant 0 : index
    %c0_125 = arith.constant 0 : index
    %c176 = arith.constant 176 : index
    %95 = vector.load %arg11[%c0_123, %c0_124, %c0_125, %c176] : memref<2x2x32x224xf32, #tpu.memory_space<vmem>>, vector<2x2x31x16xf32>
    tpu.vector_store %arg11[%c0_123, %c0_124, %c0_125, %c176], %94 {strides = array<i32>} : memref<2x2x32x224xf32, #tpu.memory_space<vmem>>, vector<2x2x31x16xf32>,
    %96 = vector.extract_strided_slice %67 {offsets = [0, 1, 2, 0], sizes = [2, 2, 30, 16], strides = [1, 1, 1, 1]} : vector<2x3x32x16xf32> to vector<2x2x30x16xf32>
    %c0_126 = arith.constant 0 : index
    %c0_127 = arith.constant 0 : index
    %c0_128 = arith.constant 0 : index
    %c192 = arith.constant 192 : index
    %97 = vector.load %arg11[%c0_126, %c0_127, %c0_128, %c192] : memref<2x2x32x224xf32, #tpu.memory_space<vmem>>, vector<2x2x30x16xf32>
    tpu.vector_store %arg11[%c0_126, %c0_127, %c0_128, %c192], %96 {strides = array<i32>} : memref<2x2x32x224xf32, #tpu.memory_space<vmem>>, vector<2x2x30x16xf32>,
    %98 = vector.extract_strided_slice %67 {offsets = [0, 1, 3, 0], sizes = [2, 2, 29, 16], strides = [1, 1, 1, 1]} : vector<2x3x32x16xf32> to vector<2x2x29x16xf32>
    %c0_129 = arith.constant 0 : index
    %c0_130 = arith.constant 0 : index
    %c0_131 = arith.constant 0 : index
    %c208 = arith.constant 208 : index
    %99 = vector.load %arg11[%c0_129, %c0_130, %c0_131, %c208] : memref<2x2x32x224xf32, #tpu.memory_space<vmem>>, vector<2x2x29x16xf32>
    tpu.vector_store %arg11[%c0_129, %c0_130, %c0_131, %c208], %98 {strides = array<i32>} : memref<2x2x32x224xf32, #tpu.memory_space<vmem>>, vector<2x2x29x16xf32>,
    %c0_132 = arith.constant 0 : index
    %c0_133 = arith.constant 0 : index
    %c0_134 = arith.constant 0 : index
    %c0_135 = arith.constant 0 : index
    %100 = vector.load %arg11[%c0_132, %c0_133, %c0_134, %c0_135] : memref<2x2x32x224xf32, #tpu.memory_space<vmem>>, vector<2x2x32x224xf32>
    %101 = vector.shape_cast %100 : vector<2x2x32x224xf32> to vector<128x224xf32>
    %c0_136 = arith.constant 0 : index
    %c0_137 = arith.constant 0 : index
    %102 = vector.load %arg3[%c0_136, %c0_137] : memref<224x32xf32, #tpu.memory_space<vmem>>, vector<224x32xf32>
    %cst_138 = arith.constant dense<0.000000e+00> : vector<128x32xf32>
    %103 = tpu.matmul %101, %102, %cst_138 {dimension_numbers = #tpu.dot_dimension_numbers<[1], [0], [0], [1], [0, 0, 1, 1], [], []>} : vector<128x224xf32>, vector<224x32xf32>, vector<128x32xf32> -> vector<128x32xf32>
    %cst_139 = arith.constant dense<0.000000e+00> : vector<32xf32>
    %104 = vector.multi_reduction <add>, %103, %cst_139 [0] : vector<128x32xf32> to vector<32xf32>
    %105 = vector.shape_cast %104 : vector<32xf32> to vector<1x32xf32>
    %cst_140 = arith.constant 1.280000e+02 : f32
    %106 = vector.broadcast %cst_140 : f32 to vector<1x32xf32>
    %107 = arith.divf %105, %106 : vector<1x32xf32>
    %108 = arith.mulf %103, %103 : vector<128x32xf32>
    %cst_141 = arith.constant dense<0.000000e+00> : vector<32xf32>
    %109 = vector.multi_reduction <add>, %108, %cst_141 [0] : vector<128x32xf32> to vector<32xf32>
    %110 = vector.shape_cast %109 : vector<32xf32> to vector<1x32xf32>
    %cst_142 = arith.constant 1.280000e+02 : f32
    %111 = vector.broadcast %cst_142 : f32 to vector<1x32xf32>
    %112 = arith.divf %110, %111 : vector<1x32xf32>
    %113 = arith.mulf %107, %107 : vector<1x32xf32>
    %114 = arith.subf %112, %113 : vector<1x32xf32>
    %115 = vector.broadcast %107 : vector<1x32xf32> to vector<128x32xf32>
    %116 = arith.subf %103, %115 : vector<128x32xf32>
    %cst_143 = arith.constant 9.99999974E-6 : f32
    %117 = vector.broadcast %cst_143 : f32 to vector<1x32xf32>
    %118 = arith.addf %114, %117 : vector<1x32xf32>
    %119 = math.rsqrt %118 : vector<1x32xf32>
    %120 = vector.broadcast %119 : vector<1x32xf32> to vector<128x32xf32>
    %121 = arith.mulf %116, %120 : vector<128x32xf32>
    %122 = vector.broadcast %68 : vector<1x32xf32> to vector<128x32xf32>
    %123 = arith.mulf %121, %122 : vector<128x32xf32>
    %124 = vector.broadcast %69 : vector<1x32xf32> to vector<128x32xf32>
    %125 = arith.addf %123, %124 : vector<128x32xf32>
    %cst_144 = arith.constant 0.000000e+00 : f32
    %126 = vector.broadcast %cst_144 : f32 to vector<128x32xf32>
    %127 = arith.maximumf %125, %126 : vector<128x32xf32>
    %128 = vector.shape_cast %127 : vector<128x32xf32> to vector<2x2x32x32xf32>
    %c4_145 = arith.constant 4 : index
    %c0_146 = arith.constant 0 : index
    %129 = vector.load %arg7[%c4_145, %c0_146] : memref<6x32xf32, #tpu.memory_space<vmem>>, vector<1x32xf32>
    %c5_147 = arith.constant 5 : index
    %c0_148 = arith.constant 0 : index
    %130 = vector.load %arg7[%c5_147, %c0_148] : memref<6x32xf32, #tpu.memory_space<vmem>>, vector<1x32xf32>
    %cst_149 = arith.constant 0.000000e+00 : f32
    %131 = vector.broadcast %cst_149 : f32 to vector<2x1x32x448xf32>
    %c0_150 = arith.constant 0 : index
    %c0_151 = arith.constant 0 : index
    %c0_152 = arith.constant 0 : index
    %c0_153 = arith.constant 0 : index
    %132 = vector.load %arg12[%c0_150, %c0_151, %c0_152, %c0_153] : memref<2x1x32x448xf32, #tpu.memory_space<vmem>>, vector<2x1x32x448xf32>
    tpu.vector_store %arg12[%c0_150, %c0_151, %c0_152, %c0_153], %131 {strides = array<i32>} : memref<2x1x32x448xf32, #tpu.memory_space<vmem>>, vector<2x1x32x448xf32>,
    %133 = vector.extract_strided_slice %128 {offsets = [0, 0, 0, 0], sizes = [2, 1, 29, 32], strides = [1, 1, 1, 1]} : vector<2x2x32x32xf32> to vector<2x1x29x32xf32>
    %c0_154 = arith.constant 0 : index
    %c0_155 = arith.constant 0 : index
    %c3_156 = arith.constant 3 : index
    %c0_157 = arith.constant 0 : index
    %134 = vector.load %arg12[%c0_154, %c0_155, %c3_156, %c0_157] : memref<2x1x32x448xf32, #tpu.memory_space<vmem>>, vector<2x1x29x32xf32>
    tpu.vector_store %arg12[%c0_154, %c0_155, %c3_156, %c0_157], %133 {strides = array<i32>} : memref<2x1x32x448xf32, #tpu.memory_space<vmem>>, vector<2x1x29x32xf32>,
    %135 = vector.extract_strided_slice %128 {offsets = [0, 0, 0, 0], sizes = [2, 1, 30, 32], strides = [1, 1, 1, 1]} : vector<2x2x32x32xf32> to vector<2x1x30x32xf32>
    %c0_158 = arith.constant 0 : index
    %c0_159 = arith.constant 0 : index
    %c2_160 = arith.constant 2 : index
    %c32_161 = arith.constant 32 : index
    %136 = vector.load %arg12[%c0_158, %c0_159, %c2_160, %c32_161] : memref<2x1x32x448xf32, #tpu.memory_space<vmem>>, vector<2x1x30x32xf32>
    tpu.vector_store %arg12[%c0_158, %c0_159, %c2_160, %c32_161], %135 {strides = array<i32>} : memref<2x1x32x448xf32, #tpu.memory_space<vmem>>, vector<2x1x30x32xf32>,
    %137 = vector.extract_strided_slice %128 {offsets = [0, 0, 0, 0], sizes = [2, 1, 31, 32], strides = [1, 1, 1, 1]} : vector<2x2x32x32xf32> to vector<2x1x31x32xf32>
    %c0_162 = arith.constant 0 : index
    %c0_163 = arith.constant 0 : index
    %c1_164 = arith.constant 1 : index
    %c64_165 = arith.constant 64 : index
    %138 = vector.load %arg12[%c0_162, %c0_163, %c1_164, %c64_165] : memref<2x1x32x448xf32, #tpu.memory_space<vmem>>, vector<2x1x31x32xf32>
    tpu.vector_store %arg12[%c0_162, %c0_163, %c1_164, %c64_165], %137 {strides = array<i32>} : memref<2x1x32x448xf32, #tpu.memory_space<vmem>>, vector<2x1x31x32xf32>,
    %139 = vector.extract_strided_slice %128 {offsets = [0, 0, 0, 0], sizes = [2, 1, 32, 32], strides = [1, 1, 1, 1]} : vector<2x2x32x32xf32> to vector<2x1x32x32xf32>
    %c0_166 = arith.constant 0 : index
    %c0_167 = arith.constant 0 : index
    %c0_168 = arith.constant 0 : index
    %c96_169 = arith.constant 96 : index
    %140 = vector.load %arg12[%c0_166, %c0_167, %c0_168, %c96_169] : memref<2x1x32x448xf32, #tpu.memory_space<vmem>>, vector<2x1x32x32xf32>
    tpu.vector_store %arg12[%c0_166, %c0_167, %c0_168, %c96_169], %139 {strides = array<i32>} : memref<2x1x32x448xf32, #tpu.memory_space<vmem>>, vector<2x1x32x32xf32>,
    %141 = vector.extract_strided_slice %128 {offsets = [0, 0, 1, 0], sizes = [2, 1, 31, 32], strides = [1, 1, 1, 1]} : vector<2x2x32x32xf32> to vector<2x1x31x32xf32>
    %c0_170 = arith.constant 0 : index
    %c0_171 = arith.constant 0 : index
    %c0_172 = arith.constant 0 : index
    %c128_173 = arith.constant 128 : index
    %142 = vector.load %arg12[%c0_170, %c0_171, %c0_172, %c128_173] : memref<2x1x32x448xf32, #tpu.memory_space<vmem>>, vector<2x1x31x32xf32>
    tpu.vector_store %arg12[%c0_170, %c0_171, %c0_172, %c128_173], %141 {strides = array<i32>} : memref<2x1x32x448xf32, #tpu.memory_space<vmem>>, vector<2x1x31x32xf32>,
    %143 = vector.extract_strided_slice %128 {offsets = [0, 0, 2, 0], sizes = [2, 1, 30, 32], strides = [1, 1, 1, 1]} : vector<2x2x32x32xf32> to vector<2x1x30x32xf32>
    %c0_174 = arith.constant 0 : index
    %c0_175 = arith.constant 0 : index
    %c0_176 = arith.constant 0 : index
    %c160_177 = arith.constant 160 : index
    %144 = vector.load %arg12[%c0_174, %c0_175, %c0_176, %c160_177] : memref<2x1x32x448xf32, #tpu.memory_space<vmem>>, vector<2x1x30x32xf32>
    tpu.vector_store %arg12[%c0_174, %c0_175, %c0_176, %c160_177], %143 {strides = array<i32>} : memref<2x1x32x448xf32, #tpu.memory_space<vmem>>, vector<2x1x30x32xf32>,
    %145 = vector.extract_strided_slice %128 {offsets = [0, 0, 3, 0], sizes = [2, 1, 29, 32], strides = [1, 1, 1, 1]} : vector<2x2x32x32xf32> to vector<2x1x29x32xf32>
    %c0_178 = arith.constant 0 : index
    %c0_179 = arith.constant 0 : index
    %c0_180 = arith.constant 0 : index
    %c192_181 = arith.constant 192 : index
    %146 = vector.load %arg12[%c0_178, %c0_179, %c0_180, %c192_181] : memref<2x1x32x448xf32, #tpu.memory_space<vmem>>, vector<2x1x29x32xf32>
    tpu.vector_store %arg12[%c0_178, %c0_179, %c0_180, %c192_181], %145 {strides = array<i32>} : memref<2x1x32x448xf32, #tpu.memory_space<vmem>>, vector<2x1x29x32xf32>,
    %147 = vector.extract_strided_slice %128 {offsets = [0, 1, 0, 0], sizes = [2, 1, 29, 32], strides = [1, 1, 1, 1]} : vector<2x2x32x32xf32> to vector<2x1x29x32xf32>
    %c0_182 = arith.constant 0 : index
    %c0_183 = arith.constant 0 : index
    %c3_184 = arith.constant 3 : index
    %c224 = arith.constant 224 : index
    %148 = vector.load %arg12[%c0_182, %c0_183, %c3_184, %c224] : memref<2x1x32x448xf32, #tpu.memory_space<vmem>>, vector<2x1x29x32xf32>
    tpu.vector_store %arg12[%c0_182, %c0_183, %c3_184, %c224], %147 {strides = array<i32>} : memref<2x1x32x448xf32, #tpu.memory_space<vmem>>, vector<2x1x29x32xf32>,
    %149 = vector.extract_strided_slice %128 {offsets = [0, 1, 0, 0], sizes = [2, 1, 30, 32], strides = [1, 1, 1, 1]} : vector<2x2x32x32xf32> to vector<2x1x30x32xf32>
    %c0_185 = arith.constant 0 : index
    %c0_186 = arith.constant 0 : index
    %c2_187 = arith.constant 2 : index
    %c256 = arith.constant 256 : index
    %150 = vector.load %arg12[%c0_185, %c0_186, %c2_187, %c256] : memref<2x1x32x448xf32, #tpu.memory_space<vmem>>, vector<2x1x30x32xf32>
    tpu.vector_store %arg12[%c0_185, %c0_186, %c2_187, %c256], %149 {strides = array<i32>} : memref<2x1x32x448xf32, #tpu.memory_space<vmem>>, vector<2x1x30x32xf32>,
    %151 = vector.extract_strided_slice %128 {offsets = [0, 1, 0, 0], sizes = [2, 1, 31, 32], strides = [1, 1, 1, 1]} : vector<2x2x32x32xf32> to vector<2x1x31x32xf32>
    %c0_188 = arith.constant 0 : index
    %c0_189 = arith.constant 0 : index
    %c1_190 = arith.constant 1 : index
    %c288 = arith.constant 288 : index
    %152 = vector.load %arg12[%c0_188, %c0_189, %c1_190, %c288] : memref<2x1x32x448xf32, #tpu.memory_space<vmem>>, vector<2x1x31x32xf32>
    tpu.vector_store %arg12[%c0_188, %c0_189, %c1_190, %c288], %151 {strides = array<i32>} : memref<2x1x32x448xf32, #tpu.memory_space<vmem>>, vector<2x1x31x32xf32>,
    %153 = vector.extract_strided_slice %128 {offsets = [0, 1, 0, 0], sizes = [2, 1, 32, 32], strides = [1, 1, 1, 1]} : vector<2x2x32x32xf32> to vector<2x1x32x32xf32>
    %c0_191 = arith.constant 0 : index
    %c0_192 = arith.constant 0 : index
    %c0_193 = arith.constant 0 : index
    %c320 = arith.constant 320 : index
    %154 = vector.load %arg12[%c0_191, %c0_192, %c0_193, %c320] : memref<2x1x32x448xf32, #tpu.memory_space<vmem>>, vector<2x1x32x32xf32>
    tpu.vector_store %arg12[%c0_191, %c0_192, %c0_193, %c320], %153 {strides = array<i32>} : memref<2x1x32x448xf32, #tpu.memory_space<vmem>>, vector<2x1x32x32xf32>,
    %155 = vector.extract_strided_slice %128 {offsets = [0, 1, 1, 0], sizes = [2, 1, 31, 32], strides = [1, 1, 1, 1]} : vector<2x2x32x32xf32> to vector<2x1x31x32xf32>
    %c0_194 = arith.constant 0 : index
    %c0_195 = arith.constant 0 : index
    %c0_196 = arith.constant 0 : index
    %c352 = arith.constant 352 : index
    %156 = vector.load %arg12[%c0_194, %c0_195, %c0_196, %c352] : memref<2x1x32x448xf32, #tpu.memory_space<vmem>>, vector<2x1x31x32xf32>
    tpu.vector_store %arg12[%c0_194, %c0_195, %c0_196, %c352], %155 {strides = array<i32>} : memref<2x1x32x448xf32, #tpu.memory_space<vmem>>, vector<2x1x31x32xf32>,
    %157 = vector.extract_strided_slice %128 {offsets = [0, 1, 2, 0], sizes = [2, 1, 30, 32], strides = [1, 1, 1, 1]} : vector<2x2x32x32xf32> to vector<2x1x30x32xf32>
    %c0_197 = arith.constant 0 : index
    %c0_198 = arith.constant 0 : index
    %c0_199 = arith.constant 0 : index
    %c384 = arith.constant 384 : index
    %158 = vector.load %arg12[%c0_197, %c0_198, %c0_199, %c384] : memref<2x1x32x448xf32, #tpu.memory_space<vmem>>, vector<2x1x30x32xf32>
    tpu.vector_store %arg12[%c0_197, %c0_198, %c0_199, %c384], %157 {strides = array<i32>} : memref<2x1x32x448xf32, #tpu.memory_space<vmem>>, vector<2x1x30x32xf32>,
    %159 = vector.extract_strided_slice %128 {offsets = [0, 1, 3, 0], sizes = [2, 1, 29, 32], strides = [1, 1, 1, 1]} : vector<2x2x32x32xf32> to vector<2x1x29x32xf32>
    %c0_200 = arith.constant 0 : index
    %c0_201 = arith.constant 0 : index
    %c0_202 = arith.constant 0 : index
    %c416 = arith.constant 416 : index
    %160 = vector.load %arg12[%c0_200, %c0_201, %c0_202, %c416] : memref<2x1x32x448xf32, #tpu.memory_space<vmem>>, vector<2x1x29x32xf32>
    tpu.vector_store %arg12[%c0_200, %c0_201, %c0_202, %c416], %159 {strides = array<i32>} : memref<2x1x32x448xf32, #tpu.memory_space<vmem>>, vector<2x1x29x32xf32>,
    %c0_203 = arith.constant 0 : index
    %c0_204 = arith.constant 0 : index
    %c0_205 = arith.constant 0 : index
    %c0_206 = arith.constant 0 : index
    %161 = vector.load %arg12[%c0_203, %c0_204, %c0_205, %c0_206] : memref<2x1x32x448xf32, #tpu.memory_space<vmem>>, vector<2x1x32x448xf32>
    %162 = vector.shape_cast %161 : vector<2x1x32x448xf32> to vector<64x448xf32>
    %c0_207 = arith.constant 0 : index
    %c0_208 = arith.constant 0 : index
    %163 = vector.load %arg4[%c0_207, %c0_208] : memref<448x32xf32, #tpu.memory_space<vmem>>, vector<448x32xf32>
    %cst_209 = arith.constant dense<0.000000e+00> : vector<64x32xf32>
    %164 = tpu.matmul %162, %163, %cst_209 {dimension_numbers = #tpu.dot_dimension_numbers<[1], [0], [0], [1], [0, 0, 1, 1], [], []>} : vector<64x448xf32>, vector<448x32xf32>, vector<64x32xf32> -> vector<64x32xf32>
    %cst_210 = arith.constant dense<0.000000e+00> : vector<32xf32>
    %165 = vector.multi_reduction <add>, %164, %cst_210 [0] : vector<64x32xf32> to vector<32xf32>
    %166 = vector.shape_cast %165 : vector<32xf32> to vector<1x32xf32>
    %cst_211 = arith.constant 6.400000e+01 : f32
    %167 = vector.broadcast %cst_211 : f32 to vector<1x32xf32>
    %168 = arith.divf %166, %167 : vector<1x32xf32>
    %169 = arith.mulf %164, %164 : vector<64x32xf32>
    %cst_212 = arith.constant dense<0.000000e+00> : vector<32xf32>
    %170 = vector.multi_reduction <add>, %169, %cst_212 [0] : vector<64x32xf32> to vector<32xf32>
    %171 = vector.shape_cast %170 : vector<32xf32> to vector<1x32xf32>
    %cst_213 = arith.constant 6.400000e+01 : f32
    %172 = vector.broadcast %cst_213 : f32 to vector<1x32xf32>
    %173 = arith.divf %171, %172 : vector<1x32xf32>
    %174 = arith.mulf %168, %168 : vector<1x32xf32>
    %175 = arith.subf %173, %174 : vector<1x32xf32>
    %176 = vector.broadcast %168 : vector<1x32xf32> to vector<64x32xf32>
    %177 = arith.subf %164, %176 : vector<64x32xf32>
    %cst_214 = arith.constant 9.99999974E-6 : f32
    %178 = vector.broadcast %cst_214 : f32 to vector<1x32xf32>
    %179 = arith.addf %175, %178 : vector<1x32xf32>
    %180 = math.rsqrt %179 : vector<1x32xf32>
    %181 = vector.broadcast %180 : vector<1x32xf32> to vector<64x32xf32>
    %182 = arith.mulf %177, %181 : vector<64x32xf32>
    %183 = vector.broadcast %129 : vector<1x32xf32> to vector<64x32xf32>
    %184 = arith.mulf %182, %183 : vector<64x32xf32>
    %185 = vector.broadcast %130 : vector<1x32xf32> to vector<64x32xf32>
    %186 = arith.addf %184, %185 : vector<64x32xf32>
    %cst_215 = arith.constant 0.000000e+00 : f32
    %187 = vector.broadcast %cst_215 : f32 to vector<64x32xf32>
    %188 = arith.maximumf %186, %187 : vector<64x32xf32>
    %189 = vector.shape_cast %188 : vector<64x32xf32> to vector<2x32x32xf32>
    %190 = vector.extract_strided_slice %189 {offsets = [0, 0, 0], sizes = [2, 1, 32], strides = [1, 1, 1]} : vector<2x32x32xf32> to vector<2x1x32xf32>
    %191 = vector.shape_cast %190 : vector<2x1x32xf32> to vector<2x32xf32>
    %c0_216 = arith.constant 0 : index
    %c0_217 = arith.constant 0 : index
    %192 = vector.load %arg13[%c0_216, %c0_217] : memref<2x1024xf32, #tpu.memory_space<vmem>>, vector<2x32xf32>
    tpu.vector_store %arg13[%c0_216, %c0_217], %191 {strides = array<i32>} : memref<2x1024xf32, #tpu.memory_space<vmem>>, vector<2x32xf32>,
    %193 = vector.extract_strided_slice %189 {offsets = [0, 1, 0], sizes = [2, 1, 32], strides = [1, 1, 1]} : vector<2x32x32xf32> to vector<2x1x32xf32>
    %194 = vector.shape_cast %193 : vector<2x1x32xf32> to vector<2x32xf32>
    %c0_218 = arith.constant 0 : index
    %c32_219 = arith.constant 32 : index
    %195 = vector.load %arg13[%c0_218, %c32_219] : memref<2x1024xf32, #tpu.memory_space<vmem>>, vector<2x32xf32>
    tpu.vector_store %arg13[%c0_218, %c32_219], %194 {strides = array<i32>} : memref<2x1024xf32, #tpu.memory_space<vmem>>, vector<2x32xf32>,
    %196 = vector.extract_strided_slice %189 {offsets = [0, 2, 0], sizes = [2, 1, 32], strides = [1, 1, 1]} : vector<2x32x32xf32> to vector<2x1x32xf32>
    %197 = vector.shape_cast %196 : vector<2x1x32xf32> to vector<2x32xf32>
    %c0_220 = arith.constant 0 : index
    %c64_221 = arith.constant 64 : index
    %198 = vector.load %arg13[%c0_220, %c64_221] : memref<2x1024xf32, #tpu.memory_space<vmem>>, vector<2x32xf32>
    tpu.vector_store %arg13[%c0_220, %c64_221], %197 {strides = array<i32>} : memref<2x1024xf32, #tpu.memory_space<vmem>>, vector<2x32xf32>,
    %199 = vector.extract_strided_slice %189 {offsets = [0, 3, 0], sizes = [2, 1, 32], strides = [1, 1, 1]} : vector<2x32x32xf32> to vector<2x1x32xf32>
    %200 = vector.shape_cast %199 : vector<2x1x32xf32> to vector<2x32xf32>
    %c0_222 = arith.constant 0 : index
    %c96_223 = arith.constant 96 : index
    %201 = vector.load %arg13[%c0_222, %c96_223] : memref<2x1024xf32, #tpu.memory_space<vmem>>, vector<2x32xf32>
    tpu.vector_store %arg13[%c0_222, %c96_223], %200 {strides = array<i32>} : memref<2x1024xf32, #tpu.memory_space<vmem>>, vector<2x32xf32>,
    %202 = vector.extract_strided_slice %189 {offsets = [0, 4, 0], sizes = [2, 1, 32], strides = [1, 1, 1]} : vector<2x32x32xf32> to vector<2x1x32xf32>
    %203 = vector.shape_cast %202 : vector<2x1x32xf32> to vector<2x32xf32>
    %c0_224 = arith.constant 0 : index
    %c128_225 = arith.constant 128 : index
    %204 = vector.load %arg13[%c0_224, %c128_225] : memref<2x1024xf32, #tpu.memory_space<vmem>>, vector<2x32xf32>
    tpu.vector_store %arg13[%c0_224, %c128_225], %203 {strides = array<i32>} : memref<2x1024xf32, #tpu.memory_space<vmem>>, vector<2x32xf32>,
    %205 = vector.extract_strided_slice %189 {offsets = [0, 5, 0], sizes = [2, 1, 32], strides = [1, 1, 1]} : vector<2x32x32xf32> to vector<2x1x32xf32>
    %206 = vector.shape_cast %205 : vector<2x1x32xf32> to vector<2x32xf32>
    %c0_226 = arith.constant 0 : index
    %c160_227 = arith.constant 160 : index
    %207 = vector.load %arg13[%c0_226, %c160_227] : memref<2x1024xf32, #tpu.memory_space<vmem>>, vector<2x32xf32>
    tpu.vector_store %arg13[%c0_226, %c160_227], %206 {strides = array<i32>} : memref<2x1024xf32, #tpu.memory_space<vmem>>, vector<2x32xf32>,
    %208 = vector.extract_strided_slice %189 {offsets = [0, 6, 0], sizes = [2, 1, 32], strides = [1, 1, 1]} : vector<2x32x32xf32> to vector<2x1x32xf32>
    %209 = vector.shape_cast %208 : vector<2x1x32xf32> to vector<2x32xf32>
    %c0_228 = arith.constant 0 : index
    %c192_229 = arith.constant 192 : index
    %210 = vector.load %arg13[%c0_228, %c192_229] : memref<2x1024xf32, #tpu.memory_space<vmem>>, vector<2x32xf32>
    tpu.vector_store %arg13[%c0_228, %c192_229], %209 {strides = array<i32>} : memref<2x1024xf32, #tpu.memory_space<vmem>>, vector<2x32xf32>,
    %211 = vector.extract_strided_slice %189 {offsets = [0, 7, 0], sizes = [2, 1, 32], strides = [1, 1, 1]} : vector<2x32x32xf32> to vector<2x1x32xf32>
    %212 = vector.shape_cast %211 : vector<2x1x32xf32> to vector<2x32xf32>
    %c0_230 = arith.constant 0 : index
    %c224_231 = arith.constant 224 : index
    %213 = vector.load %arg13[%c0_230, %c224_231] : memref<2x1024xf32, #tpu.memory_space<vmem>>, vector<2x32xf32>
    tpu.vector_store %arg13[%c0_230, %c224_231], %212 {strides = array<i32>} : memref<2x1024xf32, #tpu.memory_space<vmem>>, vector<2x32xf32>,
    %214 = vector.extract_strided_slice %189 {offsets = [0, 8, 0], sizes = [2, 1, 32], strides = [1, 1, 1]} : vector<2x32x32xf32> to vector<2x1x32xf32>
    %215 = vector.shape_cast %214 : vector<2x1x32xf32> to vector<2x32xf32>
    %c0_232 = arith.constant 0 : index
    %c256_233 = arith.constant 256 : index
    %216 = vector.load %arg13[%c0_232, %c256_233] : memref<2x1024xf32, #tpu.memory_space<vmem>>, vector<2x32xf32>
    tpu.vector_store %arg13[%c0_232, %c256_233], %215 {strides = array<i32>} : memref<2x1024xf32, #tpu.memory_space<vmem>>, vector<2x32xf32>,
    %217 = vector.extract_strided_slice %189 {offsets = [0, 9, 0], sizes = [2, 1, 32], strides = [1, 1, 1]} : vector<2x32x32xf32> to vector<2x1x32xf32>
    %218 = vector.shape_cast %217 : vector<2x1x32xf32> to vector<2x32xf32>
    %c0_234 = arith.constant 0 : index
    %c288_235 = arith.constant 288 : index
    %219 = vector.load %arg13[%c0_234, %c288_235] : memref<2x1024xf32, #tpu.memory_space<vmem>>, vector<2x32xf32>
    tpu.vector_store %arg13[%c0_234, %c288_235], %218 {strides = array<i32>} : memref<2x1024xf32, #tpu.memory_space<vmem>>, vector<2x32xf32>,
    %220 = vector.extract_strided_slice %189 {offsets = [0, 10, 0], sizes = [2, 1, 32], strides = [1, 1, 1]} : vector<2x32x32xf32> to vector<2x1x32xf32>
    %221 = vector.shape_cast %220 : vector<2x1x32xf32> to vector<2x32xf32>
    %c0_236 = arith.constant 0 : index
    %c320_237 = arith.constant 320 : index
    %222 = vector.load %arg13[%c0_236, %c320_237] : memref<2x1024xf32, #tpu.memory_space<vmem>>, vector<2x32xf32>
    tpu.vector_store %arg13[%c0_236, %c320_237], %221 {strides = array<i32>} : memref<2x1024xf32, #tpu.memory_space<vmem>>, vector<2x32xf32>,
    %223 = vector.extract_strided_slice %189 {offsets = [0, 11, 0], sizes = [2, 1, 32], strides = [1, 1, 1]} : vector<2x32x32xf32> to vector<2x1x32xf32>
    %224 = vector.shape_cast %223 : vector<2x1x32xf32> to vector<2x32xf32>
    %c0_238 = arith.constant 0 : index
    %c352_239 = arith.constant 352 : index
    %225 = vector.load %arg13[%c0_238, %c352_239] : memref<2x1024xf32, #tpu.memory_space<vmem>>, vector<2x32xf32>
    tpu.vector_store %arg13[%c0_238, %c352_239], %224 {strides = array<i32>} : memref<2x1024xf32, #tpu.memory_space<vmem>>, vector<2x32xf32>,
    %226 = vector.extract_strided_slice %189 {offsets = [0, 12, 0], sizes = [2, 1, 32], strides = [1, 1, 1]} : vector<2x32x32xf32> to vector<2x1x32xf32>
    %227 = vector.shape_cast %226 : vector<2x1x32xf32> to vector<2x32xf32>
    %c0_240 = arith.constant 0 : index
    %c384_241 = arith.constant 384 : index
    %228 = vector.load %arg13[%c0_240, %c384_241] : memref<2x1024xf32, #tpu.memory_space<vmem>>, vector<2x32xf32>
    tpu.vector_store %arg13[%c0_240, %c384_241], %227 {strides = array<i32>} : memref<2x1024xf32, #tpu.memory_space<vmem>>, vector<2x32xf32>,
    %229 = vector.extract_strided_slice %189 {offsets = [0, 13, 0], sizes = [2, 1, 32], strides = [1, 1, 1]} : vector<2x32x32xf32> to vector<2x1x32xf32>
    %230 = vector.shape_cast %229 : vector<2x1x32xf32> to vector<2x32xf32>
    %c0_242 = arith.constant 0 : index
    %c416_243 = arith.constant 416 : index
    %231 = vector.load %arg13[%c0_242, %c416_243] : memref<2x1024xf32, #tpu.memory_space<vmem>>, vector<2x32xf32>
    tpu.vector_store %arg13[%c0_242, %c416_243], %230 {strides = array<i32>} : memref<2x1024xf32, #tpu.memory_space<vmem>>, vector<2x32xf32>,
    %232 = vector.extract_strided_slice %189 {offsets = [0, 14, 0], sizes = [2, 1, 32], strides = [1, 1, 1]} : vector<2x32x32xf32> to vector<2x1x32xf32>
    %233 = vector.shape_cast %232 : vector<2x1x32xf32> to vector<2x32xf32>
    %c0_244 = arith.constant 0 : index
    %c448 = arith.constant 448 : index
    %234 = vector.load %arg13[%c0_244, %c448] : memref<2x1024xf32, #tpu.memory_space<vmem>>, vector<2x32xf32>
    tpu.vector_store %arg13[%c0_244, %c448], %233 {strides = array<i32>} : memref<2x1024xf32, #tpu.memory_space<vmem>>, vector<2x32xf32>,
    %235 = vector.extract_strided_slice %189 {offsets = [0, 15, 0], sizes = [2, 1, 32], strides = [1, 1, 1]} : vector<2x32x32xf32> to vector<2x1x32xf32>
    %236 = vector.shape_cast %235 : vector<2x1x32xf32> to vector<2x32xf32>
    %c0_245 = arith.constant 0 : index
    %c480 = arith.constant 480 : index
    %237 = vector.load %arg13[%c0_245, %c480] : memref<2x1024xf32, #tpu.memory_space<vmem>>, vector<2x32xf32>
    tpu.vector_store %arg13[%c0_245, %c480], %236 {strides = array<i32>} : memref<2x1024xf32, #tpu.memory_space<vmem>>, vector<2x32xf32>,
    %238 = vector.extract_strided_slice %189 {offsets = [0, 16, 0], sizes = [2, 1, 32], strides = [1, 1, 1]} : vector<2x32x32xf32> to vector<2x1x32xf32>
    %239 = vector.shape_cast %238 : vector<2x1x32xf32> to vector<2x32xf32>
    %c0_246 = arith.constant 0 : index
    %c512 = arith.constant 512 : index
    %240 = vector.load %arg13[%c0_246, %c512] : memref<2x1024xf32, #tpu.memory_space<vmem>>, vector<2x32xf32>
    tpu.vector_store %arg13[%c0_246, %c512], %239 {strides = array<i32>} : memref<2x1024xf32, #tpu.memory_space<vmem>>, vector<2x32xf32>,
    %241 = vector.extract_strided_slice %189 {offsets = [0, 17, 0], sizes = [2, 1, 32], strides = [1, 1, 1]} : vector<2x32x32xf32> to vector<2x1x32xf32>
    %242 = vector.shape_cast %241 : vector<2x1x32xf32> to vector<2x32xf32>
    %c0_247 = arith.constant 0 : index
    %c544 = arith.constant 544 : index
    %243 = vector.load %arg13[%c0_247, %c544] : memref<2x1024xf32, #tpu.memory_space<vmem>>, vector<2x32xf32>
    tpu.vector_store %arg13[%c0_247, %c544], %242 {strides = array<i32>} : memref<2x1024xf32, #tpu.memory_space<vmem>>, vector<2x32xf32>,
    %244 = vector.extract_strided_slice %189 {offsets = [0, 18, 0], sizes = [2, 1, 32], strides = [1, 1, 1]} : vector<2x32x32xf32> to vector<2x1x32xf32>
    %245 = vector.shape_cast %244 : vector<2x1x32xf32> to vector<2x32xf32>
    %c0_248 = arith.constant 0 : index
    %c576 = arith.constant 576 : index
    %246 = vector.load %arg13[%c0_248, %c576] : memref<2x1024xf32, #tpu.memory_space<vmem>>, vector<2x32xf32>
    tpu.vector_store %arg13[%c0_248, %c576], %245 {strides = array<i32>} : memref<2x1024xf32, #tpu.memory_space<vmem>>, vector<2x32xf32>,
    %247 = vector.extract_strided_slice %189 {offsets = [0, 19, 0], sizes = [2, 1, 32], strides = [1, 1, 1]} : vector<2x32x32xf32> to vector<2x1x32xf32>
    %248 = vector.shape_cast %247 : vector<2x1x32xf32> to vector<2x32xf32>
    %c0_249 = arith.constant 0 : index
    %c608 = arith.constant 608 : index
    %249 = vector.load %arg13[%c0_249, %c608] : memref<2x1024xf32, #tpu.memory_space<vmem>>, vector<2x32xf32>
    tpu.vector_store %arg13[%c0_249, %c608], %248 {strides = array<i32>} : memref<2x1024xf32, #tpu.memory_space<vmem>>, vector<2x32xf32>,
    %250 = vector.extract_strided_slice %189 {offsets = [0, 20, 0], sizes = [2, 1, 32], strides = [1, 1, 1]} : vector<2x32x32xf32> to vector<2x1x32xf32>
    %251 = vector.shape_cast %250 : vector<2x1x32xf32> to vector<2x32xf32>
    %c0_250 = arith.constant 0 : index
    %c640 = arith.constant 640 : index
    %252 = vector.load %arg13[%c0_250, %c640] : memref<2x1024xf32, #tpu.memory_space<vmem>>, vector<2x32xf32>
    tpu.vector_store %arg13[%c0_250, %c640], %251 {strides = array<i32>} : memref<2x1024xf32, #tpu.memory_space<vmem>>, vector<2x32xf32>,
    %253 = vector.extract_strided_slice %189 {offsets = [0, 21, 0], sizes = [2, 1, 32], strides = [1, 1, 1]} : vector<2x32x32xf32> to vector<2x1x32xf32>
    %254 = vector.shape_cast %253 : vector<2x1x32xf32> to vector<2x32xf32>
    %c0_251 = arith.constant 0 : index
    %c672 = arith.constant 672 : index
    %255 = vector.load %arg13[%c0_251, %c672] : memref<2x1024xf32, #tpu.memory_space<vmem>>, vector<2x32xf32>
    tpu.vector_store %arg13[%c0_251, %c672], %254 {strides = array<i32>} : memref<2x1024xf32, #tpu.memory_space<vmem>>, vector<2x32xf32>,
    %256 = vector.extract_strided_slice %189 {offsets = [0, 22, 0], sizes = [2, 1, 32], strides = [1, 1, 1]} : vector<2x32x32xf32> to vector<2x1x32xf32>
    %257 = vector.shape_cast %256 : vector<2x1x32xf32> to vector<2x32xf32>
    %c0_252 = arith.constant 0 : index
    %c704 = arith.constant 704 : index
    %258 = vector.load %arg13[%c0_252, %c704] : memref<2x1024xf32, #tpu.memory_space<vmem>>, vector<2x32xf32>
    tpu.vector_store %arg13[%c0_252, %c704], %257 {strides = array<i32>} : memref<2x1024xf32, #tpu.memory_space<vmem>>, vector<2x32xf32>,
    %259 = vector.extract_strided_slice %189 {offsets = [0, 23, 0], sizes = [2, 1, 32], strides = [1, 1, 1]} : vector<2x32x32xf32> to vector<2x1x32xf32>
    %260 = vector.shape_cast %259 : vector<2x1x32xf32> to vector<2x32xf32>
    %c0_253 = arith.constant 0 : index
    %c736 = arith.constant 736 : index
    %261 = vector.load %arg13[%c0_253, %c736] : memref<2x1024xf32, #tpu.memory_space<vmem>>, vector<2x32xf32>
    tpu.vector_store %arg13[%c0_253, %c736], %260 {strides = array<i32>} : memref<2x1024xf32, #tpu.memory_space<vmem>>, vector<2x32xf32>,
    %262 = vector.extract_strided_slice %189 {offsets = [0, 24, 0], sizes = [2, 1, 32], strides = [1, 1, 1]} : vector<2x32x32xf32> to vector<2x1x32xf32>
    %263 = vector.shape_cast %262 : vector<2x1x32xf32> to vector<2x32xf32>
    %c0_254 = arith.constant 0 : index
    %c768 = arith.constant 768 : index
    %264 = vector.load %arg13[%c0_254, %c768] : memref<2x1024xf32, #tpu.memory_space<vmem>>, vector<2x32xf32>
    tpu.vector_store %arg13[%c0_254, %c768], %263 {strides = array<i32>} : memref<2x1024xf32, #tpu.memory_space<vmem>>, vector<2x32xf32>,
    %265 = vector.extract_strided_slice %189 {offsets = [0, 25, 0], sizes = [2, 1, 32], strides = [1, 1, 1]} : vector<2x32x32xf32> to vector<2x1x32xf32>
    %266 = vector.shape_cast %265 : vector<2x1x32xf32> to vector<2x32xf32>
    %c0_255 = arith.constant 0 : index
    %c800 = arith.constant 800 : index
    %267 = vector.load %arg13[%c0_255, %c800] : memref<2x1024xf32, #tpu.memory_space<vmem>>, vector<2x32xf32>
    tpu.vector_store %arg13[%c0_255, %c800], %266 {strides = array<i32>} : memref<2x1024xf32, #tpu.memory_space<vmem>>, vector<2x32xf32>,
    %268 = vector.extract_strided_slice %189 {offsets = [0, 26, 0], sizes = [2, 1, 32], strides = [1, 1, 1]} : vector<2x32x32xf32> to vector<2x1x32xf32>
    %269 = vector.shape_cast %268 : vector<2x1x32xf32> to vector<2x32xf32>
    %c0_256 = arith.constant 0 : index
    %c832 = arith.constant 832 : index
    %270 = vector.load %arg13[%c0_256, %c832] : memref<2x1024xf32, #tpu.memory_space<vmem>>, vector<2x32xf32>
    tpu.vector_store %arg13[%c0_256, %c832], %269 {strides = array<i32>} : memref<2x1024xf32, #tpu.memory_space<vmem>>, vector<2x32xf32>,
    %271 = vector.extract_strided_slice %189 {offsets = [0, 27, 0], sizes = [2, 1, 32], strides = [1, 1, 1]} : vector<2x32x32xf32> to vector<2x1x32xf32>
    %272 = vector.shape_cast %271 : vector<2x1x32xf32> to vector<2x32xf32>
    %c0_257 = arith.constant 0 : index
    %c864 = arith.constant 864 : index
    %273 = vector.load %arg13[%c0_257, %c864] : memref<2x1024xf32, #tpu.memory_space<vmem>>, vector<2x32xf32>
    tpu.vector_store %arg13[%c0_257, %c864], %272 {strides = array<i32>} : memref<2x1024xf32, #tpu.memory_space<vmem>>, vector<2x32xf32>,
    %274 = vector.extract_strided_slice %189 {offsets = [0, 28, 0], sizes = [2, 1, 32], strides = [1, 1, 1]} : vector<2x32x32xf32> to vector<2x1x32xf32>
    %275 = vector.shape_cast %274 : vector<2x1x32xf32> to vector<2x32xf32>
    %c0_258 = arith.constant 0 : index
    %c896 = arith.constant 896 : index
    %276 = vector.load %arg13[%c0_258, %c896] : memref<2x1024xf32, #tpu.memory_space<vmem>>, vector<2x32xf32>
    tpu.vector_store %arg13[%c0_258, %c896], %275 {strides = array<i32>} : memref<2x1024xf32, #tpu.memory_space<vmem>>, vector<2x32xf32>,
    %277 = vector.extract_strided_slice %189 {offsets = [0, 29, 0], sizes = [2, 1, 32], strides = [1, 1, 1]} : vector<2x32x32xf32> to vector<2x1x32xf32>
    %278 = vector.shape_cast %277 : vector<2x1x32xf32> to vector<2x32xf32>
    %c0_259 = arith.constant 0 : index
    %c928 = arith.constant 928 : index
    %279 = vector.load %arg13[%c0_259, %c928] : memref<2x1024xf32, #tpu.memory_space<vmem>>, vector<2x32xf32>
    tpu.vector_store %arg13[%c0_259, %c928], %278 {strides = array<i32>} : memref<2x1024xf32, #tpu.memory_space<vmem>>, vector<2x32xf32>,
    %280 = vector.extract_strided_slice %189 {offsets = [0, 30, 0], sizes = [2, 1, 32], strides = [1, 1, 1]} : vector<2x32x32xf32> to vector<2x1x32xf32>
    %281 = vector.shape_cast %280 : vector<2x1x32xf32> to vector<2x32xf32>
    %c0_260 = arith.constant 0 : index
    %c960 = arith.constant 960 : index
    %282 = vector.load %arg13[%c0_260, %c960] : memref<2x1024xf32, #tpu.memory_space<vmem>>, vector<2x32xf32>
    tpu.vector_store %arg13[%c0_260, %c960], %281 {strides = array<i32>} : memref<2x1024xf32, #tpu.memory_space<vmem>>, vector<2x32xf32>,
    %283 = vector.extract_strided_slice %189 {offsets = [0, 31, 0], sizes = [2, 1, 32], strides = [1, 1, 1]} : vector<2x32x32xf32> to vector<2x1x32xf32>
    %284 = vector.shape_cast %283 : vector<2x1x32xf32> to vector<2x32xf32>
    %c0_261 = arith.constant 0 : index
    %c992 = arith.constant 992 : index
    %285 = vector.load %arg13[%c0_261, %c992] : memref<2x1024xf32, #tpu.memory_space<vmem>>, vector<2x32xf32>
    tpu.vector_store %arg13[%c0_261, %c992], %284 {strides = array<i32>} : memref<2x1024xf32, #tpu.memory_space<vmem>>, vector<2x32xf32>,
    %c0_262 = arith.constant 0 : index
    %c0_263 = arith.constant 0 : index
    %286 = vector.load %arg13[%c0_262, %c0_263] : memref<2x1024xf32, #tpu.memory_space<vmem>>, vector<2x1024xf32>
    %c0_264 = arith.constant 0 : index
    %c0_265 = arith.constant 0 : index
    %287 = vector.load %arg5[%c0_264, %c0_265] : memref<1024x200xf32, #tpu.memory_space<vmem>>, vector<1024x200xf32>
    %cst_266 = arith.constant dense<0.000000e+00> : vector<2x200xf32>
    %288 = tpu.matmul %286, %287, %cst_266 {dimension_numbers = #tpu.dot_dimension_numbers<[1], [0], [0], [1], [0, 0, 1, 1], [], []>} : vector<2x1024xf32>, vector<1024x200xf32>, vector<2x200xf32> -> vector<2x200xf32>
    %c0_267 = arith.constant 0 : index
    %c0_268 = arith.constant 0 : index
    %289 = vector.load %arg8[%c0_267, %c0_268] : memref<2x200xf32, #tpu.memory_space<vmem>>, vector<1x200xf32>
    %290 = vector.broadcast %289 : vector<1x200xf32> to vector<2x200xf32>
    %291 = arith.addf %288, %290 : vector<2x200xf32>
    %cst_269 = arith.constant 0.000000e+00 : f32
    %292 = vector.broadcast %cst_269 : f32 to vector<2x200xf32>
    %293 = arith.maximumf %291, %292 : vector<2x200xf32>
    %c0_270 = arith.constant 0 : index
    %c0_271 = arith.constant 0 : index
    %294 = vector.load %arg6[%c0_270, %c0_271] : memref<200x128xf32, #tpu.memory_space<vmem>>, vector<200x128xf32>
    %cst_272 = arith.constant dense<0.000000e+00> : vector<2x128xf32>
    %295 = tpu.matmul %293, %294, %cst_272 {dimension_numbers = #tpu.dot_dimension_numbers<[1], [0], [0], [1], [0, 0, 1, 1], [], []>} : vector<2x200xf32>, vector<200x128xf32>, vector<2x128xf32> -> vector<2x128xf32>
    %c1_273 = arith.constant 1 : index
    %c0_274 = arith.constant 0 : index
    %296 = vector.load %arg8[%c1_273, %c0_274] : memref<2x200xf32, #tpu.memory_space<vmem>>, vector<1x128xf32>
    %297 = vector.broadcast %296 : vector<1x128xf32> to vector<2x128xf32>
    %298 = arith.addf %295, %297 : vector<2x128xf32>
    %cst_275 = arith.constant 0.000000e+00 : f32
    %299 = vector.broadcast %cst_275 : f32 to vector<2x128xf32>
    %300 = arith.subf %299, %298 : vector<2x128xf32>
    %301 = math.exp %300 : vector<2x128xf32>
    %cst_276 = arith.constant 1.000000e+00 : f32
    %302 = vector.broadcast %cst_276 : f32 to vector<2x128xf32>
    %303 = arith.addf %302, %301 : vector<2x128xf32>
    %cst_277 = arith.constant 1.000000e+00 : f32
    %304 = vector.broadcast %cst_277 : f32 to vector<2x128xf32>
    %305 = arith.divf %304, %303 : vector<2x128xf32>
    %c0_278 = arith.constant 0 : index
    %c0_279 = arith.constant 0 : index
    %306 = vector.load %arg1[%c0_278, %c0_279] : memref<2x128xf32, #tpu.memory_space<vmem>>, vector<2x128xf32>
    %307 = arith.cmpf olt, %306, %305 : vector<2x128xf32>
    %308 = arith.extui %307 : vector<2x128xi1> to vector<2x128xi32>
    %309 = arith.sitofp %308 : vector<2x128xi32> to vector<2x128xf32>
    %cst_280 = arith.constant 0.000000e+00 : f32
    %310 = vector.broadcast %cst_280 : f32 to vector<2x128xf32>
    %311 = arith.maximumf %298, %310 : vector<2x128xf32>
    %312 = math.absf %298 : vector<2x128xf32>
    %cst_281 = arith.constant 0.000000e+00 : f32
    %313 = vector.broadcast %cst_281 : f32 to vector<2x128xf32>
    %314 = arith.subf %313, %312 : vector<2x128xf32>
    %315 = math.exp %314 : vector<2x128xf32>
    %cst_282 = arith.constant 1.000000e+00 : f32
    %316 = vector.broadcast %cst_282 : f32 to vector<2x128xf32>
    %317 = arith.addf %316, %315 : vector<2x128xf32>
    %318 = math.log %317 : vector<2x128xf32>
    %319 = arith.addf %311, %318 : vector<2x128xf32>
    %320 = arith.subf %319, %298 : vector<2x128xf32>
    %321 = arith.mulf %309, %320 : vector<2x128xf32>
    %cst_283 = arith.constant 1.000000e+00 : f32
    %322 = vector.broadcast %cst_283 : f32 to vector<2x128xf32>
    %323 = arith.subf %322, %309 : vector<2x128xf32>
    %324 = arith.mulf %323, %319 : vector<2x128xf32>
    %325 = arith.addf %321, %324 : vector<2x128xf32>
    %cst_284 = arith.constant 0.000000e+00 : f32
    %326 = vector.broadcast %cst_284 : f32 to vector<2x128xf32>
    %327 = arith.subf %326, %325 : vector<2x128xf32>
    %328 = arith.mulf %298, %305 : vector<2x128xf32>
    %329 = arith.subf %319, %328 : vector<2x128xf32>
    %330 = tpu.iota {dimensions = array<i32: 1>} : vector<2x128xi32>
    %c3_i32 = arith.constant 3 : i32
    %331 = vector.broadcast %c3_i32 : i32 to vector<2x128xi32>
    %332 = arith.cmpi slt, %330, %331 : vector<2x128xi32>
    %cst_285 = arith.constant 0.000000e+00 : f32
    %333 = vector.broadcast %cst_285 : f32 to vector<2x128xf32>
    %334 = arith.select %332, %327, %333 : vector<2x128xi1>, vector<2x128xf32>
    %cst_286 = arith.constant dense<0.000000e+00> : vector<2xf32>
    %335 = vector.multi_reduction <add>, %334, %cst_286 [1] : vector<2x128xf32> to vector<2xf32>
    %336 = vector.shape_cast %335 : vector<2xf32> to vector<2x1xf32>
    %cst_287 = arith.constant 0.000000e+00 : f32
    %337 = vector.broadcast %cst_287 : f32 to vector<2x128xf32>
    %338 = arith.select %332, %329, %337 : vector<2x128xi1>, vector<2x128xf32>
    %cst_288 = arith.constant dense<0.000000e+00> : vector<2xf32>
    %339 = vector.multi_reduction <add>, %338, %cst_288 [1] : vector<2x128xf32> to vector<2xf32>
    %340 = vector.shape_cast %339 : vector<2xf32> to vector<2x1xf32>
    %341 = vector.extract_strided_slice %298 {offsets = [0, 3], sizes = [2, 1], strides = [1, 1]} : vector<2x128xf32> to vector<2x1xf32>
    %c3_i32_289 = arith.constant 3 : i32
    %342 = vector.broadcast %c3_i32_289 : i32 to vector<2x128xi32>
    %343 = arith.cmpi eq, %330, %342 : vector<2x128xi32>
    %c4_i32 = arith.constant 4 : i32
    %344 = vector.broadcast %c4_i32 : i32 to vector<2x128xi32>
    %345 = arith.cmpi eq, %330, %344 : vector<2x128xi32>
    %c5_i32 = arith.constant 5 : i32
    %346 = vector.broadcast %c5_i32 : i32 to vector<2x128xi32>
    %347 = arith.cmpi eq, %330, %346 : vector<2x128xi32>
    %cst_290 = arith.constant 0.000000e+00 : f32
    %348 = vector.shape_cast %341 : vector<2x1xf32> to vector<2x1xf32>
    %349 = vector.broadcast %348 : vector<2x1xf32> to vector<2x128xf32>
    %350 = vector.broadcast %cst_290 : f32 to vector<2x128xf32>
    %351 = arith.select %347, %349, %350 : vector<2x128xi1>, vector<2x128xf32>
    %352 = vector.shape_cast %340 : vector<2x1xf32> to vector<2x1xf32>
    %353 = vector.broadcast %352 : vector<2x1xf32> to vector<2x128xf32>
    %354 = arith.select %345, %353, %351 : vector<2x128xi1>, vector<2x128xf32>
    %355 = vector.shape_cast %336 : vector<2x1xf32> to vector<2x1xf32>
    %356 = vector.broadcast %355 : vector<2x1xf32> to vector<2x128xf32>
    %357 = arith.select %343, %356, %354 : vector<2x128xi1>, vector<2x128xf32>
    %358 = arith.select %332, %309, %357 : vector<2x128xi1>, vector<2x128xf32>
    %c0_291 = arith.constant 0 : index
    %c0_292 = arith.constant 0 : index
    %359 = vector.load %arg9[%c0_291, %c0_292] : memref<2x128xf32, #tpu.memory_space<vmem>>, vector<2x128xf32>
    tpu.vector_store %arg9[%c0_291, %c0_292], %358 {strides = array<i32>} : memref<2x128xf32, #tpu.memory_space<vmem>>, vector<2x128xf32>,
    return
  }
}

</mosaic_0001>

<bundles_post_ra>
// kernel: actor_critic_forward.1
= control target key start
LH: loop header
LB: loop body
LE: loop exit
PB: predicated region body
PF: predicated region fallthrough
CT: control target
= control target key end

     0   :  { %vm50_vm0 = vcmask 146432   ;;  %vm76_vm1 = vcmask 7168   ;;  %v5911_v3 = vmov 0.0   ;;  %s5912_s15 = smov 1   ;;  %vm10930_vm2 = vcmask 3072   ;;  %s5913_s24 = smov 9   ;;  %s10903_s0 = inlined_call_operand.vmem [shape: f32[2,2,32,1], index: 0, kind: input, shape index: {}]   ;;  %s10904_s2 = inlined_call_operand.vmem [shape: f32[18,16], index: 2, kind: input, shape index: {}]   ;;  %s10905_s3 = inlined_call_operand.vmem [shape: f32[224,32], index: 3, kind: input, shape index: {}]   ;;  %s10906_s7 = inlined_call_operand.vmem [shape: f32[6,32], index: 7, kind: input, shape index: {}]   ;;  %s10907_s4 = inlined_call_operand.vmem [shape: f32[448,32], index: 4, kind: input, shape index: {}]   ;;  %s10908_s5 = inlined_call_operand.vmem [shape: f32[1024,200], index: 5, kind: input, shape index: {}]   ;;  %s10909_s6 = inlined_call_operand.vmem [shape: f32[200,128], index: 6, kind: input, shape index: {}]   ;;  %s10910_s8 = inlined_call_operand.vmem [shape: f32[2,200], index: 8, kind: input, shape index: {}]   ;;  %s10911_s1 = inlined_call_operand.vmem [shape: f32[2,128], index: 1, kind: input, shape index: {}]   ;;  %s10912_s9 = inlined_call_operand.vmem [shape: f32[2,128], index: 9, kind: output, shape index: {}]  }
   0x1   :  { %v5990_v0 = vld [vmem:[%s10903_s0 + $0x10] sm:$0xff]  ;;  %v5995_v1 = vld [vmem:[%s10903_s0] sm:$0xff]  ;;  %v6000_v2 = vld [vmem:[%s10903_s0 + $0x8] sm:$0xff]  ;;  %56 = vst.msk [vmem:[#allocation2 + $0x28] sm:$0xff] %vm50_vm0, %v5911_v3  ;;  %3059 = vmatprep.subr.mxu1 %v5911_v3  ;;  %s5914_s25 = smov 2   ;;  %s5915_s26 = smov 10  }
   0x2   :  { %57 = vst.msk [vmem:[#allocation2 + $0x30] sm:$0xff] %vm50_vm0, %v5911_v3  ;;  %58 = vst.msk [vmem:[#allocation2 + $0x38] sm:$0xff] %vm50_vm0, %v5911_v3  ;;  %114 = vrot.lane.b32.xlu1 %v5990_v0, %s5912_s15  ;;  %110 = vrot.lane.b32.xlu0 %v5995_v1, %s5912_s15  ;;  %v6098_v4 = vld [vmem:[%s10903_s0 + $0x18] sm:$0xff]  ;;  %v6109_v5 = vld [vmem:[%s10903_s0 + $0x20] sm:$0xff]  ;;  %s5916_s27 = smov 3   ;;  %s5917_s30 = smov 11  }
   0x3   :  { %51 = vst.msk [vmem:[#allocation2] sm:$0xff] %vm50_vm0, %v5911_v3  ;;  %52 = vst.msk [vmem:[#allocation2 + $0x8] sm:$0xff] %vm50_vm0, %v5911_v3  ;;  %v6116_v6 = vld [vmem:[%s10903_s0 + $0x28] sm:$0xff]  ;;  %v6123_v7 = vld [vmem:[%s10903_s0 + $0x30] sm:$0xff]  ;;  %s5918_s10 = smov 4   ;;  %s5919_s11 = smov 12  }
   0x4   :  { %53 = vst.msk [vmem:[#allocation2 + $0x10] sm:$0xff] %vm50_vm0, %v5911_v3  ;;  %54 = vst.msk [vmem:[#allocation2 + $0x18] sm:$0xff] %vm50_vm0, %v5911_v3  ;;  %v6156_v8 = vld [vmem:[%s10903_s0 + $0x38] sm:$0xff]  ;;  %s5920_s12 = smov 5   ;;  %s5921_s13 = smov 13   ;;  %vm10929_vm3 = vcmask 15368  }
   0x5   :  { %55 = vst.msk [vmem:[#allocation2 + $0x20] sm:$0xff] %vm50_vm0, %v5911_v3  ;;  %59 = vst.msk [vmem:[#allocation2 + $0x40] sm:$0xff] %vm50_vm0, %v5911_v3  ;;  %s5922_s14 = smov 6   ;;  %s5923_s16 = smov 14   ;;  %vm685_vm4 = vcmask 80968   ;;  %vm10921_vm5 = vcmask 12296  }
   0x6   :  { %60 = vst.msk [vmem:[#allocation2 + $0x48] sm:$0xff] %vm50_vm0, %v5911_v3  ;;  %61 = vst.msk [vmem:[#allocation2 + $0x50] sm:$0xff] %vm50_vm0, %v5911_v3  ;;  %637 = vrot.lane.b32.xlu1 %v5995_v1, %s5913_s24  ;;  %112 = vrot.lane.b32.xlu0 %v6000_v2, %s5912_s15  ;;  %s10915_s17 = smov 7   ;;  %s5925_s18 = smov 15   ;;  %v6265_v15 = vld [vmem:[%s10903_s0 + $0x40] sm:$0xff]  ;;  %vm10926_vm6 = vcmask 23568  }
   0x7   :  { %62 = vst.msk [vmem:[#allocation2 + $0x58] sm:$0xff] %vm50_vm0, %v5911_v3  ;;  %63 = vst.msk [vmem:[#allocation2 + $0x60] sm:$0xff] %vm50_vm0, %v5911_v3  ;;  %s10913_s19 = smov 8   ;;  %s5927_s20 = smov 16   ;;  %v1256_v16 = vld [vmem:[%s10904_s2 + $0x10] sm:$0x3] }
   0x8   :  { %64 = vst.msk [vmem:[#allocation2 + $0x68] sm:$0xff] %vm50_vm0, %v5911_v3  ;;  %65 = vst.msk [vmem:[#allocation2 + $0x70] sm:$0xff] %vm50_vm0, %v5911_v3  ;;  %s5928_s23 = smov 17   ;;  %vm10917_vm7 = vcmask 1041408   ;;  %v1255_v19 = vld [vmem:[%s10904_s2 + $0x8] sm:$0xff]  ;;  %v6286_v20 = vld [vmem:[%s10903_s0 + $0x50] sm:$0xff] }
   0x9   :  { %66 = vst.msk [vmem:[#allocation2 + $0x78] sm:$0xff] %vm50_vm0, %v5911_v3  ;;  %67 = vst.msk [vmem:[#allocation2 + $0x80] sm:$0xff] %vm50_vm0, %v5911_v3  ;;  %5825 = vmatprep.subr.msk.mxu0 %vm10917_vm7, %v1256_v16  ;;  %v6291_v21 = vld [vmem:[%s10903_s0 + $0x48] sm:$0xff]  ;;  %v1254_v22 = vld [vmem:[%s10904_s2] sm:$0xff]  ;;  %vm751_vm8 = vcmask 89168   ;;  %vm10925_vm9 = vcmask 31768  }
   0xa   :  { %68 = vst.msk [vmem:[#allocation2 + $0x88] sm:$0xff] %vm50_vm0, %v5911_v3  ;;  %69 = vst.msk [vmem:[#allocation2 + $0x90] sm:$0xff] %vm50_vm0, %v5911_v3  ;;  %116 = vrot.lane.b32.xlu1 %v6098_v4, %s5912_s15  ;;  %639 = vrot.lane.b32.xlu0 %v6000_v2, %s5913_s24  ;;  %vm10919_vm10 = vcmask 21520   ;;  %v6327_v31 = vld [vmem:[%s10903_s0 + $0x58] sm:$0xff]  ;;  %vm817_vm11 = vcmask 97368   ;;  %vm10918_vm12 = vcmask 30744  }
   0xb   :  { %70 = vst.msk [vmem:[#allocation2 + $0x98] sm:$0xff] %vm50_vm0, %v5911_v3  ;;  %71 = vst.msk [vmem:[#allocation2 + $0xa0] sm:$0xff] %vm50_vm0, %v5911_v3  ;;  %5826 = vmatpush3.msk.msra.mxu0 %vm10917_vm7, %v1256_v16  ;;  %vm10924_vm13 = vcmask 39968   ;;  %vm883_vm14 = vcmask 105568   ;;  %vm10920_vm15 = vcmask 48169   ;;  %vm10923_vm7 = vcmask 48168  }
   0xc   :  { %72 = vst.msk [vmem:[#allocation2 + $0xa8] sm:$0xff] %vm50_vm0, %v5911_v3  ;;  %73 = vst.msk [vmem:[#allocation2 + $0xb0] sm:$0xff] %vm50_vm0, %v5911_v3  ;;  %5827 = vmatprep.subr.mxu0 %v1255_v19  ;;  %s10960_s22 = smov 7  }
   0xd   :  { %74 = vst.msk [vmem:[#allocation2 + $0xb8] sm:$0xff] %vm50_vm0, %v5911_v3  ;;  %1786 = vst [vmem:[#allocation3] sm:$0xff] %v5911_v3  ;;  %5828 = vmatpush3.msra.mxu0 %v1255_v19 }
   0xe   :  { %1789 = vst [vmem:[#allocation3 + $0x10] sm:$0xff] %v5911_v3  ;;  %1791 = vst [vmem:[#allocation3 + $0x20] sm:$0xff] %v5911_v3  ;;  %178 = vrot.lane.b32.xlu1 %v6000_v2, %s5914_s25  ;;  %176 = vrot.lane.b32.xlu0 %v5995_v1, %s5914_s25 }
   0xf   :  { %1793 = vst [vmem:[#allocation3 + $0x30] sm:$0xff] %v5911_v3  ;;  %1795 = vst [vmem:[#allocation3 + $0x40] sm:$0xff] %v5911_v3  ;;  %5829 = vmatprep.subr.mxu0 %v1254_v22 }
  0x10   :  { %1797 = vst [vmem:[#allocation3 + $0x50] sm:$0xff] %v5911_v3  ;;  %1799 = vst [vmem:[#allocation3 + $0x60] sm:$0xff] %v5911_v3  ;;  %5830 = vmatpush3.msra.mxu0 %v1254_v22 }
  0x11   :  { %1801 = vst [vmem:[#allocation3 + $0x70] sm:$0xff] %v5911_v3  ;;  %1803 = vst [vmem:[#allocation3 + $0x80] sm:$0xff] %v5911_v3 }
  0x12   :  { %1805 = vst [vmem:[#allocation3 + $0x90] sm:$0xff] %v5911_v3  ;;  %1807 = vst [vmem:[#allocation3 + $0xa0] sm:$0xff] %v5911_v3  ;;  %641 = vrot.lane.b32.xlu1 %v5990_v0, %s5913_s24  ;;  %180 = vrot.lane.b32.xlu0 %v5990_v0, %s5914_s25 }
  0x13   :  { %1809 = vst [vmem:[#allocation3 + $0xb0] sm:$0xff] %v5911_v3  ;;  %1811 = vst [vmem:[#allocation3 + $0xc0] sm:$0xff] %v5911_v3 }
  0x14   :  { %1813 = vst [vmem:[#allocation3 + $0xd0] sm:$0xff] %v5911_v3  ;;  %1815 = vst [vmem:[#allocation3 + $0xe0] sm:$0xff] %v5911_v3 }
  0x15   :  { %1817 = vst [vmem:[#allocation3 + $0xf0] sm:$0xff] %v5911_v3  ;;  %3392 = vst [vmem:[#allocation4] sm:$0xff] %v5911_v3 }
  0x16   :  { %3393 = vst [vmem:[#allocation4 + $0x8] sm:$0xff] %v5911_v3  ;;  %3394 = vst [vmem:[#allocation4 + $0x10] sm:$0xff] %v5911_v3  ;;  %705 = vrot.lane.b32.xlu1 %v6000_v2, %s5915_s26  ;;  %703 = vrot.lane.b32.xlu0 %v5995_v1, %s5915_s26 }
  0x17   :  { %3397 = vst [vmem:[#allocation4 + $0x20] sm:$0xff] %v5911_v3  ;;  %3398 = vst [vmem:[#allocation4 + $0x28] sm:$0xff] %v5911_v3 }
  0x18   :  { %3399 = vst [vmem:[#allocation4 + $0x30] sm:$0xff] %v5911_v3  ;;  %3401 = vst [vmem:[#allocation4 + $0x40] sm:$0xff] %v5911_v3 }
  0x19   :  { %3402 = vst [vmem:[#allocation4 + $0x48] sm:$0xff] %v5911_v3  ;;  %3403 = vst [vmem:[#allocation4 + $0x50] sm:$0xff] %v5911_v3 }
  0x1a   :  { %3405 = vst [vmem:[#allocation4 + $0x60] sm:$0xff] %v5911_v3  ;;  %3406 = vst [vmem:[#allocation4 + $0x68] sm:$0xff] %v5911_v3  ;;  %242 = vrot.lane.b32.xlu1 %v5995_v1, %s5916_s27  ;;  %182 = vrot.lane.b32.xlu0 %v6098_v4, %s5914_s25 }
  0x1b   :  { %3407 = vst [vmem:[#allocation4 + $0x70] sm:$0xff] %v5911_v3  ;;  %3409 = vst [vmem:[#allocation4 + $0x80] sm:$0xff] %v5911_v3 }
  0x1c   :  { %3410 = vst [vmem:[#allocation4 + $0x88] sm:$0xff] %v5911_v3  ;;  %3411 = vst [vmem:[#allocation4 + $0x90] sm:$0xff] %v5911_v3 }
  0x1d   :  { %3413 = vst [vmem:[#allocation4 + $0xa0] sm:$0xff] %v5911_v3  ;;  %3414 = vst [vmem:[#allocation4 + $0xa8] sm:$0xff] %v5911_v3 }
  0x1e   :  { %3415 = vst [vmem:[#allocation4 + $0xb0] sm:$0xff] %v5911_v3  ;;  %3417 = vst [vmem:[#allocation4 + $0xc0] sm:$0xff] %v5911_v3  ;;  %246 = vrot.lane.b32.xlu1 %v5990_v0, %s5916_s27  ;;  %244 = vrot.lane.b32.xlu0 %v6000_v2, %s5916_s27 }
  0x1f   :  { %3418 = vst [vmem:[#allocation4 + $0xc8] sm:$0xff] %v5911_v3  ;;  %3419 = vst [vmem:[#allocation4 + $0xd0] sm:$0xff] %v5911_v3 }
  0x20   :  { %3421 = vst [vmem:[#allocation4 + $0xe0] sm:$0xff] %v5911_v3  ;;  %3422 = vst [vmem:[#allocation4 + $0xe8] sm:$0xff] %v5911_v3 }
  0x21   :  { %3423 = vst [vmem:[#allocation4 + $0xf0] sm:$0xff] %v5911_v3  ;;  %78 = vst.msk [vmem:[#allocation2 + $0x2c] sm:$0xff] %vm76_vm1, %v6000_v2 }
  0x22   :  { %79 = vst.msk [vmem:[#allocation2 + $0x34] sm:$0xff] %vm76_vm1, %v5990_v0  ;;  %77 = vst.msk [vmem:[#allocation2 + $0x24] sm:$0xff] %vm76_vm1, %v5995_v1  ;;  %769 = vrot.lane.b32.xlu1 %v5995_v1, %s5917_s30  ;;  %707 = vrot.lane.b32.xlu0 %v5990_v0, %s5915_s26 }
  0x23   :  { %82 = vst.msk [vmem:[#allocation2 + $0x44] sm:$0xff] %vm76_vm1, %v6109_v5  ;;  %83 = vst.msk [vmem:[#allocation2 + $0x4c] sm:$0xff] %vm76_vm1, %v6116_v6 }
  0x24   :  { %81 = vst.msk [vmem:[#allocation2 + $0x3c] sm:$0xf] %vm10930_vm2, %v6098_v4  ;;  %85 = vst.msk [vmem:[#allocation2 + $0x5c] sm:$0xf] %vm10930_vm2, %v6156_v8 }
  0x25   :  { %84 = vst.msk [vmem:[#allocation2 + $0x54] sm:$0xff] %vm76_vm1, %v6123_v7  ;;  %86 = vst.msk [vmem:[#allocation2 + $0x84] sm:$0xff] %vm76_vm1, %v6265_v15 }
  0x26   :  { %248 = vrot.lane.b32.xlu1 %v6098_v4, %s5916_s27  ;;  %771 = vrot.lane.b32.xlu0 %v6000_v2, %s5917_s30  ;;  %88 = vst.msk [vmem:[#allocation2 + $0x94] sm:$0xff] %vm76_vm1, %v6286_v20  ;;  %87 = vst.msk [vmem:[#allocation2 + $0x8c] sm:$0xff] %vm76_vm1, %v6291_v21 }
  0x27   :  { %89 = vst.msk [vmem:[#allocation2 + $0x9c] sm:$0xf] %vm10930_vm2, %v6327_v31  ;;  %vm10936_vm2 = vcmask 72768  }
  0x2a   :  { %310 = vrot.lane.b32.xlu1 %v6000_v2, %s5918_s10  ;;  %308 = vrot.lane.b32.xlu0 %v5995_v1, %s5918_s10 }
  0x2e   :  { %773 = vrot.lane.b32.xlu1 %v5990_v0, %s5917_s30  ;;  %312 = vrot.lane.b32.xlu0 %v5990_v0, %s5918_s10 }
  0x32   :  { %837 = vrot.lane.b32.xlu1 %v6000_v2, %s5919_s11  ;;  %835 = vrot.lane.b32.xlu0 %v5995_v1, %s5919_s11 }
  0x36   :  { %373 = vrot.lane.b32.xlu1 %v5995_v1, %s5920_s12  ;;  %314 = vrot.lane.b32.xlu0 %v6098_v4, %s5918_s10 }
  0x3a   :  { %377 = vrot.lane.b32.xlu1 %v5990_v0, %s5920_s12  ;;  %375 = vrot.lane.b32.xlu0 %v6000_v2, %s5920_s12 }
  0x3e   :  { %839 = vrot.lane.b32.xlu1 %v5990_v0, %s5919_s11  ;;  %643 = vrot.lane.b32.xlu0 %v6098_v4, %s5913_s24 }
  0x42   :  { %903 = vrot.lane.b32.xlu1 %v6000_v2, %s5921_s13  ;;  %901 = vrot.lane.b32.xlu0 %v5995_v1, %s5921_s13 }
  0x46   :  { %439 = vrot.lane.b32.xlu1 %v5995_v1, %s5922_s14  ;;  %379 = vrot.lane.b32.xlu0 %v6098_v4, %s5920_s12 }
  0x4a   :  { %443 = vrot.lane.b32.xlu1 %v5990_v0, %s5922_s14  ;;  %441 = vrot.lane.b32.xlu0 %v6000_v2, %s5922_s14 }
  0x4e   :  { %905 = vrot.lane.b32.xlu1 %v5990_v0, %s5921_s13  ;;  %709 = vrot.lane.b32.xlu0 %v6098_v4, %s5915_s26 }
  0x52   :  { %968 = vrot.lane.b32.xlu1 %v6000_v2, %s5923_s16  ;;  %966 = vrot.lane.b32.xlu0 %v5995_v1, %s5923_s16 }
  0x56   :  { %505 = vrot.lane.b32.xlu1 %v5995_v1, %s10915_s17  ;;  %445 = vrot.lane.b32.xlu0 %v6098_v4, %s5922_s14 }
  0x5a   :  { %509 = vrot.lane.b32.xlu1 %v5990_v0, %s10915_s17  ;;  %507 = vrot.lane.b32.xlu0 %v6000_v2, %s10915_s17 }
  0x5e   :  { %970 = vrot.lane.b32.xlu1 %v5990_v0, %s5923_s16  ;;  %775 = vrot.lane.b32.xlu0 %v6098_v4, %s5917_s30 }
  0x62   :  { %1034 = vrot.lane.b32.xlu1 %v6000_v2, %s5925_s18  ;;  %1032 = vrot.lane.b32.xlu0 %v5995_v1, %s5925_s18 }
  0x66   :  { %573 = vrot.lane.b32.xlu1 %v6000_v2, %s10913_s19  ;;  %511 = vrot.lane.b32.xlu0 %v6098_v4, %s10915_s17  ;;  %s10961_s17 = smov 8  }
  0x6a   :  { %841 = vrot.lane.b32.xlu1 %v6098_v4, %s5919_s11  ;;  %575 = vrot.lane.b32.xlu0 %v5990_v0, %s10913_s19 }
  0x6e   :  { %1098 = vrot.lane.b32.xlu1 %v5995_v1, %s5927_s20  ;;  %1036 = vrot.lane.b32.xlu0 %v5990_v0, %s5925_s18 }
  0x72   :  { %571 = vrot.lane.b32.xlu1 %v5995_v1, %s10913_s19  ;;  %1100 = vrot.lane.b32.xlu0 %v6000_v2, %s5927_s20 }
  0x74   :  { %v115_v9 = vpop.permute.xlu1 %114  ;;  %v111_v10 = vpop.permute.xlu0 %110 }
  0x75   :  { %161 = vst.msk [vmem:[#allocation2 + $0x33] sm:$0xff] %vm10929_vm3, %v115_v9  ;;  %159 = vst.msk [vmem:[#allocation2 + $0x23] sm:$0xff] %vm10929_vm3, %v111_v10 }
  0x76   :  { %645 = vrot.lane.b32.xlu1 %v6109_v5, %s5913_s24  ;;  %577 = vrot.lane.b32.xlu0 %v6098_v4, %s10913_s19  ;;  %s5930_s19 = smov 48  }
  0x78   :  { %v638_v11 = vpop.permute.xlu1 %637  ;;  %v113_v12 = vpop.permute.xlu0 %112 }
  0x79   :  { %686 = vst.msk [vmem:[#allocation2 + $0x4] sm:$0xff] %vm685_vm4, %v638_v11 }
  0x7a   :  { %160 = vst.msk [vmem:[#allocation2 + $0x2b] sm:$0xff] %vm10929_vm3, %v113_v12  ;;  %907 = vrot.lane.b32.xlu1 %v6098_v4, %s5921_s13  ;;  %647 = vrot.lane.b32.xlu0 %v6116_v6, %s5913_s24  ;;  %vm10931_vm3 = vcmask 130170  }
  0x7c   :  { %v117_v13 = vpop.permute.xlu1 %116  ;;  %v640_v14 = vpop.permute.xlu0 %639 }
  0x7d   :  { %163 = vst.msk [vmem:[#allocation2 + $0x3b] sm:$0x1f] %vm10921_vm5, %v117_v13  ;;  %vm10928_vm5 = vcmask 56368  }
  0x7e   :  { %687 = vst.msk [vmem:[#allocation2 + $0xc] sm:$0xff] %vm685_vm4, %v640_v14  ;;  %1164 = vrot.lane.b32.xlu1 %v5995_v1, %s5928_s23  ;;  %1102 = vrot.lane.b32.xlu0 %v5990_v0, %s5927_s20 }
  0x80   :  { %v179_v17 = vpop.permute.xlu1 %178  ;;  %v177_v18 = vpop.permute.xlu0 %176 }
  0x81   :  { %226 = vst.msk [vmem:[#allocation2 + $0x2a] sm:$0xff] %vm10926_vm6, %v179_v17  ;;  %225 = vst.msk [vmem:[#allocation2 + $0x22] sm:$0xff] %vm10926_vm6, %v177_v18 }
  0x82   :  { %649 = vrot.lane.b32.xlu1 %v6123_v7, %s5913_s24  ;;  %1166 = vrot.lane.b32.xlu0 %v6000_v2, %s5928_s23 }
  0x84   :  { %v642_v23 = vpop.permute.xlu1 %641  ;;  %v181_v24 = vpop.permute.xlu0 %180 }
  0x85   :  { %688 = vst.msk [vmem:[#allocation2 + $0x14] sm:$0xff] %vm685_vm4, %v642_v23 }
  0x86   :  { %227 = vst.msk [vmem:[#allocation2 + $0x32] sm:$0xff] %vm10926_vm6, %v181_v24  ;;  %713 = vrot.lane.b32.xlu1 %v6116_v6, %s5915_s26  ;;  %711 = vrot.lane.b32.xlu0 %v6109_v5, %s5915_s26  ;;  %vm10932_vm6 = vcmask 64568  }
  0x88   :  { %v706_v25 = vpop.permute.xlu1 %705  ;;  %v704_v26 = vpop.permute.xlu0 %703 }
  0x89   :  { %753 = vst.msk [vmem:[#allocation2 + $0xb] sm:$0xff] %vm751_vm8, %v706_v25  ;;  %752 = vst.msk [vmem:[#allocation2 + $0x3] sm:$0xff] %vm751_vm8, %v704_v26 }
  0x8a   :  { %1168 = vrot.lane.b32.xlu1 %v5990_v0, %s5928_s23  ;;  %972 = vrot.lane.b32.xlu0 %v6098_v4, %s5923_s16 }
  0x8c   :  { %v243_v27 = vpop.permute.xlu1 %242  ;;  %v183_v28 = vpop.permute.xlu0 %182 }
  0x8d   :  { %291 = vst.msk [vmem:[#allocation2 + $0x21] sm:$0xff] %vm10925_vm9, %v243_v27 }
  0x8e   :  { %229 = vst.msk [vmem:[#allocation2 + $0x3a] sm:$0x3f] %vm10919_vm10, %v183_v28  ;;  %777 = vrot.lane.b32.xlu1 %v6109_v5, %s5917_s30  ;;  %715 = vrot.lane.b32.xlu0 %v6123_v7, %s5915_s26  ;;  %vm949_vm10 = vcmask 113768  }
  0x90   :  { %v247_v29 = vpop.permute.xlu1 %246  ;;  %v245_v30 = vpop.permute.xlu0 %244 }
  0x91   :  { %293 = vst.msk [vmem:[#allocation2 + $0x31] sm:$0xff] %vm10925_vm9, %v247_v29  ;;  %292 = vst.msk [vmem:[#allocation2 + $0x29] sm:$0xff] %vm10925_vm9, %v245_v30  ;;  %vm10927_vm9 = vcmask 64571  }
  0x92   :  { %1038 = vrot.lane.b32.xlu1 %v6098_v4, %s5925_s18  ;;  %779 = vrot.lane.b32.xlu0 %v6116_v6, %s5917_s30 }
  0x94   :  { %v770_v32 = vpop.permute.xlu1 %769  ;;  %v708_v33 = vpop.permute.xlu0 %707 }
  0x95   :  { %818 = vst.msk [vmem:[#allocation2 + $0x2] sm:$0xff] %vm817_vm11, %v770_v32 }
  0x96   :  { %754 = vst.msk [vmem:[#allocation2 + $0x13] sm:$0xff] %vm751_vm8, %v708_v33  ;;  %843 = vrot.lane.b32.xlu1 %v6109_v5, %s5919_s11  ;;  %781 = vrot.lane.b32.xlu0 %v6123_v7, %s5917_s30 }
  0x98   :  { %v249_v34 = vpop.permute.xlu1 %248  ;;  %v772_v35 = vpop.permute.xlu0 %771 }
  0x99   :  { %295 = vst.msk [vmem:[#allocation2 + $0x39] sm:$0x7f] %vm10918_vm12, %v249_v34  ;;  %vm689_vm12 = vcmask 76872  }
  0x9a   :  { %819 = vst.msk [vmem:[#allocation2 + $0xa] sm:$0xff] %vm817_vm11, %v772_v35  ;;  %1104 = vrot.lane.b32.xlu1 %v6098_v4, %s5927_s20  ;;  %845 = vrot.lane.b32.xlu0 %v6116_v6, %s5919_s11 }
  0x9c   :  { %v311_v36 = vpop.permute.xlu1 %310  ;;  %v309_v37 = vpop.permute.xlu0 %308 }
  0x9d   :  { %358 = vst.msk [vmem:[#allocation2 + $0x28] sm:$0xff] %vm10924_vm13, %v311_v36  ;;  %357 = vst.msk [vmem:[#allocation2 + $0x20] sm:$0xff] %vm10924_vm13, %v309_v37  ;;  %v6510_v36 = vld [vmem:[%s10903_s0 + $0x60] sm:$0xff] }
  0x9e   :  { %847 = vrot.lane.b32.xlu1 %v6123_v7, %s5919_s11  ;;  %651 = vrot.lane.b32.xlu0 %v6156_v8, %s5913_s24  ;;  %90 = vst.msk [vmem:[#allocation2 + $0xa4] sm:$0xff] %vm76_vm1, %v6510_v36 }
  0xa0   :  { %v774_v38 = vpop.permute.xlu1 %773  ;;  %v313_v39 = vpop.permute.xlu0 %312 }
  0xa1   :  { %820 = vst.msk [vmem:[#allocation2 + $0x12] sm:$0xff] %vm817_vm11, %v774_v38 }
  0xa2   :  { %359 = vst.msk [vmem:[#allocation2 + $0x30] sm:$0xff] %vm10924_vm13, %v313_v39  ;;  %911 = vrot.lane.b32.xlu1 %v6116_v6, %s5921_s13  ;;  %909 = vrot.lane.b32.xlu0 %v6109_v5, %s5921_s13  ;;  %v6527_v39 = vld [vmem:[%s10903_s0 + $0x68] sm:$0xff] }
  0xa3   :  { %91 = vst.msk [vmem:[#allocation2 + $0xac] sm:$0xff] %vm76_vm1, %v6527_v39 }
  0xa4   :  { %v838_v40 = vpop.permute.xlu1 %837  ;;  %v836_v41 = vpop.permute.xlu0 %835 }
  0xa5   :  { %885 = vst.msk [vmem:[#allocation2 + $0x9] sm:$0xff] %vm883_vm14, %v838_v40  ;;  %884 = vst.msk [vmem:[#allocation2 + $0x1] sm:$0xff] %vm883_vm14, %v836_v41 }
  0xa6   :  { %717 = vrot.lane.b32.xlu1 %v6156_v8, %s5915_s26  ;;  %1170 = vrot.lane.b32.xlu0 %v6098_v4, %s5928_s23 }
  0xa8   :  { %v374_v42 = vpop.permute.xlu1 %373  ;;  %v315_v43 = vpop.permute.xlu0 %314 }
  0xa9   :  { %422 = vst.msk [vmem:[#allocation2 + $0x1f] sm:$0xfe] %vm10920_vm15, %v374_v42  ;;  %vm10922_vm15 = vcmask 56370   ;;  %v6542_v42 = vld [vmem:[%s10903_s0 + $0x70] sm:$0xff] }
  0xaa   :  { %360 = vst.msk [vmem:[#allocation2 + $0x38] sm:$0xff] %vm10924_vm13, %v315_v43  ;;  %974 = vrot.lane.b32.xlu1 %v6109_v5, %s5923_s16  ;;  %913 = vrot.lane.b32.xlu0 %v6123_v7, %s5921_s13  ;;  %vm10937_vm13 = vcmask 121969  }
  0xab   :  { %92 = vst.msk [vmem:[#allocation2 + $0xb4] sm:$0xff] %vm76_vm1, %v6542_v42  ;;  %vm10962_vm1 = vcmask 95320  }
  0xac   :  { %v378_v44 = vpop.permute.xlu1 %377  ;;  %v376_v45 = vpop.permute.xlu0 %375 }
  0xad   :  { %425 = vst.msk [vmem:[#allocation2 + $0x2f] sm:$0xff] %vm10923_vm7, %v378_v44  ;;  %424 = vst.msk [vmem:[#allocation2 + $0x27] sm:$0xff] %vm10923_vm7, %v376_v45 }
  0xae   :  { %783 = vrot.lane.b32.xlu1 %v6156_v8, %s5917_s30  ;;  %976 = vrot.lane.b32.xlu0 %v6116_v6, %s5923_s16 }
  0xb0   :  { %v840_v46 = vpop.permute.xlu1 %839  ;;  %v644_v47 = vpop.permute.xlu0 %643 }
  0xb1   :  { %886 = vst.msk [vmem:[#allocation2 + $0x11] sm:$0xff] %vm883_vm14, %v840_v46 }
  0xb2   :  { %690 = vst.msk [vmem:[#allocation2 + $0x1c] sm:$0xf] %vm689_vm12, %v644_v47  ;;  %1040 = vrot.lane.b32.xlu1 %v6109_v5, %s5925_s18  ;;  %978 = vrot.lane.b32.xlu0 %v6123_v7, %s5923_s16 }
  0xb4   :  { %v904_v48 = vpop.permute.xlu1 %903  ;;  %v902_v49 = vpop.permute.xlu0 %901 }
  0xb5   :  { %951 = vst.msk [vmem:[#allocation2 + $0x8] sm:$0xff] %vm949_vm10, %v904_v48  ;;  %950 = vst.msk [vmem:[#allocation2] sm:$0xff] %vm949_vm10, %v902_v49 }
  0xb6   :  { %849 = vrot.lane.b32.xlu1 %v6156_v8, %s5919_s11  ;;  %1042 = vrot.lane.b32.xlu0 %v6116_v6, %s5925_s18 }
  0xb8   :  { %v440_v50 = vpop.permute.xlu1 %439  ;;  %v380_v51 = vpop.permute.xlu0 %379 }
  0xb9   :  { %488 = vst.msk [vmem:[#allocation2 + $0x1e] sm:$0xfc] %vm10922_vm15, %v440_v50  ;;  %vm755_vm15 = vcmask 86096  }
  0xba   :  { %426 = vst.msk [vmem:[#allocation2 + $0x37] sm:$0xff] %vm10923_vm7, %v380_v51  ;;  %1106 = vrot.lane.b32.xlu1 %v6109_v5, %s5927_s20  ;;  %1044 = vrot.lane.b32.xlu0 %v6123_v7, %s5925_s18  ;;  %vm1016_vm7 = vcmask 121968  }
  0xbc   :  { %v444_v52 = vpop.permute.xlu1 %443  ;;  %v442_v53 = vpop.permute.xlu0 %441 }
  0xbd   :  { %491 = vst.msk [vmem:[#allocation2 + $0x2e] sm:$0xff] %vm10928_vm5, %v444_v52  ;;  %490 = vst.msk [vmem:[#allocation2 + $0x26] sm:$0xff] %vm10928_vm5, %v442_v53 }
  0xbe   :  { %915 = vrot.lane.b32.xlu1 %v6156_v8, %s5921_s13  ;;  %1108 = vrot.lane.b32.xlu0 %v6116_v6, %s5927_s20 }
  0xc0   :  { %v906_v54 = vpop.permute.xlu1 %905  ;;  %v710_v55 = vpop.permute.xlu0 %709 }
  0xc1   :  { %952 = vst.msk [vmem:[#allocation2 + $0x10] sm:$0xff] %vm949_vm10, %v906_v54 }
  0xc2   :  { %756 = vst.msk [vmem:[#allocation2 + $0x1b] sm:$0x1f] %vm755_vm15, %v710_v55  ;;  %1172 = vrot.lane.b32.xlu1 %v6109_v5, %s5928_s23  ;;  %1110 = vrot.lane.b32.xlu0 %v6123_v7, %s5927_s20 }
  0xc4   :  { %v969_v56 = vpop.permute.xlu1 %968  ;;  %v967_v57 = vpop.permute.xlu0 %966 }
  0xc5   :  { %1017 = vst.msk [vmem:[#allocation2 + $0x7] sm:$0xff] %vm1016_vm7, %v969_v56 }
  0xc6   :  { %1015 = vst.msk [vmem:[#allocation2 - $0x1] sm:$0xfe] %vm10937_vm13, %v967_v57  ;;  %118 = vrot.lane.b32.xlu1 %v6109_v5, %s5912_s15  ;;  %1174 = vrot.lane.b32.xlu0 %v6116_v6, %s5928_s23 }
  0xc8   :  { %v506_v58 = vpop.permute.xlu1 %505  ;;  %v446_v59 = vpop.permute.xlu0 %445 }
  0xc9   :  { %554 = vst.msk [vmem:[#allocation2 + $0x1d] sm:$0xf8] %vm10927_vm9, %v506_v58  ;;  %vm10934_vm9 = vcmask 95320   ;;  %v6593_v58 = vld [vmem:[%s10903_s0 + $0x78] sm:$0xff] }
  0xca   :  { %492 = vst.msk [vmem:[#allocation2 + $0x36] sm:$0xff] %vm10928_vm5, %v446_v59  ;;  %980 = vrot.lane.b32.xlu1 %v6156_v8, %s5923_s16  ;;  %120 = vrot.lane.b32.xlu0 %v6116_v6, %s5912_s15  ;;  %vm1082_vm5 = vcmask 130168  }
  0xcc   :  { %v510_v60 = vpop.permute.xlu1 %509  ;;  %v508_v61 = vpop.permute.xlu0 %507 }
  0xcd   :  { %557 = vst.msk [vmem:[#allocation2 + $0x2d] sm:$0xff] %vm10932_vm6, %v510_v60  ;;  %556 = vst.msk [vmem:[#allocation2 + $0x25] sm:$0xff] %vm10932_vm6, %v508_v61 }
  0xce   :  { %122 = vrot.lane.b32.xlu1 %v6123_v7, %s5912_s15  ;;  %1176 = vrot.lane.b32.xlu0 %v6123_v7, %s5928_s23 }
  0xd0   :  { %v971_v62 = vpop.permute.xlu1 %970  ;;  %v776_v63 = vpop.permute.xlu0 %775 }
  0xd1   :  { %1018 = vst.msk [vmem:[#allocation2 + $0xf] sm:$0xff] %vm1016_vm7, %v971_v62 }
  0xd2   :  { %822 = vst.msk [vmem:[#allocation2 + $0x1a] sm:$0x3f] %vm10934_vm9, %v776_v63  ;;  %186 = vrot.lane.b32.xlu1 %v6116_v6, %s5914_s25  ;;  %184 = vrot.lane.b32.xlu0 %v6109_v5, %s5914_s25  ;;  %vm1148_vm9 = vcmask 138368  }
  0xd4   :  { %v1035_v0 = vpop.permute.xlu1 %1034  ;;  %v1033_v1 = vpop.permute.xlu0 %1032 }
  0xd5   :  { %1083 = vst.msk [vmem:[#allocation2 + $0x6] sm:$0xff] %vm1082_vm5, %v1035_v0 }
  0xd6   :  { %1081 = vst.msk [vmem:[#allocation2 - $0x2] sm:$0xfc] %vm10931_vm3, %v1033_v1  ;;  %188 = vrot.lane.b32.xlu1 %v6123_v7, %s5914_s25  ;;  %1046 = vrot.lane.b32.xlu0 %v6156_v8, %s5925_s18  ;;  %vm10933_vm3 = vcmask 104544  }
  0xd8   :  { %v574_v2 = vpop.permute.xlu1 %573  ;;  %v512_v3 = vpop.permute.xlu0 %511 }
  0xd9   :  { %622 = vst.msk [vmem:[#allocation2 + $0x24] sm:$0xff] %vm10936_vm2, %v574_v2 }
  0xda   :  { %558 = vst.msk [vmem:[#allocation2 + $0x35] sm:$0xff] %vm10932_vm6, %v512_v3  ;;  %252 = vrot.lane.b32.xlu1 %v6116_v6, %s5916_s27  ;;  %250 = vrot.lane.b32.xlu0 %v6109_v5, %s5916_s27  ;;  %vm1146_vm6 = vcmask 138371  }
  0xdc   :  { %v842_v4 = vpop.permute.xlu1 %841  ;;  %v576_v9 = vpop.permute.xlu0 %575 }
  0xdd   :  { %888 = vst.msk [vmem:[#allocation2 + $0x19] sm:$0x7f] %vm10933_vm3, %v842_v4  ;;  %vm10935_vm3 = vcmask 72772  }
  0xde   :  { %623 = vst.msk [vmem:[#allocation2 + $0x2c] sm:$0xff] %vm10936_vm2, %v576_v9  ;;  %254 = vrot.lane.b32.xlu1 %v6123_v7, %s5916_s27  ;;  %1112 = vrot.lane.b32.xlu0 %v6156_v8, %s5927_s20 }
  0xe0   :  { %v1099_v10 = vpop.permute.xlu1 %1098  ;;  %v1037_v11 = vpop.permute.xlu0 %1036 }
  0xe1   :  { %1147 = vst.msk [vmem:[#allocation2 - $0x3] sm:$0xf8] %vm1146_vm6, %v1099_v10 }
  0xe2   :  { %1084 = vst.msk [vmem:[#allocation2 + $0xe] sm:$0xff] %vm1082_vm5, %v1037_v11  ;;  %318 = vrot.lane.b32.xlu1 %v6116_v6, %s5918_s10  ;;  %316 = vrot.lane.b32.xlu0 %v6109_v5, %s5918_s10 }
  0xe4   :  { %v572_v12 = vpop.permute.xlu1 %571  ;;  %v1101_v13 = vpop.permute.xlu0 %1100 }
  0xe5   :  { %620 = vst.msk [vmem:[#allocation2 + $0x1c] sm:$0xf0] %vm10935_vm3, %v572_v12  ;;  %vm10938_vm3 = vcmask 146572  }
  0xe6   :  { %1149 = vst.msk [vmem:[#allocation2 + $0x5] sm:$0xff] %vm1148_vm9, %v1101_v13  ;;  %124 = vrot.lane.b32.xlu1 %v6156_v8, %s5912_s15  ;;  %1178 = vrot.lane.b32.xlu0 %v6156_v8, %s5928_s23 }
  0xe8   :  { %v646_v14 = vpop.permute.xlu1 %645  ;;  %v578_v16 = vpop.permute.xlu0 %577 }
  0xe9   :  { %691 = vst.msk [vmem:[#allocation2 + $0x24] sm:$0xff] %vm685_vm4, %v646_v14 }
  0xea   :  { %624 = vst.msk [vmem:[#allocation2 + $0x34] sm:$0xff] %vm10936_vm2, %v578_v16  ;;  %381 = vrot.lane.b32.xlu1 %v6109_v5, %s5920_s12  ;;  %320 = vrot.lane.b32.xlu0 %v6123_v7, %s5918_s10  ;;  %vm10939_vm2 = vcmask 146568  }
  0xec   :  { %v908_v17 = vpop.permute.xlu1 %907  ;;  %v648_v18 = vpop.permute.xlu0 %647 }
  0xed   :  { %953 = vst.msk [vmem:[#allocation2 + $0x18] sm:$0xff] %vm949_vm10, %v908_v17 }
  0xee   :  { %692 = vst.msk [vmem:[#allocation2 + $0x2c] sm:$0xff] %vm685_vm4, %v648_v18  ;;  %190 = vrot.lane.b32.xlu1 %v6156_v8, %s5914_s25  ;;  %383 = vrot.lane.b32.xlu0 %v6116_v6, %s5920_s12 }
  0xf0   :  { %v1165_v19 = vpop.permute.xlu1 %1164  ;;  %v1103_v22 = vpop.permute.xlu0 %1102 }
  0xf1   :  { %1213 = vst.msk [vmem:[#allocation2 - $0x4] sm:$0xf0] %vm10938_vm3, %v1165_v19 }
  0xf2   :  { %1150 = vst.msk [vmem:[#allocation2 + $0xd] sm:$0xff] %vm1148_vm9, %v1103_v22  ;;  %447 = vrot.lane.b32.xlu1 %v6109_v5, %s5922_s14  ;;  %385 = vrot.lane.b32.xlu0 %v6123_v7, %s5920_s12 }
  0xf4   :  { %v650_v23 = vpop.permute.xlu1 %649  ;;  %v1167_v24 = vpop.permute.xlu0 %1166 }
  0xf5   :  { %693 = vst.msk [vmem:[#allocation2 + $0x34] sm:$0xff] %vm685_vm4, %v650_v23 }
  0xf6   :  { %1215 = vst.msk [vmem:[#allocation2 + $0x4] sm:$0xff] %vm10939_vm2, %v1167_v24  ;;  %256 = vrot.lane.b32.xlu1 %v6156_v8, %s5916_s27  ;;  %449 = vrot.lane.b32.xlu0 %v6116_v6, %s5922_s14 }
  0xf8   :  { %v714_v25 = vpop.permute.xlu1 %713  ;;  %v712_v26 = vpop.permute.xlu0 %711 }
  0xf9   :  { %758 = vst.msk [vmem:[#allocation2 + $0x2b] sm:$0xff] %vm751_vm8, %v714_v25  ;;  %757 = vst.msk [vmem:[#allocation2 + $0x23] sm:$0xff] %vm751_vm8, %v712_v26 }
  0xfa   :  { %513 = vrot.lane.b32.xlu1 %v6109_v5, %s10960_s22  ;;  %451 = vrot.lane.b32.xlu0 %v6123_v7, %s5922_s14 }
  0xfc   :  { %v1169_v27 = vpop.permute.xlu1 %1168  ;;  %v973_v28 = vpop.permute.xlu0 %972 }
  0xfd   :  { %v1230_v29 = vld [vmem:[#allocation2] sm:$0xff]  ;;  %1216 = vst.msk [vmem:[#allocation2 + $0xc] sm:$0xff] %vm10939_vm2, %v1169_v27 }
  0xfe   :  { %1019 = vst.msk [vmem:[#allocation2 + $0x17] sm:$0xff] %vm1016_vm7, %v973_v28  ;;  %5831 = vmatprep.mubr.msk.f32.mxu0 %vm50_vm0, %v1230_v29  ;;  %126 = vrot.lane.b32.xlu1 %v6265_v15, %s5912_s15 }
  0xff   :  { %515 = vrot.lane.b32.xlu0 %v6116_v6, %s10960_s22 }
 0x100   :  { %v778_v30 = vpop.permute.xlu1 %777  ;;  %v716_v32 = vpop.permute.xlu0 %715 }
 0x101   :  { %823 = vst.msk [vmem:[#allocation2 + $0x22] sm:$0xff] %vm817_vm11, %v778_v30 }
 0x102   :  { %759 = vst.msk [vmem:[#allocation2 + $0x33] sm:$0xff] %vm751_vm8, %v716_v32  ;;  %130 = vrot.lane.b32.xlu1 %v6286_v20, %s5912_s15 }
 0x103   :  { %128 = vrot.lane.b32.xlu0 %v6291_v21, %s5912_s15 }
 0x104   :  { %v1039_v33 = vpop.permute.xlu1 %1038  ;;  %v780_v34 = vpop.permute.xlu0 %779  ;;  %v1231_v35 = vld [vmem:[#allocation2 + $0x8] sm:$0xff] }
 0x105   :  { %1085 = vst.msk [vmem:[#allocation2 + $0x16] sm:$0xff] %vm1082_vm5, %v1039_v33  ;;  %5832 = vmatmul.mubr.msk.f32.vlgmr.msra.gmra.mxu0 %vm50_vm0, %v1231_v35 }
 0x106   :  { %824 = vst.msk [vmem:[#allocation2 + $0x2a] sm:$0xff] %vm817_vm11, %v780_v34  ;;  %517 = vrot.lane.b32.xlu1 %v6123_v7, %s10960_s22 }
 0x107   :  { %322 = vrot.lane.b32.xlu0 %v6156_v8, %s5918_s10 }
 0x108   :  { %v844_v37 = vpop.permute.xlu1 %843  ;;  %v782_v38 = vpop.permute.xlu0 %781 }
 0x109   :  { %889 = vst.msk [vmem:[#allocation2 + $0x21] sm:$0xff] %vm883_vm14, %v844_v37 }
 0x10a   :  { %825 = vst.msk [vmem:[#allocation2 + $0x32] sm:$0xff] %vm817_vm11, %v782_v38  ;;  %581 = vrot.lane.b32.xlu1 %v6116_v6, %s10961_s17 }
 0x10b   :  { %579 = vrot.lane.b32.xlu0 %v6109_v5, %s10961_s17 }
 0x10c   :  { %v1105_v40 = vpop.permute.xlu1 %1104  ;;  %v846_v41 = vpop.permute.xlu0 %845 }
 0x10d   :  { %1151 = vst.msk [vmem:[#allocation2 + $0x15] sm:$0xff] %vm1148_vm9, %v1105_v40 }
 0x10e   :  { %890 = vst.msk [vmem:[#allocation2 + $0x29] sm:$0xff] %vm883_vm14, %v846_v41  ;;  %655 = vrot.lane.b32.xlu1 %v6291_v21, %s5913_s24 }
 0x10f   :  { %653 = vrot.lane.b32.xlu0 %v6265_v15, %s5913_s24 }
 0x110   :  { %v848_v5 = vpop.permute.xlu1 %847  ;;  %v652_v6 = vpop.permute.xlu0 %651 }
 0x111   :  { %891 = vst.msk [vmem:[#allocation2 + $0x31] sm:$0xff] %vm883_vm14, %v848_v5 }
 0x112   :  { %694 = vst.msk [vmem:[#allocation2 + $0x3c] sm:$0xf] %vm689_vm12, %v652_v6  ;;  %192 = vrot.lane.b32.xlu1 %v6265_v15, %s5914_s25 }
 0x113   :  { %132 = vrot.lane.b32.xlu0 %v6327_v31, %s5912_s15 }
 0x114   :  { %v912_v43 = vpop.permute.xlu1 %911  ;;  %v910_v44 = vpop.permute.xlu0 %909 }
 0x115   :  { %955 = vst.msk [vmem:[#allocation2 + $0x28] sm:$0xff] %vm949_vm10, %v912_v43  ;;  %954 = vst.msk [vmem:[#allocation2 + $0x20] sm:$0xff] %vm949_vm10, %v910_v44 }
 0x116   :  { %196 = vrot.lane.b32.xlu1 %v6286_v20, %s5914_s25 }
 0x117   :  { %194 = vrot.lane.b32.xlu0 %v6291_v21, %s5914_s25 }
 0x118   :  { %v718_v45 = vpop.permute.xlu1 %717  ;;  %v1171_v46 = vpop.permute.xlu0 %1170 }
 0x119   :  { %760 = vst.msk [vmem:[#allocation2 + $0x3b] sm:$0x1f] %vm755_vm15, %v718_v45 }
 0x11a   :  { %1217 = vst.msk [vmem:[#allocation2 + $0x14] sm:$0xff] %vm10939_vm2, %v1171_v46  ;;  %583 = vrot.lane.b32.xlu1 %v6123_v7, %s10961_s17 }
 0x11b   :  { %387 = vrot.lane.b32.xlu0 %v6156_v8, %s5920_s12 }
 0x11c   :  { %v975_v47 = vpop.permute.xlu1 %974  ;;  %v914_v48 = vpop.permute.xlu0 %913 }
 0x11d   :  { %1020 = vst.msk [vmem:[#allocation2 + $0x1f] sm:$0xfe] %vm10937_vm13, %v975_v47  ;;  %vm10963_vm13 = vcmask 130170  }
 0x11e   :  { %956 = vst.msk [vmem:[#allocation2 + $0x30] sm:$0xff] %vm949_vm10, %v914_v48  ;;  %719 = vrot.lane.b32.xlu1 %v6265_v15, %s5915_s26 }
 0x11f   :  { %657 = vrot.lane.b32.xlu0 %v6286_v20, %s5913_s24 }
 0x120   :  { %v784_v49 = vpop.permute.xlu1 %783  ;;  %v977_v50 = vpop.permute.xlu0 %976 }
 0x121   :  { %v1232_v51 = vld [vmem:[#allocation2 + $0x10] sm:$0xff]  ;;  %v1233_v52 = vld [vmem:[#allocation2 + $0x18] sm:$0xff]  ;;  %826 = vst.msk [vmem:[#allocation2 + $0x3a] sm:$0x3f] %vm10962_vm1, %v784_v49  ;;  %vm10964_vm1 = vcmask 104544  }
 0x122   :  { %1021 = vst.msk [vmem:[#allocation2 + $0x27] sm:$0xff] %vm1016_vm7, %v977_v50  ;;  %5834 = vmatprep.mubr.msk.f32.mxu0 %vm50_vm0, %v1232_v51  ;;  %198 = vrot.lane.b32.xlu1 %v6327_v31, %s5914_s25 }
 0x123   :  { %721 = vrot.lane.b32.xlu0 %v6291_v21, %s5915_s26  ;;  %5835 = vmatmul.mubr.msk.f32.gmra.mxu0 %vm50_vm0, %v1233_v52 }
 0x124   :  { %v1041_v7 = vpop.permute.xlu1 %1040  ;;  %v979_v53 = vpop.permute.xlu0 %978 }
 0x125   :  { %1086 = vst.msk [vmem:[#allocation2 + $0x1e] sm:$0xfc] %vm10963_vm13, %v1041_v7  ;;  %vm10965_vm13 = vcmask 3072  }
 0x126   :  { %1022 = vst.msk [vmem:[#allocation2 + $0x2f] sm:$0xff] %vm1016_vm7, %v979_v53  ;;  %260 = vrot.lane.b32.xlu1 %v6291_v21, %s5916_s27 }
 0x127   :  { %258 = vrot.lane.b32.xlu0 %v6265_v15, %s5916_s27  ;;  %93 = vst.msk [vmem:[#allocation2 + $0xbc] sm:$0xf] %vm10965_vm13, %v6593_v58 }
 0x128   :  { %v850_v54 = vpop.permute.xlu1 %849  ;;  %v1043_v55 = vpop.permute.xlu0 %1042 }
 0x129   :  { %892 = vst.msk [vmem:[#allocation2 + $0x39] sm:$0x7f] %vm10964_vm1, %v850_v54  ;;  %vm10966_vm1 = vcmask 15368  }
 0x12a   :  { %1087 = vst.msk [vmem:[#allocation2 + $0x26] sm:$0xff] %vm1082_vm5, %v1043_v55  ;;  %453 = vrot.lane.b32.xlu1 %v6156_v8, %s5922_s14  ;;  %vm10967_vm13 = vmmov %vm10966_vm1 }
 0x12b   :  { %262 = vrot.lane.b32.xlu0 %v6286_v20, %s5916_s27 }
 0x12c   :  { %v1107_v56 = vpop.permute.xlu1 %1106  ;;  %v1045_v57 = vpop.permute.xlu0 %1044 }
 0x12d   :  { %1152 = vst.msk [vmem:[#allocation2 + $0x1d] sm:$0xf8] %vm1146_vm6, %v1107_v56 }
 0x12e   :  { %1088 = vst.msk [vmem:[#allocation2 + $0x2e] sm:$0xff] %vm1082_vm5, %v1045_v57  ;;  %785 = vrot.lane.b32.xlu1 %v6265_v15, %s5917_s30 }
 0x12f   :  { %723 = vrot.lane.b32.xlu0 %v6286_v20, %s5915_s26 }
 0x130   :  { %v916_v59 = vpop.permute.xlu1 %915  ;;  %v1109_v60 = vpop.permute.xlu0 %1108 }
 0x131   :  { %957 = vst.msk [vmem:[#allocation2 + $0x38] sm:$0xff] %vm949_vm10, %v916_v59 }
 0x132   :  { %1153 = vst.msk [vmem:[#allocation2 + $0x25] sm:$0xff] %vm1148_vm9, %v1109_v60  ;;  %264 = vrot.lane.b32.xlu1 %v6327_v31, %s5916_s27 }
 0x133   :  { %787 = vrot.lane.b32.xlu0 %v6291_v21, %s5917_s30 }
 0x134   :  { %v1173_v61 = vpop.permute.xlu1 %1172  ;;  %v1111_v62 = vpop.permute.xlu0 %1110 }
 0x135   :  { %1218 = vst.msk [vmem:[#allocation2 + $0x1c] sm:$0xf0] %vm10938_vm3, %v1173_v61 }
 0x136   :  { %1154 = vst.msk [vmem:[#allocation2 + $0x2d] sm:$0xff] %vm1148_vm9, %v1111_v62  ;;  %326 = vrot.lane.b32.xlu1 %v6291_v21, %s5918_s10 }
 0x137   :  { %324 = vrot.lane.b32.xlu0 %v6265_v15, %s5918_s10 }
 0x138   :  { %v119_v63 = vpop.permute.xlu1 %118  ;;  %v1175_v0 = vpop.permute.xlu0 %1174 }
 0x139   :  { %164 = vst.msk [vmem:[#allocation2 + $0x43] sm:$0xff] %vm10966_vm1, %v119_v63 }
 0x13a   :  { %1219 = vst.msk [vmem:[#allocation2 + $0x24] sm:$0xff] %vm10939_vm2, %v1175_v0  ;;  %519 = vrot.lane.b32.xlu1 %v6156_v8, %s10960_s22 }
 0x13b   :  { %328 = vrot.lane.b32.xlu0 %v6286_v20, %s5918_s10 }
 0x13c   :  { %v981_v1 = vpop.permute.xlu1 %980  ;;  %v121_v2 = vpop.permute.xlu0 %120 }
 0x13d   :  { %1023 = vst.msk [vmem:[#allocation2 + $0x37] sm:$0xff] %vm1016_vm7, %v981_v1 }
 0x13e   :  { %165 = vst.msk [vmem:[#allocation2 + $0x4b] sm:$0xff] %vm10967_vm13, %v121_v2  ;;  %851 = vrot.lane.b32.xlu1 %v6265_v15, %s5919_s11  ;;  %vm10968_vm13 = vcmask 23568  }
 0x13f   :  { %789 = vrot.lane.b32.xlu0 %v6286_v20, %s5917_s30  ;;  %vm10969_vm3 = vmmov %vm10968_vm13 }
 0x140   :  { %v123_v3 = vpop.permute.xlu1 %122  ;;  %v1177_v4 = vpop.permute.xlu0 %1176 }
 0x141   :  { %v1234_v9 = vld [vmem:[#allocation2 + $0x20] sm:$0xff]  ;;  %166 = vst.msk [vmem:[#allocation2 + $0x53] sm:$0xff] %vm10966_vm1, %v123_v3  ;;  %vm10970_vm1 = vmmov %vm10969_vm3 }
 0x142   :  { %1220 = vst.msk [vmem:[#allocation2 + $0x2c] sm:$0xff] %vm10939_vm2, %v1177_v4  ;;  %5837 = vmatprep.mubr.msk.f32.mxu0 %vm50_vm0, %v1234_v9  ;;  %330 = vrot.lane.b32.xlu1 %v6327_v31, %s5918_s10 }
 0x143   :  { %853 = vrot.lane.b32.xlu0 %v6291_v21, %s5919_s11 }
 0x144   :  { %v187_v10 = vpop.permute.xlu1 %186  ;;  %v185_v11 = vpop.permute.xlu0 %184 }
 0x145   :  { %231 = vst.msk [vmem:[#allocation2 + $0x4a] sm:$0xff] %vm10968_vm13, %v187_v10 }
 0x146   :  { %230 = vst.msk [vmem:[#allocation2 + $0x42] sm:$0xff] %vm10969_vm3, %v185_v11  ;;  %391 = vrot.lane.b32.xlu1 %v6291_v21, %s5920_s12  ;;  %vm10971_vm3 = vcmask 31768  }
 0x147   :  { %389 = vrot.lane.b32.xlu0 %v6265_v15, %s5920_s12  ;;  %vm10972_vm13 = vmmov %vm10971_vm3 }
 0x148   :  { %v189_v12 = vpop.permute.xlu1 %188  ;;  %v1047_v13 = vpop.permute.xlu0 %1046 }
 0x149   :  { %v1235_v14 = vld [vmem:[#allocation2 + $0x28] sm:$0xff]  ;;  %232 = vst.msk [vmem:[#allocation2 + $0x52] sm:$0xff] %vm10970_vm1, %v189_v12  ;;  %vm10973_vm1 = vmmov %vm10971_vm3 }
 0x14a   :  { %1089 = vst.msk [vmem:[#allocation2 + $0x36] sm:$0xff] %vm1082_vm5, %v1047_v13  ;;  %5838 = vmatmul.mubr.msk.f32.gmra.mxu0 %vm50_vm0, %v1235_v14  ;;  %585 = vrot.lane.b32.xlu1 %v6156_v8, %s10961_s17 }
 0x14b   :  { %393 = vrot.lane.b32.xlu0 %v6286_v20, %s5920_s12 }
 0x14c   :  { %v253_v16 = vpop.permute.xlu1 %252  ;;  %v251_v17 = vpop.permute.xlu0 %250 }
 0x14d   :  { %297 = vst.msk [vmem:[#allocation2 + $0x49] sm:$0xff] %vm10971_vm3, %v253_v16  ;;  %vm10974_vm3 = vcmask 39968  }
 0x14e   :  { %296 = vst.msk [vmem:[#allocation2 + $0x41] sm:$0xff] %vm10972_vm13, %v251_v17  ;;  %855 = vrot.lane.b32.xlu1 %v6286_v20, %s5919_s11  ;;  %vm10975_vm13 = vmmov %vm10974_vm3 }
 0x14f   :  { %659 = vrot.lane.b32.xlu0 %v6327_v31, %s5913_s24 }
 0x150   :  { %v255_v18 = vpop.permute.xlu1 %254  ;;  %v1113_v19 = vpop.permute.xlu0 %1112 }
 0x151   :  { %298 = vst.msk [vmem:[#allocation2 + $0x51] sm:$0xff] %vm10973_vm1, %v255_v18  ;;  %vm10976_vm1 = vcmask 12296  }
 0x152   :  { %1155 = vst.msk [vmem:[#allocation2 + $0x35] sm:$0xff] %vm1148_vm9, %v1113_v19  ;;  %919 = vrot.lane.b32.xlu1 %v6291_v21, %s5921_s13 }
 0x153   :  { %917 = vrot.lane.b32.xlu0 %v6265_v15, %s5921_s13 }
 0x154   :  { %v319_v8 = vpop.permute.xlu1 %318  ;;  %v317_v22 = vpop.permute.xlu0 %316 }
 0x155   :  { %362 = vst.msk [vmem:[#allocation2 + $0x48] sm:$0xff] %vm10974_vm3, %v319_v8  ;;  %vm10977_vm3 = vcmask 48169  }
 0x156   :  { %361 = vst.msk [vmem:[#allocation2 + $0x40] sm:$0xff] %vm10975_vm13, %v317_v22  ;;  %455 = vrot.lane.b32.xlu1 %v6265_v15, %s5922_s14 }
 0x157   :  { %395 = vrot.lane.b32.xlu0 %v6327_v31, %s5920_s12 }
 0x158   :  { %v125_v23 = vpop.permute.xlu1 %124  ;;  %v1179_v24 = vpop.permute.xlu0 %1178 }
 0x159   :  { %167 = vst.msk [vmem:[#allocation2 + $0x5b] sm:$0x1f] %vm10976_vm1, %v125_v23  ;;  %vm10978_vm1 = vcmask 21520  }
 0x15a   :  { %1221 = vst.msk [vmem:[#allocation2 + $0x34] sm:$0xff] %vm10939_vm2, %v1179_v24  ;;  %459 = vrot.lane.b32.xlu1 %v6286_v20, %s5922_s14  ;;  %vm10979_vm2 = vcmask 48168  }
 0x15b   :  { %457 = vrot.lane.b32.xlu0 %v6291_v21, %s5922_s14 }
 0x15c   :  { %v382_v25 = vpop.permute.xlu1 %381  ;;  %v321_v26 = vpop.permute.xlu0 %320 }
 0x15d   :  { %427 = vst.msk [vmem:[#allocation2 + $0x3f] sm:$0xfe] %vm10977_vm3, %v382_v25  ;;  %vm10980_vm3 = vcmask 56370  }
 0x15e   :  { %363 = vst.msk [vmem:[#allocation2 + $0x50] sm:$0xff] %vm10975_vm13, %v321_v26  ;;  %921 = vrot.lane.b32.xlu1 %v6286_v20, %s5921_s13  ;;  %vm10981_vm13 = vmmov %vm10979_vm2 }
 0x15f   :  { %725 = vrot.lane.b32.xlu0 %v6327_v31, %s5915_s26 }
 0x160   :  { %v191_v27 = vpop.permute.xlu1 %190  ;;  %v384_v28 = vpop.permute.xlu0 %383 }
 0x161   :  { %v1236_v29 = vld [vmem:[#allocation2 + $0x30] sm:$0xff]  ;;  %v1237_v30 = vld [vmem:[#allocation2 + $0x38] sm:$0xff]  ;;  %233 = vst.msk [vmem:[#allocation2 + $0x5a] sm:$0x3f] %vm10978_vm1, %v191_v27  ;;  %vm10983_vm1 = vcmask 56368  }
 0x162   :  { %428 = vst.msk [vmem:[#allocation2 + $0x47] sm:$0xff] %vm10979_vm2, %v384_v28  ;;  %5840 = vmatprep.mubr.msk.f32.mxu0 %vm50_vm0, %v1236_v29  ;;  %984 = vrot.lane.b32.xlu1 %v6291_v21, %s5923_s16  ;;  %vm10982_vm2 = vcmask 30744  }
 0x163   :  { %982 = vrot.lane.b32.xlu0 %v6265_v15, %s5923_s16  ;;  %5841 = vmatmul.mubr.msk.f32.gmra.mxu0 %vm50_vm0, %v1237_v30 }
 0x164   :  { %v448_v32 = vpop.permute.xlu1 %447  ;;  %v386_v33 = vpop.permute.xlu0 %385 }
 0x165   :  { %493 = vst.msk [vmem:[#allocation2 + $0x3e] sm:$0xfc] %vm10980_vm3, %v448_v32  ;;  %vm10984_vm3 = vcmask 64571  }
 0x166   :  { %429 = vst.msk [vmem:[#allocation2 + $0x4f] sm:$0xff] %vm10981_vm13, %v386_v33  ;;  %521 = vrot.lane.b32.xlu1 %v6265_v15, %s10960_s22  ;;  %vm10985_vm13 = vmmov %vm10983_vm1 }
 0x167   :  { %461 = vrot.lane.b32.xlu0 %v6327_v31, %s5922_s14 }
 0x168   :  { %v257_v34 = vpop.permute.xlu1 %256  ;;  %v450_v35 = vpop.permute.xlu0 %449 }
 0x169   :  { %299 = vst.msk [vmem:[#allocation2 + $0x59] sm:$0x7f] %vm10982_vm2, %v257_v34  ;;  %vm10986_vm2 = vcmask 15368  }
 0x16a   :  { %494 = vst.msk [vmem:[#allocation2 + $0x46] sm:$0xff] %vm10983_vm1, %v450_v35  ;;  %525 = vrot.lane.b32.xlu1 %v6286_v20, %s10960_s22  ;;  %vm10987_vm1 = vcmask 64568  }
 0x16b   :  { %523 = vrot.lane.b32.xlu0 %v6291_v21, %s10960_s22 }
 0x16c   :  { %v514_v37 = vpop.permute.xlu1 %513  ;;  %v452_v38 = vpop.permute.xlu0 %451 }
 0x16d   :  { %559 = vst.msk [vmem:[#allocation2 + $0x3d] sm:$0xf8] %vm10984_vm3, %v514_v37  ;;  %vm10988_vm3 = vmmov %vm10986_vm2 }
 0x16e   :  { %495 = vst.msk [vmem:[#allocation2 + $0x4e] sm:$0xff] %vm10985_vm13, %v452_v38  ;;  %986 = vrot.lane.b32.xlu1 %v6286_v20, %s5923_s16  ;;  %vm10989_vm13 = vmmov %vm10986_vm2 }
 0x16f   :  { %791 = vrot.lane.b32.xlu0 %v6327_v31, %s5917_s30 }
 0x170   :  { %v127_v40 = vpop.permute.xlu1 %126 }
 0x171   :  { %v516_v41 = vpop.permute.xlu0 %515  ;;  %168 = vst.msk [vmem:[#allocation2 + $0x83] sm:$0xff] %vm10986_vm2, %v127_v40  ;;  %vm10990_vm2 = vmmov %vm10987_vm1 }
 0x172   :  { %560 = vst.msk [vmem:[#allocation2 + $0x45] sm:$0xff] %vm10987_vm1, %v516_v41  ;;  %1050 = vrot.lane.b32.xlu1 %v6291_v21, %s5925_s18  ;;  %vm10991_vm1 = vcmask 39968  }
 0x173   :  { %1048 = vrot.lane.b32.xlu0 %v6265_v15, %s5925_s18 }
 0x174   :  { %v131_v5 = vpop.permute.xlu1 %130 }
 0x175   :  { %v129_v6 = vpop.permute.xlu0 %128  ;;  %170 = vst.msk [vmem:[#allocation2 + $0x93] sm:$0xff] %vm10988_vm3, %v131_v5  ;;  %vm10992_vm3 = vcmask 72768  }
 0x176   :  { %169 = vst.msk [vmem:[#allocation2 + $0x8b] sm:$0xff] %vm10989_vm13, %v129_v6  ;;  %589 = vrot.lane.b32.xlu1 %v6291_v21, %s10961_s17  ;;  %vm10993_vm13 = vcmask 72772  }
 0x177   :  { %527 = vrot.lane.b32.xlu0 %v6327_v31, %s10960_s22 }
 0x178   :  { %v518_v43 = vpop.permute.xlu1 %517 }
 0x179   :  { %v323_v44 = vpop.permute.xlu0 %322  ;;  %561 = vst.msk [vmem:[#allocation2 + $0x4d] sm:$0xff] %vm10990_vm2, %v518_v43  ;;  %vm10994_vm2 = vcmask 23568  }
 0x17a   :  { %364 = vst.msk [vmem:[#allocation2 + $0x58] sm:$0xff] %vm10991_vm1, %v323_v44  ;;  %857 = vrot.lane.b32.xlu1 %v6327_v31, %s5919_s11  ;;  %vm10995_vm1 = vcmask 12296  }
 0x17b   :  { %591 = vrot.lane.b32.xlu0 %v6286_v20, %s10961_s17 }
 0x17c   :  { %v582_v45 = vpop.permute.xlu1 %581 }
 0x17d   :  { %v580_v46 = vpop.permute.xlu0 %579  ;;  %626 = vst.msk [vmem:[#allocation2 + $0x44] sm:$0xff] %vm10992_vm3, %v582_v45  ;;  %vm10996_vm3 = vmmov %vm10994_vm2 }
 0x17e   :  { %625 = vst.msk [vmem:[#allocation2 + $0x3c] sm:$0xf0] %vm10993_vm13, %v580_v46  ;;  %1114 = vrot.lane.b32.xlu1 %v6265_v15, %s5927_s20  ;;  %vm10997_vm13 = vmmov %vm10994_vm2 }
 0x17f   :  { %1052 = vrot.lane.b32.xlu0 %v6286_v20, %s5925_s18 }
 0x180   :  { %v656_v47 = vpop.permute.xlu1 %655 }
 0x181   :  { %v654_v48 = vpop.permute.xlu0 %653  ;;  %696 = vst.msk [vmem:[#allocation2 + $0x6c] sm:$0xff] %vm685_vm4, %v656_v47 }
 0x182   :  { %695 = vst.msk [vmem:[#allocation2 + $0x64] sm:$0xff] %vm685_vm4, %v654_v48  ;;  %587 = vrot.lane.b32.xlu1 %v6265_v15, %s10961_s17 }
 0x183   :  { %1116 = vrot.lane.b32.xlu0 %v6291_v21, %s5927_s20 }
 0x184   :  { %v193_v49 = vpop.permute.xlu1 %192 }
 0x185   :  { %v133_v50 = vpop.permute.xlu0 %132  ;;  %v1238_v51 = vld [vmem:[#allocation2 + $0x40] sm:$0xff]  ;;  %234 = vst.msk [vmem:[#allocation2 + $0x82] sm:$0xff] %vm10994_vm2, %v193_v49  ;;  %vm10998_vm2 = vcmask 72768  }
 0x186   :  { %171 = vst.msk [vmem:[#allocation2 + $0x9b] sm:$0x1f] %vm10995_vm1, %v133_v50  ;;  %5843 = vmatprep.mubr.msk.f32.mxu0 %vm50_vm0, %v1238_v51  ;;  %661 = vrot.lane.b32.xlu1 %v6510_v36, %s5913_s24  ;;  %vm10999_vm1 = vcmask 48168  }
 0x187   :  { %593 = vrot.lane.b32.xlu0 %v6327_v31, %s10961_s17 }
 0x188   :  { %v197_v52 = vpop.permute.xlu1 %196 }
 0x189   :  { %v195_v7 = vpop.permute.xlu0 %194  ;;  %236 = vst.msk [vmem:[#allocation2 + $0x92] sm:$0xff] %vm10996_vm3, %v197_v52  ;;  %vm11000_vm3 = vcmask 21520  }
 0x18a   :  { %235 = vst.msk [vmem:[#allocation2 + $0x8a] sm:$0xff] %vm10997_vm13, %v195_v7  ;;  %923 = vrot.lane.b32.xlu1 %v6327_v31, %s5921_s13  ;;  %vm11001_vm13 = vcmask 31768  }
 0x18b   :  { %663 = vrot.lane.b32.xlu0 %v6527_v39, %s5913_s24 }
 0x18c   :  { %v584_v53 = vpop.permute.xlu1 %583 }
 0x18d   :  { %v388_v54 = vpop.permute.xlu0 %387  ;;  %627 = vst.msk [vmem:[#allocation2 + $0x4c] sm:$0xff] %vm10998_vm2, %v584_v53  ;;  %vm11002_vm2 = vmmov %vm11001_vm13 }
 0x18e   :  { %430 = vst.msk [vmem:[#allocation2 + $0x57] sm:$0xff] %vm10999_vm1, %v388_v54  ;;  %1180 = vrot.lane.b32.xlu1 %v6265_v15, %s5928_s23  ;;  %vm11003_vm1 = vcmask 56368  }
 0x18f   :  { %1118 = vrot.lane.b32.xlu0 %v6286_v20, %s5927_s20 }
 0x190   :  { %v720_v55 = vpop.permute.xlu1 %719 }
 0x191   :  { %v658_v56 = vpop.permute.xlu0 %657  ;;  %761 = vst.msk [vmem:[#allocation2 + $0x63] sm:$0xff] %vm751_vm8, %v720_v55 }
 0x192   :  { %697 = vst.msk [vmem:[#allocation2 + $0x74] sm:$0xff] %vm685_vm4, %v658_v56  ;;  %665 = vrot.lane.b32.xlu1 %v6542_v42, %s5913_s24 }
 0x193   :  { %1182 = vrot.lane.b32.xlu0 %v6291_v21, %s5928_s23 }
 0x194   :  { %v199_v57 = vpop.permute.xlu1 %198  ;;  %v1239_v60 = vld [vmem:[#allocation2 + $0x48] sm:$0xff] }
 0x195   :  { %v722_v59 = vpop.permute.xlu0 %721  ;;  %237 = vst.msk [vmem:[#allocation2 + $0x9a] sm:$0x3f] %vm11000_vm3, %v199_v57  ;;  %5844 = vmatmul.mubr.msk.f32.gmra.mxu0 %vm50_vm0, %v1239_v60  ;;  %vm11004_vm3 = vmmov %vm11002_vm2 }
 0x196   :  { %762 = vst.msk [vmem:[#allocation2 + $0x6b] sm:$0xff] %vm751_vm8, %v722_v59  ;;  %729 = vrot.lane.b32.xlu1 %v6527_v39, %s5915_s26 }
 0x197   :  { %727 = vrot.lane.b32.xlu0 %v6510_v36, %s5915_s26 }
 0x198   :  { %v261_v15 = vpop.permute.xlu1 %260 }
 0x199   :  { %v259_v61 = vpop.permute.xlu0 %258  ;;  %301 = vst.msk [vmem:[#allocation2 + $0x89] sm:$0xff] %vm11001_vm13, %v261_v15  ;;  %vm11005_vm13 = vcmask 30744  }
 0x19a   :  { %300 = vst.msk [vmem:[#allocation2 + $0x81] sm:$0xff] %vm11002_vm2, %v259_v61  ;;  %1184 = vrot.lane.b32.xlu1 %v6286_v20, %s5928_s23  ;;  %vm11006_vm2 = vcmask 39968  }
 0x19b   :  { %988 = vrot.lane.b32.xlu0 %v6327_v31, %s5923_s16 }
 0x19c   :  { %v454_v21 = vpop.permute.xlu1 %453 }
 0x19d   :  { %v263_v62 = vpop.permute.xlu0 %262  ;;  %496 = vst.msk [vmem:[#allocation2 + $0x56] sm:$0xff] %vm11003_vm1, %v454_v21  ;;  %vm11007_vm1 = vmmov %vm11006_vm2 }
 0x19e   :  { %302 = vst.msk [vmem:[#allocation2 + $0x91] sm:$0xff] %vm11004_vm3, %v263_v62  ;;  %793 = vrot.lane.b32.xlu1 %v6510_v36, %s5917_s30  ;;  %vm11008_vm3 = vcmask 64568  }
 0x19f   :  { %731 = vrot.lane.b32.xlu0 %v6542_v42, %s5915_s26 }
 0x1a0   :  { %v786_v63 = vpop.permute.xlu1 %785 }
 0x1a1   :  { %v724_v0 = vpop.permute.xlu0 %723  ;;  %827 = vst.msk [vmem:[#allocation2 + $0x62] sm:$0xff] %vm817_vm11, %v786_v63 }
 0x1a2   :  { %763 = vst.msk [vmem:[#allocation2 + $0x73] sm:$0xff] %vm751_vm8, %v724_v0  ;;  %1054 = vrot.lane.b32.xlu1 %v6327_v31, %s5925_s18 }
 0x1a3   :  { %795 = vrot.lane.b32.xlu0 %v6527_v39, %s5917_s30 }
 0x1a4   :  { %v265_v20 = vpop.permute.xlu1 %264 }
 0x1a5   :  { %v788_v1 = vpop.permute.xlu0 %787  ;;  %303 = vst.msk [vmem:[#allocation2 + $0x99] sm:$0x7f] %vm11005_vm13, %v265_v20  ;;  %vm11009_vm13 = vmmov %vm11007_vm1 }
 0x1a6   :  { %828 = vst.msk [vmem:[#allocation2 + $0x6a] sm:$0xff] %vm817_vm11, %v788_v1  ;;  %859 = vrot.lane.b32.xlu1 %v6510_v36, %s5919_s11 }
 0x1a7   :  { %797 = vrot.lane.b32.xlu0 %v6542_v42, %s5917_s30 }
 0x1a8   :  { %v327_v2 = vpop.permute.xlu1 %326 }
 0x1a9   :  { %v325_v3 = vpop.permute.xlu0 %324  ;;  %366 = vst.msk [vmem:[#allocation2 + $0x88] sm:$0xff] %vm11006_vm2, %v327_v2  ;;  %vm11010_vm2 = vmmov %vm11007_vm1 }
 0x1aa   :  { %365 = vst.msk [vmem:[#allocation2 + $0x80] sm:$0xff] %vm11007_vm1, %v325_v3  ;;  %1120 = vrot.lane.b32.xlu1 %v6327_v31, %s5927_s20  ;;  %vm11011_vm1 = vcmask 48168  }
 0x1ab   :  { %861 = vrot.lane.b32.xlu0 %v6527_v39, %s5919_s11 }
 0x1ac   :  { %v520_v4 = vpop.permute.xlu1 %519 }
 0x1ad   :  { %v329_v9 = vpop.permute.xlu0 %328  ;;  %562 = vst.msk [vmem:[#allocation2 + $0x55] sm:$0xff] %vm11008_vm3, %v520_v4  ;;  %vm11012_vm3 = vcmask 48169  }
 0x1ae   :  { %367 = vst.msk [vmem:[#allocation2 + $0x90] sm:$0xff] %vm11009_vm13, %v329_v9  ;;  %863 = vrot.lane.b32.xlu1 %v6542_v42, %s5919_s11  ;;  %vm11013_vm13 = vcmask 72768  }
 0x1af   :  { %667 = vrot.lane.b32.xlu0 %v6593_v58, %s5913_s24  ;;  %s5931_s24 = smov 64  }
 0x1b0   :  { %v852_v10 = vpop.permute.xlu1 %851 }
 0x1b1   :  { %v790_v11 = vpop.permute.xlu0 %789  ;;  %893 = vst.msk [vmem:[#allocation2 + $0x61] sm:$0xff] %vm883_vm14, %v852_v10 }
 0x1b2   :  { %829 = vst.msk [vmem:[#allocation2 + $0x72] sm:$0xff] %vm817_vm11, %v790_v11  ;;  %927 = vrot.lane.b32.xlu1 %v6527_v39, %s5921_s13 }
 0x1b3   :  { %925 = vrot.lane.b32.xlu0 %v6510_v36, %s5921_s13 }
 0x1b4   :  { %v331_v12 = vpop.permute.xlu1 %330 }
 0x1b5   :  { %v854_v13 = vpop.permute.xlu0 %853  ;;  %368 = vst.msk [vmem:[#allocation2 + $0x98] sm:$0xff] %vm11010_vm2, %v331_v12  ;;  %vm11014_vm2 = vmmov %vm11011_vm1 }
 0x1b6   :  { %894 = vst.msk [vmem:[#allocation2 + $0x69] sm:$0xff] %vm883_vm14, %v854_v13  ;;  %733 = vrot.lane.b32.xlu1 %v6593_v58, %s5915_s26 }
 0x1b7   :  { %1186 = vrot.lane.b32.xlu0 %v6327_v31, %s5928_s23 }
 0x1b8   :  { %v392_v14 = vpop.permute.xlu1 %391 }
 0x1b9   :  { %v390_v16 = vpop.permute.xlu0 %389  ;;  %432 = vst.msk [vmem:[#allocation2 + $0x87] sm:$0xff] %vm11011_vm1, %v392_v14  ;;  %vm11015_vm1 = vcmask 56370  }
 0x1ba   :  { %431 = vst.msk [vmem:[#allocation2 + $0x7f] sm:$0xfe] %vm11012_vm3, %v390_v16  ;;  %990 = vrot.lane.b32.xlu1 %v6510_v36, %s5923_s16  ;;  %vm11016_vm3 = vmmov %vm11014_vm2 }
 0x1bb   :  { %929 = vrot.lane.b32.xlu0 %v6542_v42, %s5921_s13 }
 0x1bc   :  { %v586_v17 = vpop.permute.xlu1 %585 }
 0x1bd   :  { %v394_v18 = vpop.permute.xlu0 %393  ;;  %628 = vst.msk [vmem:[#allocation2 + $0x54] sm:$0xff] %vm11013_vm13, %v586_v17  ;;  %vm11017_vm13 = vcmask 56368  }
 0x1be   :  { %433 = vst.msk [vmem:[#allocation2 + $0x8f] sm:$0xff] %vm11014_vm2, %v394_v18  ;;  %799 = vrot.lane.b32.xlu1 %v6593_v58, %s5917_s30  ;;  %vm11018_vm2 = vmmov %vm11017_vm13 }
 0x1bf   :  { %992 = vrot.lane.b32.xlu0 %v6527_v39, %s5923_s16 }
 0x1c0   :  { %v856_v31 = vpop.permute.xlu1 %855 }
 0x1c1   :  { %v660_v19 = vpop.permute.xlu0 %659  ;;  %895 = vst.msk [vmem:[#allocation2 + $0x71] sm:$0xff] %vm883_vm14, %v856_v31 }
 0x1c2   :  { %698 = vst.msk [vmem:[#allocation2 + $0x7c] sm:$0xf] %vm689_vm12, %v660_v19  ;;  %1056 = vrot.lane.b32.xlu1 %v6510_v36, %s5925_s18 }
 0x1c3   :  { %994 = vrot.lane.b32.xlu0 %v6542_v42, %s5923_s16 }
 0x1c4   :  { %v920_v8 = vpop.permute.xlu1 %919  ;;  %v1240_v23 = vld [vmem:[#allocation2 + $0x50] sm:$0xff]  ;;  %v1241_v24 = vld [vmem:[#allocation2 + $0x58] sm:$0xff] }
 0x1c5   :  { %v918_v22 = vpop.permute.xlu0 %917  ;;  %959 = vst.msk [vmem:[#allocation2 + $0x68] sm:$0xff] %vm949_vm10, %v920_v8  ;;  %5846 = vmatprep.mubr.msk.f32.mxu0 %vm50_vm0, %v1240_v23 }
 0x1c6   :  { %958 = vst.msk [vmem:[#allocation2 + $0x60] sm:$0xff] %vm949_vm10, %v918_v22  ;;  %5847 = vmatmul.mubr.msk.f32.gmra.mxu0 %vm50_vm0, %v1241_v24  ;;  %865 = vrot.lane.b32.xlu1 %v6593_v58, %s5919_s11 }
 0x1c7   :  { %1058 = vrot.lane.b32.xlu0 %v6527_v39, %s5925_s18 }
 0x1c8   :  { %v456_v25 = vpop.permute.xlu1 %455 }
 0x1c9   :  { %v396_v26 = vpop.permute.xlu0 %395  ;;  %497 = vst.msk [vmem:[#allocation2 + $0x7e] sm:$0xfc] %vm11015_vm1, %v456_v25  ;;  %vm11019_vm1 = vcmask 121969  }
 0x1ca   :  { %434 = vst.msk [vmem:[#allocation2 + $0x97] sm:$0xff] %vm11016_vm3, %v396_v26  ;;  %1122 = vrot.lane.b32.xlu1 %v6510_v36, %s5927_s20  ;;  %vm11020_vm3 = vcmask 64571  }
 0x1cb   :  { %1060 = vrot.lane.b32.xlu0 %v6542_v42, %s5925_s18 }
 0x1cc   :  { %v460_v27 = vpop.permute.xlu1 %459 }
 0x1cd   :  { %v458_v28 = vpop.permute.xlu0 %457  ;;  %499 = vst.msk [vmem:[#allocation2 + $0x8e] sm:$0xff] %vm11017_vm13, %v460_v27  ;;  %vm11021_vm13 = vmmov %vm11018_vm2 }
 0x1ce   :  { %498 = vst.msk [vmem:[#allocation2 + $0x86] sm:$0xff] %vm11018_vm2, %v458_v28  ;;  %931 = vrot.lane.b32.xlu1 %v6593_v58, %s5921_s13  ;;  %vm11022_vm2 = vcmask 64568  }
 0x1cf   :  { %1124 = vrot.lane.b32.xlu0 %v6527_v39, %s5927_s20 }
 0x1d0   :  { %v922_v29 = vpop.permute.xlu1 %921 }
 0x1d1   :  { %v726_v30 = vpop.permute.xlu0 %725  ;;  %960 = vst.msk [vmem:[#allocation2 + $0x70] sm:$0xff] %vm949_vm10, %v922_v29 }
 0x1d2   :  { %764 = vst.msk [vmem:[#allocation2 + $0x7b] sm:$0x1f] %vm755_vm15, %v726_v30  ;;  %1188 = vrot.lane.b32.xlu1 %v6510_v36, %s5928_s23 }
 0x1d3   :  { %1126 = vrot.lane.b32.xlu0 %v6542_v42, %s5927_s20 }
 0x1d4   :  { %v985_v32 = vpop.permute.xlu1 %984 }
 0x1d5   :  { %v983_v33 = vpop.permute.xlu0 %982  ;;  %1025 = vst.msk [vmem:[#allocation2 + $0x67] sm:$0xff] %vm1016_vm7, %v985_v32 }
 0x1d6   :  { %1024 = vst.msk [vmem:[#allocation2 + $0x5f] sm:$0xfe] %vm11019_vm1, %v983_v33  ;;  %134 = vrot.lane.b32.xlu1 %v6510_v36, %s5912_s15  ;;  %vm11023_vm1 = vmmov %vm11022_vm2 }
 0x1d7   :  { %1190 = vrot.lane.b32.xlu0 %v6527_v39, %s5928_s23 }
 0x1d8   :  { %v522_v34 = vpop.permute.xlu1 %521 }
 0x1d9   :  { %v462_v35 = vpop.permute.xlu0 %461  ;;  %563 = vst.msk [vmem:[#allocation2 + $0x7d] sm:$0xf8] %vm11020_vm3, %v522_v34  ;;  %vm11024_vm3 = vcmask 95320  }
 0x1da   :  { %500 = vst.msk [vmem:[#allocation2 + $0x96] sm:$0xff] %vm11021_vm13, %v462_v35  ;;  %996 = vrot.lane.b32.xlu1 %v6593_v58, %s5923_s16  ;;  %vm11025_vm13 = vcmask 130170  }
 0x1db   :  { %136 = vrot.lane.b32.xlu0 %v6527_v39, %s5912_s15 }
 0x1dc   :  { %v526_v37 = vpop.permute.xlu1 %525 }
 0x1dd   :  { %v524_v38 = vpop.permute.xlu0 %523  ;;  %565 = vst.msk [vmem:[#allocation2 + $0x8d] sm:$0xff] %vm11022_vm2, %v526_v37  ;;  %vm11026_vm2 = vcmask 72768  }
 0x1de   :  { %564 = vst.msk [vmem:[#allocation2 + $0x85] sm:$0xff] %vm11023_vm1, %v524_v38  ;;  %138 = vrot.lane.b32.xlu1 %v6542_v42, %s5912_s15 }
 0x1df   :  { %1192 = vrot.lane.b32.xlu0 %v6542_v42, %s5928_s23 }
 0x1e0   :  { %v987_v40 = vpop.permute.xlu1 %986 }
 0x1e1   :  { %v792_v41 = vpop.permute.xlu0 %791  ;;  %1026 = vst.msk [vmem:[#allocation2 + $0x6f] sm:$0xff] %vm1016_vm7, %v987_v40 }
 0x1e2   :  { %830 = vst.msk [vmem:[#allocation2 + $0x7a] sm:$0x3f] %vm11024_vm3, %v792_v41  ;;  %202 = vrot.lane.b32.xlu1 %v6527_v39, %s5914_s25  ;;  %vm11027_vm3 = vcmask 104544  }
 0x1e3   :  { %200 = vrot.lane.b32.xlu0 %v6510_v36, %s5914_s25 }
 0x1e4   :  { %v1051_v5 = vpop.permute.xlu1 %1050 }
 0x1e5   :  { %v1049_v6 = vpop.permute.xlu0 %1048  ;;  %1091 = vst.msk [vmem:[#allocation2 + $0x66] sm:$0xff] %vm1082_vm5, %v1051_v5 }
 0x1e6   :  { %1090 = vst.msk [vmem:[#allocation2 + $0x5e] sm:$0xfc] %vm11025_vm13, %v1049_v6  ;;  %204 = vrot.lane.b32.xlu1 %v6542_v42, %s5914_s25  ;;  %vm11028_vm13 = vmmov %vm11026_vm2 }
 0x1e7   :  { %1062 = vrot.lane.b32.xlu0 %v6593_v58, %s5925_s18 }
 0x1e8   :  { %v590_v43 = vpop.permute.xlu1 %589 }
 0x1e9   :  { %v528_v44 = vpop.permute.xlu0 %527  ;;  %630 = vst.msk [vmem:[#allocation2 + $0x84] sm:$0xff] %vm11026_vm2, %v590_v43  ;;  %vm11029_vm2 = vcmask 72772  }
 0x1ea   :  { %566 = vst.msk [vmem:[#allocation2 + $0x95] sm:$0xff] %vm11023_vm1, %v528_v44  ;;  %268 = vrot.lane.b32.xlu1 %v6527_v39, %s5916_s27  ;;  %vm11030_vm1 = vmmov %vm11028_vm13 }
 0x1eb   :  { %266 = vrot.lane.b32.xlu0 %v6510_v36, %s5916_s27 }
 0x1ec   :  { %v858_v45 = vpop.permute.xlu1 %857 }
 0x1ed   :  { %v592_v46 = vpop.permute.xlu0 %591  ;;  %896 = vst.msk [vmem:[#allocation2 + $0x79] sm:$0x7f] %vm11027_vm3, %v858_v45  ;;  %vm11031_vm3 = vcmask 146572  }
 0x1ee   :  { %631 = vst.msk [vmem:[#allocation2 + $0x8c] sm:$0xff] %vm11028_vm13, %v592_v46  ;;  %270 = vrot.lane.b32.xlu1 %v6542_v42, %s5916_s27  ;;  %vm11032_vm13 = vcmask 146568  }
 0x1ef   :  { %1128 = vrot.lane.b32.xlu0 %v6593_v58, %s5927_s20 }
 0x1f0   :  { %v1115_v47 = vpop.permute.xlu1 %1114 }
 0x1f1   :  { %v1053_v48 = vpop.permute.xlu0 %1052  ;;  %1156 = vst.msk [vmem:[#allocation2 + $0x5d] sm:$0xf8] %vm1146_vm6, %v1115_v47 }
 0x1f2   :  { %1092 = vst.msk [vmem:[#allocation2 + $0x6e] sm:$0xff] %vm1082_vm5, %v1053_v48  ;;  %334 = vrot.lane.b32.xlu1 %v6527_v39, %s5918_s10 }
 0x1f3   :  { %332 = vrot.lane.b32.xlu0 %v6510_v36, %s5918_s10 }
 0x1f4   :  { %v588_v49 = vpop.permute.xlu1 %587 }
 0x1f5   :  { %v1117_v50 = vpop.permute.xlu0 %1116  ;;  %629 = vst.msk [vmem:[#allocation2 + $0x7c] sm:$0xf0] %vm11029_vm2, %v588_v49  ;;  %vm11039_vm2 = vmmov %vm11031_vm3 }
 0x1f6   :  { %1157 = vst.msk [vmem:[#allocation2 + $0x65] sm:$0xff] %vm1148_vm9, %v1117_v50  ;;  %140 = vrot.lane.b32.xlu1 %v6593_v58, %s5912_s15  ;;  %s5934_s15 = smov 112  }
 0x1f7   :  { %1194 = vrot.lane.b32.xlu0 %v6593_v58, %s5928_s23  ;;  %s5933_s23 = smov 96  }
 0x1f8   :  { %v662_v51 = vpop.permute.xlu1 %661 }
 0x1f9   :  { %v594_v52 = vpop.permute.xlu0 %593  ;;  %699 = vst.msk [vmem:[#allocation2 + $0x84] sm:$0xff] %vm685_vm4, %v662_v51 }
 0x1fa   :  { %632 = vst.msk [vmem:[#allocation2 + $0x94] sm:$0xff] %vm11030_vm1, %v594_v52  ;;  %397 = vrot.lane.b32.xlu1 %v6510_v36, %s5920_s12 }
 0x1fb   :  { %336 = vrot.lane.b32.xlu0 %v6542_v42, %s5918_s10 }
 0x1fc   :  { %v924_v7 = vpop.permute.xlu1 %923 }
 0x1fd   :  { %v664_v53 = vpop.permute.xlu0 %663  ;;  %961 = vst.msk [vmem:[#allocation2 + $0x78] sm:$0xff] %vm949_vm10, %v924_v7 }
 0x1fe   :  { %700 = vst.msk [vmem:[#allocation2 + $0x8c] sm:$0xff] %vm685_vm4, %v664_v53  ;;  %206 = vrot.lane.b32.xlu1 %v6593_v58, %s5914_s25 }
 0x1ff   :  { %399 = vrot.lane.b32.xlu0 %v6527_v39, %s5920_s12 }
 0x200   :  { %v1181_v54 = vpop.permute.xlu1 %1180 }
 0x201   :  { %v1119_v55 = vpop.permute.xlu0 %1118  ;;  %1222 = vst.msk [vmem:[#allocation2 + $0x5c] sm:$0xf0] %vm11031_vm3, %v1181_v54  ;;  %vm11041_vm3 = vcmask 15368  }
 0x202   :  { %1158 = vst.msk [vmem:[#allocation2 + $0x6d] sm:$0xff] %vm1148_vm9, %v1119_v55  ;;  %463 = vrot.lane.b32.xlu1 %v6510_v36, %s5922_s14 }
 0x203   :  { %401 = vrot.lane.b32.xlu0 %v6542_v42, %s5920_s12 }
 0x204   :  { %v666_v56 = vpop.permute.xlu1 %665 }
 0x205   :  { %v1183_v57 = vpop.permute.xlu0 %1182  ;;  %701 = vst.msk [vmem:[#allocation2 + $0x94] sm:$0xff] %vm685_vm4, %v666_v56  ;;  %vm11033_vm4 = vmmov %vm11032_vm13 }
 0x206   :  { %1223 = vst.msk [vmem:[#allocation2 + $0x64] sm:$0xff] %vm11032_vm13, %v1183_v57  ;;  %272 = vrot.lane.b32.xlu1 %v6593_v58, %s5916_s27  ;;  %vm11040_vm1 = vmmov %vm11033_vm4 }
 0x207   :  { %465 = vrot.lane.b32.xlu0 %v6527_v39, %s5922_s14  ;;  %vm11044_vm13 = vmmov %vm11041_vm3 }
 0x208   :  { %v730_v59 = vpop.permute.xlu1 %729 }
 0x209   :  { %v728_v60 = vpop.permute.xlu0 %727  ;;  %766 = vst.msk [vmem:[#allocation2 + $0x8b] sm:$0xff] %vm751_vm8, %v730_v59 }
 0x20a   :  { %765 = vst.msk [vmem:[#allocation2 + $0x83] sm:$0xff] %vm751_vm8, %v728_v60  ;;  %529 = vrot.lane.b32.xlu1 %v6510_v36, %s10960_s22 }
 0x20b   :  { %467 = vrot.lane.b32.xlu0 %v6542_v42, %s5922_s14 }
 0x20c   :  { %v1185_v15 = vpop.permute.xlu1 %1184 }
 0x20d   :  { %v989_v61 = vpop.permute.xlu0 %988  ;;  %v1242_v21 = vld [vmem:[#allocation2 + $0x60] sm:$0xff]  ;;  %1224 = vst.msk [vmem:[#allocation2 + $0x6c] sm:$0xff] %vm11033_vm4, %v1185_v15 }
 0x20e   :  { %1027 = vst.msk [vmem:[#allocation2 + $0x77] sm:$0xff] %vm1016_vm7, %v989_v61  ;;  %5849 = vmatprep.mubr.msk.f32.mxu0 %vm50_vm0, %v1242_v21  ;;  %338 = vrot.lane.b32.xlu1 %v6593_v58, %s5918_s10 }
 0x20f   :  { %531 = vrot.lane.b32.xlu0 %v6527_v39, %s10960_s22 }
 0x210   :  { %v794_v63 = vpop.permute.xlu1 %793 }
 0x211   :  { %v732_v62 = vpop.permute.xlu0 %731  ;;  %831 = vst.msk [vmem:[#allocation2 + $0x82] sm:$0xff] %vm817_vm11, %v794_v63 }
 0x212   :  { %767 = vst.msk [vmem:[#allocation2 + $0x93] sm:$0xff] %vm751_vm8, %v732_v62  ;;  %595 = vrot.lane.b32.xlu1 %v6510_v36, %s10961_s17  ;;  %vm11034_vm8 = vmmov %vm11033_vm4  ;;  %vm11045_vm4 = vcmask 23568  }
 0x213   :  { %533 = vrot.lane.b32.xlu0 %v6542_v42, %s10960_s22 }
 0x214   :  { %v1055_v20 = vpop.permute.xlu1 %1054  ;;  %v1243_v1 = vld [vmem:[#allocation2 + $0x68] sm:$0xff] }
 0x215   :  { %v796_v0 = vpop.permute.xlu0 %795  ;;  %1093 = vst.msk [vmem:[#allocation2 + $0x76] sm:$0xff] %vm1082_vm5, %v1055_v20  ;;  %5850 = vmatmul.mubr.msk.f32.gmra.mxu0 %vm50_vm0, %v1243_v1 }
 0x216   :  { %832 = vst.msk [vmem:[#allocation2 + $0x8a] sm:$0xff] %vm817_vm11, %v796_v0  ;;  %403 = vrot.lane.b32.xlu1 %v6593_v58, %s5920_s12  ;;  %s5932_s12 = smov 80  }
 0x217   :  { %597 = vrot.lane.b32.xlu0 %v6527_v39, %s10961_s17 }
 0x218   :  { %v860_v3 = vpop.permute.xlu1 %859 }
 0x219   :  { %v798_v2 = vpop.permute.xlu0 %797  ;;  %897 = vst.msk [vmem:[#allocation2 + $0x81] sm:$0xff] %vm883_vm14, %v860_v3 }
 0x21a   :  { %833 = vst.msk [vmem:[#allocation2 + $0x92] sm:$0xff] %vm817_vm11, %v798_v2  ;;  %469 = vrot.lane.b32.xlu1 %v6593_v58, %s5922_s14  ;;  %vm11035_vm11 = vcmask 121969  }
 0x21b   :  { %599 = vrot.lane.b32.xlu0 %v6542_v42, %s10961_s17 }
 0x21c   :  { %v1121_v4 = vpop.permute.xlu1 %1120 }
 0x21d   :  { %v862_v36 = vpop.permute.xlu0 %861  ;;  %1159 = vst.msk [vmem:[#allocation2 + $0x75] sm:$0xff] %vm1148_vm9, %v1121_v4 }
 0x21e   :  { %898 = vst.msk [vmem:[#allocation2 + $0x89] sm:$0xff] %vm883_vm14, %v862_v36  ;;  %601 = vrot.lane.b32.xlu1 %v6593_v58, %s10961_s17  ;;  %s5929_s17 = smov 32  }
 0x21f   :  { %535 = vrot.lane.b32.xlu0 %v6593_v58, %s10960_s22 }
 0x220   :  { %v864_v9 = vpop.permute.xlu1 %863 }
 0x221   :  { %v668_v39 = vpop.permute.xlu0 %667  ;;  %899 = vst.msk [vmem:[#allocation2 + $0x91] sm:$0xff] %vm883_vm14, %v864_v9  ;;  %vm11037_vm14 = vcmask 130170  }
 0x222   :  { %702 = vst.msk [vmem:[#allocation2 + $0x9c] sm:$0xf] %vm689_vm12, %v668_v39  ;;  %vm11036_vm12 = vcmask 95320  }
 0x224   :  { %v928_v10 = vpop.permute.xlu1 %927 }
 0x225   :  { %v926_v42 = vpop.permute.xlu0 %925  ;;  %963 = vst.msk [vmem:[#allocation2 + $0x88] sm:$0xff] %vm949_vm10, %v928_v10 }
 0x226   :  { %962 = vst.msk [vmem:[#allocation2 + $0x80] sm:$0xff] %vm949_vm10, %v926_v42 }
 0x228   :  { %v734_v12 = vpop.permute.xlu1 %733 }
 0x229   :  { %v1187_v11 = vpop.permute.xlu0 %1186  ;;  %768 = vst.msk [vmem:[#allocation2 + $0x9b] sm:$0x1f] %vm755_vm15, %v734_v12  ;;  %vm11038_vm15 = vcmask 104544  }
 0x22a   :  { %1225 = vst.msk [vmem:[#allocation2 + $0x74] sm:$0xff] %vm11034_vm8, %v1187_v11  ;;  %vm11046_vm8 = vmmov %vm11045_vm4  ;;  %v7039_v11 = vpop.f32.mrf.mxu0 }
 0x22c   :  { %v991_v58 = vpop.permute.xlu1 %990  ;;  %v7041_v12 = vpop.f32.mrf.mxu0 }
 0x22d   :  { %v930_v13 = vpop.permute.xlu0 %929  ;;  %1028 = vst.msk [vmem:[#allocation2 + $0x7f] sm:$0xfe] %vm11035_vm11, %v991_v58  ;;  %vm11048_vm11 = vcmask 31768  }
 0x22e   :  { %964 = vst.msk [vmem:[#allocation2 + $0x90] sm:$0xff] %vm949_vm10, %v930_v13  ;;  %v7043_v13 = vpop.f32.mrf.mxu0 }
 0x230   :  { %v800_v16 = vpop.permute.xlu1 %799  ;;  %v7045_v58 = vpop.f32.mrf.mxu0 }
 0x231   :  { %v993_v14 = vpop.permute.xlu0 %992  ;;  %v1244_v17 = vld [vmem:[#allocation2 + $0x70] sm:$0xff]  ;;  %v1245_v18 = vld [vmem:[#allocation2 + $0x78] sm:$0xff]  ;;  %834 = vst.msk [vmem:[#allocation2 + $0x9a] sm:$0x3f] %vm11036_vm12, %v800_v16  ;;  %vm11049_vm12 = vmmov %vm11048_vm11 }
 0x232   :  { %1029 = vst.msk [vmem:[#allocation2 + $0x87] sm:$0xff] %vm1016_vm7, %v993_v14  ;;  %5852 = vmatprep.mubr.msk.f32.mxu0 %vm50_vm0, %v1244_v17  ;;  %v1574_v14 = vmul.f32 %v7041_v12, %v7041_v12  ;;  %v7049_v16 = vpop.f32.mrf.mxu0  ;;  %v1575_v17 = vmul.f32 %v7039_v11, %v7039_v11 }
 0x233   :  { %5853 = vmatmul.mubr.msk.f32.gmra.mxu0 %vm50_vm0, %v1245_v18 }
 0x234   :  { %v1057_v19 = vpop.permute.xlu1 %1056 }
 0x235   :  { %v995_v31 = vpop.permute.xlu0 %994  ;;  %1094 = vst.msk [vmem:[#allocation2 + $0x7e] sm:$0xfc] %vm11037_vm14, %v1057_v19  ;;  %vm11050_vm14 = vmmov %vm11048_vm11 }
 0x236   :  { %1030 = vst.msk [vmem:[#allocation2 + $0x8f] sm:$0xff] %vm1016_vm7, %v995_v31  ;;  %v1576_v31 = vmul.f32 %v7045_v58, %v7045_v58 }
 0x238   :  { %v866_v22 = vpop.permute.xlu1 %865 }
 0x239   :  { %v1059_v8 = vpop.permute.xlu0 %1058  ;;  %900 = vst.msk [vmem:[#allocation2 + $0x99] sm:$0x7f] %vm11038_vm15, %v866_v22  ;;  %vm11051_vm15 = vcmask 39968  }
 0x23a   :  { %1095 = vst.msk [vmem:[#allocation2 + $0x86] sm:$0xff] %vm1082_vm5, %v1059_v8 }
 0x23c   :  { %v1123_v24 = vpop.permute.xlu1 %1122 }
 0x23d   :  { %v1061_v23 = vpop.permute.xlu0 %1060  ;;  %1160 = vst.msk [vmem:[#allocation2 + $0x7d] sm:$0xf8] %vm1146_vm6, %v1123_v24  ;;  %vm11042_vm6 = vmmov %vm11041_vm3  ;;  %v7062_v24 = vpop.f32.mrf.mxu0 }
 0x23e   :  { %1096 = vst.msk [vmem:[#allocation2 + $0x8e] sm:$0xff] %vm1082_vm5, %v1061_v23 }
 0x240   :  { %v932_v26 = vpop.permute.xlu1 %931 }
 0x241   :  { %v1125_v25 = vpop.permute.xlu0 %1124  ;;  %965 = vst.msk [vmem:[#allocation2 + $0x98] sm:$0xff] %vm949_vm10, %v932_v26  ;;  %vm11043_vm10 = vmmov %vm11040_vm1 }
 0x242   :  { %1161 = vst.msk [vmem:[#allocation2 + $0x85] sm:$0xff] %vm1148_vm9, %v1125_v25 }
 0x244   :  { %v1189_v28 = vpop.permute.xlu1 %1188 }
 0x245   :  { %v1127_v27 = vpop.permute.xlu0 %1126  ;;  %1226 = vst.msk [vmem:[#allocation2 + $0x7c] sm:$0xf0] %vm11039_vm2, %v1189_v28  ;;  %vm11053_vm2 = vmmov %vm11040_vm1 }
 0x246   :  { %1162 = vst.msk [vmem:[#allocation2 + $0x8d] sm:$0xff] %vm1148_vm9, %v1127_v27 }
 0x248   :  { %v135_v30 = vpop.permute.xlu1 %134 }
 0x249   :  { %v1191_v29 = vpop.permute.xlu0 %1190  ;;  %172 = vst.msk [vmem:[#allocation2 + $0xa3] sm:$0xff] %vm11041_vm3, %v135_v30  ;;  %v1577_v30 = vmul.f32 %v7043_v13, %v7043_v13 }
 0x24a   :  { %1227 = vst.msk [vmem:[#allocation2 + $0x84] sm:$0xff] %vm11040_vm1, %v1191_v29  ;;  %vm11054_vm1 = vcmask 12296   ;;  %v7066_v29 = vpop.f32.mrf.mxu0 }
 0x24c   :  { %v997_v33 = vpop.permute.xlu1 %996 }
 0x24d   :  { %v137_v32 = vpop.permute.xlu0 %136  ;;  %1031 = vst.msk [vmem:[#allocation2 + $0x97] sm:$0xff] %vm1016_vm7, %v997_v33  ;;  %vm11047_vm7 = vmmov %vm11045_vm4 }
 0x24e   :  { %173 = vst.msk [vmem:[#allocation2 + $0xab] sm:$0xff] %vm11042_vm6, %v137_v32  ;;  %vm11057_vm6 = vcmask 48168   ;;  %v1578_v32 = vmul.f32 %v7062_v24, %v7062_v24 }
 0x250   :  { %v139_v37 = vpop.permute.xlu1 %138 }
 0x251   :  { %v1193_v34 = vpop.permute.xlu0 %1192  ;;  %v1246_v35 = vld [vmem:[#allocation2 + $0x80] sm:$0xff]  ;;  %174 = vst.msk [vmem:[#allocation2 + $0xb3] sm:$0xff] %vm11044_vm13, %v139_v37  ;;  %vm11059_vm13 = vmmov %vm11057_vm6 }
 0x252   :  { %1228 = vst.msk [vmem:[#allocation2 + $0x8c] sm:$0xff] %vm11043_vm10, %v1193_v34  ;;  %5855 = vmatprep.mubr.msk.f32.mxu0 %vm50_vm0, %v1246_v35  ;;  %vm11058_vm10 = vcmask 21520  }
 0x254   :  { %v203_v40 = vpop.permute.xlu1 %202 }
 0x255   :  { %v201_v38 = vpop.permute.xlu0 %200  ;;  %239 = vst.msk [vmem:[#allocation2 + $0xaa] sm:$0xff] %vm11046_vm8, %v203_v40  ;;  %vm11061_vm8 = vcmask 56368   ;;  %v7078_v40 = vld [vmem:[#allocation3] sm:$0xff] }
 0x256   :  { %238 = vst.msk [vmem:[#allocation2 + $0xa2] sm:$0xff] %vm11045_vm4, %v201_v38  ;;  %vm11060_vm4 = vcmask 56370   ;;  %v7076_v38 = vpop.f32.mrf.mxu0 }
 0x258   :  { %v205_v6 = vpop.permute.xlu1 %204 }
 0x259   :  { %v1063_v41 = vpop.permute.xlu0 %1062  ;;  %v1247_v5 = vld [vmem:[#allocation2 + $0x88] sm:$0xff]  ;;  %240 = vst.msk [vmem:[#allocation2 + $0xb2] sm:$0xff] %vm11047_vm7, %v205_v6  ;;  %vm11062_vm7 = vcmask 30744  }
 0x25a   :  { %1097 = vst.msk [vmem:[#allocation2 + $0x96] sm:$0xff] %vm1082_vm5, %v1063_v41  ;;  %5856 = vmatmul.mubr.msk.f32.gmra.mxu0 %vm50_vm0, %v1247_v5  ;;  %vm11052_vm5 = vmmov %vm11051_vm15 }
 0x25b   :  { %vm11055_vm3 = vmmov %vm11052_vm5 }
 0x25c   :  { %v269_v44 = vpop.permute.xlu1 %268 }
 0x25d   :  { %v267_v43 = vpop.permute.xlu0 %266  ;;  %305 = vst.msk [vmem:[#allocation2 + $0xa9] sm:$0xff] %vm11049_vm12, %v269_v44  ;;  %vm11064_vm12 = vcmask 64571   ;;  %v7114_v44 = vpop.f32.mrf.mxu0 }
 0x25e   :  { %304 = vst.msk [vmem:[#allocation2 + $0xa1] sm:$0xff] %vm11048_vm11, %v267_v43  ;;  %vm11063_vm11 = vmmov %vm11061_vm8 }
 0x260   :  { %v271_v46 = vpop.permute.xlu1 %270 }
 0x261   :  { %v1129_v45 = vpop.permute.xlu0 %1128  ;;  %306 = vst.msk [vmem:[#allocation2 + $0xb1] sm:$0xff] %vm11050_vm14, %v271_v46  ;;  %vm11065_vm14 = vcmask 64568   ;;  %v1580_v46 = vmul.f32 %v7076_v38, %v7076_v38 }
 0x262   :  { %1163 = vst.msk [vmem:[#allocation2 + $0x95] sm:$0xff] %vm1148_vm9, %v1129_v45  ;;  %vm11056_vm9 = vcmask 48169   ;;  %v1579_v45 = vmul.f32 %v7049_v16, %v7049_v16 }
 0x264   :  { %v335_v48 = vpop.permute.xlu1 %334 }
 0x265   :  { %v333_v47 = vpop.permute.xlu0 %332  ;;  %370 = vst.msk [vmem:[#allocation2 + $0xa8] sm:$0xff] %vm11052_vm5, %v335_v48  ;;  %vm11067_vm5 = vmmov %vm11065_vm14 }
 0x266   :  { %369 = vst.msk [vmem:[#allocation2 + $0xa0] sm:$0xff] %vm11051_vm15, %v333_v47  ;;  %vm11066_vm15 = vmmov %vm11055_vm3 }
 0x268   :  { %v141_v50 = vpop.permute.xlu1 %140 }
 0x269   :  { %v1195_v49 = vpop.permute.xlu0 %1194  ;;  %175 = vst.msk [vmem:[#allocation2 + $0xbb] sm:$0x1f] %vm11054_vm1, %v141_v50  ;;  %vm11069_vm1 = vcmask 72768  }
 0x26a   :  { %1229 = vst.msk [vmem:[#allocation2 + $0x94] sm:$0xff] %vm11053_vm2, %v1195_v49  ;;  %vm11068_vm2 = vcmask 72772  }
 0x26c   :  { %v398_v52 = vpop.permute.xlu1 %397 }
 0x26d   :  { %v337_v51 = vpop.permute.xlu0 %336  ;;  %435 = vst.msk [vmem:[#allocation2 + $0x9f] sm:$0xfe] %vm11056_vm9, %v398_v52  ;;  %vm11071_vm9 = vmmov %vm11069_vm1 }
 0x26e   :  { %371 = vst.msk [vmem:[#allocation2 + $0xb0] sm:$0xff] %vm11055_vm3, %v337_v51  ;;  %vm11070_vm3 = vmmov %vm11057_vm6  ;;  %v7124_v51 = vpop.f32.mrf.mxu0 }
 0x270   :  { %v207_v55 = vpop.permute.xlu1 %206 }
 0x271   :  { %v400_v7 = vpop.permute.xlu0 %399  ;;  %v1248_v53 = vld [vmem:[#allocation2 + $0x90] sm:$0xff]  ;;  %v1249_v54 = vld [vmem:[#allocation2 + $0x98] sm:$0xff]  ;;  %241 = vst.msk [vmem:[#allocation2 + $0xba] sm:$0x3f] %vm11058_vm10, %v207_v55  ;;  %vm11073_vm10 = vmmov %vm11067_vm5 }
 0x272   :  { %436 = vst.msk [vmem:[#allocation2 + $0xa7] sm:$0xff] %vm11057_vm6, %v400_v7  ;;  %5858 = vmatprep.mubr.msk.f32.mxu0 %vm50_vm0, %v1248_v53  ;;  %vm11072_vm6 = vmmov %vm11061_vm8 }
 0x273   :  { %5859 = vmatmul.mubr.msk.f32.gmra.mxu0 %vm50_vm0, %v1249_v54 }
 0x274   :  { %v464_v57 = vpop.permute.xlu1 %463 }
 0x275   :  { %v402_v56 = vpop.permute.xlu0 %401  ;;  %501 = vst.msk [vmem:[#allocation2 + $0x9e] sm:$0xfc] %vm11060_vm4, %v464_v57  ;;  %vm1518_vm4 = vcmask 130048   ;;  %v1582_v57 = vmul.f32 %v7124_v51, %v7124_v51 }
 0x276   :  { %437 = vst.msk [vmem:[#allocation2 + $0xaf] sm:$0xff] %vm11059_vm13, %v402_v56  ;;  %vm11074_vm13 = vmmov %vm11069_vm1  ;;  %v1519_v18 = vsel %vm1518_vm4, %v7041_v12, 0.0  ;;  %v1520_v19 = vsel %vm1518_vm4, %v7039_v11, 0.0  ;;  %v1598_v8 = vsel %vm1518_vm4, %v1574_v14, 0.0  ;;  %v1522_v22 = vsel %vm1518_vm4, %v7045_v58, 0.0 }
 0x277   :  { %v1521_v23 = vadd.f32 %v1520_v19, %v1519_v18  ;;  %v1599_v25 = vsel %vm1518_vm4, %v1575_v17, 0.0  ;;  %v1601_v26 = vsel %vm1518_vm4, %v1576_v31, 0.0  ;;  %v1524_v34 = vsel %vm1518_vm4, %v7043_v13, 0.0 }
 0x278   :  { %v273_v60 = vpop.permute.xlu1 %272  ;;  %v1600_v27 = vadd.f32 %v1599_v25, %v1598_v8  ;;  %v1526_v35 = vsel %vm1518_vm4, %v7062_v24, 0.0  ;;  %v1603_v41 = vsel %vm1518_vm4, %v1577_v30, 0.0  ;;  %v1605_v5 = vsel %vm1518_vm4, %v1578_v32, 0.0 }
 0x279   :  { %v466_v59 = vpop.permute.xlu0 %465  ;;  %307 = vst.msk [vmem:[#allocation2 + $0xb9] sm:$0x7f] %vm11062_vm7, %v273_v60  ;;  %v1523_v28 = vadd.f32 %v1522_v22, %v1521_v23  ;;  %v1528_v48 = vsel %vm1518_vm4, %v7049_v16, 0.0  ;;  %v1530_v49 = vsel %vm1518_vm4, %v7076_v38, 0.0  ;;  %v1607_v52 = vsel %vm1518_vm4, %v1579_v45, 0.0 }
 0x27a   :  { %502 = vst.msk [vmem:[#allocation2 + $0xa6] sm:$0xff] %vm11061_vm8, %v466_v59  ;;  %v1602_v33 = vadd.f32 %v1601_v26, %v1600_v27  ;;  %v1609_v7 = vsel %vm1518_vm4, %v1580_v46, 0.0  ;;  %v1581_v56 = vmul.f32 %v7066_v29, %v7066_v29  ;;  %v1532_v60 = vsel %vm1518_vm4, %v7066_v29, 0.0 }
 0x27b   :  { %v1525_v37 = vadd.f32 %v1524_v34, %v1523_v28  ;;  %vm1880_vm8 = vcmask 130051   ;;  %vm10959_vm7 = vcmask 1046528  }
 0x27c   :  { %v530_v61 = vpop.permute.xlu1 %529  ;;  %v1604_v43 = vadd.f32 %v1603_v41, %v1602_v33 }
 0x27d   :  { %v468_v15 = vpop.permute.xlu0 %467  ;;  %567 = vst.msk [vmem:[#allocation2 + $0x9d] sm:$0xf8] %vm11064_vm12, %v530_v61  ;;  %v1527_v6 = vadd.f32 %v1526_v35, %v1525_v37  ;;  %vm2246_vm12 = vcmask 1045504  }
 0x27e   :  { %503 = vst.msk [vmem:[#allocation2 + $0xae] sm:$0xff] %vm11063_vm11, %v468_v15  ;;  %v1606_v47 = vadd.f32 %v1605_v5, %v1604_v43  ;;  %v1534_v15 = vsel %vm1518_vm4, %v7124_v51, 0.0  ;;  %vm10952_vm11 = vcmask 1042432  }
 0x27f   :  { %v1529_v50 = vadd.f32 %v1528_v48, %v1527_v6 }
 0x280   :  { %v339_v62 = vpop.permute.xlu1 %338  ;;  %v1608_v54 = vadd.f32 %v1607_v52, %v1606_v47 }
 0x281   :  { %v532_v21 = vpop.permute.xlu0 %531  ;;  %372 = vst.msk [vmem:[#allocation2 + $0xb8] sm:$0xff] %vm11066_vm15, %v339_v62  ;;  %v1531_v53 = vadd.f32 %v1530_v49, %v1529_v50  ;;  %v1611_v62 = vsel %vm1518_vm4, %v1581_v56, 0.0  ;;  %vm11075_vm15 = vcmask 1041408  }
 0x282   :  { %568 = vst.msk [vmem:[#allocation2 + $0xa5] sm:$0xff] %vm11065_vm14, %v532_v21  ;;  %v1610_v59 = vadd.f32 %v1609_v7, %v1608_v54  ;;  %vm2554_vm14 = vcmask 130050  }
 0x283   :  { %v1533_v61 = vadd.f32 %v1532_v60, %v1531_v53 }
 0x284   :  { %v596_v0 = vpop.permute.xlu1 %595 }
 0x285   :  { %v534_v63 = vpop.permute.xlu0 %533  ;;  %633 = vst.msk [vmem:[#allocation2 + $0x9c] sm:$0xf0] %vm11068_vm2, %v596_v0  ;;  %v1535_v0 = vadd.f32 %v1534_v15, %v1533_v61  ;;  %vm2341_vm2 = vcmask 1044480  }
 0x286   :  { %569 = vst.msk [vmem:[#allocation2 + $0xad] sm:$0xff] %vm11067_vm5, %v534_v63  ;;  %v7128_v55 = vpop.f32.mrf.mxu0  ;;  %v1613_v63 = vsel %vm1518_vm4, %v1582_v57, 0.0  ;;  %vm1991_vm5 = vcmask 1040384  }
 0x287   :  { %v1585_v19 = vmul.f32 %v7128_v55, %v7128_v55  ;;  %v1540_v23 = vsel %vm1518_vm4, %v7128_v55, 0.0 }
 0x288   :  { %v404_v1 = vpop.permute.xlu1 %403  ;;  %v7138_v21 = vpop.f32.mrf.mxu0 }
 0x289   :  { %v598_v20 = vpop.permute.xlu0 %597  ;;  %438 = vst.msk [vmem:[#allocation2 + $0xb7] sm:$0xff] %vm11070_vm3, %v404_v1  ;;  %v1619_v28 = vsel %vm1518_vm4, %v1585_v19, 0.0 }
 0x28a   :  { %634 = vst.msk [vmem:[#allocation2 + $0xa4] sm:$0xff] %vm11069_vm1, %v598_v20  ;;  %v1612_v20 = vadd.f32 %v1611_v62, %v1610_v59  ;;  %vm11076_vm1 = vmmov %vm11075_vm15 }
 0x28b   :  { %vm11077_vm3 = vmmov %vm11076_vm1 }
 0x28c   :  { %v470_v3 = vpop.permute.xlu1 %469 }
 0x28d   :  { %v600_v2 = vpop.permute.xlu0 %599  ;;  %504 = vst.msk [vmem:[#allocation2 + $0xb6] sm:$0xff] %vm11072_vm6, %v470_v3  ;;  %v1584_v3 = vmul.f32 %v7138_v21, %v7138_v21  ;;  %vm11079_vm6 = vmmov %vm11076_vm1 }
 0x28e   :  { %635 = vst.msk [vmem:[#allocation2 + $0xac] sm:$0xff] %vm11071_vm9, %v600_v2  ;;  %v1583_v2 = vmul.f32 %v7114_v44, %v7114_v44  ;;  %vm11078_vm9 = vmmov %vm11076_vm1 }
 0x28f   :  { %v1617_v14 = vsel %vm1518_vm4, %v1584_v3, 0.0 }
 0x290   :  { %v602_v39 = vpop.permute.xlu1 %601 }
 0x291   :  { %v536_v36 = vpop.permute.xlu0 %535  ;;  %v1250_v4 = vld [vmem:[#allocation2 + $0xa0] sm:$0xff] }
 0x292   :  { %570 = vst.msk [vmem:[#allocation2 + $0xb5] sm:$0xff] %vm11073_vm10, %v536_v36  ;;  %5861 = vmatprep.mubr.msk.f32.mxu0 %vm50_vm0, %v1250_v4  ;;  %v1614_v36 = vadd.f32 %v1613_v63, %v1612_v20  ;;  %v1536_v4 = vsel %vm1518_vm4, %v7114_v44, 0.0  ;;  %vm11080_vm10 = vmmov %vm11076_vm1 }
 0x293   :  { %636 = vst.msk [vmem:[#allocation2 + $0xb4] sm:$0xff] %vm11074_vm13, %v602_v39  ;;  %v1538_v39 = vsel %vm1518_vm4, %v7138_v21, 0.0  ;;  %vm11081_vm13 = vmmov %vm11076_vm1 }
 0x295   :  { %v1251_v9 = vld [vmem:[#allocation2 + $0xa8] sm:$0xff] }
 0x296   :  { %5862 = vmatmul.mubr.msk.f32.gmra.mxu0 %vm50_vm0, %v1251_v9  ;;  %v1537_v9 = vadd.f32 %v1536_v4, %v1535_v0 }
 0x298   :  { %v1539_v17 = vadd.f32 %v1538_v39, %v1537_v9 }
 0x29a   :  { %v1252_v42 = vld [vmem:[#allocation2 + $0xb0] sm:$0xff]  ;;  %v1253_v10 = vld [vmem:[#allocation2 + $0xb8] sm:$0xff]  ;;  %v1541_v26 = vadd.f32 %v1540_v23, %v1539_v17 }
 0x29b   :  { %5864 = vmatprep.mubr.msk.f32.mxu0 %vm50_vm0, %v1252_v42 }
 0x29c   :  { %5865 = vmatmul.mubr.msk.f32.gmra.mxu0 %vm50_vm0, %v1253_v10  ;;  %vm1787_vm0 = vcmask 785408   ;;  %v1615_v10 = vsel %vm1518_vm4, %v1583_v2, 0.0 }
 0x29d   :  { %1788 = vst.msk [vmem:[#allocation3 + $0x8] sm:$0xff] %vm1787_vm0, %v7078_v40  ;;  %1790 = vst.msk [vmem:[#allocation3 + $0x18] sm:$0xff] %vm1787_vm0, %v7078_v40  ;;  %v1616_v18 = vadd.f32 %v1615_v10, %v1614_v36 }
 0x29e   :  { %1792 = vst.msk [vmem:[#allocation3 + $0x28] sm:$0xff] %vm1787_vm0, %v7078_v40  ;;  %1794 = vst.msk [vmem:[#allocation3 + $0x38] sm:$0xff] %vm1787_vm0, %v7078_v40 }
 0x29f   :  { %1796 = vst.msk [vmem:[#allocation3 + $0x48] sm:$0xff] %vm1787_vm0, %v7078_v40  ;;  %1798 = vst.msk [vmem:[#allocation3 + $0x58] sm:$0xff] %vm1787_vm0, %v7078_v40  ;;  %v1618_v22 = vadd.f32 %v1617_v14, %v1616_v18 }
 0x2a0   :  { %1800 = vst.msk [vmem:[#allocation3 + $0x68] sm:$0xff] %vm1787_vm0, %v7078_v40  ;;  %1802 = vst.msk [vmem:[#allocation3 + $0x78] sm:$0xff] %vm1787_vm0, %v7078_v40 }
 0x2a1   :  { %1804 = vst.msk [vmem:[#allocation3 + $0x88] sm:$0xff] %vm1787_vm0, %v7078_v40  ;;  %1806 = vst.msk [vmem:[#allocation3 + $0x98] sm:$0xff] %vm1787_vm0, %v7078_v40  ;;  %v1620_v33 = vadd.f32 %v1619_v28, %v1618_v22 }
 0x2a2   :  { %1808 = vst.msk [vmem:[#allocation3 + $0xa8] sm:$0xff] %vm1787_vm0, %v7078_v40  ;;  %1810 = vst.msk [vmem:[#allocation3 + $0xb8] sm:$0xff] %vm1787_vm0, %v7078_v40 }
 0x2a3   :  { %1812 = vst.msk [vmem:[#allocation3 + $0xc8] sm:$0xff] %vm1787_vm0, %v7078_v40  ;;  %1814 = vst.msk [vmem:[#allocation3 + $0xd8] sm:$0xff] %vm1787_vm0, %v7078_v40 }
 0x2a4   :  { %1816 = vst.msk [vmem:[#allocation3 + $0xe8] sm:$0xff] %vm1787_vm0, %v7078_v40  ;;  %1818 = vst.msk [vmem:[#allocation3 + $0xf8] sm:$0xff] %vm1787_vm0, %v7078_v40 }
 0x2d5   :  { %v7142_v1 = vpop.f32.mrf.mxu0 }
 0x2d6   :  { %v1587_v35 = vmul.f32 %v7142_v1, %v7142_v1  ;;  %v1544_v5 = vsel %vm1518_vm4, %v7142_v1, 0.0 }
 0x2d7   :  { %v7152_v42 = vpop.f32.mrf.mxu0 }
 0x2d8   :  { %v1586_v8 = vmul.f32 %v7152_v42, %v7152_v42  ;;  %v1542_v25 = vsel %vm1518_vm4, %v7152_v42, 0.0  ;;  %v1623_v46 = vsel %vm1518_vm4, %v1587_v35, 0.0 }
 0x2d9   :  { %v1543_v32 = vadd.f32 %v1542_v25, %v1541_v26 }
 0x2da   :  { %v1621_v30 = vsel %vm1518_vm4, %v1586_v8, 0.0 }
 0x2db   :  { %v1622_v41 = vadd.f32 %v1621_v30, %v1620_v33  ;;  %v1545_v43 = vadd.f32 %v1544_v5, %v1543_v32 }
 0x2dd   :  { %v1624_v49 = vadd.f32 %v1623_v46, %v1622_v41 }
 0x2f3   :  { %v7156_v31 = vpop.f32.mrf.mxu0 }
 0x2f4   :  { %v1589_v52 = vmul.f32 %v7156_v31, %v7156_v31  ;;  %v1548_v54 = vsel %vm1518_vm4, %v7156_v31, 0.0 }
 0x2f5   :  { %v7166_v27 = vpop.f32.mrf.mxu0 }
 0x2f6   :  { %v1588_v37 = vmul.f32 %v7166_v27, %v7166_v27  ;;  %v1546_v6 = vsel %vm1518_vm4, %v7166_v27, 0.0  ;;  %v1627_v60 = vsel %vm1518_vm4, %v1589_v52, 0.0 }
 0x2f7   :  { %v1547_v48 = vadd.f32 %v1546_v6, %v1545_v43 }
 0x2f8   :  { %v1625_v47 = vsel %vm1518_vm4, %v1588_v37, 0.0 }
 0x2f9   :  { %v1626_v53 = vadd.f32 %v1625_v47, %v1624_v49  ;;  %v1549_v57 = vadd.f32 %v1548_v54, %v1547_v48 }
 0x2fb   :  { %v1628_v62 = vadd.f32 %v1627_v60, %v1626_v53 }
 0x31a   :  { %v7170_v34 = vpop.f32.mrf.mxu0 }
 0x31b   :  { %v1591_v63 = vmul.f32 %v7170_v34, %v7170_v34  ;;  %v1552_v2 = vsel %vm1518_vm4, %v7170_v34, 0.0 }
 0x31c   :  { %v7180_v45 = vpop.f32.mrf.mxu0 }
 0x31d   :  { %v1590_v7 = vmul.f32 %v7180_v45, %v7180_v45  ;;  %v1550_v56 = vsel %vm1518_vm4, %v7180_v45, 0.0  ;;  %v1631_v4 = vsel %vm1518_vm4, %v1591_v63, 0.0 }
 0x31e   :  { %v1551_v61 = vadd.f32 %v1550_v56, %v1549_v57 }
 0x31f   :  { %v1629_v15 = vsel %vm1518_vm4, %v1590_v7, 0.0 }
 0x320   :  { %v1630_v20 = vadd.f32 %v1629_v15, %v1628_v62  ;;  %v1553_v36 = vadd.f32 %v1552_v2, %v1551_v61 }
 0x322   :  { %v1632_v10 = vadd.f32 %v1631_v4, %v1630_v20  ;;  %v2998_v4 = vld [vmem:[%s10905_s3 + $0x78] sm:$0xff] }
 0x323   :  { %3060 = vmatpush1.msra.mxu1 %v2998_v4 }
 0x324   :  { %3061 = vmatprep.subr.mxu1 %v7078_v40 }
 0x333   :  { %v7184_v50 = vpop.f32.mrf.mxu0 }
 0x334   :  { %v1593_v14 = vmul.f32 %v7184_v50, %v7184_v50  ;;  %v1556_v19 = vsel %vm1518_vm4, %v7184_v50, 0.0 }
 0x335   :  { %v7194_v59 = vpop.f32.mrf.mxu0 }
 0x336   :  { %v1592_v0 = vmul.f32 %v7194_v59, %v7194_v59  ;;  %v1554_v3 = vsel %vm1518_vm4, %v7194_v59, 0.0  ;;  %v1635_v23 = vsel %vm1518_vm4, %v1593_v14, 0.0 }
 0x337   :  { %v1555_v9 = vadd.f32 %v1554_v3, %v1553_v36 }
 0x338   :  { %v1633_v39 = vsel %vm1518_vm4, %v1592_v0, 0.0 }
 0x339   :  { %v1634_v17 = vadd.f32 %v1633_v39, %v1632_v10  ;;  %v1557_v22 = vadd.f32 %v1556_v19, %v1555_v9  ;;  %v2996_v19 = vld [vmem:[%s10905_s3 + $0x68] sm:$0xff] }
 0x33b   :  { %v1636_v30 = vadd.f32 %v1635_v23, %v1634_v17  ;;  %v2997_v17 = vld [vmem:[%s10905_s3 + $0x70] sm:$0xff] }
 0x33c   :  { %3062 = vmatpush1.msra.mxu1 %v2997_v17 }
 0x33d   :  { %3063 = vmatprep.subr.mxu1 %v7078_v40 }
 0x33e   :  { %3064 = vmatpush1.msra.mxu1 %v2996_v19 }
 0x33f   :  { %3065 = vmatprep.subr.mxu1 %v7078_v40 }
 0x356   :  { %v7210_v18 = vpop.f32.mrf.mxu0 }
 0x357   :  { %v1595_v32 = vmul.f32 %v7210_v18, %v7210_v18  ;;  %v1560_v41 = vsel %vm1518_vm4, %v7210_v18, 0.0 }
 0x358   :  { %v7214_v8 = vpop.f32.mrf.mxu0 }
 0x359   :  { %v1558_v25 = vsel %vm1518_vm4, %v7214_v8, 0.0  ;;  %v1594_v26 = vmul.f32 %v7214_v8, %v7214_v8  ;;  %v1639_v43 = vsel %vm1518_vm4, %v1595_v32, 0.0  ;;  %v2993_v32 = vld [vmem:[%s10905_s3 + $0x50] sm:$0xff] }
 0x35a   :  { %v1559_v28 = vadd.f32 %v1558_v25, %v1557_v22 }
 0x35b   :  { %v1637_v33 = vsel %vm1518_vm4, %v1594_v26, 0.0  ;;  %v2995_v26 = vld [vmem:[%s10905_s3 + $0x60] sm:$0xff] }
 0x35c   :  { %v1638_v35 = vadd.f32 %v1637_v33, %v1636_v30  ;;  %v7224_v37 = vpop.f32.mrf.mxu0  ;;  %v1561_v6 = vadd.f32 %v1560_v41, %v1559_v28  ;;  %v2994_v28 = vld [vmem:[%s10905_s3 + $0x58] sm:$0xff]  ;;  %3066 = vmatpush1.msra.mxu1 %v2995_v26  ;;  %v2992_v33 = vld [vmem:[%s10905_s3 + $0x48] sm:$0xff] }
 0x35d   :  { %v1597_v46 = vmul.f32 %v7224_v37, %v7224_v37  ;;  %v1564_v7 = vsel %vm1518_vm4, %v7224_v37, 0.0  ;;  %3067 = vmatprep.subr.mxu1 %v7078_v40  ;;  %v3010_v26 = vld [vmem:[%s10905_s3 + $0xd8] sm:$0xff] }
 0x35e   :  { %v7228_v5 = vpop.f32.mrf.mxu0  ;;  %v1640_v52 = vadd.f32 %v1639_v43, %v1638_v35  ;;  %3068 = vmatpush1.msra.mxu1 %v2994_v28  ;;  %v2991_v43 = vld [vmem:[%s10905_s3 + $0x40] sm:$0xff] }
 0x35f   :  { %v1562_v47 = vsel %vm1518_vm4, %v7228_v5, 0.0  ;;  %v1596_v48 = vmul.f32 %v7228_v5, %v7228_v5  ;;  %v1643_v57 = vsel %vm1518_vm4, %v1597_v46, 0.0  ;;  %3069 = vmatprep.subr.mxu1 %v7078_v40  ;;  %v2990_v46 = vld [vmem:[%s10905_s3 + $0x38] sm:$0xff] }
 0x360   :  { %v1563_v49 = vadd.f32 %v1562_v47, %v1561_v6  ;;  %3070 = vmatpush1.msra.mxu1 %v2993_v32  ;;  %v2989_v47 = vld [vmem:[%s10905_s3 + $0x30] sm:$0xff] }
 0x361   :  { %v1641_v53 = vsel %vm1518_vm4, %v1596_v48, 0.0  ;;  %3071 = vmatprep.subr.mxu1 %v7078_v40  ;;  %v2988_v48 = vld [vmem:[%s10905_s3 + $0x28] sm:$0xff] }
 0x362   :  { %v1565_v54 = vadd.f32 %v1564_v7, %v1563_v49  ;;  %v1642_v56 = vadd.f32 %v1641_v53, %v1640_v52  ;;  %3072 = vmatpush1.msra.mxu1 %v2992_v33  ;;  %v2987_v53 = vld [vmem:[%s10905_s3 + $0x20] sm:$0xff] }
 0x363   :  { %3073 = vmatprep.subr.mxu1 %v7078_v40 }
 0x364   :  { %v1566_v60 = vrot.slane %v1565_v54, 4  ;;  %v1644_v15 = vadd.f32 %v1643_v57, %v1642_v56  ;;  %3074 = vmatpush1.msra.mxu1 %v2991_v43  ;;  %v7308_v56 = vld [vmem:[%s10906_s7] ss:$0 sm:$0xff] }
 0x365   :  { %3075 = vmatprep.subr.mxu1 %v7078_v40 }
 0x366   :  { %v1567_v61 = vadd.f32 %v1566_v60, %v1565_v54  ;;  %v1645_v62 = vrot.slane %v1644_v15, 4  ;;  %3076 = vmatpush1.msra.mxu1 %v2990_v46  ;;  %v7319_v60 = vld [vmem:[%s10906_s7 + $0x1] ss:$0 sm:$0xff] }
 0x367   :  { %3077 = vmatprep.subr.mxu1 %v7078_v40 }
 0x368   :  { %v1568_v63 = vrot.slane %v1567_v61, 2  ;;  %v1646_v0 = vadd.f32 %v1645_v62, %v1644_v15  ;;  %3078 = vmatpush1.msra.mxu1 %v2989_v47  ;;  %v3008_v47 = vld [vmem:[%s10905_s3 + $0xc8] sm:$0xff] }
 0x369   :  { %3079 = vmatprep.subr.mxu1 %v7078_v40 }
 0x36a   :  { %v1569_v20 = vadd.f32 %v1568_v63, %v1567_v61  ;;  %v1647_v2 = vrot.slane %v1646_v0, 2  ;;  %3080 = vmatpush1.msra.mxu1 %v2988_v48 }
 0x36b   :  { %3081 = vmatprep.subr.mxu1 %v7078_v40 }
 0x36c   :  { %v1570_v3 = vrot.slane %v1569_v20, 1  ;;  %v1648_v36 = vadd.f32 %v1647_v2, %v1646_v0  ;;  %3082 = vmatpush1.msra.mxu1 %v2987_v53  ;;  %v2985_v0 = vld [vmem:[%s10905_s3 + $0x10] sm:$0xff] }
 0x36d   :  { %3083 = vmatprep.subr.mxu1 %v7078_v40 }
 0x36e   :  { %v1571_v39 = vadd.f32 %v1570_v3, %v1569_v20  ;;  %v1649_v9 = vrot.slane %v1648_v36, 1 }
 0x370   :  { %v7245_v10 = vmul.f32 0.0052083335, %v1571_v39  ;;  %v1650_v14 = vadd.f32 %v1649_v9, %v1648_v36  ;;  %v2984_v39 = vld [vmem:[%s10905_s3 + $0x8] sm:$0xff] }
 0x372   :  { %v1651_v22 = vmul.f32 0.0052083335, %v1650_v14  ;;  %v1652_v23 = vmul.f32 %v7245_v10, %v7245_v10  ;;  %v1674_v35 = vsub.f32 %v7214_v8, %v7245_v10  ;;  %v1654_v49 = vsub.f32 %v7041_v12, %v7245_v10 }
 0x373   :  { %v1658_v52 = vsub.f32 %v7062_v24, %v7245_v10  ;;  %v1655_v7 = vsub.f32 %v7039_v11, %v7245_v10  ;;  %v1659_v12 = vsub.f32 %v7049_v16, %v7245_v10  ;;  %v2986_v16 = vld [vmem:[%s10905_s3 + $0x18] sm:$0xff]  ;;  %v1660_v3 = vsub.f32 %v7076_v38, %v7245_v10  ;;  %v2983_v38 = vld [vmem:[%s10905_s3] sm:$0xff] }
 0x374   :  { %v1653_v25 = vsub.f32 %v1651_v22, %v1652_v23  ;;  %3084 = vmatpush1.msra.mxu1 %v2986_v16  ;;  %v1661_v53 = vsub.f32 %v7066_v29, %v7245_v10 }
 0x375   :  { %3085 = vmatprep.subr.mxu1 %v7078_v40 }
 0x376   :  { %v1678_v30 = vadd.f32 1e-05, %v1653_v25  ;;  %3086 = vmatpush1.msra.mxu1 %v2985_v0 }
 0x377   :  { %3087 = vmatprep.subr.mxu1 %v7078_v40 }
 0x378   :  { %5895 = vrsqrt.f32 %v1678_v30  ;;  %3088 = vmatpush1.msra.mxu1 %v2984_v39  ;;  %v3009_v30 = vld [vmem:[%s10905_s3 + $0xd0] sm:$0xff] }
 0x379   :  { %3089 = vmatprep.subr.mxu1 %v7078_v40 }
 0x37a   :  { %3090 = vmatpush1.msra.mxu1 %v2983_v38 }
 0x37b   :  { %3099 = vmatprep.subr.mxu1 %v7078_v40 }
 0x37c   :  { %3100 = vmatpush2.msra.mxu1 %v3010_v26 }
 0x37d   :  { %3101 = vmatprep.subr.mxu1 %v7078_v40 }
 0x37e   :  { %3102 = vmatpush2.msra.mxu1 %v3009_v30 }
 0x37f   :  { %3103 = vmatprep.subr.mxu1 %v7078_v40 }
 0x380   :  { %3104 = vmatpush2.msra.mxu1 %v3008_v47 }
 0x381   :  { %3105 = vmatprep.subr.mxu1 %v7078_v40 }
 0x385   :  { %v7303_v54 = vpop.eup %5895 }
 0x386   :  { %v1680_v24 = vmul.f32 %v7303_v54, %v1654_v49  ;;  %v1684_v11 = vmul.f32 %v7303_v54, %v1658_v52  ;;  %v1681_v57 = vmul.f32 %v7303_v54, %v1655_v7  ;;  %v1685_v15 = vmul.f32 %v7303_v54, %v1659_v12  ;;  %v3007_v12 = vld [vmem:[%s10905_s3 + $0xc0] sm:$0xff] }
 0x387   :  { %v1686_v14 = vmul.f32 %v7303_v54, %v1660_v3  ;;  %v1656_v52 = vsub.f32 %v7045_v58, %v7245_v10  ;;  %v1657_v7 = vsub.f32 %v7043_v13, %v7245_v10  ;;  %3106 = vmatpush2.msra.mxu1 %v3007_v12 }
 0x388   :  { %v1708_v61 = vmul.f32 %v7308_v56, %v1680_v24  ;;  %v1712_v62 = vmul.f32 %v7308_v56, %v1684_v11  ;;  %v1709_v63 = vmul.f32 %v7308_v56, %v1681_v57  ;;  %v1713_v4 = vmul.f32 %v7308_v56, %v1685_v15  ;;  %v3006_v15 = vld [vmem:[%s10905_s3 + $0xb8] sm:$0xff]  ;;  %3107 = vmatprep.subr.mxu1 %v7078_v40 }
 0x389   :  { %v1714_v28 = vmul.f32 %v7308_v56, %v1686_v14  ;;  %v1682_v16 = vmul.f32 %v7303_v54, %v1656_v52  ;;  %3108 = vmatpush2.msra.mxu1 %v3006_v15  ;;  %v3005_v14 = vld [vmem:[%s10905_s3 + $0xb0] sm:$0xff] }
 0x38a   :  { %v1736_v20 = vadd.f32 %v7319_v60, %v1708_v61  ;;  %v1740_v2 = vadd.f32 %v7319_v60, %v1712_v62  ;;  %v1737_v36 = vadd.f32 %v7319_v60, %v1709_v63  ;;  %v1741_v25 = vadd.f32 %v7319_v60, %v1713_v4  ;;  %3109 = vmatprep.subr.mxu1 %v7078_v40 }
 0x38b   :  { %v1742_v49 = vadd.f32 %v7319_v60, %v1714_v28  ;;  %v1683_v61 = vmul.f32 %v7303_v54, %v1657_v7  ;;  %v1687_v62 = vmul.f32 %v7303_v54, %v1661_v53  ;;  %v1710_v28 = vmul.f32 %v7308_v56, %v1682_v16  ;;  %3110 = vmatpush2.msra.mxu1 %v3005_v14  ;;  %v3004_v7 = vld [vmem:[%s10905_s3 + $0xa8] sm:$0xff] }
 0x38c   :  { %v7343_v9 = vmax.f32 %v1736_v20, 0.0  ;;  %v7352_v22 = vmax.f32 %v1740_v2, 0.0  ;;  %v7354_v23 = vmax.f32 %v1737_v36, 0.0  ;;  %v7375_v46 = vmax.f32 %v1741_v25, 0.0  ;;  %3111 = vmatprep.subr.mxu1 %v7078_v40 }
 0x38d   :  { %v7410_v29 = vmax.f32 %v1742_v49, 0.0  ;;  %v1715_v39 = vmul.f32 %v7308_v56, %v1687_v62  ;;  %v1662_v25 = vsub.f32 %v7124_v51, %v7245_v10  ;;  %v1711_v30 = vmul.f32 %v7308_v56, %v1683_v61  ;;  %v3003_v61 = vld [vmem:[%s10905_s3 + $0xa0] sm:$0xff]  ;;  %3112 = vmatpush2.msra.mxu1 %v3004_v7 }
 0x38e   :  { %v1992_v17 = vrot.slane %v7343_v9, 7  ;;  %v1897_v19 = vrot.slane %v7343_v9, 6  ;;  %v7370_v32 = vrot.slane %v7352_v22, 7  ;;  %v2152_v33 = vrot.slane %v7343_v9, 1  ;;  %3113 = vmatprep.subr.mxu1 %v7078_v40 }
 0x38f   :  { %v2153_v43 = vrot.slane %v7354_v23, 1  ;;  %v7385_v48 = vrot.slane %v7352_v22, 5  ;;  %v2159_v58 = vrot.slane %v7352_v22, 1  ;;  %v2160_v11 = vrot.slane %v7375_v46, 1  ;;  %3114 = vmatpush2.msra.mxu1 %v3003_v61 }
 0x390   :  { %2020 = vrot.lane.b32.xlu1 %v1992_v17, %s5929_s17  ;;  %1925 = vrot.lane.b32.xlu0 %v1897_v19, %s5927_s20  ;;  %v1898_v13 = vrot.slane %v7354_v23, 6  ;;  %v1844_v57 = vrot.slane %v7375_v46, 5  ;;  %v2247_v63 = vrot.slane %v7343_v9, 2  ;;  %v2248_v0 = vrot.slane %v7354_v23, 2 }
 0x391   :  { %1885 = vst.msk [vmem:[#allocation3 + $0x40] sm:$0xf8] %vm1880_vm8, %v7385_v48  ;;  %v2154_v24 = vsel %vm10959_vm7, %v2152_v33, %v2153_v43  ;;  %v2254_v20 = vrot.slane %v7352_v22, 2  ;;  %v7430_v3 = vsel %vm10959_vm7, %v2159_v58, %v2160_v11  ;;  %v2255_v4 = vrot.slane %v7375_v46, 2  ;;  %3115 = vmatprep.subr.mxu1 %v7078_v40 }
 0x392   :  { %v7424_v2 = vsel %vm10952_vm11, %v7385_v48, %v1844_v57  ;;  %v1899_v36 = vsel %vm11075_vm15, %v1897_v19, %v1898_v13  ;;  %v1846_v38 = vrot.slane %v7410_v29, 5  ;;  %v7447_v19 = vrot.slane %v7352_v22, 6  ;;  %vm11082_vm15 = vmmov %vm11076_vm1 }
 0x393   :  { %1886 = vst.msk [vmem:[#allocation3 + $0x50] sm:$0xff] %vm1518_vm4, %v7424_v2  ;;  %v1993_v26 = vrot.slane %v7354_v23, 7  ;;  %v1743_v33 = vadd.f32 %v7319_v60, %v1715_v39  ;;  %v2249_v47 = vsel %vm2246_vm12, %v2247_v63, %v2248_v0  ;;  %v1905_v52 = vrot.slane %v7375_v46, 6 }
 0x394   :  { %2086 = vrot.lane.b32.xlu1 %v7343_v9, %s5930_s19  ;;  %2585 = vrot.lane.b32.xlu0 %v7370_v32, %s5927_s20  ;;  %v7460_v49 = vsel %vm10952_vm11, %v1844_v57, %v1846_v38  ;;  %v1836_v51 = vrot.slane %v7343_v9, 5  ;;  %2555 = vst.msk [vmem:[#allocation3 + $0x8] sm:$0xfc] %vm2554_vm14, %v7447_v19  ;;  %v7472_v53 = vsel %vm2246_vm12, %v2254_v20, %v2255_v4  ;;  %v2342_v12 = vrot.slane %v7343_v9, 3 }
 0x395   :  { %v7476_v58 = vmax.f32 %v1743_v33, 0.0  ;;  %1887 = vst.msk [vmem:[#allocation3 + $0x60] sm:$0xff] %vm1518_vm4, %v7460_v49  ;;  %v1688_v57 = vmul.f32 %v7303_v54, %v1662_v25  ;;  %v7487_v15 = vsel %vm11076_vm1, %v7447_v19, %v1905_v52  ;;  %v1837_v16 = vrot.slane %v7354_v23, 5 }
 0x396   :  { %1881 = vst.msk [vmem:[#allocation3] sm:$0xf8] %vm1880_vm8, %v1836_v51  ;;  %v1994_v62 = vsel %vm1991_vm5, %v1992_v17, %v1993_v26  ;;  %v1738_v63 = vadd.f32 %v7319_v60, %v1710_v28  ;;  %v1739_v20 = vadd.f32 %v7319_v60, %v1711_v30  ;;  %v2000_v14 = vrot.slane %v7375_v46, 7  ;;  %v3002_v17 = vld [vmem:[%s10905_s3 + $0x98] sm:$0xff] }
 0x397   :  { %2556 = vst.msk [vmem:[#allocation3 + $0x18] sm:$0xff] %vm1518_vm4, %v7487_v15  ;;  %v2349_v25 = vrot.slane %v7352_v22, 3  ;;  %v2350_v9 = vrot.slane %v7375_v46, 3  ;;  %v1716_v28 = vmul.f32 %v7308_v56, %v1688_v57  ;;  %v1838_v33 = vsel %vm10952_vm11, %v1836_v51, %v1837_v16  ;;  %3116 = vmatpush2.msra.mxu1 %v3002_v17  ;;  %v2999_v17 = vld [vmem:[%s10905_s3 + $0x80] sm:$0xff] }
 0x398   :  { %2180 = vrot.lane.b32.xlu1 %v2154_v24, %s5931_s24  ;;  %2650 = vrot.lane.b32.xlu0 %v7352_v22, %s5929_s17  ;;  %v2343_v24 = vrot.slane %v7354_v23, 3  ;;  %1882 = vst.msk [vmem:[#allocation3 + $0x10] sm:$0xff] %vm1518_vm4, %v1838_v33  ;;  %v7526_v7 = vmax.f32 %v1738_v63, 0.0  ;;  %v7537_v51 = vsel %vm1991_vm5, %v7370_v32, %v2000_v14  ;;  %v7544_v61 = vmax.f32 %v1739_v20, 0.0  ;;  %v3000_v20 = vld [vmem:[%s10905_s3 + $0x88] sm:$0xff] }
 0x399   :  { %v7542_v57 = vsel %vm2341_vm2, %v2349_v25, %v2350_v9  ;;  %3117 = vmatprep.subr.mxu1 %v7078_v40 }
 0x39a   :  { %v2344_v39 = vsel %vm2341_vm2, %v2342_v12, %v2343_v24  ;;  %v1663_v12 = vsub.f32 %v7114_v44, %v7245_v10  ;;  %v1744_v44 = vadd.f32 %v7319_v60, %v1716_v28  ;;  %v1839_v25 = vrot.slane %v7526_v7, 5 }
 0x39b   :  { %v1909_v28 = vrot.slane %v7476_v58, 6  ;;  %v1841_v33 = vrot.slane %v7544_v61, 5 }
 0x39c   :  { %2728 = vrot.lane.b32.xlu0 %v7430_v3, %s5930_s19  ;;  %1927 = vrot.lane.b32.xlu1 %v1899_v36, %s5927_s20  ;;  %v1848_v36 = vrot.slane %v7476_v58, 5 }
 0x39d   :  { %v1842_v6 = vsel %vm10952_vm11, %v1839_v25, %v1841_v33 }
 0x39e   :  { %v7518_v30 = vsel %vm10952_vm11, %v1846_v38, %v1848_v36  ;;  %v3001_v38 = vld [vmem:[%s10905_s3 + $0x90] sm:$0xff]  ;;  %v1670_v36 = vsub.f32 %v7180_v45, %v7245_v10  ;;  %1884 = vst.msk [vmem:[#allocation3 + $0x30] sm:$0xff] %vm1518_vm4, %v1842_v6 }
 0x39f   :  { %1888 = vst.msk [vmem:[#allocation3 + $0x70] sm:$0xff] %vm1518_vm4, %v7518_v30  ;;  %3118 = vmatpush2.msra.mxu1 %v3001_v38  ;;  %v1840_v38 = vsel %vm10952_vm11, %v1837_v16, %v1839_v25  ;;  %v1900_v16 = vrot.slane %v7526_v7, 6 }
 0x3a0   :  { %2275 = vrot.lane.b32.xlu0 %v2249_v47, %s5932_s12  ;;  %2807 = vrot.lane.b32.xlu1 %v7472_v53, %s5931_s24  ;;  %v1907_v47 = vrot.slane %v7410_v29, 6  ;;  %v1696_v45 = vmul.f32 %v7303_v54, %v1670_v36  ;;  %1883 = vst.msk [vmem:[#allocation3 + $0x20] sm:$0xff] %vm1518_vm4, %v1840_v38 }
 0x3a1   :  { %3119 = vmatprep.subr.mxu1 %v7078_v40 }
 0x3a2   :  { %v7554_v63 = vsel %vm11077_vm3, %v1905_v52, %v1907_v47  ;;  %v2155_v52 = vrot.slane %v7526_v7, 1  ;;  %3120 = vmatpush2.msra.mxu1 %v3000_v20  ;;  %v7586_v36 = vsel %vm11078_vm9, %v1907_v47, %v1909_v28  ;;  %v1724_v41 = vmul.f32 %v7308_v56, %v1696_v45  ;;  %vm11086_vm3 = vmmov %vm11076_vm1 }
 0x3a3   :  { %2557 = vst.msk [vmem:[#allocation3 + $0x28] sm:$0xff] %vm1518_vm4, %v7554_v63  ;;  %3121 = vmatprep.subr.mxu1 %v7078_v40  ;;  %2558 = vst.msk [vmem:[#allocation3 + $0x38] sm:$0xff] %vm1518_vm4, %v7586_v36  ;;  %v1671_v47 = vsub.f32 %v7170_v34, %v7245_v10  ;;  %v1901_v34 = vsel %vm11079_vm6, %v1898_v13, %v1900_v16  ;;  %v1665_v28 = vsub.f32 %v7128_v55, %v7245_v10 }
 0x3a4   :  { %2022 = vrot.lane.b32.xlu0 %v1994_v62, %s5929_s17  ;;  %2370 = vrot.lane.b32.xlu1 %v2344_v39, %s5933_s23  ;;  %v1689_v62 = vmul.f32 %v7303_v54, %v1663_v12  ;;  %v1664_v39 = vsub.f32 %v7138_v21, %v7245_v10  ;;  %v7578_v21 = vmax.f32 %v1744_v44, 0.0  ;;  %v2156_v40 = vsel %vm10959_vm7, %v2153_v43, %v2155_v52  ;;  %vm11093_vm9 = vmmov %vm11076_vm1 }
 0x3a5   :  { %3122 = vmatpush2.msra.mxu1 %v2999_v17  ;;  %v1752_v43 = vadd.f32 %v7319_v60, %v1724_v41  ;;  %v2250_v17 = vrot.slane %v7526_v7, 2  ;;  %v2257_v41 = vrot.slane %v7410_v29, 2  ;;  %v1691_v13 = vmul.f32 %v7303_v54, %v1665_v28  ;;  %vm11094_vm6 = vmmov %vm11076_vm1 }
 0x3a6   :  { %v1717_v12 = vmul.f32 %v7308_v56, %v1689_v62  ;;  %v1690_v20 = vmul.f32 %v7303_v54, %v1664_v39  ;;  %v2524_v6 = vrot.slane %v7578_v21, 6  ;;  %v1697_v39 = vmul.f32 %v7303_v54, %v1671_v47 }
 0x3a7   :  { %v7633_v45 = vmax.f32 %v1752_v43, 0.0  ;;  %v2251_v55 = vsel %vm2246_vm12, %v2248_v0, %v2250_v17  ;;  %v10943_v47 = vrot.slane %v7526_v7, 3 }
 0x3a8   :  { %2587 = vrot.lane.b32.xlu0 %v7537_v51, %s5927_s20  ;;  %2886 = vrot.lane.b32.xlu1 %v7542_v57, %s5932_s12  ;;  %v1745_v44 = vadd.f32 %v7319_v60, %v1717_v12  ;;  %v1718_v62 = vmul.f32 %v7308_v56, %v1690_v20  ;;  %2559 = vst.msk [vmem:[#allocation3 + $0x48] sm:$0xfc] %vm2554_vm14, %v2524_v6 }
 0x3a9   :  { %v1666_v12 = vsub.f32 %v7152_v42, %v7245_v10  ;;  %v1725_v38 = vmul.f32 %v7308_v56, %v1697_v39  ;;  %v1672_v20 = vsub.f32 %v7194_v59, %v7245_v10  ;;  %v10944_v42 = vrot.slane %v7526_v7, 7 }
 0x3aa   :  { %v1746_v33 = vadd.f32 %v7319_v60, %v1718_v62  ;;  %v7663_v62 = vrot.slane %v7633_v45, 5  ;;  %v10941_v39 = vrot.slane %v7410_v29, 7 }
 0x3ab   :  { %v1692_v59 = vmul.f32 %v7303_v54, %v1666_v12  ;;  %v1753_v0 = vadd.f32 %v7319_v60, %v1725_v38  ;;  %v1996_v28 = vsel %vm1991_vm5, %v1993_v26, %v10944_v42  ;;  %v10940_v12 = vrot.slane %v7410_v29, 3 }
 0x3ac   :  { %2088 = vrot.lane.b32.xlu0 %v7354_v23, %s5930_s19  ;;  %2458 = vrot.lane.b32.xlu1 %v7385_v48, %s5934_s15  ;;  %v2162_v48 = vrot.slane %v7410_v29, 1  ;;  %1893 = vst.msk [vmem:[#allocation3 + $0xc0] sm:$0xf8] %vm1880_vm8, %v7663_v62  ;;  %v1667_v23 = vsub.f32 %v7142_v1, %v7245_v10 }
 0x3ad   :  { %v7686_v26 = vmax.f32 %v1753_v0, 0.0  ;;  %v7708_v1 = vsel %vm2341_vm2, %v2350_v9, %v10940_v12 }
 0x3ae   :  { %v7616_v25 = vsel %vm10959_vm7, %v2160_v11, %v2162_v48  ;;  %v7630_v11 = vmax.f32 %v1745_v44, 0.0  ;;  %v7660_v44 = vmax.f32 %v1746_v33, 0.0  ;;  %v2346_v33 = vsel %vm2341_vm2, %v2343_v24, %v10943_v47 }
 0x3af   :  { %v1673_v24 = vsub.f32 %v7184_v50, %v7245_v10  ;;  %v1693_v50 = vmul.f32 %v7303_v54, %v1667_v23  ;;  %v1858_v9 = vrot.slane %v7686_v26, 5 }
 0x3b0   :  { %2652 = vrot.lane.b32.xlu0 %v7375_v46, %s5929_s17  ;;  %2182 = vrot.lane.b32.xlu1 %v2156_v40, %s5931_s24  ;;  %v7651_v40 = vsel %vm2246_vm12, %v2255_v4, %v2257_v41  ;;  %v1698_v4 = vmul.f32 %v7303_v54, %v1672_v20  ;;  %v2525_v43 = vrot.slane %v7630_v11, 6 }
 0x3b1   :  { %v1699_v0 = vmul.f32 %v7303_v54, %v1673_v24 }
 0x3b2   :  { %v2526_v38 = vsel %vm11080_vm10, %v2524_v6, %v2525_v43  ;;  %v1726_v20 = vmul.f32 %v7308_v56, %v1698_v4  ;;  %v2527_v6 = vrot.slane %v7660_v44, 6  ;;  %v1668_v4 = vsub.f32 %v7166_v27, %v7245_v10  ;;  %vm11095_vm10 = vmmov %vm11076_vm1 }
 0x3b3   :  { %2560 = vst.msk [vmem:[#allocation3 + $0x58] sm:$0xff] %vm1518_vm4, %v2526_v38  ;;  %v10942_v38 = vrot.slane %v7544_v61, 1 }
 0x3b4   :  { %2730 = vrot.lane.b32.xlu0 %v7616_v25, %s5930_s19  ;;  %1929 = vrot.lane.b32.xlu1 %v1901_v34, %s5927_s20  ;;  %v1719_v34 = vmul.f32 %v7308_v56, %v1691_v13  ;;  %v1720_v13 = vmul.f32 %v7308_v56, %v1692_v59  ;;  %v7701_v59 = vsel %vm1991_vm5, %v2000_v14, %v10941_v39 }
 0x3b5   :  { %v1694_v24 = vmul.f32 %v7303_v54, %v1668_v4  ;;  %v2158_v4 = vsel %vm10959_vm7, %v2155_v52, %v10942_v38  ;;  %v10945_v38 = vrot.slane %v7544_v61, 2 }
 0x3b6   :  { %v1748_v14 = vadd.f32 %v7319_v60, %v1720_v13  ;;  %v1721_v13 = vmul.f32 %v7308_v56, %v1693_v50  ;;  %v1676_v50 = vsub.f32 %v7228_v5, %v7245_v10 }
 0x3b8   :  { %2277 = vrot.lane.b32.xlu0 %v2251_v55, %s5932_s12  ;;  %2809 = vrot.lane.b32.xlu1 %v7651_v40, %s5931_s24  ;;  %v1747_v55 = vadd.f32 %v7319_v60, %v1719_v34  ;;  %v1754_v34 = vadd.f32 %v7319_v60, %v1726_v20  ;;  %v7735_v20 = vsel %vm10952_vm11, %v7663_v62, %v1858_v9 }
 0x3b9   :  { %1894 = vst.msk [vmem:[#allocation3 + $0xd0] sm:$0xff] %vm1518_vm4, %v7735_v20  ;;  %v1702_v39 = vmul.f32 %v7303_v54, %v1676_v50 }
 0x3ba   :  { %v7726_v23 = vmax.f32 %v1747_v55, 0.0  ;;  %v7731_v27 = vmax.f32 %v1754_v34, 0.0  ;;  %v7744_v55 = vmax.f32 %v1748_v14, 0.0  ;;  %v7758_v34 = vrot.slane %v7476_v58, 1 }
 0x3bb   :  { %v1722_v14 = vmul.f32 %v7308_v56, %v1694_v24 }
 0x3bc   :  { %2024 = vrot.lane.b32.xlu0 %v1996_v28, %s5929_s17  ;;  %2372 = vrot.lane.b32.xlu1 %v2346_v33, %s5933_s23  ;;  %v2528_v28 = vsel %vm11081_vm13, %v2525_v43, %v2527_v6  ;;  %v7723_v33 = vrot.slane %v7633_v45, 6  ;;  %v1727_v43 = vmul.f32 %v7308_v56, %v1699_v0  ;;  %v1669_v0 = vsub.f32 %v7156_v31, %v7245_v10 }
 0x3bd   :  { %2561 = vst.msk [vmem:[#allocation3 + $0x68] sm:$0xff] %vm1518_vm4, %v2528_v28  ;;  %v1749_v28 = vadd.f32 %v7319_v60, %v1721_v13  ;;  %v1860_v12 = vrot.slane %v7731_v27, 5  ;;  %v2529_v31 = vrot.slane %v7726_v23, 6  ;;  %v1850_v52 = vrot.slane %v7744_v55, 5 }
 0x3be   :  { %2563 = vst.msk [vmem:[#allocation3 + $0x88] sm:$0xfc] %vm2554_vm14, %v7723_v33  ;;  %v1755_v5 = vadd.f32 %v7319_v60, %v1727_v43  ;;  %v1695_v24 = vmul.f32 %v7303_v54, %v1669_v0  ;;  %v1750_v47 = vadd.f32 %v7319_v60, %v1722_v14  ;;  %vm2068_vm13 = vcmask 392449  }
 0x3bf   :  { %v7774_v13 = vsel %vm10952_vm11, %v1858_v9, %v1860_v12  ;;  %v2530_v43 = vsel %vm11082_vm15, %v2527_v6, %v2529_v31  ;;  %v1700_v9 = vmul.f32 %v7303_v54, %v1674_v35  ;;  %1889 = vst.msk [vmem:[#allocation3 + $0x80] sm:$0xf8] %vm1880_vm8, %v1850_v52  ;;  %v7798_v6 = vrot.slane %v7476_v58, 2  ;;  %vm11084_vm8 = vmmov %vm11076_vm1 }
 0x3c0   :  { %2589 = vrot.lane.b32.xlu0 %v7701_v59, %s5927_s20  ;;  %2888 = vrot.lane.b32.xlu1 %v7708_v1, %s5932_s12  ;;  %v7781_v42 = vmax.f32 %v1755_v5, 0.0  ;;  %1895 = vst.msk [vmem:[#allocation3 + $0xe0] sm:$0xff] %vm1518_vm4, %v7774_v13  ;;  %2562 = vst.msk [vmem:[#allocation3 + $0x78] sm:$0xff] %vm1518_vm4, %v2530_v43  ;;  %v7800_v0 = vmax.f32 %v1749_v28, 0.0  ;;  %v1730_v35 = vmul.f32 %v7308_v56, %v1702_v39  ;;  %v7818_v28 = vmax.f32 %v1750_v47, 0.0 }
 0x3c1   :  { %v1723_v14 = vmul.f32 %v7308_v56, %v1695_v24  ;;  %v1728_v5 = vmul.f32 %v7308_v56, %v1700_v9  ;;  %v7826_v39 = vsel %vm2246_vm12, %v2257_v41, %v7798_v6  ;;  %v1919_v43 = vrot.slane %v7686_v26, 6 }
 0x3c2   :  { %v1862_v31 = vrot.slane %v7781_v42, 5  ;;  %v1921_v47 = vrot.slane %v7731_v27, 6  ;;  %v1758_v9 = vadd.f32 %v7319_v60, %v1730_v35  ;;  %vm2134_vm15 = vcmask 523648  }
 0x3c3   :  { %v1751_v41 = vadd.f32 %v7319_v60, %v1723_v14  ;;  %v1853_v14 = vrot.slane %v7818_v28, 5 }
 0x3c4   :  { %2090 = vrot.lane.b32.xlu0 %v7526_v7, %s5930_s19  ;;  %2460 = vrot.lane.b32.xlu1 %v7424_v2, %s5934_s15  ;;  %v1902_v2 = vrot.slane %v7544_v61, 6  ;;  %v7853_v35 = vsel %vm11086_vm3, %v1919_v43, %v1921_v47  ;;  %vm2070_vm3 = vcmask 392448  }
 0x3c5   :  { %11087 = vst [vmem:[#allocation7_spill] sm:$0xff] %v7853_v35  ;;  %2565 = vst.msk [vmem:[#allocation3 + $0xa8] sm:$0xff] %vm1518_vm4, %v7853_v35  ;;  %v7884_v35 = vmax.f32 %v1758_v9, 0.0 }
 0x3c6   :  { %v1903_v50 = vsel %vm11076_vm1, %v1900_v16, %v1902_v2  ;;  %v7795_v16 = vsel %vm10959_vm7, %v2162_v48, %v7758_v34  ;;  %v1997_v48 = vrot.slane %v7544_v61, 7  ;;  %v10947_v2 = vrot.slane %v7544_v61, 3 }
 0x3c8   :  { %2654 = vrot.lane.b32.xlu0 %v7410_v29, %s5929_s17  ;;  %2184 = vrot.lane.b32.xlu1 %v2158_v4, %s5931_s24  ;;  %v11083_v4 = vsub.f32 %v7210_v18, %v7245_v10  ;;  %v2253_v18 = vsel %vm2246_vm12, %v2250_v17, %v10945_v38  ;;  %v7835_v17 = vsel %vm10952_vm11, %v1860_v12, %v1862_v31  ;;  %v11088_v31 = vrot.slane %v7526_v7, 7 }
 0x3c9   :  { %1896 = vst.msk [vmem:[#allocation3 + $0xf0] sm:$0xff] %vm1518_vm4, %v7835_v17 }
 0x3ca   :  { %v1701_v8 = vmul.f32 %v7303_v54, %v11083_v4  ;;  %v7844_v4 = vsel %vm11084_vm8, %v7723_v33, %v1919_v43  ;;  %v1998_v38 = vsel %vm1991_vm5, %v11088_v31, %v1997_v48  ;;  %v11090_v48 = vsub.f32 %v7224_v37, %v7245_v10 }
 0x3cb   :  { %11085 = vst [vmem:[#allocation6_spill] sm:$0xff] %v7844_v4  ;;  %2564 = vst.msk [vmem:[#allocation3 + $0x98] sm:$0xff] %vm1518_vm4, %v7844_v4  ;;  %v7866_v4 = vrot.slane %v7476_v58, 3  ;;  %v11092_v37 = vrot.slane %v7410_v29, 3  ;;  %vm2228_vm8 = vcmask 654848  }
 0x3cc   :  { %2732 = vrot.lane.b32.xlu0 %v7795_v16, %s5930_s19  ;;  %1931 = vrot.lane.b32.xlu1 %v1903_v50, %s5927_s20  ;;  %v1729_v24 = vmul.f32 %v7308_v56, %v1701_v8  ;;  %v1851_v50 = vrot.slane %v7800_v0, 5  ;;  %v1703_v43 = vmul.f32 %v7303_v54, %v11090_v48 }
 0x3cd   :  { %v7895_v10 = vsel %vm2341_vm2, %v11092_v37, %v7866_v4  ;;  %v2793_v37 = vrot.slane %v7578_v21, 2 }
 0x3ce   :  { %v1852_v8 = vsel %vm10952_vm11, %v1850_v52, %v1851_v50  ;;  %v1757_v12 = vadd.f32 %v7319_v60, %v1729_v24  ;;  %v11089_v52 = vrot.slane %v7526_v7, 3  ;;  %v2004_v24 = vrot.slane %v7476_v58, 7 }
 0x3cf   :  { %1890 = vst.msk [vmem:[#allocation3 + $0x90] sm:$0xff] %vm1518_vm4, %v1852_v8  ;;  %v1923_v7 = vrot.slane %v7781_v42, 6  ;;  %v7877_v8 = vmax.f32 %v1751_v41, 0.0  ;;  %v1731_v54 = vmul.f32 %v7308_v56, %v1703_v43  ;;  %v11098_v43 = vrot.slane %v7544_v61, 2 }
 0x3d0   :  { %2279 = vrot.lane.b32.xlu0 %v2253_v18, %s5932_s12  ;;  %2811 = vrot.lane.b32.xlu1 %v7826_v39, %s5931_s24  ;;  %v1756_v18 = vadd.f32 %v7319_v60, %v1728_v5  ;;  %v2348_v5 = vsel %vm2341_vm2, %v11089_v52, %v10947_v2  ;;  %v7881_v52 = vmax.f32 %v1757_v12, 0.0  ;;  %v1854_v2 = vsel %vm10952_vm11, %v1851_v50, %v1853_v14 }
 0x3d1   :  { %1891 = vst.msk [vmem:[#allocation3 + $0xa0] sm:$0xff] %vm1518_vm4, %v1854_v2  ;;  %v7904_v50 = vsel %vm11093_vm9, %v1921_v47, %v1923_v7  ;;  %v1855_v9 = vrot.slane %v7877_v8, 5  ;;  %v2534_v12 = vrot.slane %v7884_v35, 6  ;;  %v11099_v7 = vrot.slane %v7544_v61, 3 }
 0x3d2   :  { %v7879_v31 = vmax.f32 %v1756_v18, 0.0  ;;  %2566 = vst.msk [vmem:[#allocation3 + $0xb8] sm:$0xff] %vm1518_vm4, %v7904_v50  ;;  %v2532_v2 = vrot.slane %v7881_v52, 6  ;;  %v1759_v18 = vadd.f32 %v7319_v60, %v1731_v54  ;;  %v2794_v54 = vrot.slane %v7630_v11, 2 }
 0x3d3   :  { %v1856_v56 = vsel %vm10952_vm11, %v1853_v14, %v1855_v9  ;;  %v2572_v9 = vrot.slane %v7630_v11, 7  ;;  %vm1975_vm9 = vcmask 261248  }
 0x3d4   :  { %2026 = vrot.lane.b32.xlu0 %v1998_v38, %s5929_s17  ;;  %2374 = vrot.lane.b32.xlu1 %v2348_v5, %s5933_s23  ;;  %v11091_v38 = vrot.slane %v7410_v29, 7  ;;  %v2531_v41 = vrot.slane %v7879_v31, 6  ;;  %1892 = vst.msk [vmem:[#allocation3 + $0xb0] sm:$0xff] %vm1518_vm4, %v1856_v56  ;;  %v2535_v60 = vsel %vm11095_vm10, %v2532_v2, %v2534_v12  ;;  %v2444_v56 = vrot.slane %v7578_v21, 5 }
 0x3d5   :  { %2569 = vst.msk [vmem:[#allocation3 + $0xe8] sm:$0xff] %vm1518_vm4, %v2535_v60  ;;  %vm10950_vm10 = vcmask 917248  }
 0x3d6   :  { %v7889_v5 = vsel %vm1991_vm5, %v11091_v38, %v2004_v24  ;;  %2567 = vst.msk [vmem:[#allocation3 + $0xc8] sm:$0xfc] %vm2554_vm14, %v2531_v41  ;;  %v2533_v47 = vsel %vm11094_vm6, %v2531_v41, %v2532_v2  ;;  %v7920_v24 = vmax.f32 %v1759_v18, 0.0  ;;  %vm11097_vm14 = vmmov %vm11076_vm1  ;;  %v2571_v38 = vrot.slane %v7578_v21, 7 }
 0x3d7   :  { %2568 = vst.msk [vmem:[#allocation3 + $0xd8] sm:$0xff] %vm1518_vm4, %v2533_v47  ;;  %v2872_v41 = vrot.slane %v7578_v21, 3  ;;  %v2873_v2 = vrot.slane %v7630_v11, 3  ;;  %vm10957_vm1 = vcmask 261249   ;;  %vm10951_vm6 = vcmask 786048  }
 0x3d8   :  { %2591 = vrot.lane.b32.xlu0 %v7889_v5, %s5927_s20  ;;  %2890 = vrot.lane.b32.xlu1 %v7895_v10, %s5932_s12  ;;  %v2536_v14 = vrot.slane %v7920_v24, 6  ;;  %v2573_v18 = vsel %vm1991_vm5, %v2571_v38, %v2572_v9 }
 0x3da   :  { %v2537_v48 = vsel %vm11097_vm14, %v2534_v12, %v2536_v14  ;;  %vm10949_vm14 = vcmask 1048451  }
 0x3db   :  { %2570 = vst.msk [vmem:[#allocation3 + $0xf8] sm:$0xff] %vm1518_vm4, %v2537_v48  ;;  %vm10954_vm4 = vcmask 261250   ;;  %v2796_v48 = vrot.slane %v7660_v44, 2 }
 0x3dc   :  { %2092 = vrot.lane.b32.xlu0 %v7544_v61, %s5930_s19  ;;  %2462 = vrot.lane.b32.xlu1 %v7460_v49, %s5934_s15  ;;  %v11096_v49 = vrot.slane %v7544_v61, 1 }
 0x3e0   :  { %2656 = vrot.lane.b32.xlu0 %v7476_v58, %s5929_s17  ;;  %2186 = vrot.lane.b32.xlu1 %v11096_v49, %s5931_s24  ;;  %v2717_v49 = vrot.slane %v7660_v44, 1 }
 0x3e4   :  { %2734 = vrot.lane.b32.xlu0 %v7758_v34, %s5930_s19  ;;  %1933 = vrot.lane.b32.xlu1 %v7447_v19, %s5927_s20  ;;  %v2714_v19 = vrot.slane %v7578_v21, 1 }
 0x3e8   :  { %2281 = vrot.lane.b32.xlu0 %v11098_v43, %s5932_s12  ;;  %2813 = vrot.lane.b32.xlu1 %v7798_v6, %s5931_s24 }
 0x3ec   :  { %2028 = vrot.lane.b32.xlu0 %v7370_v32, %s5929_s17  ;;  %2376 = vrot.lane.b32.xlu1 %v11099_v7, %s5933_s23  ;;  %v2715_v32 = vrot.slane %v7630_v11, 1 }
 0x3ee   :  { %v2716_v61 = vsel %vm10959_vm7, %v2714_v19, %v2715_v32  ;;  %v2718_v14 = vsel %vm10959_vm7, %v2715_v32, %v2717_v49  ;;  %v2875_v32 = vrot.slane %v7660_v44, 3 }
 0x3f0   :  { %2593 = vrot.lane.b32.xlu0 %v2571_v38, %s5927_s20  ;;  %2892 = vrot.lane.b32.xlu1 %v7866_v4, %s5932_s12 }
 0x3f4   :  { %2094 = vrot.lane.b32.xlu0 %v7352_v22, %s5930_s19  ;;  %2464 = vrot.lane.b32.xlu1 %v7518_v30, %s5934_s15  ;;  %v2795_v22 = vsel %vm2246_vm12, %v2793_v37, %v2794_v54 }
 0x3f8   :  { %2658 = vrot.lane.b32.xlu0 %v7578_v21, %s5929_s17  ;;  %2188 = vrot.lane.b32.xlu1 %v7430_v3, %s5931_s24 }
 0x3fc   :  { %2736 = vrot.lane.b32.xlu0 %v2716_v61, %s5930_s19  ;;  %1935 = vrot.lane.b32.xlu1 %v7487_v15, %s5927_s20 }
 0x400   :  { %2283 = vrot.lane.b32.xlu0 %v7472_v53, %s5932_s12  ;;  %2815 = vrot.lane.b32.xlu1 %v2795_v22, %s5931_s24 }
 0x402   :  { %v2021_v3 = vpop.permute.xlu1 %2020  ;;  %v1926_v30 = vpop.permute.xlu0 %1925 }
 0x403   :  { %1974 = vst.msk [vmem:[#allocation3] sm:$0xfc] %vm10954_vm4, %v1926_v30 }
 0x404   :  { %2030 = vrot.lane.b32.xlu0 %v7537_v51, %s5929_s17  ;;  %2378 = vrot.lane.b32.xlu1 %v7542_v57, %s5933_s23  ;;  %2069 = vst.msk [vmem:[#allocation3] sm:$0xfe] %vm2068_vm13, %v2021_v3  ;;  %v2874_v51 = vsel %vm2341_vm2, %v2872_v41, %v2873_v2 }
 0x406   :  { %v2087_v53 = vpop.permute.xlu1 %2086  ;;  %v2586_v15 = vpop.permute.xlu0 %2585 }
 0x407   :  { %2135 = vst.msk [vmem:[#allocation3] sm:$0xff] %vm2134_vm15, %v2087_v53 }
 0x408   :  { %2634 = vst.msk [vmem:[#allocation3 + $0x8] sm:$0xfe] %vm10957_vm1, %v2586_v15  ;;  %2595 = vrot.lane.b32.xlu0 %v2573_v18, %s5927_s20  ;;  %2894 = vrot.lane.b32.xlu1 %v2874_v51, %s5932_s12  ;;  %v2798_v18 = vrot.slane %v7726_v23, 2 }
 0x40a   :  { %v2181_v57 = vpop.permute.xlu1 %2180  ;;  %v2651_v12 = vpop.permute.xlu0 %2650 }
 0x40b   :  { %2229 = vst.msk [vmem:[#allocation3] sm:$0xff] %vm2228_vm8, %v2181_v57 }
 0x40c   :  { %2698 = vst.msk [vmem:[#allocation3 + $0x8] sm:$0xff] %vm2070_vm3, %v2651_v12  ;;  %2096 = vrot.lane.b32.xlu0 %v7375_v46, %s5930_s19  ;;  %2466 = vrot.lane.b32.xlu1 %v2444_v56, %s5934_s15 }
 0x40e   :  { %v2729_v47 = vpop.permute.xlu0 %2728  ;;  %v1928_v60 = vpop.permute.xlu1 %1927 }
 0x40f   :  { %2776 = vst.msk [vmem:[#allocation3 + $0x8] sm:$0xff] %vm2134_vm15, %v2729_v47  ;;  %v2877_v47 = vrot.slane %v7726_v23, 3 }
 0x410   :  { %1976 = vst.msk [vmem:[#allocation3 + $0x10] sm:$0xff] %vm1975_vm9, %v1928_v60  ;;  %2660 = vrot.lane.b32.xlu0 %v7630_v11, %s5929_s17  ;;  %2190 = vrot.lane.b32.xlu1 %v7616_v25, %s5931_s24  ;;  %v2797_v25 = vsel %vm2246_vm12, %v2794_v54, %v2796_v48  ;;  %v2876_v54 = vsel %vm2341_vm2, %v2873_v2, %v2875_v32  ;;  %v2719_v2 = vrot.slane %v7726_v23, 1 }
 0x412   :  { %v2276_v21 = vpop.permute.xlu0 %2275  ;;  %v2808_v46 = vpop.permute.xlu1 %2807  ;;  %v2720_v15 = vsel %vm10959_vm7, %v2717_v49, %v2719_v2 }
 0x413   :  { %2324 = vst.msk [vmem:[#allocation3] sm:$0xff] %vm10951_vm6, %v2276_v21  ;;  %v2878_v21 = vsel %vm2341_vm2, %v2875_v32, %v2877_v47 }
 0x414   :  { %2855 = vst.msk [vmem:[#allocation3 + $0x8] sm:$0xff] %vm2228_vm8, %v2808_v46  ;;  %2738 = vrot.lane.b32.xlu0 %v2718_v14, %s5930_s19  ;;  %1937 = vrot.lane.b32.xlu1 %v7554_v63, %s5927_s20  ;;  %v2574_v63 = vrot.slane %v7660_v44, 7  ;;  %v2447_v46 = vrot.slane %v7660_v44, 5 }
 0x416   :  { %v2023_v43 = vpop.permute.xlu0 %2022  ;;  %v2371_v7 = vpop.permute.xlu1 %2370  ;;  %v2575_v37 = vsel %vm1991_vm5, %v2572_v9, %v2574_v63 }
 0x417   :  { %2071 = vst.msk [vmem:[#allocation3 + $0x10] sm:$0xff] %vm2070_vm3, %v2023_v43 }
 0x418   :  { %2419 = vst.msk [vmem:[#allocation3] sm:$0xff] %vm10950_vm10, %v2371_v7  ;;  %2285 = vrot.lane.b32.xlu0 %v7651_v40, %s5932_s12  ;;  %2817 = vrot.lane.b32.xlu1 %v2797_v25, %s5931_s24 }
 0x41a   :  { %v2588_v38 = vpop.permute.xlu0 %2587  ;;  %v2887_v19 = vpop.permute.xlu1 %2886 }
 0x41b   :  { %2635 = vst.msk [vmem:[#allocation3 + $0x18] sm:$0xff] %vm1975_vm9, %v2588_v38 }
 0x41c   :  { %2934 = vst.msk [vmem:[#allocation3 + $0x8] sm:$0xff] %vm10951_vm6, %v2887_v19  ;;  %2032 = vrot.lane.b32.xlu0 %v7701_v59, %s5929_s17  ;;  %2380 = vrot.lane.b32.xlu1 %v7708_v1, %s5933_s23  ;;  %v2445_v59 = vrot.slane %v7630_v11, 5 }
 0x41e   :  { %v2089_v40 = vpop.permute.xlu0 %2088  ;;  %v2459_v61 = vpop.permute.xlu1 %2458  ;;  %v2446_v30 = vsel %vm10952_vm11, %v2444_v56, %v2445_v59 }
 0x41f   :  { %2136 = vst.msk [vmem:[#allocation3 + $0x10] sm:$0xff] %vm2134_vm15, %v2089_v40  ;;  %v2006_v40 = vrot.slane %v7744_v55, 7 }
 0x420   :  { %2507 = vst.msk [vmem:[#allocation3] sm:$0xf8] %vm10949_vm14, %v2459_v61  ;;  %2597 = vrot.lane.b32.xlu0 %v2575_v37, %s5927_s20  ;;  %2896 = vrot.lane.b32.xlu1 %v2876_v54, %s5932_s12  ;;  %vm2508_vm14 = vcmask 1048448   ;;  %v2449_v54 = vrot.slane %v7726_v23, 5 }
 0x422   :  { %v2653_v1 = vpop.permute.xlu0 %2652  ;;  %v2183_v22 = vpop.permute.xlu1 %2182 }
 0x423   :  { %v2952_v3 = vld [vmem:[#allocation3 + $0x8] sm:$0xff]  ;;  %2699 = vst.msk [vmem:[#allocation3 + $0x18] sm:$0xff] %vm2070_vm3, %v2653_v1 }
 0x424   :  { %2230 = vst.msk [vmem:[#allocation3 + $0x10] sm:$0xff] %vm2228_vm8, %v2183_v22  ;;  %5711 = vmatprep.mubr.msk.f32.mxu1 %vm1787_vm0, %v2952_v3  ;;  %2098 = vrot.lane.b32.xlu0 %v7410_v29, %s5930_s19  ;;  %v2450_v22 = vsel %vm10952_vm11, %v2447_v46, %v2449_v54  ;;  %v2166_v3 = vrot.slane %v7744_v55, 1 }
 0x425   :  { %2468 = vrot.lane.b32.xlu1 %v2446_v30, %s5934_s15 }
 0x426   :  { %v2731_v11 = vpop.permute.xlu0 %2730  ;;  %v1930_v9 = vpop.permute.xlu1 %1929 }
 0x427   :  { %v2951_v41 = vld [vmem:[#allocation3] sm:$0xff]  ;;  %2777 = vst.msk [vmem:[#allocation3 + $0x18] sm:$0xff] %vm2134_vm15, %v2731_v11 }
 0x428   :  { %1977 = vst.msk [vmem:[#allocation3 + $0x20] sm:$0xff] %vm1975_vm9, %v1930_v9  ;;  %3124 = vmatmul.mubr.f32.vlgmr.msra.gmra.mxu1 %v2951_v41  ;;  %2662 = vrot.lane.b32.xlu0 %v7660_v44, %s5929_s17 }
 0x429   :  { %2192 = vrot.lane.b32.xlu1 %v7795_v16, %s5931_s24  ;;  %v2799_v16 = vsel %vm2246_vm12, %v2796_v48, %v2798_v18  ;;  %v2448_v48 = vsel %vm10952_vm11, %v2445_v59, %v2447_v46  ;;  %vm10955_vm11 = vcmask 784000   ;;  %v2007_v46 = vrot.slane %v7800_v0, 7 }
 0x42a   :  { %v2278_v53 = vpop.permute.xlu0 %2277  ;;  %v2810_v29 = vpop.permute.xlu1 %2809 }
 0x42b   :  { %2325 = vst.msk [vmem:[#allocation3 + $0x10] sm:$0xff] %vm10951_vm6, %v2278_v53  ;;  %v2174_v53 = vrot.slane %v7686_v26, 1 }
 0x42c   :  { %2856 = vst.msk [vmem:[#allocation3 + $0x18] sm:$0xff] %vm2228_vm8, %v2810_v29  ;;  %2740 = vrot.lane.b32.xlu0 %v2720_v15, %s5930_s19  ;;  %v1912_v29 = vrot.slane %v7800_v0, 6 }
 0x42d   :  { %1939 = vrot.lane.b32.xlu1 %v7586_v36, %s5927_s20  ;;  %v2576_v36 = vrot.slane %v7726_v23, 7 }
 0x42e   :  { %v2025_v51 = vpop.permute.xlu0 %2024  ;;  %v2373_v57 = vpop.permute.xlu1 %2372 }
 0x42f   :  { %2072 = vst.msk [vmem:[#allocation3 + $0x20] sm:$0xff] %vm2070_vm3, %v2025_v51  ;;  %v2577_v49 = vsel %vm1991_vm5, %v2574_v63, %v2576_v36  ;;  %v2261_v51 = vrot.slane %v7744_v55, 2  ;;  %v2269_v36 = vrot.slane %v7686_v26, 2 }
 0x430   :  { %2420 = vst.msk [vmem:[#allocation3 + $0x10] sm:$0xff] %vm10950_vm10, %v2373_v57  ;;  %2287 = vrot.lane.b32.xlu0 %v7826_v39, %s5932_s12  ;;  %v2268_v57 = vrot.slane %v7633_v45, 2 }
 0x431   :  { %2819 = vrot.lane.b32.xlu1 %v2799_v16, %s5931_s24 }
 0x432   :  { %v2590_v12 = vpop.permute.xlu0 %2589  ;;  %v2889_v56 = vpop.permute.xlu1 %2888 }
 0x433   :  { %2636 = vst.msk [vmem:[#allocation3 + $0x28] sm:$0xff] %vm1975_vm9, %v2590_v12 }
 0x434   :  { %2935 = vst.msk [vmem:[#allocation3 + $0x18] sm:$0xff] %vm10951_vm6, %v2889_v56  ;;  %2034 = vrot.lane.b32.xlu0 %v7889_v5, %s5929_s17  ;;  %v2262_v56 = vrot.slane %v7800_v0, 2 }
 0x435   :  { %2382 = vrot.lane.b32.xlu1 %v7895_v10, %s5933_s23 }
 0x436   :  { %v2091_v39 = vpop.permute.xlu0 %2090  ;;  %v2461_v60 = vpop.permute.xlu1 %2460 }
 0x437   :  { %2137 = vst.msk [vmem:[#allocation3 + $0x20] sm:$0xff] %vm2134_vm15, %v2091_v39 }
 0x438   :  { %2509 = vst.msk [vmem:[#allocation3 + $0x10] sm:$0xff] %vm2508_vm14, %v2461_v60  ;;  %2599 = vrot.lane.b32.xlu0 %v2577_v49, %s5927_s20  ;;  %v2356_v60 = vrot.slane %v7744_v55, 3  ;;  %v2263_v49 = vsel %vm2246_vm12, %v2261_v51, %v2262_v56 }
 0x439   :  { %2898 = vrot.lane.b32.xlu1 %v2878_v21, %s5932_s12  ;;  %v8164_v21 = vsel %vm2246_vm12, %v2268_v57, %v2269_v36 }
 0x43a   :  { %v2655_v5 = vpop.permute.xlu0 %2654  ;;  %v2185_v14 = vpop.permute.xlu1 %2184 }
 0x43b   :  { %v2954_v10 = vld [vmem:[#allocation3 + $0x18] sm:$0xff]  ;;  %2700 = vst.msk [vmem:[#allocation3 + $0x28] sm:$0xff] %vm2070_vm3, %v2655_v5  ;;  %v2357_v5 = vrot.slane %v7800_v0, 3 }
 0x43c   :  { %2231 = vst.msk [vmem:[#allocation3 + $0x20] sm:$0xff] %vm2228_vm8, %v2185_v14  ;;  %5712 = vmatprep.mubr.msk.f32.mxu1 %vm1787_vm0, %v2954_v10  ;;  %2100 = vrot.lane.b32.xlu0 %v7476_v58, %s5930_s19  ;;  %v1911_v58 = vrot.slane %v7744_v55, 6 }
 0x43d   :  { %2470 = vrot.lane.b32.xlu1 %v2448_v48, %s5934_s15  ;;  %v2363_v48 = vrot.slane %v7633_v45, 3 }
 0x43e   :  { %v2733_v44 = vpop.permute.xlu0 %2732  ;;  %v1932_v43 = vpop.permute.xlu1 %1931 }
 0x43f   :  { %v2953_v7 = vld [vmem:[#allocation3 + $0x10] sm:$0xff]  ;;  %2778 = vst.msk [vmem:[#allocation3 + $0x28] sm:$0xff] %vm2134_vm15, %v2733_v44  ;;  %v2008_v44 = vsel %vm1991_vm5, %v2006_v40, %v2007_v46 }
 0x440   :  { %1978 = vst.msk [vmem:[#allocation3 + $0x30] sm:$0xff] %vm1975_vm9, %v1932_v43  ;;  %3129 = vmatmul.mubr.f32.gmra.mxu1 %v2953_v7  ;;  %2664 = vrot.lane.b32.xlu0 %v7726_v23, %s5929_s17  ;;  %v2167_v23 = vrot.slane %v7800_v0, 1  ;;  %v2358_v43 = vsel %vm2341_vm2, %v2356_v60, %v2357_v5  ;;  %v2014_v7 = vrot.slane %v7686_v26, 7 }
 0x441   :  { %2194 = vrot.lane.b32.xlu1 %v7758_v34, %s5931_s24 }
 0x442   :  { %v2280_v25 = vpop.permute.xlu0 %2279  ;;  %v2812_v38 = vpop.permute.xlu1 %2811  ;;  %v2168_v41 = vsel %vm10959_vm7, %v2166_v3, %v2167_v23 }
 0x443   :  { %2326 = vst.msk [vmem:[#allocation3 + $0x20] sm:$0xff] %vm10951_vm6, %v2280_v25  ;;  %v2364_v25 = vrot.slane %v7686_v26, 3 }
 0x444   :  { %2857 = vst.msk [vmem:[#allocation3 + $0x28] sm:$0xff] %vm2228_vm8, %v2812_v38  ;;  %2742 = vrot.lane.b32.xlu0 %v2719_v2, %s5930_s19  ;;  %v2173_v2 = vrot.slane %v7633_v45, 1 }
 0x445   :  { %1941 = vrot.lane.b32.xlu1 %v1911_v58, %s5927_s20 }
 0x446   :  { %v2027_v19 = vpop.permute.xlu0 %2026  ;;  %v2375_v63 = vpop.permute.xlu1 %2374  ;;  %v8145_v16 = vsel %vm10959_vm7, %v2173_v2, %v2174_v53 }
 0x447   :  { %2073 = vst.msk [vmem:[#allocation3 + $0x30] sm:$0xff] %vm2070_vm3, %v2027_v19  ;;  %v8197_v19 = vsel %vm2341_vm2, %v2363_v48, %v2364_v25 }
 0x448   :  { %2421 = vst.msk [vmem:[#allocation3 + $0x20] sm:$0xff] %vm10950_vm10, %v2375_v63  ;;  %2289 = vrot.lane.b32.xlu0 %v7798_v6, %s5932_s12  ;;  %v8110_v6 = vrot.slane %v7633_v45, 7  ;;  %vm10958_vm10 = vcmask 653824  }
 0x449   :  { %2821 = vrot.lane.b32.xlu1 %v2798_v18, %s5931_s24 }
 0x44a   :  { %v2592_v34 = vpop.permute.xlu0 %2591  ;;  %v2891_v32 = vpop.permute.xlu1 %2890 }
 0x44b   :  { %2637 = vst.msk [vmem:[#allocation3 + $0x38] sm:$0xff] %vm1975_vm9, %v2592_v34 }
 0x44c   :  { %2936 = vst.msk [vmem:[#allocation3 + $0x28] sm:$0xff] %vm10951_vm6, %v2891_v32  ;;  %2036 = vrot.lane.b32.xlu0 %v2006_v40, %s5929_s17  ;;  %vm10953_vm6 = vcmask 522624   ;;  %v2169_v40 = vrot.slane %v7818_v28, 1 }
 0x44d   :  { %2384 = vrot.lane.b32.xlu1 %v7866_v4, %s5933_s23 }
 0x44e   :  { %v2093_v61 = vpop.permute.xlu0 %2092  ;;  %v2463_v37 = vpop.permute.xlu1 %2462 }
 0x44f   :  { %2138 = vst.msk [vmem:[#allocation3 + $0x30] sm:$0xff] %vm2134_vm15, %v2093_v61 }
 0x450   :  { %2510 = vst.msk [vmem:[#allocation3 + $0x20] sm:$0xff] %vm2508_vm14, %v2463_v37  ;;  %2601 = vrot.lane.b32.xlu0 %v8110_v6, %s5927_s20 }
 0x451   :  { %2900 = vrot.lane.b32.xlu1 %v2877_v47, %s5932_s12 }
 0x452   :  { %v2657_v59 = vpop.permute.xlu0 %2656  ;;  %v2187_v1 = vpop.permute.xlu1 %2186 }
 0x453   :  { %v2956_v4 = vld [vmem:[#allocation3 + $0x28] sm:$0xff]  ;;  %2701 = vst.msk [vmem:[#allocation3 + $0x38] sm:$0xff] %vm2070_vm3, %v2657_v59  ;;  %v2170_v59 = vsel %vm10959_vm7, %v2167_v23, %v2169_v40 }
 0x454   :  { %2233 = vst.msk [vmem:[#allocation3 + $0x30] sm:$0x7f] %vm10958_vm10, %v2187_v1  ;;  %5713 = vmatprep.mubr.msk.f32.mxu1 %vm1787_vm0, %v2956_v4  ;;  %2102 = vrot.lane.b32.xlu0 %v7744_v55, %s5930_s19  ;;  %v8192_v55 = vsel %vm1991_vm5, %v8110_v6, %v2014_v7  ;;  %v2176_v1 = vrot.slane %v7731_v27, 1  ;;  %v1914_v4 = vrot.slane %v7818_v28, 6 }
 0x455   :  { %2472 = vrot.lane.b32.xlu1 %v2450_v22, %s5934_s15 }
 0x456   :  { %v2735_v30 = vpop.permute.xlu0 %2734  ;;  %v1934_v11 = vpop.permute.xlu1 %1933  ;;  %v8230_v3 = vsel %vm10959_vm7, %v2174_v53, %v2176_v1 }
 0x457   :  { %v2955_v9 = vld [vmem:[#allocation3 + $0x20] sm:$0xff]  ;;  %2780 = vst.msk [vmem:[#allocation3 + $0x38] sm:$0x7f] %vm10953_vm6, %v2735_v30  ;;  %vm2858_vm6 = vcmask 652800   ;;  %v2264_v30 = vrot.slane %v7818_v28, 2 }
 0x458   :  { %1979 = vst.msk [vmem:[#allocation3 + $0x40] sm:$0xfc] %vm10954_vm4, %v1934_v11  ;;  %3134 = vmatmul.mubr.f32.gmra.mxu1 %v2955_v9  ;;  %2666 = vrot.lane.b32.xlu0 %v7633_v45, %s5929_s17  ;;  %vm11100_vm4 = vcmask 1041408   ;;  %v2271_v11 = vrot.slane %v7731_v27, 2 }
 0x459   :  { %2196 = vrot.lane.b32.xlu1 %v2168_v41, %s5931_s24  ;;  %v1913_v12 = vsel %vm11100_vm4, %v1911_v58, %v1912_v29  ;;  %vm10956_vm4 = vcmask 782976   ;;  %v2265_v2 = vsel %vm2246_vm12, %v2262_v56, %v2264_v30  ;;  %v2016_v56 = vrot.slane %v7731_v27, 7 }
 0x45a   :  { %v2282_v15 = vpop.permute.xlu0 %2281  ;;  %v2814_v18 = vpop.permute.xlu1 %2813  ;;  %v8254_v53 = vsel %vm2246_vm12, %v2269_v36, %v2271_v11  ;;  %v2366_v36 = vrot.slane %v7731_v27, 3 }
 0x45b   :  { %2328 = vst.msk [vmem:[#allocation3 + $0x30] sm:$0x3f] %vm10955_vm11, %v2282_v15  ;;  %vm2422_vm11 = vcmask 914176   ;;  %v2359_v15 = vrot.slane %v7818_v28, 3 }
 0x45c   :  { %2859 = vst.msk [vmem:[#allocation3 + $0x38] sm:$0x3f] %vm2858_vm6, %v2814_v18  ;;  %2744 = vrot.lane.b32.xlu0 %v8145_v16, %s5930_s19  ;;  %v8291_v60 = vsel %vm2341_vm2, %v2364_v25, %v2366_v36  ;;  %v1916_v25 = vrot.slane %v7877_v8, 6 }
 0x45d   :  { %1943 = vrot.lane.b32.xlu1 %v1913_v12, %s5927_s20  ;;  %v2360_v12 = vsel %vm2341_vm2, %v2357_v5, %v2359_v15 }
 0x45e   :  { %v2029_v47 = vpop.permute.xlu0 %2028  ;;  %v2377_v39 = vpop.permute.xlu1 %2376 }
 0x45f   :  { %2074 = vst.msk [vmem:[#allocation3 + $0x40] sm:$0xfe] %vm2068_vm13, %v2029_v47 }
 0x460   :  { %2423 = vst.msk [vmem:[#allocation3 + $0x30] sm:$0x1f] %vm2422_vm11, %v2377_v39  ;;  %2291 = vrot.lane.b32.xlu0 %v2263_v49, %s5932_s12 }
 0x461   :  { %2823 = vrot.lane.b32.xlu1 %v8164_v21, %s5931_s24 }
 0x462   :  { %v2594_v14 = vpop.permute.xlu0 %2593  ;;  %v2893_v10 = vpop.permute.xlu1 %2892 }
 0x463   :  { %2638 = vst.msk [vmem:[#allocation3 + $0x48] sm:$0xfe] %vm10957_vm1, %v2594_v14  ;;  %vm11102_vm1 = vcmask 1041408   ;;  %v2171_v14 = vrot.slane %v7877_v8, 1 }
 0x464   :  { %2938 = vst.msk [vmem:[#allocation3 + $0x38] sm:$0x1f] %vm10956_vm4, %v2893_v10  ;;  %2038 = vrot.lane.b32.xlu0 %v2008_v44, %s5929_s17  ;;  %vm11101_vm4 = vcmask 786048   ;;  %v1915_v23 = vsel %vm11102_vm1, %v1912_v29, %v1914_v4  ;;  %v2009_v29 = vrot.slane %v7818_v28, 7  ;;  %vm11104_vm1 = vcmask 786048  }
 0x465   :  { %2386 = vrot.lane.b32.xlu1 %v2358_v43, %s5933_s23  ;;  %v2172_v43 = vsel %vm10959_vm7, %v2169_v40, %v2171_v14 }
 0x466   :  { %v2095_v38 = vpop.permute.xlu0 %2094  ;;  %v2465_v58 = vpop.permute.xlu1 %2464  ;;  %v2010_v57 = vsel %vm1991_vm5, %v2007_v46, %v2009_v29 }
 0x467   :  { %2139 = vst.msk [vmem:[#allocation3 + $0x40] sm:$0xff] %vm2134_vm15, %v2095_v38 }
 0x468   :  { %2511 = vst.msk [vmem:[#allocation3 + $0x30] sm:$0xff] %vm2508_vm14, %v2465_v58  ;;  %2603 = vrot.lane.b32.xlu0 %v8192_v55, %s5927_s20 }
 0x469   :  { %2902 = vrot.lane.b32.xlu1 %v8197_v19, %s5932_s12 }
 0x46a   :  { %v2659_v63 = vpop.permute.xlu0 %2658  ;;  %v2189_v34 = vpop.permute.xlu1 %2188 }
 0x46b   :  { %v2958_v32 = vld [vmem:[#allocation3 + $0x38] sm:$0xff]  ;;  %2702 = vst.msk [vmem:[#allocation3 + $0x48] sm:$0xff] %vm2070_vm3, %v2659_v63 }
 0x46c   :  { %2234 = vst.msk [vmem:[#allocation3 + $0x40] sm:$0xff] %vm2228_vm8, %v2189_v34  ;;  %5714 = vmatprep.mubr.msk.f32.mxu1 %vm1787_vm0, %v2958_v32  ;;  %2104 = vrot.lane.b32.xlu0 %v7800_v0, %s5930_s19  ;;  %v8284_v0 = vsel %vm1991_vm5, %v2014_v7, %v2016_v56  ;;  %v8313_v7 = vrot.slane %v7781_v42, 1  ;;  %v2266_v34 = vrot.slane %v7877_v8, 2  ;;  %v8332_v32 = vrot.slane %v7781_v42, 2 }
 0x46d   :  { %2474 = vrot.lane.b32.xlu1 %v7663_v62, %s5934_s15 }
 0x46e   :  { %v2737_v61 = vpop.permute.xlu0 %2736  ;;  %v1936_v37 = vpop.permute.xlu1 %1935  ;;  %v8325_v58 = vsel %vm10959_vm7, %v2176_v1, %v8313_v7  ;;  %v2361_v1 = vrot.slane %v7877_v8, 3 }
 0x46f   :  { %v2957_v54 = vld [vmem:[#allocation3 + $0x30] sm:$0xff]  ;;  %2781 = vst.msk [vmem:[#allocation3 + $0x48] sm:$0xff] %vm2134_vm15, %v2737_v61 }
 0x470   :  { %1980 = vst.msk [vmem:[#allocation3 + $0x50] sm:$0xff] %vm1975_vm9, %v1936_v37  ;;  %3139 = vmatmul.mubr.f32.gmra.mxu1 %v2957_v54  ;;  %2668 = vrot.lane.b32.xlu0 %v7686_v26, %s5929_s17  ;;  %v2267_v37 = vsel %vm2246_vm12, %v2264_v30, %v2266_v34  ;;  %v8346_v54 = vsel %vm2246_vm12, %v2271_v11, %v8332_v32  ;;  %v2018_v30 = vrot.slane %v7781_v42, 7  ;;  %v8363_v11 = vrot.slane %v7781_v42, 3 }
 0x471   :  { %2198 = vrot.lane.b32.xlu1 %v2170_v59, %s5931_s24  ;;  %v2011_v59 = vrot.slane %v7877_v8, 7 }
 0x472   :  { %v2284_v62 = vpop.permute.xlu0 %2283  ;;  %v2816_v22 = vpop.permute.xlu1 %2815 }
 0x473   :  { %2329 = vst.msk [vmem:[#allocation3 + $0x40] sm:$0xff] %vm11101_vm4, %v2284_v62  ;;  %vm11103_vm4 = vcmask 917248  }
 0x474   :  { %2860 = vst.msk [vmem:[#allocation3 + $0x48] sm:$0xff] %vm2228_vm8, %v2816_v22  ;;  %2746 = vrot.lane.b32.xlu0 %v8230_v3, %s5930_s19  ;;  %v2012_v22 = vsel %vm1991_vm5, %v2009_v29, %v2011_v59 }
 0x475   :  { %1945 = vrot.lane.b32.xlu1 %v1915_v23, %s5927_s20  ;;  %v2362_v23 = vsel %vm2341_vm2, %v2359_v15, %v2361_v1 }
 0x476   :  { %v2031_v9 = vpop.permute.xlu0 %2030  ;;  %v2379_v41 = vpop.permute.xlu1 %2378 }
 0x477   :  { %2075 = vst.msk [vmem:[#allocation3 + $0x50] sm:$0xff] %vm2070_vm3, %v2031_v9 }
 0x478   :  { %2424 = vst.msk [vmem:[#allocation3 + $0x40] sm:$0xff] %vm11103_vm4, %v2379_v41  ;;  %2293 = vrot.lane.b32.xlu0 %v2265_v2, %s5932_s12  ;;  %vm11105_vm4 = vcmask 1048451   ;;  %v8378_v2 = vsel %vm2341_vm2, %v2366_v36, %v8363_v11 }
 0x479   :  { %2825 = vrot.lane.b32.xlu1 %v8254_v53, %s5931_s24 }
 0x47a   :  { %v2596_v18 = vpop.permute.xlu0 %2595  ;;  %v2895_v51 = vpop.permute.xlu1 %2894 }
 0x47b   :  { %2639 = vst.msk [vmem:[#allocation3 + $0x58] sm:$0xff] %vm1975_vm9, %v2596_v18 }
 0x47c   :  { %2939 = vst.msk [vmem:[#allocation3 + $0x48] sm:$0xff] %vm11104_vm1, %v2895_v51  ;;  %2040 = vrot.lane.b32.xlu0 %v2010_v57, %s5929_s17 }
 0x47d   :  { %2388 = vrot.lane.b32.xlu1 %v2360_v12, %s5933_s23 }
 0x47e   :  { %v2097_v47 = vpop.permute.xlu0 %2096  ;;  %v2467_v39 = vpop.permute.xlu1 %2466 }
 0x47f   :  { %2140 = vst.msk [vmem:[#allocation3 + $0x50] sm:$0xff] %vm2134_vm15, %v2097_v47 }
 0x480   :  { %2512 = vst.msk [vmem:[#allocation3 + $0x40] sm:$0xf8] %vm11105_vm4, %v2467_v39  ;;  %2605 = vrot.lane.b32.xlu0 %v8284_v0, %s5927_s20  ;;  %vm11106_vm4 = vcmask 1041408  }
 0x481   :  { %2904 = vrot.lane.b32.xlu1 %v8291_v60, %s5932_s12  ;;  %v1917_v63 = vsel %vm11106_vm4, %v1914_v4, %v1916_v25  ;;  %vm11108_vm4 = vcmask 786048   ;;  %v2722_v25 = vrot.slane %v7881_v52, 1 }
 0x482   :  { %v2661_v49 = vpop.permute.xlu0 %2660  ;;  %v2191_v46 = vpop.permute.xlu1 %2190 }
 0x483   :  { %v2960_v5 = vld [vmem:[#allocation3 + $0x48] sm:$0xff]  ;;  %2703 = vst.msk [vmem:[#allocation3 + $0x58] sm:$0xff] %vm2070_vm3, %v2661_v49 }
 0x484   :  { %2235 = vst.msk [vmem:[#allocation3 + $0x50] sm:$0xff] %vm2228_vm8, %v2191_v46  ;;  %5715 = vmatprep.mubr.msk.f32.mxu1 %vm1787_vm0, %v2960_v5  ;;  %2106 = vrot.lane.b32.xlu0 %v7818_v28, %s5930_s19  ;;  %v8372_v28 = vsel %vm1991_vm5, %v2016_v56, %v2018_v30  ;;  %v2578_v46 = vrot.slane %v7879_v31, 7 }
 0x485   :  { %2476 = vrot.lane.b32.xlu1 %v7735_v20, %s5934_s15 }
 0x486   :  { %v2739_v10 = vpop.permute.xlu0 %2738  ;;  %v1938_v48 = vpop.permute.xlu1 %1937 }
 0x487   :  { %v2959_v44 = vld [vmem:[#allocation3 + $0x40] sm:$0xff]  ;;  %2782 = vst.msk [vmem:[#allocation3 + $0x58] sm:$0xff] %vm2134_vm15, %v2739_v10 }
 0x488   :  { %1981 = vst.msk [vmem:[#allocation3 + $0x60] sm:$0xff] %vm1975_vm9, %v1938_v48  ;;  %3144 = vmatmul.mubr.f32.gmra.mxu1 %v2959_v44  ;;  %2670 = vrot.lane.b32.xlu0 %v7731_v27, %s5929_s17 }
 0x489   :  { %2200 = vrot.lane.b32.xlu1 %v2172_v43, %s5931_s24  ;;  %v2721_v43 = vrot.slane %v7879_v31, 1 }
 0x48a   :  { %v2286_v20 = vpop.permute.xlu0 %2285  ;;  %v2818_v38 = vpop.permute.xlu1 %2817 }
 0x48b   :  { %2330 = vst.msk [vmem:[#allocation3 + $0x50] sm:$0xff] %vm11104_vm1, %v2286_v20  ;;  %vm11107_vm1 = vcmask 917248   ;;  %v2723_v20 = vsel %vm10959_vm7, %v2721_v43, %v2722_v25 }
 0x48c   :  { %2861 = vst.msk [vmem:[#allocation3 + $0x58] sm:$0xff] %vm2228_vm8, %v2818_v38  ;;  %2748 = vrot.lane.b32.xlu0 %v8325_v58, %s5930_s19  ;;  %v2800_v38 = vrot.slane %v7879_v31, 2 }
 0x48d   :  { %1947 = vrot.lane.b32.xlu1 %v1917_v63, %s5927_s20  ;;  %v2801_v63 = vrot.slane %v7881_v52, 2 }
 0x48e   :  { %v2033_v40 = vpop.permute.xlu0 %2032  ;;  %v2381_v61 = vpop.permute.xlu1 %2380 }
 0x48f   :  { %2076 = vst.msk [vmem:[#allocation3 + $0x60] sm:$0xff] %vm2070_vm3, %v2033_v40 }
 0x490   :  { %2425 = vst.msk [vmem:[#allocation3 + $0x50] sm:$0xff] %vm11107_vm1, %v2381_v61  ;;  %2295 = vrot.lane.b32.xlu0 %v2267_v37, %s5932_s12  ;;  %vm11109_vm1 = vmmov %vm11108_vm4 }
 0x491   :  { %2827 = vrot.lane.b32.xlu1 %v8346_v54, %s5931_s24 }
 0x492   :  { %v2598_v4 = vpop.permute.xlu0 %2597  ;;  %v2897_v62 = vpop.permute.xlu1 %2896 }
 0x493   :  { %2640 = vst.msk [vmem:[#allocation3 + $0x68] sm:$0xff] %vm1975_vm9, %v2598_v4  ;;  %v2879_v4 = vrot.slane %v7879_v31, 3 }
 0x494   :  { %2940 = vst.msk [vmem:[#allocation3 + $0x58] sm:$0xff] %vm11108_vm4, %v2897_v62  ;;  %2042 = vrot.lane.b32.xlu0 %v2012_v22, %s5929_s17  ;;  %vm11110_vm4 = vcmask 917248   ;;  %v2880_v62 = vrot.slane %v7881_v52, 3 }
 0x495   :  { %2390 = vrot.lane.b32.xlu1 %v2362_v23, %s5933_s23 }
 0x496   :  { %v2099_v9 = vpop.permute.xlu0 %2098  ;;  %v2881_v30 = vsel %vm2341_vm2, %v2879_v4, %v2880_v62  ;;  %v2454_v4 = vrot.slane %v7884_v35, 5 }
 0x497   :  { %v2469_v41 = vpop.permute.xlu1 %2468  ;;  %2141 = vst.msk [vmem:[#allocation3 + $0x60] sm:$0xff] %vm2134_vm15, %v2099_v9 }
 0x498   :  { %2513 = vst.msk [vmem:[#allocation3 + $0x50] sm:$0xff] %vm2508_vm14, %v2469_v41  ;;  %2607 = vrot.lane.b32.xlu0 %v8372_v28, %s5927_s20 }
 0x499   :  { %2906 = vrot.lane.b32.xlu1 %v8378_v2, %s5932_s12 }
 0x49a   :  { %v2663_v29 = vpop.permute.xlu0 %2662 }
 0x49b   :  { %v2193_v15 = vpop.permute.xlu1 %2192  ;;  %v2962_v18 = vld [vmem:[#allocation3 + $0x58] sm:$0xff]  ;;  %2704 = vst.msk [vmem:[#allocation3 + $0x68] sm:$0xff] %vm2070_vm3, %v2663_v29  ;;  %v2451_v29 = vrot.slane %v7879_v31, 5 }
 0x49c   :  { %2236 = vst.msk [vmem:[#allocation3 + $0x60] sm:$0xff] %vm2228_vm8, %v2193_v15  ;;  %5716 = vmatprep.mubr.msk.f32.mxu1 %vm1787_vm0, %v2962_v18  ;;  %2108 = vrot.lane.b32.xlu0 %v7877_v8, %s5930_s19 }
 0x49d   :  { %2478 = vrot.lane.b32.xlu1 %v7774_v13, %s5934_s15 }
 0x49e   :  { %v2741_v51 = vpop.permute.xlu0 %2740 }
 0x49f   :  { %v1940_v57 = vpop.permute.xlu1 %1939  ;;  %v2961_v12 = vld [vmem:[#allocation3 + $0x50] sm:$0xff]  ;;  %2783 = vst.msk [vmem:[#allocation3 + $0x68] sm:$0xff] %vm2134_vm15, %v2741_v51 }
 0x4a0   :  { %1982 = vst.msk [vmem:[#allocation3 + $0x70] sm:$0xff] %vm1975_vm9, %v1940_v57  ;;  %3149 = vmatmul.mubr.f32.gmra.mxu1 %v2961_v12  ;;  %2672 = vrot.lane.b32.xlu0 %v7781_v42, %s5929_s17  ;;  %v2803_v12 = vrot.slane %v7884_v35, 2 }
 0x4a1   :  { %2202 = vrot.lane.b32.xlu1 %v2171_v14, %s5931_s24 }
 0x4a2   :  { %v2288_v56 = vpop.permute.xlu0 %2287 }
 0x4a3   :  { %v2820_v36 = vpop.permute.xlu1 %2819  ;;  %2331 = vst.msk [vmem:[#allocation3 + $0x60] sm:$0xff] %vm11109_vm1, %v2288_v56  ;;  %v11118_v56 = vld [vmem:[#allocation7_spill] sm:$0xff] }
 0x4a4   :  { %2862 = vst.msk [vmem:[#allocation3 + $0x68] sm:$0xff] %vm2228_vm8, %v2820_v36  ;;  %2750 = vrot.lane.b32.xlu0 %v8313_v7, %s5930_s19 }
 0x4a5   :  { %1949 = vrot.lane.b32.xlu1 %v7723_v33, %s5927_s20 }
 0x4a6   :  { %v2035_v13 = vpop.permute.xlu0 %2034 }
 0x4a7   :  { %v2383_v47 = vpop.permute.xlu1 %2382  ;;  %2077 = vst.msk [vmem:[#allocation3 + $0x70] sm:$0xff] %vm2070_vm3, %v2035_v13 }
 0x4a8   :  { %2426 = vst.msk [vmem:[#allocation3 + $0x60] sm:$0xff] %vm11110_vm4, %v2383_v47  ;;  %2297 = vrot.lane.b32.xlu0 %v2266_v34, %s5932_s12  ;;  %vm11111_vm4 = vcmask 522624   ;;  %v11114_v34 = vld [vmem:[#allocation6_spill] sm:$0xff] }
 0x4a9   :  { %2829 = vrot.lane.b32.xlu1 %v8332_v32, %s5931_s24 }
 0x4aa   :  { %v2600_v8 = vpop.permute.xlu0 %2599 }
 0x4ab   :  { %v2899_v39 = vpop.permute.xlu1 %2898  ;;  %2641 = vst.msk [vmem:[#allocation3 + $0x78] sm:$0xff] %vm1975_vm9, %v2600_v8 }
 0x4ac   :  { %2941 = vst.msk [vmem:[#allocation3 + $0x68] sm:$0xff] %vm11109_vm1, %v2899_v39  ;;  %2044 = vrot.lane.b32.xlu0 %v8110_v6, %s5929_s17  ;;  %vm11112_vm1 = vcmask 261250   ;;  %v2581_v39 = vrot.slane %v7884_v35, 7 }
 0x4ad   :  { %2392 = vrot.lane.b32.xlu1 %v2361_v1, %s5933_s23  ;;  %v2579_v1 = vrot.slane %v7881_v52, 7 }
 0x4ae   :  { %v2101_v33 = vpop.permute.xlu0 %2100 }
 0x4af   :  { %v2471_v49 = vpop.permute.xlu1 %2470  ;;  %2142 = vst.msk [vmem:[#allocation3 + $0x70] sm:$0xff] %vm2134_vm15, %v2101_v33  ;;  %v2580_v23 = vsel %vm1991_vm5, %v2578_v46, %v2579_v1  ;;  %v2882_v33 = vrot.slane %v7884_v35, 3 }
 0x4b0   :  { %2514 = vst.msk [vmem:[#allocation3 + $0x60] sm:$0xff] %vm2508_vm14, %v2471_v49  ;;  %2609 = vrot.lane.b32.xlu0 %v2578_v46, %s5927_s20  ;;  %v2582_v46 = vsel %vm1991_vm5, %v2579_v1, %v2581_v39 }
 0x4b1   :  { %2908 = vrot.lane.b32.xlu1 %v8363_v11, %s5932_s12 }
 0x4b2   :  { %v2665_v5 = vpop.permute.xlu0 %2664 }
 0x4b3   :  { %v2195_v14 = vpop.permute.xlu1 %2194  ;;  %v2964_v10 = vld [vmem:[#allocation3 + $0x68] sm:$0xff]  ;;  %2705 = vst.msk [vmem:[#allocation3 + $0x78] sm:$0xff] %vm2070_vm3, %v2665_v5  ;;  %v2883_v5 = vsel %vm2341_vm2, %v2880_v62, %v2882_v33 }
 0x4b4   :  { %2237 = vst.msk [vmem:[#allocation3 + $0x70] sm:$0x7f] %vm10958_vm10, %v2195_v14  ;;  %5717 = vmatprep.mubr.msk.f32.mxu1 %vm1787_vm0, %v2964_v10  ;;  %2110 = vrot.lane.b32.xlu0 %v7633_v45, %s5930_s19  ;;  %vm11113_vm10 = vcmask 784000   ;;  %v2452_v14 = vrot.slane %v7881_v52, 5 }
 0x4b5   :  { %2480 = vrot.lane.b32.xlu1 %v7835_v17, %s5934_s15 }
 0x4b6   :  { %v2743_v6 = vpop.permute.xlu0 %2742 }
 0x4b7   :  { %v1942_v48 = vpop.permute.xlu1 %1941  ;;  %v2963_v44 = vld [vmem:[#allocation3 + $0x60] sm:$0xff]  ;;  %2784 = vst.msk [vmem:[#allocation3 + $0x78] sm:$0x7f] %vm11111_vm4, %v2743_v6  ;;  %vm11116_vm4 = vcmask 782976  }
 0x4b8   :  { %1983 = vst.msk [vmem:[#allocation3 + $0x80] sm:$0xfc] %vm11112_vm1, %v1942_v48  ;;  %3154 = vmatmul.mubr.f32.gmra.mxu1 %v2963_v44  ;;  %2674 = vrot.lane.b32.xlu0 %v7879_v31, %s5929_s17  ;;  %v2724_v31 = vrot.slane %v7884_v35, 1  ;;  %vm11117_vm1 = vcmask 786048  }
 0x4b9   :  { %2204 = vrot.lane.b32.xlu1 %v8145_v16, %s5931_s24  ;;  %v2802_v16 = vsel %vm2246_vm12, %v2800_v38, %v2801_v63  ;;  %v2805_v38 = vrot.slane %v7920_v24, 2 }
 0x4ba   :  { %v2290_v45 = vpop.permute.xlu0 %2289  ;;  %v2725_v57 = vsel %vm10959_vm7, %v2722_v25, %v2724_v31  ;;  %v2726_v25 = vrot.slane %v7920_v24, 1 }
 0x4bb   :  { %v2822_v17 = vpop.permute.xlu1 %2821  ;;  %2332 = vst.msk [vmem:[#allocation3 + $0x70] sm:$0x3f] %vm11113_vm10, %v2290_v45  ;;  %vm11115_vm10 = vcmask 261249  }
 0x4bc   :  { %2863 = vst.msk [vmem:[#allocation3 + $0x78] sm:$0x3f] %vm2858_vm6, %v2822_v17  ;;  %2752 = vrot.lane.b32.xlu0 %v2723_v20, %s5930_s19  ;;  %v2727_v20 = vsel %vm10959_vm7, %v2724_v31, %v2726_v25  ;;  %vm11133_vm7 = vcmask 784000  }
 0x4bd   :  { %1951 = vrot.lane.b32.xlu1 %v11114_v34, %s5927_s20 }
 0x4be   :  { %v2037_v40 = vpop.permute.xlu0 %2036 }
 0x4bf   :  { %v2385_v61 = vpop.permute.xlu1 %2384  ;;  %2078 = vst.msk [vmem:[#allocation3 + $0x80] sm:$0xfe] %vm2068_vm13, %v2037_v40 }
 0x4c0   :  { %2427 = vst.msk [vmem:[#allocation3 + $0x70] sm:$0x1f] %vm2422_vm11, %v2385_v61  ;;  %2299 = vrot.lane.b32.xlu0 %v8164_v21, %s5932_s12 }
 0x4c1   :  { %2831 = vrot.lane.b32.xlu1 %v2802_v16, %s5931_s24  ;;  %v2884_v16 = vrot.slane %v7920_v24, 3 }
 0x4c2   :  { %v2602_v37 = vpop.permute.xlu0 %2601 }
 0x4c3   :  { %v2901_v59 = vpop.permute.xlu1 %2900  ;;  %2642 = vst.msk [vmem:[#allocation3 + $0x88] sm:$0xfe] %vm11115_vm10, %v2602_v37  ;;  %vm11119_vm10 = vcmask 917248   ;;  %v2885_v1 = vsel %vm2341_vm2, %v2882_v33, %v2884_v16 }
 0x4c4   :  { %2942 = vst.msk [vmem:[#allocation3 + $0x78] sm:$0x1f] %vm11116_vm4, %v2901_v59  ;;  %2046 = vrot.lane.b32.xlu0 %v8192_v55, %s5929_s17  ;;  %vm11120_vm4 = vmmov %vm11117_vm1 }
 0x4c5   :  { %2394 = vrot.lane.b32.xlu1 %v8197_v19, %s5933_s23 }
 0x4c6   :  { %v2103_v21 = vpop.permute.xlu0 %2102 }
 0x4c7   :  { %v2473_v22 = vpop.permute.xlu1 %2472  ;;  %2143 = vst.msk [vmem:[#allocation3 + $0x80] sm:$0xff] %vm2134_vm15, %v2103_v21 }
 0x4c8   :  { %2515 = vst.msk [vmem:[#allocation3 + $0x70] sm:$0xff] %vm2508_vm14, %v2473_v22  ;;  %2611 = vrot.lane.b32.xlu0 %v2580_v23, %s5927_s20 }
 0x4c9   :  { %2910 = vrot.lane.b32.xlu1 %v2881_v30, %s5932_s12 }
 0x4ca   :  { %v2667_v9 = vpop.permute.xlu0 %2666 }
 0x4cb   :  { %v2197_v41 = vpop.permute.xlu1 %2196  ;;  %v2966_v55 = vld [vmem:[#allocation3 + $0x78] sm:$0xff]  ;;  %2706 = vst.msk [vmem:[#allocation3 + $0x88] sm:$0xff] %vm2070_vm3, %v2667_v9 }
 0x4cc   :  { %2238 = vst.msk [vmem:[#allocation3 + $0x80] sm:$0xff] %vm2228_vm8, %v2197_v41  ;;  %5718 = vmatprep.mubr.msk.f32.mxu1 %vm1787_vm0, %v2966_v55  ;;  %2112 = vrot.lane.b32.xlu0 %v7686_v26, %s5930_s19 }
 0x4cd   :  { %2482 = vrot.lane.b32.xlu1 %v2451_v29, %s5934_s15 }
 0x4ce   :  { %v2745_v19 = vpop.permute.xlu0 %2744 }
 0x4cf   :  { %v1944_v15 = vpop.permute.xlu1 %1943  ;;  %v2965_v18 = vld [vmem:[#allocation3 + $0x70] sm:$0xff]  ;;  %2785 = vst.msk [vmem:[#allocation3 + $0x88] sm:$0xff] %vm2134_vm15, %v2745_v19 }
 0x4d0   :  { %1984 = vst.msk [vmem:[#allocation3 + $0x90] sm:$0xff] %vm1975_vm9, %v1944_v15  ;;  %3159 = vmatmul.mubr.f32.gmra.mxu1 %v2965_v18  ;;  %2676 = vrot.lane.b32.xlu0 %v7881_v52, %s5929_s17 }
 0x4d1   :  { %2206 = vrot.lane.b32.xlu1 %v8230_v3, %s5931_s24  ;;  %v2804_v3 = vsel %vm2246_vm12, %v2801_v63, %v2803_v12 }
 0x4d2   :  { %v2292_v51 = vpop.permute.xlu0 %2291 }
 0x4d3   :  { %v2824_v26 = vpop.permute.xlu1 %2823  ;;  %2333 = vst.msk [vmem:[#allocation3 + $0x80] sm:$0xff] %vm11117_vm1, %v2292_v51  ;;  %vm11121_vm1 = vcmask 1048451  }
 0x4d4   :  { %2864 = vst.msk [vmem:[#allocation3 + $0x88] sm:$0xff] %vm2228_vm8, %v2824_v26  ;;  %2754 = vrot.lane.b32.xlu0 %v2725_v57, %s5930_s19 }
 0x4d5   :  { %1953 = vrot.lane.b32.xlu1 %v11118_v56, %s5927_s20 }
 0x4d6   :  { %v2039_v36 = vpop.permute.xlu0 %2038 }
 0x4d7   :  { %v2387_v13 = vpop.permute.xlu1 %2386  ;;  %2079 = vst.msk [vmem:[#allocation3 + $0x90] sm:$0xff] %vm2070_vm3, %v2039_v36 }
 0x4d8   :  { %2428 = vst.msk [vmem:[#allocation3 + $0x80] sm:$0xff] %vm11119_vm10, %v2387_v13  ;;  %2301 = vrot.lane.b32.xlu0 %v8254_v53, %s5932_s12  ;;  %vm11122_vm10 = vcmask 1042432  }
 0x4d9   :  { %2833 = vrot.lane.b32.xlu1 %v2804_v3, %s5931_s24 }
 0x4da   :  { %v2604_v47 = vpop.permute.xlu0 %2603 }
 0x4db   :  { %v2903_v8 = vpop.permute.xlu1 %2902  ;;  %2643 = vst.msk [vmem:[#allocation3 + $0x98] sm:$0xff] %vm1975_vm9, %v2604_v47 }
 0x4dc   :  { %2943 = vst.msk [vmem:[#allocation3 + $0x88] sm:$0xff] %vm11120_vm4, %v2903_v8  ;;  %2048 = vrot.lane.b32.xlu0 %v8284_v0, %s5929_s17 }
 0x4dd   :  { %2396 = vrot.lane.b32.xlu1 %v8291_v60, %s5933_s23  ;;  %v2453_v60 = vsel %vm11122_vm10, %v2451_v29, %v2452_v14  ;;  %vm11124_vm10 = vmmov %vm11120_vm4 }
 0x4de   :  { %v2105_v49 = vpop.permute.xlu0 %2104 }
 0x4df   :  { %v2475_v53 = vpop.permute.xlu1 %2474  ;;  %2144 = vst.msk [vmem:[#allocation3 + $0x90] sm:$0xff] %vm2134_vm15, %v2105_v49 }
 0x4e0   :  { %2516 = vst.msk [vmem:[#allocation3 + $0x80] sm:$0xf8] %vm11121_vm1, %v2475_v53  ;;  %2613 = vrot.lane.b32.xlu0 %v2582_v46, %s5927_s20  ;;  %vm11123_vm1 = vcmask 917248  }
 0x4e1   :  { %2912 = vrot.lane.b32.xlu1 %v2883_v5, %s5932_s12 }
 0x4e2   :  { %v2669_v0 = vpop.permute.xlu0 %2668 }
 0x4e3   :  { %v2199_v10 = vpop.permute.xlu1 %2198  ;;  %v2968_v6 = vld [vmem:[#allocation3 + $0x88] sm:$0xff]  ;;  %2707 = vst.msk [vmem:[#allocation3 + $0x98] sm:$0xff] %vm2070_vm3, %v2669_v0 }
 0x4e4   :  { %2239 = vst.msk [vmem:[#allocation3 + $0x90] sm:$0xff] %vm2228_vm8, %v2199_v10  ;;  %5719 = vmatprep.mubr.msk.f32.mxu1 %vm1787_vm0, %v2968_v6  ;;  %2114 = vrot.lane.b32.xlu0 %v7731_v27, %s5930_s19 }
 0x4e5   :  { %2484 = vrot.lane.b32.xlu1 %v2453_v60, %s5934_s15 }
 0x4e6   :  { %v2747_v52 = vpop.permute.xlu0 %2746 }
 0x4e7   :  { %v1946_v48 = vpop.permute.xlu1 %1945  ;;  %v2967_v44 = vld [vmem:[#allocation3 + $0x80] sm:$0xff]  ;;  %2786 = vst.msk [vmem:[#allocation3 + $0x98] sm:$0xff] %vm2134_vm15, %v2747_v52 }
 0x4e8   :  { %1985 = vst.msk [vmem:[#allocation3 + $0xa0] sm:$0xff] %vm1975_vm9, %v1946_v48  ;;  %v8515_v43 = vpop.f32.mrf.mxu1  ;;  %3164 = vmatmul.mubr.f32.gmra.mxu1 %v2967_v44  ;;  %2678 = vrot.lane.b32.xlu0 %v7884_v35, %s5929_s17 }
 0x4e9   :  { %2208 = vrot.lane.b32.xlu1 %v8325_v58, %s5931_s24  ;;  %v2806_v58 = vsel %vm2246_vm12, %v2803_v12, %v2805_v38 }
 0x4ea   :  { %v3127_v27 = vpop.f32.mrf.mxu1  ;;  %v2294_v45 = vpop.permute.xlu0 %2293 }
 0x4eb   :  { %v2826_v17 = vpop.permute.xlu1 %2825  ;;  %2334 = vst.msk [vmem:[#allocation3 + $0x90] sm:$0xff] %vm11120_vm4, %v2294_v45  ;;  %vm11125_vm4 = vcmask 1042432  }
 0x4ec   :  { %2865 = vst.msk [vmem:[#allocation3 + $0x98] sm:$0xff] %vm2228_vm8, %v2826_v17  ;;  %2756 = vrot.lane.b32.xlu0 %v2727_v20, %s5930_s19 }
 0x4ed   :  { %1955 = vrot.lane.b32.xlu1 %v7904_v50, %s5927_s20  ;;  %v2583_v50 = vrot.slane %v7920_v24, 7 }
 0x4ee   :  { %v2041_v63 = vpop.permute.xlu0 %2040 }
 0x4ef   :  { %v2389_v34 = vpop.permute.xlu1 %2388  ;;  %2080 = vst.msk [vmem:[#allocation3 + $0xa0] sm:$0xff] %vm2070_vm3, %v2041_v63  ;;  %v2584_v59 = vsel %vm1991_vm5, %v2581_v39, %v2583_v50 }
 0x4f0   :  { %2429 = vst.msk [vmem:[#allocation3 + $0x90] sm:$0xff] %vm11123_vm1, %v2389_v34  ;;  %2303 = vrot.lane.b32.xlu0 %v8346_v54, %s5932_s12  ;;  %vm11126_vm1 = vmmov %vm11124_vm10 }
 0x4f1   :  { %2835 = vrot.lane.b32.xlu1 %v2806_v58, %s5931_s24 }
 0x4f2   :  { %v2606_v40 = vpop.permute.xlu0 %2605 }
 0x4f3   :  { %v2905_v61 = vpop.permute.xlu1 %2904  ;;  %2644 = vst.msk [vmem:[#allocation3 + $0xa8] sm:$0xff] %vm1975_vm9, %v2606_v40 }
 0x4f4   :  { %2944 = vst.msk [vmem:[#allocation3 + $0x98] sm:$0xff] %vm11124_vm10, %v2905_v61  ;;  %2050 = vrot.lane.b32.xlu0 %v8372_v28, %s5929_s17  ;;  %vm11127_vm10 = vcmask 917248  }
 0x4f5   :  { %2398 = vrot.lane.b32.xlu1 %v8378_v2, %s5933_s23  ;;  %v2455_v2 = vsel %vm11125_vm4, %v2452_v14, %v2454_v4  ;;  %vm11128_vm4 = vmmov %vm11126_vm1 }
 0x4f6   :  { %v2107_v37 = vpop.permute.xlu0 %2106 }
 0x4f7   :  { %v2477_v54 = vpop.permute.xlu1 %2476  ;;  %2145 = vst.msk [vmem:[#allocation3 + $0xa0] sm:$0xff] %vm2134_vm15, %v2107_v37 }
 0x4f8   :  { %2517 = vst.msk [vmem:[#allocation3 + $0x90] sm:$0xff] %vm2508_vm14, %v2477_v54  ;;  %2615 = vrot.lane.b32.xlu0 %v2584_v59, %s5927_s20 }
 0x4f9   :  { %2914 = vrot.lane.b32.xlu1 %v2885_v1, %s5932_s12 }
 0x4fa   :  { %v2671_v28 = vpop.permute.xlu0 %2670 }
 0x4fb   :  { %v2201_v62 = vpop.permute.xlu1 %2200  ;;  %v2970_v21 = vld [vmem:[#allocation3 + $0x98] sm:$0xff]  ;;  %2708 = vst.msk [vmem:[#allocation3 + $0xa8] sm:$0xff] %vm2070_vm3, %v2671_v28 }
 0x4fc   :  { %2240 = vst.msk [vmem:[#allocation3 + $0xa0] sm:$0xff] %vm2228_vm8, %v2201_v62  ;;  %5720 = vmatprep.mubr.msk.f32.mxu1 %vm1787_vm0, %v2970_v21  ;;  %2116 = vrot.lane.b32.xlu0 %v7781_v42, %s5930_s19 }
 0x4fd   :  { %2486 = vrot.lane.b32.xlu1 %v2455_v2, %s5934_s15 }
 0x4fe   :  { %v2749_v35 = vpop.permute.xlu0 %2748 }
 0x4ff   :  { %v1948_v22 = vpop.permute.xlu1 %1947  ;;  %v2969_v23 = vld [vmem:[#allocation3 + $0x90] sm:$0xff]  ;;  %2787 = vst.msk [vmem:[#allocation3 + $0xa8] sm:$0xff] %vm2134_vm15, %v2749_v35 }
 0x500   :  { %1986 = vst.msk [vmem:[#allocation3 + $0xb0] sm:$0xff] %vm1975_vm9, %v1948_v22  ;;  %v8559_v30 = vpop.f32.mrf.mxu1  ;;  %3169 = vmatmul.mubr.f32.gmra.mxu1 %v2969_v23  ;;  %2680 = vrot.lane.b32.xlu0 %v7920_v24, %s5929_s17 }
 0x501   :  { %2210 = vrot.lane.b32.xlu1 %v8313_v7, %s5931_s24  ;;  %v2456_v7 = vrot.slane %v7920_v24, 5 }
 0x502   :  { %v3132_v9 = vpop.f32.mrf.mxu1  ;;  %v2296_v42 = vpop.permute.xlu0 %2295 }
 0x503   :  { %v2828_v41 = vpop.permute.xlu1 %2827  ;;  %2335 = vst.msk [vmem:[#allocation3 + $0xa0] sm:$0xff] %vm11126_vm1, %v2296_v42  ;;  %vm11129_vm1 = vcmask 1042432  }
 0x504   :  { %2866 = vst.msk [vmem:[#allocation3 + $0xa8] sm:$0xff] %vm2228_vm8, %v2828_v41  ;;  %2758 = vrot.lane.b32.xlu0 %v2726_v25, %s5930_s19 }
 0x505   :  { %2305 = vrot.lane.b32.xlu1 %v8332_v32, %s5932_s12  ;;  %v2457_v32 = vsel %vm11129_vm1, %v2454_v4, %v2456_v7  ;;  %vm11132_vm1 = vcmask 261250  }
 0x506   :  { %v2043_v55 = vpop.permute.xlu0 %2042 }
 0x507   :  { %v2391_v29 = vpop.permute.xlu1 %2390  ;;  %2081 = vst.msk [vmem:[#allocation3 + $0xb0] sm:$0xff] %vm2070_vm3, %v2043_v55 }
 0x508   :  { %2430 = vst.msk [vmem:[#allocation3 + $0xa0] sm:$0xff] %vm11127_vm10, %v2391_v29  ;;  %2837 = vrot.lane.b32.xlu0 %v2805_v38, %s5931_s24  ;;  %vm11130_vm10 = vcmask 653824  }
 0x509   :  { %2400 = vrot.lane.b32.xlu1 %v8363_v11, %s5933_s23 }
 0x50a   :  { %v2608_v19 = vpop.permute.xlu0 %2607 }
 0x50b   :  { %v2907_v15 = vpop.permute.xlu1 %2906  ;;  %2645 = vst.msk [vmem:[#allocation3 + $0xb8] sm:$0xff] %vm1975_vm9, %v2608_v19 }
 0x50c   :  { %2945 = vst.msk [vmem:[#allocation3 + $0xa8] sm:$0xff] %vm11128_vm4, %v2907_v15  ;;  %2916 = vrot.lane.b32.xlu0 %v2884_v16, %s5932_s12  ;;  %vm11131_vm4 = vcmask 522624  }
 0x50d   :  { %2488 = vrot.lane.b32.xlu1 %v2457_v32, %s5934_s15 }
 0x50e   :  { %v2109_v18 = vpop.permute.xlu0 %2108 }
 0x50f   :  { %v2479_v31 = vpop.permute.xlu1 %2478  ;;  %2146 = vst.msk [vmem:[#allocation3 + $0xb0] sm:$0xff] %vm2134_vm15, %v2109_v18 }
 0x510   :  { %2518 = vst.msk [vmem:[#allocation3 + $0xa0] sm:$0xff] %vm2508_vm14, %v2479_v31 }
 0x512   :  { %v2673_v24 = vpop.permute.xlu0 %2672 }
 0x513   :  { %v2203_v11 = vpop.permute.xlu1 %2202  ;;  %v2972_v51 = vld [vmem:[#allocation3 + $0xa8] sm:$0xff]  ;;  %2709 = vst.msk [vmem:[#allocation3 + $0xb8] sm:$0xff] %vm2070_vm3, %v2673_v24 }
 0x514   :  { %2241 = vst.msk [vmem:[#allocation3 + $0xb0] sm:$0x7f] %vm11130_vm10, %v2203_v11  ;;  %5721 = vmatprep.mubr.msk.f32.mxu1 %vm1787_vm0, %v2972_v51  ;;  %vm11134_vm10 = vcmask 261249  }
 0x516   :  { %v2751_v26 = vpop.permute.xlu0 %2750 }
 0x517   :  { %v1950_v57 = vpop.permute.xlu1 %1949  ;;  %v2971_v12 = vld [vmem:[#allocation3 + $0xa0] sm:$0xff]  ;;  %2788 = vst.msk [vmem:[#allocation3 + $0xb8] sm:$0x7f] %vm11131_vm4, %v2751_v26  ;;  %vm11135_vm4 = vcmask 782976  }
 0x518   :  { %1987 = vst.msk [vmem:[#allocation3 + $0xc0] sm:$0xfc] %vm11132_vm1, %v1950_v57  ;;  %v8588_v56 = vpop.f32.mrf.mxu1  ;;  %3174 = vmatmul.mubr.f32.gmra.mxu1 %v2971_v12 }
 0x51a   :  { %v3137_v36 = vpop.f32.mrf.mxu1  ;;  %v2298_v13 = vpop.permute.xlu0 %2297 }
 0x51b   :  { %v2830_v3 = vpop.permute.xlu1 %2829  ;;  %2336 = vst.msk [vmem:[#allocation3 + $0xb0] sm:$0x3f] %vm11133_vm7, %v2298_v13  ;;  %vm11136_vm7 = vcmask 786048  }
 0x51c   :  { %2867 = vst.msk [vmem:[#allocation3 + $0xb8] sm:$0x3f] %vm2858_vm6, %v2830_v3  ;;  %vm11138_vm1 = vmmov %vm11136_vm7 }
 0x51e   :  { %v2045_v47 = vpop.permute.xlu0 %2044 }
 0x51f   :  { %v2393_v8 = vpop.permute.xlu1 %2392  ;;  %2082 = vst.msk [vmem:[#allocation3 + $0xc0] sm:$0xfe] %vm2068_vm13, %v2045_v47  ;;  %vm11137_vm13 = vcmask 917248  }
 0x520   :  { %2431 = vst.msk [vmem:[#allocation3 + $0xb0] sm:$0x1f] %vm2422_vm11, %v2393_v8 }
 0x522   :  { %v2610_v39 = vpop.permute.xlu0 %2609 }
 0x523   :  { %v2909_v33 = vpop.permute.xlu1 %2908  ;;  %2646 = vst.msk [vmem:[#allocation3 + $0xc8] sm:$0xfe] %vm11134_vm10, %v2610_v39  ;;  %vm11139_vm10 = vcmask 1048451  }
 0x524   :  { %2946 = vst.msk [vmem:[#allocation3 + $0xb8] sm:$0x1f] %vm11135_vm4, %v2909_v33  ;;  %vm11140_vm4 = vmmov %vm11138_vm1 }
 0x526   :  { %v2111_v49 = vpop.permute.xlu0 %2110 }
 0x527   :  { %v2481_v53 = vpop.permute.xlu1 %2480  ;;  %2147 = vst.msk [vmem:[#allocation3 + $0xc0] sm:$0xff] %vm2134_vm15, %v2111_v49 }
 0x528   :  { %2519 = vst.msk [vmem:[#allocation3 + $0xb0] sm:$0xff] %vm2508_vm14, %v2481_v53 }
 0x52a   :  { %v2675_v46 = vpop.permute.xlu0 %2674 }
 0x52b   :  { %v2205_v5 = vpop.permute.xlu1 %2204  ;;  %v2974_v14 = vld [vmem:[#allocation3 + $0xb8] sm:$0xff]  ;;  %2710 = vst.msk [vmem:[#allocation3 + $0xc8] sm:$0xff] %vm2070_vm3, %v2675_v46 }
 0x52c   :  { %2242 = vst.msk [vmem:[#allocation3 + $0xc0] sm:$0xff] %vm2228_vm8, %v2205_v5  ;;  %5722 = vmatprep.mubr.msk.f32.mxu1 %vm1787_vm0, %v2974_v14 }
 0x52e   :  { %v2753_v0 = vpop.permute.xlu0 %2752 }
 0x52f   :  { %v1952_v10 = vpop.permute.xlu1 %1951  ;;  %v2973_v6 = vld [vmem:[#allocation3 + $0xb0] sm:$0xff]  ;;  %2789 = vst.msk [vmem:[#allocation3 + $0xc8] sm:$0xff] %vm2134_vm15, %v2753_v0 }
 0x530   :  { %1988 = vst.msk [vmem:[#allocation3 + $0xd0] sm:$0xff] %vm1975_vm9, %v1952_v10  ;;  %v8603_v60 = vpop.f32.mrf.mxu1  ;;  %3179 = vmatmul.mubr.f32.gmra.mxu1 %v2973_v6 }
 0x532   :  { %v3142_v52 = vpop.f32.mrf.mxu1  ;;  %v2300_v48 = vpop.permute.xlu0 %2299 }
 0x533   :  { %v2832_v44 = vpop.permute.xlu1 %2831  ;;  %2337 = vst.msk [vmem:[#allocation3 + $0xc0] sm:$0xff] %vm11136_vm7, %v2300_v48  ;;  %vm11141_vm7 = vmmov %vm11137_vm13 }
 0x534   :  { %2868 = vst.msk [vmem:[#allocation3 + $0xc8] sm:$0xff] %vm2228_vm8, %v2832_v44 }
 0x536   :  { %v2047_v25 = vpop.permute.xlu0 %2046 }
 0x537   :  { %v2395_v27 = vpop.permute.xlu1 %2394  ;;  %2083 = vst.msk [vmem:[#allocation3 + $0xd0] sm:$0xff] %vm2070_vm3, %v2047_v25 }
 0x538   :  { %2432 = vst.msk [vmem:[#allocation3 + $0xc0] sm:$0xff] %vm11137_vm13, %v2395_v27  ;;  %vm11142_vm13 = vmmov %vm11138_vm1 }
 0x53a   :  { %v2612_v45 = vpop.permute.xlu0 %2611 }
 0x53b   :  { %v2911_v17 = vpop.permute.xlu1 %2910  ;;  %2647 = vst.msk [vmem:[#allocation3 + $0xd8] sm:$0xff] %vm1975_vm9, %v2612_v45 }
 0x53c   :  { %2947 = vst.msk [vmem:[#allocation3 + $0xc8] sm:$0xff] %vm11138_vm1, %v2911_v17 }
 0x53e   :  { %v2113_v20 = vpop.permute.xlu0 %2112 }
 0x53f   :  { %v2483_v38 = vpop.permute.xlu1 %2482  ;;  %2148 = vst.msk [vmem:[#allocation3 + $0xd0] sm:$0xff] %vm2134_vm15, %v2113_v20 }
 0x540   :  { %2520 = vst.msk [vmem:[#allocation3 + $0xc0] sm:$0xf8] %vm11139_vm10, %v2483_v38  ;;  %vm11143_vm10 = vmmov %vm11141_vm7 }
 0x542   :  { %v2677_v63 = vpop.permute.xlu0 %2676 }
 0x543   :  { %v2207_v34 = vpop.permute.xlu1 %2206  ;;  %v2976_v58 = vld [vmem:[#allocation3 + $0xc8] sm:$0xff]  ;;  %2711 = vst.msk [vmem:[#allocation3 + $0xd8] sm:$0xff] %vm2070_vm3, %v2677_v63  ;;  %v3245_v63 = vmul.f32 %v8559_v30, %v8559_v30 }
 0x544   :  { %2243 = vst.msk [vmem:[#allocation3 + $0xd0] sm:$0xff] %vm2228_vm8, %v2207_v34  ;;  %5723 = vmatprep.mubr.msk.f32.mxu1 %vm1787_vm0, %v2976_v58  ;;  %v3244_v34 = vmul.f32 %v8515_v43, %v8515_v43 }
 0x546   :  { %v2755_v40 = vpop.permute.xlu0 %2754 }
 0x547   :  { %v1954_v61 = vpop.permute.xlu1 %1953  ;;  %v2975_v50 = vld [vmem:[#allocation3 + $0xc0] sm:$0xff]  ;;  %2790 = vst.msk [vmem:[#allocation3 + $0xd8] sm:$0xff] %vm2134_vm15, %v2755_v40  ;;  %v3246_v40 = vmul.f32 %v8588_v56, %v8588_v56 }
 0x548   :  { %1989 = vst.msk [vmem:[#allocation3 + $0xe0] sm:$0xff] %vm1975_vm9, %v1954_v61  ;;  %v8618_v16 = vpop.f32.mrf.mxu1  ;;  %3184 = vmatmul.mubr.f32.gmra.mxu1 %v2975_v50 }
 0x54a   :  { %v3147_v37 = vpop.f32.mrf.mxu1  ;;  %v2302_v54 = vpop.permute.xlu0 %2301 }
 0x54b   :  { %v2834_v59 = vpop.permute.xlu1 %2833  ;;  %2338 = vst.msk [vmem:[#allocation3 + $0xd0] sm:$0xff] %vm11140_vm4, %v2302_v54  ;;  %vm11144_vm4 = vmmov %vm11138_vm1  ;;  %v3247_v54 = vmul.f32 %v8603_v60, %v8603_v60 }
 0x54c   :  { %2869 = vst.msk [vmem:[#allocation3 + $0xd8] sm:$0xff] %vm2228_vm8, %v2834_v59 }
 0x54e   :  { %v2049_v1 = vpop.permute.xlu0 %2048 }
 0x54f   :  { %v2397_v4 = vpop.permute.xlu1 %2396  ;;  %2084 = vst.msk [vmem:[#allocation3 + $0xe0] sm:$0xff] %vm2070_vm3, %v2049_v1 }
 0x550   :  { %2433 = vst.msk [vmem:[#allocation3 + $0xd0] sm:$0xff] %vm11141_vm7, %v2397_v4  ;;  %vm11147_vm7 = vcmask 784000  }
 0x552   :  { %v2614_v28 = vpop.permute.xlu0 %2613 }
 0x553   :  { %v2913_v62 = vpop.permute.xlu1 %2912  ;;  %2648 = vst.msk [vmem:[#allocation3 + $0xe8] sm:$0xff] %vm1975_vm9, %v2614_v28 }
 0x554   :  { %2948 = vst.msk [vmem:[#allocation3 + $0xd8] sm:$0xff] %vm11142_vm13, %v2913_v62  ;;  %v3248_v62 = vmul.f32 %v8618_v16, %v8618_v16 }
 0x556   :  { %v2115_v21 = vpop.permute.xlu0 %2114 }
 0x557   :  { %v2485_v2 = vpop.permute.xlu1 %2484  ;;  %2149 = vst.msk [vmem:[#allocation3 + $0xe0] sm:$0xff] %vm2134_vm15, %v2115_v21 }
 0x558   :  { %2521 = vst.msk [vmem:[#allocation3 + $0xd0] sm:$0xff] %vm2508_vm14, %v2485_v2 }
 0x55a   :  { %v2679_v35 = vpop.permute.xlu0 %2678 }
 0x55b   :  { %v2209_v22 = vpop.permute.xlu1 %2208  ;;  %v2978_v23 = vld [vmem:[#allocation3 + $0xd8] sm:$0xff]  ;;  %2712 = vst.msk [vmem:[#allocation3 + $0xe8] sm:$0xff] %vm2070_vm3, %v2679_v35 }
 0x55c   :  { %2244 = vst.msk [vmem:[#allocation3 + $0xe0] sm:$0xff] %vm2228_vm8, %v2209_v22  ;;  %5724 = vmatprep.mubr.msk.f32.mxu1 %vm1787_vm0, %v2978_v23 }
 0x55e   :  { %v2757_v9 = vpop.permute.xlu0 %2756 }
 0x55f   :  { %v1956_v42 = vpop.permute.xlu1 %1955  ;;  %v2977_v41 = vld [vmem:[#allocation3 + $0xd0] sm:$0xff]  ;;  %2791 = vst.msk [vmem:[#allocation3 + $0xe8] sm:$0xff] %vm2134_vm15, %v2757_v9 }
 0x560   :  { %1990 = vst.msk [vmem:[#allocation3 + $0xf0] sm:$0xff] %vm1975_vm9, %v1956_v42  ;;  %v8633_v55 = vpop.f32.mrf.mxu1  ;;  %3189 = vmatmul.mubr.f32.gmra.mxu1 %v2977_v41 }
 0x561   :  { %v3249_v23 = vmul.f32 %v8633_v55, %v8633_v55 }
 0x562   :  { %v3152_v29 = vpop.f32.mrf.mxu1  ;;  %v2304_v7 = vpop.permute.xlu0 %2303 }
 0x563   :  { %v2836_v19 = vpop.permute.xlu1 %2835  ;;  %2339 = vst.msk [vmem:[#allocation3 + $0xe0] sm:$0xff] %vm11138_vm1, %v2304_v7  ;;  %vm3618_vm1 = vcmask 260096  }
 0x564   :  { %2870 = vst.msk [vmem:[#allocation3 + $0xe8] sm:$0xff] %vm2228_vm8, %v2836_v19  ;;  %vm11145_vm8 = vcmask 653824  }
 0x566   :  { %v2051_v15 = vpop.permute.xlu0 %2050 }
 0x567   :  { %v2399_v32 = vpop.permute.xlu1 %2398  ;;  %2085 = vst.msk [vmem:[#allocation3 + $0xf0] sm:$0xff] %vm2070_vm3, %v2051_v15 }
 0x568   :  { %2434 = vst.msk [vmem:[#allocation3 + $0xe0] sm:$0xff] %vm11143_vm10, %v2399_v32  ;;  %vm11152_vm10 = vcmask 1046528  }
 0x56a   :  { %v2616_v18 = vpop.permute.xlu0 %2615 }
 0x56b   :  { %v2915_v31 = vpop.permute.xlu1 %2914  ;;  %2649 = vst.msk [vmem:[#allocation3 + $0xf8] sm:$0xff] %vm1975_vm9, %v2616_v18  ;;  %vm11146_vm9 = vcmask 522624  }
 0x56c   :  { %2949 = vst.msk [vmem:[#allocation3 + $0xe8] sm:$0xff] %vm11144_vm4, %v2915_v31 }
 0x56e   :  { %v2117_v24 = vpop.permute.xlu0 %2116 }
 0x56f   :  { %v2487_v11 = vpop.permute.xlu1 %2486  ;;  %2150 = vst.msk [vmem:[#allocation3 + $0xf0] sm:$0xff] %vm2134_vm15, %v2117_v24  ;;  %vm11148_vm15 = vcmask 782976  }
 0x570   :  { %2522 = vst.msk [vmem:[#allocation3 + $0xe0] sm:$0xff] %vm2508_vm14, %v2487_v11 }
 0x572   :  { %v2681_v51 = vpop.permute.xlu0 %2680 }
 0x573   :  { %v2211_v26 = vpop.permute.xlu1 %2210  ;;  %v2980_v57 = vld [vmem:[#allocation3 + $0xe8] sm:$0xff]  ;;  %2713 = vst.msk [vmem:[#allocation3 + $0xf8] sm:$0xff] %vm2070_vm3, %v2681_v51  ;;  %vm11149_vm3 = vcmask 1041408  }
 0x574   :  { %2245 = vst.msk [vmem:[#allocation3 + $0xf0] sm:$0x7f] %vm11145_vm8, %v2211_v26  ;;  %5725 = vmatprep.mubr.msk.f32.mxu1 %vm1787_vm0, %v2980_v57  ;;  %vm11151_vm13 = vmmov %vm11149_vm3 }
 0x576   :  { %v2759_v12 = vpop.permute.xlu0 %2758 }
 0x577   :  { %v2306_v36 = vpop.permute.xlu1 %2305  ;;  %v2979_v13 = vld [vmem:[#allocation3 + $0xe0] sm:$0xff]  ;;  %2792 = vst.msk [vmem:[#allocation3 + $0xf8] sm:$0x7f] %vm11146_vm9, %v2759_v12  ;;  %vm3795_vm9 = vcmask 261122  }
 0x578   :  { %2340 = vst.msk [vmem:[#allocation3 + $0xf0] sm:$0x3f] %vm11147_vm7, %v2306_v36  ;;  %v8648_v3 = vpop.f32.mrf.mxu1  ;;  %3194 = vmatmul.mubr.f32.gmra.mxu1 %v2979_v13  ;;  %vm11155_vm7 = vmmov %vm11152_vm10 }
 0x579   :  { %v3250_v7 = vmul.f32 %v8648_v3, %v8648_v3 }
 0x57a   :  { %v3157_v47 = vpop.f32.mrf.mxu1  ;;  %v2838_v8 = vpop.permute.xlu0 %2837 }
 0x57b   :  { %v2401_v39 = vpop.permute.xlu1 %2400  ;;  %2871 = vst.msk [vmem:[#allocation3 + $0xf8] sm:$0x3f] %vm2858_vm6, %v2838_v8  ;;  %vm11150_vm6 = vcmask 1042432  }
 0x57c   :  { %2435 = vst.msk [vmem:[#allocation3 + $0xf0] sm:$0x1f] %vm2422_vm11, %v2401_v39  ;;  %vm3395_vm11 = vcmask 523264   ;;  %vm11153_vm4 = vmmov %vm11150_vm6 }
 0x57d   :  { %vm11154_vm8 = vmmov %vm11153_vm4 }
 0x57e   :  { %v2917_v33 = vpop.permute.xlu0 %2916 }
 0x57f   :  { %v2489_v49 = vpop.permute.xlu1 %2488  ;;  %2950 = vst.msk [vmem:[#allocation3 + $0xf8] sm:$0x1f] %vm11148_vm15, %v2917_v33  ;;  %vm11156_vm15 = vmmov %vm11149_vm3 }
 0x580   :  { %2523 = vst.msk [vmem:[#allocation3 + $0xf0] sm:$0xff] %vm2508_vm14, %v2489_v49  ;;  %vm3455_vm14 = vcmask 261123  }
 0x586   :  { %v2982_v53 = vld [vmem:[#allocation3 + $0xf8] sm:$0xff] }
 0x587   :  { %v2981_v46 = vld [vmem:[#allocation3 + $0xf0] sm:$0xff]  ;;  %5726 = vmatprep.mubr.msk.f32.mxu1 %vm1787_vm0, %v2982_v53  ;;  %vm3204_vm0 = vcmask 261120  }
 0x588   :  { %3199 = vmatmul.mubr.f32.gmra.mxu1 %v2981_v46  ;;  %v3206_v58 = vsel %vm3204_vm0, %v8559_v30, 0.0  ;;  %v3205_v61 = vsel %vm3204_vm0, %v8515_v43, 0.0  ;;  %v3261_v50 = vsel %vm3204_vm0, %v3245_v63, 0.0  ;;  %v3208_v37 = vsel %vm3204_vm0, %v8588_v56, 0.0 }
 0x589   :  { %v3207_v59 = vadd.f32 %v3206_v58, %v3205_v61  ;;  %v3260_v1 = vsel %vm3204_vm0, %v3244_v34, 0.0  ;;  %v3263_v4 = vsel %vm3204_vm0, %v3246_v40, 0.0  ;;  %v3210_v28 = vsel %vm3204_vm0, %v8603_v60, 0.0 }
 0x58a   :  { %v3262_v21 = vadd.f32 %v3261_v50, %v3260_v1  ;;  %v3265_v35 = vsel %vm3204_vm0, %v3247_v54, 0.0  ;;  %v3212_v22 = vsel %vm3204_vm0, %v8618_v16, 0.0  ;;  %v3267_v41 = vsel %vm3204_vm0, %v3248_v62, 0.0 }
 0x58b   :  { %v3209_v2 = vadd.f32 %v3208_v37, %v3207_v59  ;;  %v3214_v29 = vsel %vm3204_vm0, %v8633_v55, 0.0  ;;  %v3269_v32 = vsel %vm3204_vm0, %v3249_v23, 0.0  ;;  %v3216_v18 = vsel %vm3204_vm0, %v8648_v3, 0.0 }
 0x58c   :  { %v3264_v9 = vadd.f32 %v3263_v4, %v3262_v21  ;;  %v3271_v51 = vsel %vm3204_vm0, %v3250_v7, 0.0 }
 0x58d   :  { %v3211_v42 = vadd.f32 %v3210_v28, %v3209_v2 }
 0x58e   :  { %v3266_v19 = vadd.f32 %v3265_v35, %v3264_v9 }
 0x58f   :  { %v3213_v15 = vadd.f32 %v3212_v22, %v3211_v42 }
 0x590   :  { %v8655_v5 = vpop.f32.mrf.mxu1  ;;  %v3268_v24 = vadd.f32 %v3267_v41, %v3266_v19 }
 0x591   :  { %v3251_v31 = vmul.f32 %v8655_v5, %v8655_v5  ;;  %v3215_v11 = vadd.f32 %v3214_v29, %v3213_v15  ;;  %v3218_v26 = vsel %vm3204_vm0, %v8655_v5, 0.0 }
 0x592   :  { %v3162_v14 = vpop.f32.mrf.mxu1  ;;  %v3270_v36 = vadd.f32 %v3269_v32, %v3268_v24 }
 0x593   :  { %v3217_v13 = vadd.f32 %v3216_v18, %v3215_v11  ;;  %v3273_v47 = vsel %vm3204_vm0, %v3251_v31, 0.0  ;;  %v8752_v31 = vld [vmem:[#allocation4] sm:$0xff] }
 0x594   :  { %v3272_v49 = vadd.f32 %v3271_v51, %v3270_v36  ;;  %3396 = vst.msk [vmem:[#allocation4 + $0x18] sm:$0xff] %vm3395_vm11, %v8752_v31  ;;  %3400 = vst.msk [vmem:[#allocation4 + $0x38] sm:$0xff] %vm3395_vm11, %v8752_v31 }
 0x595   :  { %v3219_v53 = vadd.f32 %v3218_v26, %v3217_v13  ;;  %3404 = vst.msk [vmem:[#allocation4 + $0x58] sm:$0xff] %vm3395_vm11, %v8752_v31  ;;  %3408 = vst.msk [vmem:[#allocation4 + $0x78] sm:$0xff] %vm3395_vm11, %v8752_v31 }
 0x596   :  { %3412 = vst.msk [vmem:[#allocation4 + $0x98] sm:$0xff] %vm3395_vm11, %v8752_v31  ;;  %3416 = vst.msk [vmem:[#allocation4 + $0xb8] sm:$0xff] %vm3395_vm11, %v8752_v31 }
 0x597   :  { %3420 = vst.msk [vmem:[#allocation4 + $0xd8] sm:$0xff] %vm3395_vm11, %v8752_v31  ;;  %3424 = vst.msk [vmem:[#allocation4 + $0xf8] sm:$0xff] %vm3395_vm11, %v8752_v31 }
 0x5a8   :  { %v8657_v0 = vpop.f32.mrf.mxu1 }
 0x5a9   :  { %v3252_v57 = vmul.f32 %v8657_v0, %v8657_v0  ;;  %v3220_v8 = vsel %vm3204_vm0, %v8657_v0, 0.0 }
 0x5aa   :  { %v3167_v10 = vpop.f32.mrf.mxu1 }
 0x5ab   :  { %v3275_v46 = vsel %vm3204_vm0, %v3252_v57, 0.0 }
 0x5c0   :  { %v8659_v6 = vpop.f32.mrf.mxu1 }
 0x5c1   :  { %v3253_v39 = vmul.f32 %v8659_v6, %v8659_v6  ;;  %v3222_v14 = vsel %vm3204_vm0, %v8659_v6, 0.0 }
 0x5c2   :  { %v3172_v52 = vpop.f32.mrf.mxu1 }
 0x5c3   :  { %v3274_v52 = vadd.f32 %v3273_v47, %v3272_v49 }
 0x5c5   :  { %v3276_v63 = vadd.f32 %v3275_v46, %v3274_v52 }
 0x5d8   :  { %v8661_v48 = vpop.f32.mrf.mxu1 }
 0x5d9   :  { %v3254_v10 = vmul.f32 %v8661_v48, %v8661_v48 }
 0x5da   :  { %v3177_v44 = vpop.f32.mrf.mxu1 }
 0x5db   :  { %v3221_v44 = vadd.f32 %v3220_v8, %v3219_v53  ;;  %v3279_v58 = vsel %vm3204_vm0, %v3254_v10, 0.0 }
 0x5dd   :  { %v3223_v34 = vadd.f32 %v3222_v14, %v3221_v44 }
 0x5f0   :  { %v8663_v25 = vpop.f32.mrf.mxu1 }
 0x5f1   :  { %v3226_v40 = vsel %vm3204_vm0, %v8663_v25, 0.0 }
 0x5f2   :  { %v3182_v27 = vpop.f32.mrf.mxu1 }
 0x5f3   :  { %v3277_v27 = vsel %vm3204_vm0, %v3253_v39, 0.0 }
 0x5f4   :  { %v3278_v50 = vadd.f32 %v3277_v27, %v3276_v63 }
 0x5f6   :  { %v3280_v4 = vadd.f32 %v3279_v58, %v3278_v50  ;;  %v4055_v58 = vld [vmem:[%s10907_s4 + $0x78] sm:$0xff] }
 0x608   :  { %v8665_v45 = vpop.f32.mrf.mxu1 }
 0x609   :  { %v3256_v61 = vmul.f32 %v8665_v45, %v8665_v45  ;;  %v3228_v59 = vsel %vm3204_vm0, %v8665_v45, 0.0 }
 0x60a   :  { %v3187_v17 = vpop.f32.mrf.mxu1 }
 0x60b   :  { %v3224_v17 = vsel %vm3204_vm0, %v8661_v48, 0.0  ;;  %v3283_v62 = vsel %vm3204_vm0, %v3256_v61, 0.0 }
 0x60c   :  { %v3225_v37 = vadd.f32 %v3224_v17, %v3223_v34  ;;  %v4071_v34 = vld [vmem:[%s10907_s4 + $0xf8] sm:$0xff] }
 0x60d   :  { %5769 = vmatprep.subr.mxu0 %v4071_v34 }
 0x60e   :  { %v3227_v28 = vadd.f32 %v3226_v40, %v3225_v37  ;;  %v4070_v40 = vld [vmem:[%s10907_s4 + $0xf0] sm:$0xff]  ;;  %5770 = vmatpush3.msra.mxu0 %v4055_v58 }
 0x60f   :  { %5771 = vmatprep.subr.mxu0 %v4070_v40 }
 0x610   :  { %v3229_v22 = vadd.f32 %v3228_v59, %v3227_v28  ;;  %v4069_v59 = vld [vmem:[%s10907_s4 + $0xe8] sm:$0xff]  ;;  %v4052_v28 = vld [vmem:[%s10907_s4 + $0x60] sm:$0xff] }
 0x620   :  { %v8667_v20 = vpop.f32.mrf.mxu1 }
 0x621   :  { %v3257_v1 = vmul.f32 %v8667_v20, %v8667_v20  ;;  %v3230_v21 = vsel %vm3204_vm0, %v8667_v20, 0.0 }
 0x622   :  { %v3192_v38 = vpop.f32.mrf.mxu1  ;;  %v3231_v41 = vadd.f32 %v3230_v21, %v3229_v22  ;;  %v4051_v21 = vld [vmem:[%s10907_s4 + $0x58] sm:$0xff]  ;;  %v4065_v22 = vld [vmem:[%s10907_s4 + $0xc8] sm:$0xff] }
 0x623   :  { %v3255_v38 = vmul.f32 %v8663_v25, %v8663_v25  ;;  %v3285_v23 = vsel %vm3204_vm0, %v3257_v1, 0.0  ;;  %v4053_v1 = vld [vmem:[%s10907_s4 + $0x68] sm:$0xff] }
 0x625   :  { %v3281_v54 = vsel %vm3204_vm0, %v3255_v38, 0.0 }
 0x626   :  { %v3282_v35 = vadd.f32 %v3281_v54, %v3280_v4  ;;  %v4054_v54 = vld [vmem:[%s10907_s4 + $0x70] sm:$0xff]  ;;  %v4068_v4 = vld [vmem:[%s10907_s4 + $0xe0] sm:$0xff] }
 0x627   :  { %5772 = vmatpush3.msra.mxu0 %v4054_v54 }
 0x628   :  { %v3284_v42 = vadd.f32 %v3283_v62, %v3282_v35  ;;  %5773 = vmatprep.subr.mxu0 %v4069_v59  ;;  %v4067_v62 = vld [vmem:[%s10907_s4 + $0xd8] sm:$0xff]  ;;  %v4050_v35 = vld [vmem:[%s10907_s4 + $0x50] sm:$0xff] }
 0x629   :  { %5774 = vmatpush3.msra.mxu0 %v4053_v1 }
 0x62a   :  { %v3286_v7 = vadd.f32 %v3285_v23, %v3284_v42  ;;  %5775 = vmatprep.subr.mxu0 %v4068_v4  ;;  %v4049_v23 = vld [vmem:[%s10907_s4 + $0x48] sm:$0xff] }
 0x62b   :  { %5776 = vmatpush3.msra.mxu0 %v4052_v28 }
 0x62c   :  { %5777 = vmatprep.subr.mxu0 %v4067_v62  ;;  %v4042_v62 = vld [vmem:[%s10907_s4 + $0x10] sm:$0xff] }
 0x62d   :  { %5778 = vmatpush3.msra.mxu0 %v4051_v21  ;;  %v4057_v21 = vld [vmem:[%s10907_s4 + $0x88] sm:$0xff] }
 0x638   :  { %v8710_v12 = vpop.f32.mrf.mxu1 }
 0x639   :  { %v3258_v2 = vmul.f32 %v8710_v12, %v8710_v12  ;;  %v3232_v9 = vsel %vm3204_vm0, %v8710_v12, 0.0 }
 0x63a   :  { %v3197_v33 = vpop.f32.mrf.mxu1  ;;  %v3233_v19 = vadd.f32 %v3232_v9, %v3231_v41  ;;  %v4064_v9 = vld [vmem:[%s10907_s4 + $0xc0] sm:$0xff] }
 0x63b   :  { %v3287_v29 = vsel %vm3204_vm0, %v3258_v2, 0.0  ;;  %v4066_v2 = vld [vmem:[%s10907_s4 + $0xd0] sm:$0xff] }
 0x63c   :  { %v3288_v24 = vadd.f32 %v3287_v29, %v3286_v7  ;;  %5779 = vmatprep.subr.mxu0 %v4066_v2  ;;  %v4048_v29 = vld [vmem:[%s10907_s4 + $0x40] sm:$0xff]  ;;  %v4063_v7 = vld [vmem:[%s10907_s4 + $0xb8] sm:$0xff]  ;;  %v4041_v2 = vld [vmem:[%s10907_s4 + $0x8] sm:$0xff] }
 0x63d   :  { %5780 = vmatpush3.msra.mxu0 %v4050_v35 }
 0x63e   :  { %5781 = vmatprep.subr.mxu0 %v4065_v22 }
 0x63f   :  { %5782 = vmatpush3.msra.mxu0 %v4049_v23 }
 0x640   :  { %5783 = vmatprep.subr.mxu0 %v4064_v9  ;;  %v4056_v9 = vld [vmem:[%s10907_s4 + $0x80] sm:$0xff] }
 0x641   :  { %5784 = vmatpush3.msra.mxu0 %v4048_v29 }
 0x642   :  { %5785 = vmatprep.subr.mxu0 %v4063_v7 }
 0x648   :  { %v8746_v15 = vpop.f32.mrf.mxu1 }
 0x649   :  { %v3234_v32 = vsel %vm3204_vm0, %v8746_v15, 0.0  ;;  %v3259_v18 = vmul.f32 %v8746_v15, %v8746_v15 }
 0x64a   :  { %v3235_v11 = vadd.f32 %v3234_v32, %v3233_v19  ;;  %v3202_v51 = vpop.f32.mrf.mxu1  ;;  %v8841_v32 = vld [vmem:[%s10906_s7 + $0x2] ss:$0 sm:$0xff] }
 0x64b   :  { %v3289_v26 = vsel %vm3204_vm0, %v3259_v18, 0.0  ;;  %v8855_v51 = vld [vmem:[%s10906_s7 + $0x3] ss:$0 sm:$0xff] }
 0x64c   :  { %v3236_v57 = vrot.slane %v3235_v11, 4  ;;  %v3290_v36 = vadd.f32 %v3289_v26, %v3288_v24  ;;  %v4062_v26 = vld [vmem:[%s10907_s4 + $0xb0] sm:$0xff] }
 0x64e   :  { %v3237_v13 = vadd.f32 %v3236_v57, %v3235_v11  ;;  %v3291_v47 = vrot.slane %v3290_v36, 4 }
 0x650   :  { %v3238_v8 = vrot.slane %v3237_v13, 2  ;;  %v3292_v39 = vadd.f32 %v3291_v47, %v3290_v36  ;;  %v4061_v47 = vld [vmem:[%s10907_s4 + $0xa8] sm:$0xff] }
 0x652   :  { %v3239_v33 = vadd.f32 %v3238_v8, %v3237_v13  ;;  %v3293_v49 = vrot.slane %v3292_v39, 2  ;;  %v4045_v8 = vld [vmem:[%s10907_s4 + $0x28] sm:$0xff] }
 0x654   :  { %v3240_v53 = vrot.slane %v3239_v33, 1  ;;  %v3294_v46 = vadd.f32 %v3293_v49, %v3292_v39 }
 0x656   :  { %v3241_v14 = vadd.f32 %v3240_v53, %v3239_v33  ;;  %v3295_v10 = vrot.slane %v3294_v46, 1  ;;  %v4060_v53 = vld [vmem:[%s10907_s4 + $0xa0] sm:$0xff] }
 0x658   :  { %v8771_v52 = vmul.f32 0.0078125, %v3241_v14  ;;  %v3296_v44 = vadd.f32 %v3295_v10, %v3294_v46 }
 0x65a   :  { %v3297_v27 = vmul.f32 0.0078125, %v3296_v44  ;;  %v3298_v17 = vmul.f32 %v8771_v52, %v8771_v52  ;;  %v3315_v38 = vsub.f32 %v8746_v15, %v8771_v52  ;;  %v3313_v50 = vsub.f32 %v8667_v20, %v8771_v52  ;;  %v4044_v44 = vld [vmem:[%s10907_s4 + $0x20] sm:$0xff] }
 0x65b   :  { %v3314_v37 = vsub.f32 %v8710_v12, %v8771_v52  ;;  %v3300_v42 = vsub.f32 %v8515_v43, %v8771_v52  ;;  %v3301_v41 = vsub.f32 %v8559_v30, %v8771_v52  ;;  %v3304_v43 = vsub.f32 %v8618_v16, %v8771_v52  ;;  %v4047_v30 = vld [vmem:[%s10907_s4 + $0x38] sm:$0xff] }
 0x65c   :  { %v3299_v63 = vsub.f32 %v3297_v27, %v3298_v17  ;;  %v3302_v11 = vsub.f32 %v8588_v56, %v8771_v52  ;;  %5786 = vmatpush3.msra.mxu0 %v4047_v30  ;;  %v4046_v56 = vld [vmem:[%s10907_s4 + $0x30] sm:$0xff]  ;;  %v4059_v27 = vld [vmem:[%s10907_s4 + $0x98] sm:$0xff]  ;;  %v3305_v17 = vsub.f32 %v8633_v55, %v8771_v52  ;;  %v3303_v22 = vsub.f32 %v8603_v60, %v8771_v52  ;;  %v4040_v60 = vld [vmem:[%s10907_s4] sm:$0xff] }
 0x65d   :  { %5787 = vmatprep.subr.mxu0 %v4062_v26  ;;  %v4058_v55 = vld [vmem:[%s10907_s4 + $0x90] sm:$0xff] }
 0x65e   :  { %v3316_v61 = vadd.f32 1e-05, %v3299_v63  ;;  %5788 = vmatpush3.msra.mxu0 %v4046_v56  ;;  %v4043_v63 = vld [vmem:[%s10907_s4 + $0x18] sm:$0xff] }
 0x65f   :  { %5789 = vmatprep.subr.mxu0 %v4061_v47 }
 0x660   :  { %5897 = vrsqrt.f32 %v3316_v61  ;;  %5790 = vmatpush3.msra.mxu0 %v4045_v8 }
 0x661   :  { %5791 = vmatprep.subr.mxu0 %v4060_v53 }
 0x662   :  { %5792 = vmatpush3.msra.mxu0 %v4044_v44 }
 0x663   :  { %5793 = vmatprep.subr.mxu0 %v4059_v27 }
 0x664   :  { %5794 = vmatpush3.msra.mxu0 %v4043_v63 }
 0x665   :  { %5795 = vmatprep.subr.mxu0 %v4058_v55 }
 0x666   :  { %5796 = vmatpush3.msra.mxu0 %v4042_v62 }
 0x667   :  { %5797 = vmatprep.subr.mxu0 %v4057_v21 }
 0x668   :  { %5798 = vmatpush3.msra.mxu0 %v4041_v2 }
 0x669   :  { %5799 = vmatprep.subr.mxu0 %v4056_v9 }
 0x66a   :  { %5800 = vmatpush3.msra.mxu0 %v4040_v60 }
 0x66b   :  { %4225 = vmatprep.subr.mxu0 %v8752_v31 }
 0x66d   :  { %v8836_v19 = vpop.eup %5897 }
 0x66e   :  { %v3318_v18 = vmul.f32 %v8836_v19, %v3300_v42  ;;  %v3319_v24 = vmul.f32 %v8836_v19, %v3301_v41  ;;  %v3322_v16 = vmul.f32 %v8836_v19, %v3304_v43  ;;  %v3320_v13 = vmul.f32 %v8836_v19, %v3302_v11 }
 0x66f   :  { %v3323_v54 = vmul.f32 %v8836_v19, %v3305_v17  ;;  %v3321_v7 = vmul.f32 %v8836_v19, %v3303_v22  ;;  %v3308_v17 = vsub.f32 %v8657_v0, %v8771_v52  ;;  %v3333_v0 = vmul.f32 %v8836_v19, %v3315_v38 }
 0x670   :  { %v3338_v57 = vmul.f32 %v8841_v32, %v3318_v18  ;;  %v3339_v36 = vmul.f32 %v8841_v32, %v3319_v24  ;;  %v3342_v49 = vmul.f32 %v8841_v32, %v3322_v16  ;;  %v3340_v10 = vmul.f32 %v8841_v32, %v3320_v13 }
 0x671   :  { %v3343_v29 = vmul.f32 %v8841_v32, %v3323_v54  ;;  %v3306_v18 = vsub.f32 %v8648_v3, %v8771_v52  ;;  %v3341_v16 = vmul.f32 %v8841_v32, %v3321_v7  ;;  %v3353_v21 = vmul.f32 %v8841_v32, %v3333_v0 }
 0x672   :  { %v3358_v39 = vadd.f32 %v8855_v51, %v3338_v57  ;;  %v3359_v33 = vadd.f32 %v8855_v51, %v3339_v36  ;;  %v3362_v61 = vadd.f32 %v8855_v51, %v3342_v49  ;;  %v3360_v28 = vadd.f32 %v8855_v51, %v3340_v10 }
 0x673   :  { %v3363_v11 = vadd.f32 %v8855_v51, %v3343_v29  ;;  %v3324_v26 = vmul.f32 %v8836_v19, %v3306_v18  ;;  %v3361_v47 = vadd.f32 %v8855_v51, %v3341_v16  ;;  %v3331_v9 = vmul.f32 %v8836_v19, %v3313_v50 }
 0x674   :  { %v8879_v46 = vmax.f32 %v3358_v39, 0.0  ;;  %v8881_v14 = vmax.f32 %v3359_v33, 0.0  ;;  %v8921_v23 = vmax.f32 %v3362_v61, 0.0  ;;  %v8928_v41 = vmax.f32 %v3360_v28, 0.0 }
 0x675   :  { %v8953_v56 = vmax.f32 %v3363_v11, 0.0  ;;  %v3344_v8 = vmul.f32 %v8841_v32, %v3324_v26  ;;  %v3307_v33 = vsub.f32 %v8655_v5, %v8771_v52  ;;  %v8964_v10 = vmax.f32 %v3361_v47, 0.0 }
 0x676   :  { %v3464_v34 = vrot.slane %v8879_v46, 6  ;;  %v3624_v58 = vrot.slane %v8879_v46, 2  ;;  %v3625_v40 = vrot.slane %v8881_v14, 2  ;;  %v3671_v1 = vrot.slane %v8879_v46, 3 }
 0x677   :  { %v3672_v4 = vrot.slane %v8881_v14, 3  ;;  %v3512_v35 = vrot.slane %v8879_v46, 7  ;;  %v3726_v43 = vrot.slane %v8921_v23, 5  ;;  %v3465_v30 = vrot.slane %v8881_v14, 6 }
 0x678   :  { %3478 = vrot.lane.b32.xlu1 %v3464_v34, %s5929_s17  ;;  %v3626_v59 = vsel %vm2246_vm12, %v3624_v58, %v3625_v40  ;;  %v3627_v24 = vrot.slane %v8928_v41, 2  ;;  %v3513_v36 = vrot.slane %v8881_v14, 7  ;;  %v3674_v13 = vrot.slane %v8928_v41, 3 }
 0x679   :  { %3638 = vrot.lane.b32.xlu0 %v3626_v59, %s5929_s17  ;;  %v3673_v42 = vsel %vm2341_vm2, %v3671_v1, %v3672_v4  ;;  %v3466_v57 = vsel %vm11149_vm3, %v3464_v34, %v3465_v30  ;;  %v3727_v53 = vrot.slane %v8953_v56, 5  ;;  %v3364_v44 = vadd.f32 %v8855_v51, %v3344_v8 }
 0x67a   :  { %v3628_v3 = vsel %vm2246_vm12, %v3625_v40, %v3627_v24  ;;  %v3514_v39 = vsel %vm1991_vm5, %v3512_v35, %v3513_v36  ;;  %v3675_v49 = vsel %vm2341_vm2, %v3672_v4, %v3674_v13  ;;  %v3325_v27 = vmul.f32 %v8836_v19, %v3307_v33 }
 0x67b   :  { %v3467_v63 = vrot.slane %v8928_v41, 6  ;;  %v3309_v5 = vsub.f32 %v8659_v6, %v8771_v52  ;;  %v3728_v34 = vsel %vm11150_vm6, %v3726_v43, %v3727_v53  ;;  %v3629_v58 = vrot.slane %v8964_v10, 2  ;;  %vm11157_vm6 = vmmov %vm11153_vm4 }
 0x67c   :  { %3526 = vrot.lane.b32.xlu1 %v3512_v35, %s5931_s24  ;;  %v3326_v40 = vmul.f32 %v8836_v19, %v3308_v17  ;;  %v3310_v61 = vsub.f32 %v8661_v48, %v8771_v52  ;;  %v8986_v6 = vmax.f32 %v3364_v44, 0.0  ;;  %v3345_v54 = vmul.f32 %v8841_v32, %v3325_v27 }
 0x67d   :  { %3685 = vrot.lane.b32.xlu0 %v3673_v42, %s5931_s24  ;;  %v3327_v55 = vmul.f32 %v8836_v19, %v3309_v5  ;;  %v3312_v59 = vsub.f32 %v8665_v45, %v8771_v52  ;;  %v3311_v1 = vsub.f32 %v8663_v25, %v8771_v52  ;;  %v3468_v48 = vsel %vm11151_vm13, %v3465_v30, %v3467_v63  ;;  %vm11158_vm13 = vmmov %vm11155_vm7 }
 0x67e   :  { %v3515_v15 = vrot.slane %v8928_v41, 7  ;;  %v3676_v38 = vrot.slane %v8964_v10, 3  ;;  %v3328_v4 = vmul.f32 %v8836_v19, %v3310_v61  ;;  %v3630_v45 = vsel %vm2246_vm12, %v3627_v24, %v3629_v58 }
 0x67f   :  { %v3346_v28 = vmul.f32 %v8841_v32, %v3326_v40  ;;  %v3330_v25 = vmul.f32 %v8836_v19, %v3312_v59  ;;  %v3329_v62 = vmul.f32 %v8836_v19, %v3311_v1  ;;  %v3729_v2 = vrot.slane %v8986_v6, 5 }
 0x680   :  { %3560 = vrot.lane.b32.xlu1 %v8879_v46, %s5933_s23  ;;  %v3365_v35 = vadd.f32 %v8855_v51, %v3345_v54  ;;  %v3347_v22 = vmul.f32 %v8841_v32, %v3327_v55  ;;  %v3433_v42 = vrot.slane %v8879_v46, 5  ;;  %v3594_v29 = vrot.slane %v8881_v14, 1 }
 0x681   :  { %3740 = vrot.lane.b32.xlu0 %v3726_v43, %s5933_s23  ;;  %v3593_v7 = vrot.slane %v8879_v46, 1  ;;  %v3516_v60 = vsel %vm1991_vm5, %v3513_v36, %v3515_v15  ;;  %v3677_v43 = vsel %vm2341_vm2, %v3674_v13, %v3676_v38  ;;  %v3348_v30 = vmul.f32 %v8841_v32, %v3328_v4 }
 0x682   :  { %v3332_v20 = vmul.f32 %v8836_v19, %v3314_v37  ;;  %v3366_v50 = vadd.f32 %v8855_v51, %v3346_v28  ;;  %v3350_v18 = vmul.f32 %v8841_v32, %v3330_v25  ;;  %v3349_v46 = vmul.f32 %v8841_v32, %v3329_v62  ;;  %3456 = vst.msk [vmem:[#allocation4] sm:$0xf8] %vm3455_vm14, %v3433_v42 }
 0x683   :  { %v3595_v24 = vsel %vm11152_vm10, %v3593_v7, %v3594_v29  ;;  %v3373_v11 = vadd.f32 %v8855_v51, %v3353_v21  ;;  %v9036_v16 = vmax.f32 %v3365_v35, 0.0  ;;  %v3367_v12 = vadd.f32 %v8855_v51, %v3347_v22  ;;  %vm11159_vm10 = vmmov %vm11153_vm4 }
 0x684   :  { %3480 = vrot.lane.b32.xlu1 %v3466_v57, %s5929_s17  ;;  %3615 = vst.msk [vmem:[#allocation4 + $0x8] sm:$0xff] %vm3204_vm0, %v3595_v24  ;;  %v3434_v52 = vrot.slane %v8881_v14, 5  ;;  %v3469_v37 = vrot.slane %v8964_v10, 6  ;;  %v3517_v19 = vrot.slane %v8964_v10, 7  ;;  %v3351_v26 = vmul.f32 %v8841_v32, %v3331_v9 }
 0x685   :  { %3640 = vrot.lane.b32.xlu0 %v3628_v3, %s5929_s17  ;;  %v3596_v57 = vrot.slane %v8928_v41, 1  ;;  %v3730_v36 = vsel %vm11153_vm4, %v3727_v53, %v3729_v2  ;;  %v3368_v3 = vadd.f32 %v8855_v51, %v3348_v30  ;;  %v3352_v13 = vmul.f32 %v8841_v32, %v3332_v20 }
 0x686   :  { %v3435_v47 = vsel %vm11154_vm8, %v3433_v42, %v3434_v52  ;;  %v3370_v8 = vadd.f32 %v8855_v51, %v3350_v18  ;;  %v3731_v32 = vrot.slane %v9036_v16, 5  ;;  %v3436_v53 = vrot.slane %v8928_v41, 5  ;;  %vm11160_vm8 = vmmov %vm11155_vm7 }
 0x687   :  { %3457 = vst.msk [vmem:[#allocation4 + $0x20] sm:$0xff] %vm3204_vm0, %v3435_v47  ;;  %v3597_v33 = vsel %vm11155_vm7, %v3594_v29, %v3596_v57  ;;  %v3598_v44 = vrot.slane %v8964_v10, 1  ;;  %v9066_v27 = vmax.f32 %v3373_v11, 0.0  ;;  %v3470_v17 = vsel %vm11156_vm15, %v3467_v63, %v3469_v37  ;;  %vm11161_vm7 = vmmov %vm11153_vm4 }
 0x688   :  { %3528 = vrot.lane.b32.xlu1 %v3514_v39, %s5931_s24  ;;  %v3369_v39 = vadd.f32 %v8855_v51, %v3349_v46  ;;  %3616 = vst.msk [vmem:[#allocation4 + $0x28] sm:$0xff] %vm3204_vm0, %v3597_v33  ;;  %v3518_v5 = vsel %vm1991_vm5, %v3515_v15, %v3517_v19  ;;  %vm3955_vm3 = vcmask 259072   ;;  %v9073_v40 = vmax.f32 %v3368_v3, 0.0  ;;  %vm11162_vm15 = vmmov %vm11160_vm8 }
 0x689   :  { %3687 = vrot.lane.b32.xlu0 %v3675_v49, %s5931_s24  ;;  %v9061_v49 = vmax.f32 %v3367_v12, 0.0  ;;  %v3372_v61 = vadd.f32 %v8855_v51, %v3352_v13  ;;  %v3437_v0 = vsel %vm11157_vm6, %v3434_v52, %v3436_v53  ;;  %v3599_v54 = vsel %vm11158_vm13, %v3596_v57, %v3598_v44  ;;  %3619 = vst.msk [vmem:[#allocation4 + $0x68] sm:$0x7f] %vm3618_vm1, %v3598_v44  ;;  %vm11164_vm6 = vmmov %vm11160_vm8 }
 0x68a   :  { %v9082_v55 = vmax.f32 %v3369_v39, 0.0  ;;  %3458 = vst.msk [vmem:[#allocation4 + $0x40] sm:$0xff] %vm3204_vm0, %v3437_v0  ;;  %3617 = vst.msk [vmem:[#allocation4 + $0x48] sm:$0xff] %vm3204_vm0, %v3599_v54  ;;  %v3732_v59 = vsel %vm11159_vm10, %v3729_v2, %v3731_v32  ;;  %v9095_v15 = vmax.f32 %v3370_v8, 0.0  ;;  %v3603_v2 = vrot.slane %v9073_v40, 1 }
 0x68b   :  { %v3632_v1 = vrot.slane %v9061_v49, 2  ;;  %v9102_v62 = vmax.f32 %v3372_v61, 0.0  ;;  %v3441_v21 = vrot.slane %v9061_v49, 5  ;;  %v3443_v35 = vrot.slane %v9073_v40, 5  ;;  %vm11165_vm13 = vmmov %vm11153_vm4 }
 0x68c   :  { %3562 = vrot.lane.b32.xlu1 %v8881_v14, %s5933_s23  ;;  %v9053_v14 = vmax.f32 %v3366_v50, 0.0  ;;  %v3605_v22 = vrot.slane %v9082_v55, 1  ;;  %v3445_v9 = vrot.slane %v9082_v55, 5  ;;  %v3773_v42 = vrot.slane %v8921_v23, 6 }
 0x68d   :  { %3742 = vrot.lane.b32.xlu0 %v3728_v34, %s5933_s23  ;;  %v3371_v34 = vadd.f32 %v8855_v51, %v3351_v26  ;;  %v3438_v51 = vrot.slane %v8964_v10, 5  ;;  %v3931_v50 = vrot.slane %v8953_v56, 2  ;;  %v3774_v18 = vrot.slane %v8953_v56, 6 }
 0x68e   :  { %v3631_v63 = vrot.slane %v9053_v14, 2  ;;  %v3440_v28 = vrot.slane %v9053_v14, 5  ;;  %v3600_v25 = vrot.slane %v9053_v14, 1  ;;  %v3606_v20 = vsel %vm11164_vm6, %v3603_v2, %v3605_v22  ;;  %3623 = vst.msk [vmem:[#allocation4 + $0xe8] sm:$0x7f] %vm3618_vm1, %v3605_v22 }
 0x68f   :  { %v9097_v4 = vmax.f32 %v3371_v34, 0.0  ;;  %3796 = vst.msk [vmem:[#allocation4 + $0x10] sm:$0xfc] %vm3795_vm9, %v3773_v42  ;;  %v3933_v46 = vrot.slane %v8986_v6, 2  ;;  %v3776_v24 = vrot.slane %v8986_v6, 6  ;;  %v3935_v11 = vrot.slane %v9036_v16, 2 }
 0x690   :  { %3482 = vrot.lane.b32.xlu1 %v3468_v48, %s5929_s17  ;;  %v3678_v48 = vrot.slane %v9053_v14, 3  ;;  %3460 = vst.msk [vmem:[#allocation4 + $0x80] sm:$0xf8] %vm3455_vm14, %v3440_v28  ;;  %v3442_v7 = vsel %vm11161_vm7, %v3440_v28, %v3441_v21  ;;  %vm11163_vm14 = vmmov %vm11153_vm4  ;;  %v3778_v52 = vrot.slane %v9036_v16, 6  ;;  %v3780_v37 = vrot.slane %v9095_v15, 6 }
 0x691   :  { %3642 = vrot.lane.b32.xlu0 %v3630_v45, %s5929_s17  ;;  %v3439_v45 = vsel %vm11153_vm4, %v3436_v53, %v3438_v51  ;;  %3461 = vst.msk [vmem:[#allocation4 + $0xa0] sm:$0xff] %vm3204_vm0, %v3442_v7  ;;  %v3444_v30 = vsel %vm11163_vm14, %v3441_v21, %v3443_v35  ;;  %3622 = vst.msk [vmem:[#allocation4 + $0xc8] sm:$0xff] %vm3204_vm0, %v3606_v20  ;;  %v3937_v19 = vrot.slane %v9095_v15, 2  ;;  %vm11166_vm1 = vcmask 1041408  }
 0x692   :  { %3459 = vst.msk [vmem:[#allocation4 + $0x60] sm:$0xff] %vm3204_vm0, %v3439_v45  ;;  %3462 = vst.msk [vmem:[#allocation4 + $0xc0] sm:$0xff] %vm3204_vm0, %v3444_v30  ;;  %v3775_v26 = vsel %vm11166_vm1, %v3773_v42, %v3774_v18  ;;  %v3934_v57 = vsel %vm2246_vm12, %v3931_v50, %v3933_v46  ;;  %v3938_v13 = vrot.slane %v9097_v4, 2  ;;  %v3781_v47 = vrot.slane %v9097_v4, 6 }
 0x693   :  { %vm11167_vm10 = vmmov %vm11166_vm1  ;;  %3956 = vst.msk [vmem:[#allocation4 + $0x78] sm:$0x3f] %vm3955_vm3, %v3935_v11  ;;  %v3940_v8 = vrot.slane %v9102_v62, 2  ;;  %v3679_v39 = vrot.slane %v9061_v49, 3  ;;  %v3783_v33 = vrot.slane %v9102_v62, 6  ;;  %v3942_v32 = vrot.slane %v9066_v27, 2 }
 0x694   :  { %3530 = vrot.lane.b32.xlu1 %v3516_v60, %s5931_s24  ;;  %3797 = vst.msk [vmem:[#allocation4 + $0x30] sm:$0xff] %vm3204_vm0, %v3775_v26  ;;  %3953 = vst.msk [vmem:[#allocation4 + $0x38] sm:$0xff] %vm3204_vm0, %v3934_v57  ;;  %v3785_v53 = vrot.slane %v9066_v27, 6  ;;  %v3633_v44 = vsel %vm2246_vm12, %v3631_v63, %v3632_v1  ;;  %v3519_v63 = vrot.slane %v9053_v14, 7  ;;  %v3472_v45 = vrot.slane %v9061_v49, 6 }
 0x695   :  { %3689 = vrot.lane.b32.xlu0 %v3677_v43, %s5931_s24  ;;  %v3930_v43 = vrot.slane %v8921_v23, 2  ;;  %vm11168_vm4 = vmmov %vm11166_vm1  ;;  %3800 = vst.msk [vmem:[#allocation4 + $0x90] sm:$0xfc] %vm3795_vm9, %v3780_v37  ;;  %v3941_v34 = vsel %vm2246_vm12, %v3938_v13, %v3940_v8  ;;  %v3943_v0 = vsel %vm2246_vm12, %v3940_v8, %v3942_v32  ;;  %v3680_v51 = vsel %vm2341_vm2, %v3678_v48, %v3679_v39 }
 0x696   :  { %v3779_v3 = vsel %vm11168_vm4, %v3776_v24, %v3778_v52  ;;  %vm11169_vm9 = vmmov %vm11166_vm1  ;;  %3958 = vst.msk [vmem:[#allocation4 + $0xb8] sm:$0xff] %vm3204_vm0, %v3941_v34  ;;  %v3634_v28 = vrot.slane %v9073_v40, 2  ;;  %v3681_v21 = vrot.slane %v9073_v40, 3  ;;  %v3636_v22 = vrot.slane %v9082_v55, 2 }
 0x697   :  { %v3932_v12 = vsel %vm2246_vm12, %v3930_v43, %v3931_v50  ;;  %3799 = vst.msk [vmem:[#allocation4 + $0x70] sm:$0xff] %vm3204_vm0, %v3779_v3  ;;  %vm11171_vm7 = vmmov %vm11166_vm1  ;;  %v3522_v42 = vrot.slane %v9073_v40, 7  ;;  %v3683_v7 = vrot.slane %v9082_v55, 3  ;;  %v3736_v43 = vrot.slane %v9102_v62, 5 }
 0x698   :  { %3564 = vrot.lane.b32.xlu1 %v8928_v41, %s5933_s23  ;;  %v3471_v41 = vrot.slane %v9053_v14, 6  ;;  %3952 = vst.msk [vmem:[#allocation4 + $0x18] sm:$0xff] %vm3204_vm0, %v3932_v12  ;;  %v3786_v54 = vsel %vm11171_vm7, %v3783_v33, %v3785_v53  ;;  %3959 = vst.msk [vmem:[#allocation4 + $0xd8] sm:$0xff] %vm3204_vm0, %v3943_v0  ;;  %v3635_v48 = vsel %vm2246_vm12, %v3632_v1, %v3634_v28  ;;  %v3476_v30 = vrot.slane %v9082_v55, 6 }
 0x699   :  { %3744 = vrot.lane.b32.xlu0 %v3730_v36, %s5933_s23  ;;  %v3777_v36 = vsel %vm11167_vm10, %v3774_v18, %v3776_v24  ;;  %3960 = vst.msk [vmem:[#allocation4 + $0xf8] sm:$0x3f] %vm3955_vm3, %v3942_v32  ;;  %vm11172_vm3 = vmmov %vm11166_vm1  ;;  %v3524_v50 = vrot.slane %v9082_v55, 7  ;;  %v3804_v24 = vrot.slane %v8921_v23, 7  ;;  %v3884_v12 = vrot.slane %v8953_v56, 1 }
 0x69a   :  { %3798 = vst.msk [vmem:[#allocation4 + $0x50] sm:$0xff] %vm3204_vm0, %v3777_v36  ;;  %3803 = vst.msk [vmem:[#allocation4 + $0xf0] sm:$0xff] %vm3204_vm0, %v3786_v54  ;;  %v3961_v52 = vrot.slane %v8921_v23, 3  ;;  %v3805_v26 = vrot.slane %v8953_v56, 7  ;;  %v3886_v57 = vrot.slane %v8986_v6, 1  ;;  %v3964_v36 = vrot.slane %v8986_v6, 3 }
 0x69b   :  { %vm11174_vm14 = vmmov %vm11166_vm1  ;;  %v3525_v18 = vsel %vm1991_vm5, %v3522_v42, %v3524_v50  ;;  %vm3502_vm4 = vcmask 523522   ;;  %v3966_v8 = vrot.slane %v9036_v16, 3  ;;  %vm3550_vm7 = vcmask 785921  }
 0x69c   :  { %3484 = vrot.lane.b32.xlu1 %v3470_v17, %s5929_s17  ;;  %v3939_v17 = vsel %vm2246_vm12, %v3937_v19, %v3938_v13  ;;  %vm11176_vm6 = vmmov %vm11166_vm1  ;;  %v3807_v13 = vrot.slane %v8986_v6, 7  ;;  %v3809_v53 = vrot.slane %v9036_v16, 7  ;;  %v3811_v54 = vrot.slane %v9095_v15, 7 }
 0x69d   :  { %3644 = vrot.lane.b32.xlu0 %v3629_v58, %s5929_s17  ;;  %v3601_v58 = vrot.slane %v9061_v49, 1  ;;  %3957 = vst.msk [vmem:[#allocation4 + $0x98] sm:$0xff] %vm3204_vm0, %v3939_v17 }
 0x69f   :  { %v3602_v29 = vsel %vm11160_vm8, %v3600_v25, %v3601_v58  ;;  %v3604_v60 = vsel %vm11162_vm15, %v3601_v58, %v3603_v2  ;;  %vm11170_vm8 = vmmov %vm11166_vm1  ;;  %v3473_v25 = vsel %vm11172_vm3, %v3471_v41, %v3472_v45  ;;  %v3520_v58 = vrot.slane %v9061_v49, 7 }
 0x6a0   :  { %3532 = vrot.lane.b32.xlu1 %v3518_v5, %s5931_s24  ;;  %3620 = vst.msk [vmem:[#allocation4 + $0x88] sm:$0xff] %vm3204_vm0, %v3602_v29  ;;  %3621 = vst.msk [vmem:[#allocation4 + $0xa8] sm:$0xff] %vm3204_vm0, %v3604_v60  ;;  %v3782_v5 = vsel %vm11169_vm9, %v3780_v37, %v3781_v47  ;;  %v3784_v61 = vsel %vm11170_vm8, %v3781_v47, %v3783_v33  ;;  %v3637_v29 = vsel %vm2246_vm12, %v3634_v28, %v3636_v22  ;;  %vm11178_vm1 = vcmask 1046528  }
 0x6a1   :  { %3691 = vrot.lane.b32.xlu0 %v3676_v38, %s5931_s24  ;;  %v3446_v38 = vsel %vm11165_vm13, %v3443_v35, %v3445_v9  ;;  %3801 = vst.msk [vmem:[#allocation4 + $0xb0] sm:$0xff] %vm3204_vm0, %v3782_v5  ;;  %3802 = vst.msk [vmem:[#allocation4 + $0xd0] sm:$0xff] %vm3204_vm0, %v3784_v61  ;;  %v3521_v2 = vsel %vm1991_vm5, %v3519_v63, %v3520_v58  ;;  %v3474_v35 = vrot.slane %v9073_v40, 6  ;;  %v3962_v37 = vrot.slane %v8953_v56, 3 }
 0x6a2   :  { %3463 = vst.msk [vmem:[#allocation4 + $0xe0] sm:$0xff] %vm3204_vm0, %v3446_v38  ;;  %vm11173_vm15 = vmmov %vm11165_vm13  ;;  %v3684_v60 = vsel %vm2341_vm2, %v3681_v21, %v3683_v7  ;;  %v3888_v47 = vrot.slane %v9036_v16, 1  ;;  %vm3504_vm9 = vcmask 523520   ;;  %vm3552_vm3 = vcmask 785920  }
 0x6a3   :  { %v3475_v9 = vsel %vm11174_vm14, %v3472_v45, %v3474_v35  ;;  %v3477_v38 = vsel %vm11176_vm6, %v3474_v35, %v3476_v30  ;;  %v3963_v19 = vsel %vm2341_vm2, %v3961_v52, %v3962_v37  ;;  %vm11179_vm10 = vmmov %vm11178_vm1  ;;  %v3965_v3 = vsel %vm2341_vm2, %v3962_v37, %v3964_v36  ;;  %v4081_v52 = vld [vmem:[%s10907_s4 + $0x148] sm:$0xff] }
 0x6a4   :  { %3566 = vrot.lane.b32.xlu1 %v8964_v10, %s5933_s23  ;;  %v3936_v10 = vsel %vm2246_vm12, %v3933_v46, %v3935_v11  ;;  %vm11175_vm12 = vmmov %vm11165_vm13  ;;  %v3738_v46 = vrot.slane %v9066_v27, 5  ;;  %v3883_v11 = vrot.slane %v8921_v23, 1  ;;  %v3810_v5 = vsel %vm1991_vm5, %v3807_v13, %v3809_v53  ;;  %v4075_v53 = vld [vmem:[%s10907_s4 + $0x118] sm:$0xff] }
 0x6a5   :  { %3746 = vrot.lane.b32.xlu0 %v3732_v59, %s5933_s23  ;;  %3954 = vst.msk [vmem:[#allocation4 + $0x58] sm:$0xff] %vm3204_vm0, %v3936_v10  ;;  %v3733_v59 = vrot.slane %v9095_v15, 5  ;;  %vm11177_vm13 = vmmov %vm11175_vm12  ;;  %v3887_v10 = vsel %vm11179_vm10, %v3884_v12, %v3886_v57  ;;  %vm3764_vm14 = vcmask 1048323   ;;  %v3969_v45 = vrot.slane %v9097_v4, 3 }
 0x6a6   :  { %vm11180_vm8 = vmmov %vm11178_vm1  ;;  %vm3924_vm10 = vcmask 1047296  }
 0x6a7   :  { %v3889_v32 = vsel %vm11180_vm8, %v3886_v57, %v3888_v47  ;;  %vm11182_vm6 = vmmov %vm11178_vm1  ;;  %v3816_v57 = vrot.slane %v9066_v27, 7  ;;  %vm4462_vm8 = vcmask 1047559  }
 0x6a8   :  { %3486 = vrot.lane.b32.xlu1 %v3471_v41, %s5929_s17  ;;  %v3734_v41 = vrot.slane %v9097_v4, 5 }
 0x6a9   :  { %3646 = vrot.lane.b32.xlu0 %v3633_v44, %s5929_s17 }
 0x6aa   :  { %v3735_v1 = vsel %vm11173_vm15, %v3733_v59, %v3734_v41  ;;  %v3737_v20 = vsel %vm11175_vm12, %v3734_v41, %v3736_v43  ;;  %vm3584_vm15 = vcmask 1048320   ;;  %vm11181_vm12 = vmmov %vm11178_vm1  ;;  %v4086_v41 = vld [vmem:[%s10907_s4 + $0x170] sm:$0xff] }
 0x6ac   :  { %3534 = vrot.lane.b32.xlu1 %v3519_v63, %s5931_s24  ;;  %v3890_v63 = vrot.slane %v9095_v15, 1 }
 0x6ad   :  { %3693 = vrot.lane.b32.xlu0 %v3680_v51, %s5931_s24  ;;  %v3891_v51 = vrot.slane %v9097_v4, 1 }
 0x6b0   :  { %3568 = vrot.lane.b32.xlu1 %v9053_v14, %s5933_s23  ;;  %v3682_v14 = vsel %vm2341_vm2, %v3679_v39, %v3681_v21  ;;  %v4087_v21 = vld [vmem:[%s10907_s4 + $0x178] sm:$0xff] }
 0x6b1   :  { %3748 = vrot.lane.b32.xlu0 %v3733_v59, %s5933_s23  ;;  %v3968_v59 = vrot.slane %v9095_v15, 3 }
 0x6b4   :  { %3488 = vrot.lane.b32.xlu1 %v3473_v25, %s5929_s17 }
 0x6b5   :  { %3648 = vrot.lane.b32.xlu0 %v3635_v48, %s5929_s17  ;;  %v3892_v48 = vsel %vm11181_vm12, %v3890_v63, %v3891_v51  ;;  %v4095_v63 = vld [vmem:[%s10907_s4 + $0x1b8] sm:$0xff]  ;;  %vm5555_vm12 = vcmask 588800  }
 0x6b8   :  { %3536 = vrot.lane.b32.xlu1 %v3521_v2, %s5931_s24 }
 0x6b9   :  { %3695 = vrot.lane.b32.xlu0 %v3682_v14, %s5931_s24  ;;  %v3812_v14 = vrot.slane %v9097_v4, 7 }
 0x6bc   :  { %3570 = vrot.lane.b32.xlu1 %v9061_v49, %s5933_s23  ;;  %v3523_v49 = vsel %vm1991_vm5, %v3520_v58, %v3522_v42  ;;  %v3813_v42 = vsel %vm1991_vm5, %v3811_v54, %v3812_v14 }
 0x6bd   :  { %3750 = vrot.lane.b32.xlu0 %v3735_v1, %s5933_s23 }
 0x6c0   :  { %3490 = vrot.lane.b32.xlu1 %v3475_v9, %s5929_s17  ;;  %v4085_v9 = vld [vmem:[%s10907_s4 + $0x168] sm:$0xff] }
 0x6c1   :  { %3650 = vrot.lane.b32.xlu0 %v3637_v29, %s5929_s17  ;;  %v3971_v29 = vrot.slane %v9102_v62, 3 }
 0x6c3   :  { %v3972_v30 = vsel %vm2341_vm2, %v3969_v45, %v3971_v29 }
 0x6c4   :  { %3538 = vrot.lane.b32.xlu1 %v3523_v49, %s5931_s24 }
 0x6c5   :  { %3697 = vrot.lane.b32.xlu0 %v3684_v60, %s5931_s24 }
 0x6c8   :  { %3572 = vrot.lane.b32.xlu1 %v9073_v40, %s5933_s23  ;;  %v3739_v40 = vsel %vm11177_vm13, %v3736_v43, %v3738_v46  ;;  %v4083_v43 = vld [vmem:[%s10907_s4 + $0x158] sm:$0xff]  ;;  %v3895_v46 = vrot.slane %v9066_v27, 1  ;;  %vm11183_vm13 = vmmov %vm11178_vm1 }
 0x6c9   :  { %3752 = vrot.lane.b32.xlu0 %v3737_v20, %s5933_s23  ;;  %v3814_v20 = vrot.slane %v9102_v62, 7 }
 0x6cc   :  { %3492 = vrot.lane.b32.xlu1 %v3477_v38, %s5929_s17 }
 0x6cd   :  { %3652 = vrot.lane.b32.xlu0 %v3636_v22, %s5929_s17  ;;  %v3893_v22 = vrot.slane %v9102_v62, 1 }
 0x6d0   :  { %3540 = vrot.lane.b32.xlu1 %v3525_v18, %s5931_s24 }
 0x6d1   :  { %3699 = vrot.lane.b32.xlu0 %v3683_v7, %s5931_s24  ;;  %v4084_v7 = vld [vmem:[%s10907_s4 + $0x160] sm:$0xff] }
 0x6d4   :  { %3574 = vrot.lane.b32.xlu1 %v9082_v55, %s5933_s23  ;;  %v3885_v55 = vsel %vm11178_vm1, %v3883_v11, %v3884_v12  ;;  %v3973_v12 = vrot.slane %v9066_v27, 3  ;;  %vm3665_vm1 = vcmask 521472  }
 0x6d5   :  { %3754 = vrot.lane.b32.xlu0 %v3739_v40, %s5933_s23  ;;  %v4082_v40 = vld [vmem:[%s10907_s4 + $0x150] sm:$0xff] }
 0x6d8   :  { %3851 = vrot.lane.b32.xlu1 %v8921_v23, %s5931_s24  ;;  %v3806_v23 = vsel %vm1991_vm5, %v3804_v24, %v3805_v26 }
 0x6d9   :  { %3818 = vrot.lane.b32.xlu0 %v3804_v24, %s5929_s17  ;;  %v3815_v24 = vsel %vm1991_vm5, %v3812_v14, %v3814_v20 }
 0x6dc   :  { %3897 = vrot.lane.b32.xlu1 %v3885_v55, %s5933_s23 }
 0x6dd   :  { %3975 = vrot.lane.b32.xlu0 %v3963_v19, %s5929_s17  ;;  %v4080_v19 = vld [vmem:[%s10907_s4 + $0x140] sm:$0xff] }
 0x6e0   :  { %3853 = vrot.lane.b32.xlu1 %v8953_v56, %s5931_s24  ;;  %v3808_v56 = vsel %vm1991_vm5, %v3805_v26, %v3807_v13  ;;  %v3974_v26 = vsel %vm2341_vm2, %v3971_v29, %v3973_v12  ;;  %v3817_v13 = vsel %vm1991_vm5, %v3814_v20, %v3816_v57  ;;  %vm3842_vm5 = vcmask 523521  }
 0x6e1   :  { %3820 = vrot.lane.b32.xlu0 %v3806_v23, %s5929_s17  ;;  %v4079_v23 = vld [vmem:[%s10907_s4 + $0x138] sm:$0xff] }
 0x6e4   :  { %3899 = vrot.lane.b32.xlu1 %v3887_v10, %s5933_s23 }
 0x6e5   :  { %3977 = vrot.lane.b32.xlu0 %v3965_v3, %s5929_s17  ;;  %v4078_v3 = vld [vmem:[%s10907_s4 + $0x130] sm:$0xff] }
 0x6e8   :  { %3855 = vrot.lane.b32.xlu1 %v8986_v6, %s5931_s24  ;;  %v3967_v6 = vsel %vm2341_vm2, %v3964_v36, %v3966_v8 }
 0x6e9   :  { %3822 = vrot.lane.b32.xlu0 %v3808_v56, %s5929_s17 }
 0x6ea   :  { %v3479_v39 = vpop.permute.xlu1 %3478 }
 0x6eb   :  { %3503 = vst.msk [vmem:[#allocation4] sm:$0xfc] %vm3502_vm4, %v3479_v39  ;;  %v3639_v33 = vpop.permute.xlu0 %3638 }
 0x6ec   :  { %3662 = vst.msk [vmem:[#allocation4 + $0x8] sm:$0xff] %vm3504_vm9, %v3639_v33  ;;  %3901 = vrot.lane.b32.xlu1 %v3889_v32, %s5933_s23  ;;  %v4076_v33 = vld [vmem:[%s10907_s4 + $0x120] sm:$0xff] }
 0x6ed   :  { %3979 = vrot.lane.b32.xlu0 %v3967_v6, %s5929_s17 }
 0x6ee   :  { %v3527_v44 = vpop.permute.xlu1 %3526 }
 0x6ef   :  { %3551 = vst.msk [vmem:[#allocation4] sm:$0xfe] %vm3550_vm7, %v3527_v44  ;;  %v3686_v17 = vpop.permute.xlu0 %3685  ;;  %v4074_v44 = vld [vmem:[%s10907_s4 + $0x110] sm:$0xff] }
 0x6f0   :  { %3709 = vst.msk [vmem:[#allocation4 + $0x8] sm:$0xff] %vm3552_vm3, %v3686_v17  ;;  %3857 = vrot.lane.b32.xlu1 %v9036_v16, %s5931_s24 }
 0x6f1   :  { %3824 = vrot.lane.b32.xlu0 %v3810_v5, %s5929_s17 }
 0x6f2   :  { %v3561_v34 = vpop.permute.xlu1 %3560 }
 0x6f3   :  { %3585 = vst.msk [vmem:[#allocation4] sm:$0xff] %vm3584_vm15, %v3561_v34  ;;  %v3741_v61 = vpop.permute.xlu0 %3740  ;;  %v4073_v34 = vld [vmem:[%s10907_s4 + $0x108] sm:$0xff] }
 0x6f4   :  { %3765 = vst.msk [vmem:[#allocation4 + $0x8] sm:$0xf8] %vm3764_vm14, %v3741_v61  ;;  %3903 = vrot.lane.b32.xlu1 %v3888_v47, %s5933_s23  ;;  %v4072_v61 = vld [vmem:[%s10907_s4 + $0x100] sm:$0xff] }
 0x6f5   :  { %3981 = vrot.lane.b32.xlu0 %v3966_v8, %s5929_s17 }
 0x6f6   :  { %v3481_v0 = vpop.permute.xlu1 %3480 }
 0x6f7   :  { %3505 = vst.msk [vmem:[#allocation4 + $0x20] sm:$0xff] %vm3504_vm9, %v3481_v0  ;;  %v3641_v16 = vpop.permute.xlu0 %3640 }
 0x6f8   :  { %3663 = vst.msk [vmem:[#allocation4 + $0x28] sm:$0xff] %vm3504_vm9, %v3641_v16  ;;  %3859 = vrot.lane.b32.xlu1 %v9095_v15, %s5931_s24  ;;  %v3970_v15 = vsel %vm2341_vm2, %v3968_v59, %v3969_v45  ;;  %vm3712_vm2 = vcmask 782848   ;;  %v4094_v59 = vld [vmem:[%s10907_s4 + $0x1b0] sm:$0xff] }
 0x6f9   :  { %3826 = vrot.lane.b32.xlu0 %v3811_v54, %s5929_s17 }
 0x6fa   :  { %v3529_v28 = vpop.permute.xlu1 %3528  ;;  %v4008_v2 = vld [vmem:[#allocation4] sm:$0xff] }
 0x6fb   :  { %3553 = vst.msk [vmem:[#allocation4 + $0x20] sm:$0xff] %vm3552_vm3, %v3529_v28  ;;  %v3688_v25 = vpop.permute.xlu0 %3687  ;;  %v4009_v58 = vld [vmem:[#allocation4 + $0x8] sm:$0xff] }
 0x6fc   :  { %3710 = vst.msk [vmem:[#allocation4 + $0x28] sm:$0xff] %vm3552_vm3, %v3688_v25  ;;  %4184 = vmatprep.mubr.f32.mxu0 %v4009_v58  ;;  %3905 = vrot.lane.b32.xlu1 %v3892_v48, %s5933_s23  ;;  %v4093_v25 = vld [vmem:[%s10907_s4 + $0x1a8] sm:$0xff]  ;;  %v4092_v58 = vld [vmem:[%s10907_s4 + $0x1a0] sm:$0xff] }
 0x6fd   :  { %3983 = vrot.lane.b32.xlu0 %v3970_v15, %s5929_s17  ;;  %4185 = vmatmul.mubr.f32.vlgmr.msra.gmra.mxu0 %v4008_v2  ;;  %v4091_v15 = vld [vmem:[%s10907_s4 + $0x198] sm:$0xff]  ;;  %v4090_v2 = vld [vmem:[%s10907_s4 + $0x190] sm:$0xff] }
 0x6fe   :  { %v3563_v35 = vpop.permute.xlu1 %3562  ;;  %4226 = vmatpush1.msra.mxu0 %v4087_v21 }
 0x6ff   :  { %3586 = vst.msk [vmem:[#allocation4 + $0x20] sm:$0xff] %vm3584_vm15, %v3563_v35  ;;  %v3743_v1 = vpop.permute.xlu0 %3742  ;;  %4227 = vmatprep.subr.mxu0 %v8752_v31 }
 0x700   :  { %3766 = vst.msk [vmem:[#allocation4 + $0x28] sm:$0xff] %vm3584_vm15, %v3743_v1  ;;  %3861 = vrot.lane.b32.xlu1 %v9097_v4, %s5931_s24  ;;  %4228 = vmatpush1.msra.mxu0 %v4086_v41  ;;  %v3894_v4 = vsel %vm11182_vm6, %v3891_v51, %v3893_v22  ;;  %v4089_v1 = vld [vmem:[%s10907_s4 + $0x188] sm:$0xff] }
 0x701   :  { %3828 = vrot.lane.b32.xlu0 %v3813_v42, %s5929_s17  ;;  %4229 = vmatprep.subr.mxu0 %v8752_v31 }
 0x702   :  { %v3483_v49 = vpop.permute.xlu1 %3482  ;;  %4230 = vmatpush1.msra.mxu0 %v4085_v9  ;;  %v4088_v9 = vld [vmem:[%s10907_s4 + $0x180] sm:$0xff] }
 0x703   :  { %3506 = vst.msk [vmem:[#allocation4 + $0x40] sm:$0xff] %vm3504_vm9, %v3483_v49  ;;  %v3643_v60 = vpop.permute.xlu0 %3642  ;;  %4231 = vmatprep.subr.mxu0 %v8752_v31 }
 0x704   :  { %3664 = vst.msk [vmem:[#allocation4 + $0x48] sm:$0xff] %vm3504_vm9, %v3643_v60  ;;  %3907 = vrot.lane.b32.xlu1 %v3894_v4, %s5933_s23  ;;  %4232 = vmatpush1.msra.mxu0 %v4084_v7 }
 0x705   :  { %3985 = vrot.lane.b32.xlu0 %v3972_v30, %s5929_s17  ;;  %4233 = vmatprep.subr.mxu0 %v8752_v31 }
 0x706   :  { %v3531_v38 = vpop.permute.xlu1 %3530  ;;  %4234 = vmatpush1.msra.mxu0 %v4083_v43  ;;  %v4012_v11 = vld [vmem:[#allocation4 + $0x20] sm:$0xff] }
 0x707   :  { %3554 = vst.msk [vmem:[#allocation4 + $0x40] sm:$0xff] %vm3552_vm3, %v3531_v38  ;;  %v3690_v50 = vpop.permute.xlu0 %3689  ;;  %v4013_v18 = vld [vmem:[#allocation4 + $0x28] sm:$0xff]  ;;  %4235 = vmatprep.subr.mxu0 %v8752_v31 }
 0x708   :  { %3711 = vst.msk [vmem:[#allocation4 + $0x48] sm:$0xff] %vm3552_vm3, %v3690_v50  ;;  %3863 = vrot.lane.b32.xlu1 %v9102_v62, %s5931_s24  ;;  %4189 = vmatprep.mubr.f32.mxu0 %v4013_v18  ;;  %v3896_v62 = vsel %vm11183_vm13, %v3893_v22, %v3895_v46 }
 0x709   :  { %3830 = vrot.lane.b32.xlu0 %v3815_v24, %s5929_s17  ;;  %4190 = vmatmul.mubr.f32.gmra.mxu0 %v4012_v11 }
 0x70a   :  { %v3565_v37 = vpop.permute.xlu1 %3564  ;;  %4236 = vmatpush1.msra.mxu0 %v4082_v40 }
 0x70b   :  { %3587 = vst.msk [vmem:[#allocation4 + $0x40] sm:$0xff] %vm3584_vm15, %v3565_v37  ;;  %v3745_v55 = vpop.permute.xlu0 %3744  ;;  %4237 = vmatprep.subr.mxu0 %v8752_v31 }
 0x70c   :  { %3767 = vst.msk [vmem:[#allocation4 + $0x48] sm:$0xff] %vm3584_vm15, %v3745_v55  ;;  %3909 = vrot.lane.b32.xlu1 %v3896_v62, %s5933_s23  ;;  %4238 = vmatpush1.msra.mxu0 %v4081_v52 }
 0x70d   :  { %3987 = vrot.lane.b32.xlu0 %v3974_v26, %s5929_s17  ;;  %4239 = vmatprep.subr.mxu0 %v8752_v31 }
 0x70e   :  { %v3485_v36 = vpop.permute.xlu1 %3484  ;;  %4240 = vmatpush1.msra.mxu0 %v4080_v19 }
 0x70f   :  { %3507 = vst.msk [vmem:[#allocation4 + $0x60] sm:$0xff] %vm3504_vm9, %v3485_v36  ;;  %v3645_v10 = vpop.permute.xlu0 %3644  ;;  %4241 = vmatprep.subr.mxu0 %v8752_v31 }
 0x710   :  { %3666 = vst.msk [vmem:[#allocation4 + $0x68] sm:$0x3f] %vm3665_vm1, %v3645_v10  ;;  %3865 = vrot.lane.b32.xlu1 %v9066_v27, %s5931_s24  ;;  %4242 = vmatpush1.msra.mxu0 %v4079_v23  ;;  %v4077_v27 = vld [vmem:[%s10907_s4 + $0x128] sm:$0xff] }
 0x711   :  { %3832 = vrot.lane.b32.xlu0 %v3817_v13, %s5929_s17  ;;  %4243 = vmatprep.subr.mxu0 %v8752_v31 }
 0x712   :  { %v3533_v47 = vpop.permute.xlu1 %3532  ;;  %4244 = vmatpush1.msra.mxu0 %v4078_v3  ;;  %v4016_v39 = vld [vmem:[#allocation4 + $0x40] sm:$0xff] }
 0x713   :  { %3555 = vst.msk [vmem:[#allocation4 + $0x60] sm:$0xff] %vm3552_vm3, %v3533_v47  ;;  %v3692_v56 = vpop.permute.xlu0 %3691  ;;  %v4017_v8 = vld [vmem:[#allocation4 + $0x48] sm:$0xff]  ;;  %4245 = vmatprep.subr.mxu0 %v8752_v31 }
 0x714   :  { %3713 = vst.msk [vmem:[#allocation4 + $0x68] sm:$0x1f] %vm3712_vm2, %v3692_v56  ;;  %3911 = vrot.lane.b32.xlu1 %v3895_v46, %s5933_s23  ;;  %4194 = vmatprep.mubr.f32.mxu0 %v4017_v8 }
 0x715   :  { %3989 = vrot.lane.b32.xlu0 %v3973_v12, %s5929_s17  ;;  %4195 = vmatmul.mubr.f32.gmra.mxu0 %v4016_v39 }
 0x716   :  { %v3567_v32 = vpop.permute.xlu1 %3566  ;;  %4246 = vmatpush1.msra.mxu0 %v4077_v27 }
 0x717   :  { %3588 = vst.msk [vmem:[#allocation4 + $0x60] sm:$0xff] %vm3584_vm15, %v3567_v32  ;;  %v3747_v6 = vpop.permute.xlu0 %3746  ;;  %4247 = vmatprep.subr.mxu0 %v8752_v31 }
 0x718   :  { %3768 = vst.msk [vmem:[#allocation4 + $0x68] sm:$0xff] %vm3584_vm15, %v3747_v6  ;;  %4248 = vmatpush1.msra.mxu0 %v4076_v33 }
 0x719   :  { %4249 = vmatprep.subr.mxu0 %v8752_v31 }
 0x71a   :  { %v3487_v17 = vpop.permute.xlu1 %3486  ;;  %4250 = vmatpush1.msra.mxu0 %v4075_v53 }
 0x71b   :  { %3508 = vst.msk [vmem:[#allocation4 + $0x80] sm:$0xfc] %vm3502_vm4, %v3487_v17  ;;  %v3647_v5 = vpop.permute.xlu0 %3646  ;;  %4251 = vmatprep.subr.mxu0 %v8752_v31  ;;  %vm4002_vm4 = vcmask 520448  }
 0x71c   :  { %3667 = vst.msk [vmem:[#allocation4 + $0x88] sm:$0xff] %vm3504_vm9, %v3647_v5  ;;  %4252 = vmatpush1.msra.mxu0 %v4074_v44 }
 0x71d   :  { %4253 = vmatprep.subr.mxu0 %v8752_v31 }
 0x71e   :  { %v3535_v0 = vpop.permute.xlu1 %3534  ;;  %4254 = vmatpush1.msra.mxu0 %v4073_v34  ;;  %v4020_v51 = vld [vmem:[#allocation4 + $0x60] sm:$0xff] }
 0x71f   :  { %3556 = vst.msk [vmem:[#allocation4 + $0x80] sm:$0xfe] %vm3550_vm7, %v3535_v0  ;;  %v3694_v16 = vpop.permute.xlu0 %3693  ;;  %v4021_v54 = vld [vmem:[#allocation4 + $0x68] sm:$0xff]  ;;  %4255 = vmatprep.subr.mxu0 %v8752_v31  ;;  %vm4465_vm7 = vcmask 254976  }
 0x720   :  { %3714 = vst.msk [vmem:[#allocation4 + $0x88] sm:$0xff] %vm3552_vm3, %v3694_v16  ;;  %4199 = vmatprep.mubr.f32.mxu0 %v4021_v54  ;;  %4256 = vmatpush1.msra.mxu0 %v4072_v61 }
 0x721   :  { %4200 = vmatmul.mubr.f32.gmra.mxu0 %v4020_v51  ;;  %4273 = vmatprep.subr.mxu0 %v8752_v31 }
 0x722   :  { %v3569_v45 = vpop.permute.xlu1 %3568  ;;  %4274 = vmatpush2.msra.mxu0 %v4095_v63 }
 0x723   :  { %3589 = vst.msk [vmem:[#allocation4 + $0x80] sm:$0xff] %vm3584_vm15, %v3569_v45  ;;  %v3749_v28 = vpop.permute.xlu0 %3748  ;;  %4275 = vmatprep.subr.mxu0 %v8752_v31 }
 0x724   :  { %3769 = vst.msk [vmem:[#allocation4 + $0x88] sm:$0xf8] %vm3764_vm14, %v3749_v28  ;;  %4276 = vmatpush2.msra.mxu0 %v4094_v59  ;;  %vm4503_vm14 = vcmask 1042176  }
 0x725   :  { %4277 = vmatprep.subr.mxu0 %v8752_v31 }
 0x726   :  { %v3489_v48 = vpop.permute.xlu1 %3488  ;;  %4278 = vmatpush2.msra.mxu0 %v4093_v25 }
 0x727   :  { %3509 = vst.msk [vmem:[#allocation4 + $0xa0] sm:$0xff] %vm3504_vm9, %v3489_v48  ;;  %v3649_v21 = vpop.permute.xlu0 %3648  ;;  %4279 = vmatprep.subr.mxu0 %v8752_v31 }
 0x728   :  { %3668 = vst.msk [vmem:[#allocation4 + $0xa8] sm:$0xff] %vm3504_vm9, %v3649_v21  ;;  %4280 = vmatpush2.msra.mxu0 %v4092_v58 }
 0x729   :  { %4281 = vmatprep.subr.mxu0 %v8752_v31 }
 0x72a   :  { %v3537_v14 = vpop.permute.xlu1 %3536  ;;  %4282 = vmatpush2.msra.mxu0 %v4091_v15  ;;  %v4024_v22 = vld [vmem:[#allocation4 + $0x80] sm:$0xff] }
 0x72b   :  { %3557 = vst.msk [vmem:[#allocation4 + $0xa0] sm:$0xff] %vm3552_vm3, %v3537_v14  ;;  %v3696_v41 = vpop.permute.xlu0 %3695  ;;  %v4025_v35 = vld [vmem:[#allocation4 + $0x88] sm:$0xff]  ;;  %4283 = vmatprep.subr.mxu0 %v8752_v31 }
 0x72c   :  { %3715 = vst.msk [vmem:[#allocation4 + $0xa8] sm:$0xff] %vm3552_vm3, %v3696_v41  ;;  %4204 = vmatprep.mubr.f32.mxu0 %v4025_v35  ;;  %4284 = vmatpush2.msra.mxu0 %v4090_v2 }
 0x72d   :  { %4205 = vmatmul.mubr.f32.gmra.mxu0 %v4024_v22  ;;  %4285 = vmatprep.subr.mxu0 %v8752_v31 }
 0x72e   :  { %v3571_v42 = vpop.permute.xlu1 %3570  ;;  %4286 = vmatpush2.msra.mxu0 %v4089_v1 }
 0x72f   :  { %3590 = vst.msk [vmem:[#allocation4 + $0xa0] sm:$0xff] %vm3584_vm15, %v3571_v42  ;;  %v3751_v29 = vpop.permute.xlu0 %3750  ;;  %4287 = vmatprep.subr.mxu0 %v8752_v31 }
 0x730   :  { %3770 = vst.msk [vmem:[#allocation4 + $0xa8] sm:$0xff] %vm3584_vm15, %v3751_v29  ;;  %4288 = vmatpush2.msra.mxu0 %v4088_v9 }
 0x732   :  { %v3491_v7 = vpop.permute.xlu1 %3490 }
 0x733   :  { %3510 = vst.msk [vmem:[#allocation4 + $0xc0] sm:$0xff] %vm3504_vm9, %v3491_v7  ;;  %v3651_v49 = vpop.permute.xlu0 %3650 }
 0x734   :  { %3669 = vst.msk [vmem:[#allocation4 + $0xc8] sm:$0xff] %vm3504_vm9, %v3651_v49 }
 0x736   :  { %v3539_v60 = vpop.permute.xlu1 %3538  ;;  %v4028_v30 = vld [vmem:[#allocation4 + $0xa0] sm:$0xff] }
 0x737   :  { %3558 = vst.msk [vmem:[#allocation4 + $0xc0] sm:$0xff] %vm3552_vm3, %v3539_v60  ;;  %v3698_v4 = vpop.permute.xlu0 %3697  ;;  %v4029_v43 = vld [vmem:[#allocation4 + $0xa8] sm:$0xff] }
 0x738   :  { %3716 = vst.msk [vmem:[#allocation4 + $0xc8] sm:$0xff] %vm3552_vm3, %v3698_v4  ;;  %4209 = vmatprep.mubr.f32.mxu0 %v4029_v43 }
 0x739   :  { %4210 = vmatmul.mubr.f32.gmra.mxu0 %v4028_v30 }
 0x73a   :  { %v3573_v20 = vpop.permute.xlu1 %3572 }
 0x73b   :  { %3591 = vst.msk [vmem:[#allocation4 + $0xc0] sm:$0xff] %vm3584_vm15, %v3573_v20  ;;  %v3753_v38 = vpop.permute.xlu0 %3752 }
 0x73c   :  { %3771 = vst.msk [vmem:[#allocation4 + $0xc8] sm:$0xff] %vm3584_vm15, %v3753_v38 }
 0x73e   :  { %v3493_v50 = vpop.permute.xlu1 %3492 }
 0x73f   :  { %3511 = vst.msk [vmem:[#allocation4 + $0xe0] sm:$0xff] %vm3504_vm9, %v3493_v50  ;;  %v3653_v18 = vpop.permute.xlu0 %3652 }
 0x740   :  { %3670 = vst.msk [vmem:[#allocation4 + $0xe8] sm:$0x3f] %vm3665_vm1, %v3653_v18  ;;  %vm11184_vm1 = vcmask 1041408  }
 0x742   :  { %v3541_v46 = vpop.permute.xlu1 %3540  ;;  %v4032_v11 = vld [vmem:[#allocation4 + $0xc0] sm:$0xff] }
 0x743   :  { %3559 = vst.msk [vmem:[#allocation4 + $0xe0] sm:$0xff] %vm3552_vm3, %v3541_v46  ;;  %v3700_v40 = vpop.permute.xlu0 %3699  ;;  %v4033_v24 = vld [vmem:[#allocation4 + $0xc8] sm:$0xff] }
 0x744   :  { %3717 = vst.msk [vmem:[#allocation4 + $0xe8] sm:$0x1f] %vm3712_vm2, %v3700_v40  ;;  %4214 = vmatprep.mubr.f32.mxu0 %v4033_v24  ;;  %vm11185_vm2 = vmmov %vm11184_vm1 }
 0x745   :  { %4215 = vmatmul.mubr.f32.gmra.mxu0 %v4032_v11 }
 0x746   :  { %v3575_v12 = vpop.permute.xlu1 %3574 }
 0x747   :  { %3592 = vst.msk [vmem:[#allocation4 + $0xe0] sm:$0xff] %vm3584_vm15, %v3575_v12  ;;  %v3755_v52 = vpop.permute.xlu0 %3754 }
 0x748   :  { %3772 = vst.msk [vmem:[#allocation4 + $0xe8] sm:$0xff] %vm3584_vm15, %v3755_v52 }
 0x74a   :  { %v3852_v37 = vpop.permute.xlu1 %3851 }
 0x74b   :  { %v3819_v55 = vpop.permute.xlu0 %3818 }
 0x74c   :  { %3843 = vst.msk [vmem:[#allocation4 + $0x10] sm:$0xfe] %vm3842_vm5, %v3819_v55 }
 0x74d   :  { %3875 = vst.msk [vmem:[#allocation4 + $0x10] sm:$0xff] %vm3552_vm3, %v3852_v37 }
 0x74e   :  { %v3898_v62 = vpop.permute.xlu1 %3897  ;;  %v4036_v57 = vld [vmem:[#allocation4 + $0xe0] sm:$0xff] }
 0x74f   :  { %3921 = vst.msk [vmem:[#allocation4 + $0x10] sm:$0xff] %vm3584_vm15, %v3898_v62  ;;  %v3976_v19 = vpop.permute.xlu0 %3975  ;;  %v4037_v26 = vld [vmem:[#allocation4 + $0xe8] sm:$0xff] }
 0x750   :  { %3999 = vst.msk [vmem:[#allocation4 + $0x18] sm:$0xff] %vm3504_vm9, %v3976_v19  ;;  %4219 = vmatprep.mubr.f32.mxu0 %v4037_v26 }
 0x751   :  { %4220 = vmatmul.mubr.f32.gmra.mxu0 %v4036_v57 }
 0x752   :  { %v3854_v23 = vpop.permute.xlu1 %3853 }
 0x753   :  { %v3821_v36 = vpop.permute.xlu0 %3820 }
 0x754   :  { %3844 = vst.msk [vmem:[#allocation4 + $0x30] sm:$0xff] %vm3504_vm9, %v3821_v36 }
 0x755   :  { %3876 = vst.msk [vmem:[#allocation4 + $0x30] sm:$0xff] %vm3552_vm3, %v3854_v23 }
 0x756   :  { %v3900_v10 = vpop.permute.xlu1 %3899  ;;  %v4010_v47 = vld [vmem:[#allocation4 + $0x10] sm:$0xff] }
 0x757   :  { %3922 = vst.msk [vmem:[#allocation4 + $0x30] sm:$0xff] %vm3584_vm15, %v3900_v10  ;;  %v3978_v3 = vpop.permute.xlu0 %3977  ;;  %v4011_v13 = vld [vmem:[#allocation4 + $0x18] sm:$0xff] }
 0x758   :  { %4000 = vst.msk [vmem:[#allocation4 + $0x38] sm:$0xff] %vm3504_vm9, %v3978_v3  ;;  %5729 = vmatprep.mubr.msk.f32.mxu0 %vm3395_vm11, %v4011_v13 }
 0x759   :  { %4290 = vmatmul.mubr.f32.vlgmr.msra.gmra.mxu0 %v4010_v47 }
 0x75a   :  { %v3856_v56 = vpop.permute.xlu1 %3855 }
 0x75b   :  { %v3823_v8 = vpop.permute.xlu0 %3822 }
 0x75c   :  { %3845 = vst.msk [vmem:[#allocation4 + $0x50] sm:$0xff] %vm3504_vm9, %v3823_v8 }
 0x75d   :  { %3877 = vst.msk [vmem:[#allocation4 + $0x50] sm:$0xff] %vm3552_vm3, %v3856_v56 }
 0x75e   :  { %v3902_v27 = vpop.permute.xlu1 %3901  ;;  %v4014_v32 = vld [vmem:[#allocation4 + $0x30] sm:$0xff] }
 0x75f   :  { %3923 = vst.msk [vmem:[#allocation4 + $0x50] sm:$0xff] %vm3584_vm15, %v3902_v27  ;;  %v3980_v39 = vpop.permute.xlu0 %3979  ;;  %v4015_v33 = vld [vmem:[#allocation4 + $0x38] sm:$0xff] }
 0x760   :  { %4001 = vst.msk [vmem:[#allocation4 + $0x58] sm:$0xff] %vm3504_vm9, %v3980_v39  ;;  %5730 = vmatprep.mubr.msk.f32.mxu0 %vm3395_vm11, %v4015_v33 }
 0x761   :  { %4295 = vmatmul.mubr.f32.gmra.mxu0 %v4014_v32 }
 0x762   :  { %v3858_v6 = vpop.permute.xlu1 %3857 }
 0x763   :  { %v3825_v53 = vpop.permute.xlu0 %3824 }
 0x764   :  { %3846 = vst.msk [vmem:[#allocation4 + $0x70] sm:$0xff] %vm3504_vm9, %v3825_v53 }
 0x765   :  { %3878 = vst.msk [vmem:[#allocation4 + $0x70] sm:$0xff] %vm3552_vm3, %v3858_v6 }
 0x766   :  { %v3904_v44 = vpop.permute.xlu1 %3903  ;;  %v4018_v34 = vld [vmem:[#allocation4 + $0x50] sm:$0xff] }
 0x767   :  { %3925 = vst.msk [vmem:[#allocation4 + $0x70] sm:$0x7f] %vm3924_vm10, %v3904_v44  ;;  %v3982_v17 = vpop.permute.xlu0 %3981  ;;  %v4019_v5 = vld [vmem:[#allocation4 + $0x58] sm:$0xff] }
 0x768   :  { %4003 = vst.msk [vmem:[#allocation4 + $0x78] sm:$0x1f] %vm4002_vm4, %v3982_v17  ;;  %5731 = vmatprep.mubr.msk.f32.mxu0 %vm3395_vm11, %v4019_v5 }
 0x769   :  { %4300 = vmatmul.mubr.f32.gmra.mxu0 %v4018_v34 }
 0x76a   :  { %v3860_v61 = vpop.permute.xlu1 %3859 }
 0x76b   :  { %v3827_v0 = vpop.permute.xlu0 %3826 }
 0x76c   :  { %3847 = vst.msk [vmem:[#allocation4 + $0x90] sm:$0xfe] %vm3842_vm5, %v3827_v0 }
 0x76d   :  { %3879 = vst.msk [vmem:[#allocation4 + $0x90] sm:$0xff] %vm3552_vm3, %v3860_v61 }
 0x76e   :  { %v3906_v16 = vpop.permute.xlu1 %3905  ;;  %v4022_v51 = vld [vmem:[#allocation4 + $0x70] sm:$0xff] }
 0x76f   :  { %3926 = vst.msk [vmem:[#allocation4 + $0x90] sm:$0xff] %vm3584_vm15, %v3906_v16  ;;  %v3984_v54 = vpop.permute.xlu0 %3983  ;;  %v4023_v63 = vld [vmem:[#allocation4 + $0x78] sm:$0xff] }
 0x770   :  { %4004 = vst.msk [vmem:[#allocation4 + $0x98] sm:$0xff] %vm3504_vm9, %v3984_v54  ;;  %5732 = vmatprep.mubr.msk.f32.mxu0 %vm3395_vm11, %v4023_v63 }
 0x771   :  { %4305 = vmatmul.mubr.f32.gmra.mxu0 %v4022_v51 }
 0x772   :  { %v3862_v59 = vpop.permute.xlu1 %3861 }
 0x773   :  { %v3829_v45 = vpop.permute.xlu0 %3828 }
 0x774   :  { %3848 = vst.msk [vmem:[#allocation4 + $0xb0] sm:$0xff] %vm3504_vm9, %v3829_v45 }
 0x775   :  { %3880 = vst.msk [vmem:[#allocation4 + $0xb0] sm:$0xff] %vm3552_vm3, %v3862_v59 }
 0x776   :  { %v3908_v28 = vpop.permute.xlu1 %3907  ;;  %v4026_v48 = vld [vmem:[#allocation4 + $0x90] sm:$0xff] }
 0x777   :  { %3927 = vst.msk [vmem:[#allocation4 + $0xb0] sm:$0xff] %vm3584_vm15, %v3908_v28  ;;  %v3986_v25 = vpop.permute.xlu0 %3985  ;;  %v4027_v58 = vld [vmem:[#allocation4 + $0x98] sm:$0xff] }
 0x778   :  { %4005 = vst.msk [vmem:[#allocation4 + $0xb8] sm:$0xff] %vm3504_vm9, %v3986_v25  ;;  %5733 = vmatprep.mubr.msk.f32.mxu0 %vm3395_vm11, %v4027_v58 }
 0x779   :  { %4310 = vmatmul.mubr.f32.gmra.mxu0 %v4026_v48 }
 0x77a   :  { %v3864_v21 = vpop.permute.xlu1 %3863 }
 0x77b   :  { %v3831_v15 = vpop.permute.xlu0 %3830 }
 0x77c   :  { %3849 = vst.msk [vmem:[#allocation4 + $0xd0] sm:$0xff] %vm3504_vm9, %v3831_v15 }
 0x77d   :  { %3881 = vst.msk [vmem:[#allocation4 + $0xd0] sm:$0xff] %vm3552_vm3, %v3864_v21 }
 0x77e   :  { %v3910_v2 = vpop.permute.xlu1 %3909  ;;  %v4030_v35 = vld [vmem:[#allocation4 + $0xb0] sm:$0xff] }
 0x77f   :  { %3928 = vst.msk [vmem:[#allocation4 + $0xd0] sm:$0xff] %vm3584_vm15, %v3910_v2  ;;  %v3988_v14 = vpop.permute.xlu0 %3987  ;;  %v4031_v41 = vld [vmem:[#allocation4 + $0xb8] sm:$0xff]  ;;  %vm4491_vm15 = vcmask 779776  }
 0x780   :  { %4006 = vst.msk [vmem:[#allocation4 + $0xd8] sm:$0xff] %vm3504_vm9, %v3988_v14  ;;  %5734 = vmatprep.mubr.msk.f32.mxu0 %vm3395_vm11, %v4031_v41  ;;  %v4958_v14 = vld [vmem:[%s10908_s5 + $0xf8] sm:$0xff]  ;;  %v4957_v41 = vld [vmem:[%s10908_s5 + $0xf0] sm:$0xff] }
 0x781   :  { %4315 = vmatmul.mubr.f32.gmra.mxu0 %v4030_v35  ;;  %v4956_v35 = vld [vmem:[%s10908_s5 + $0xe8] sm:$0xff]  ;;  %5239 = vmatprep.subr.mxu1 %v4958_v14  ;;  %v4937_v14 = vld [vmem:[%s10908_s5 + $0x50] sm:$0xff] }
 0x782   :  { %v3866_v1 = vpop.permute.xlu1 %3865  ;;  %5240 = vmatpush1.msra.mxu1 %v4957_v41  ;;  %v5002_v41 = vld [vmem:[%s10908_s5 + $0x258] sm:$0xff] }
 0x783   :  { %v3833_v22 = vpop.permute.xlu0 %3832  ;;  %5241 = vmatprep.subr.mxu1 %v4956_v35  ;;  %v4936_v35 = vld [vmem:[%s10908_s5 + $0x48] sm:$0xff] }
 0x784   :  { %3850 = vst.msk [vmem:[#allocation4 + $0xf0] sm:$0xff] %vm3504_vm9, %v3833_v22  ;;  %v5022_v22 = vld [vmem:[%s10908_s5 + $0x2f8] sm:$0xff]  ;;  %vm4460_vm9 = vcmask 1045509  }
 0x785   :  { %3882 = vst.msk [vmem:[#allocation4 + $0xf0] sm:$0xff] %vm3552_vm3, %v3866_v1  ;;  %5310 = vmatprep.subr.mxu0 %v5022_v22  ;;  %v5001_v22 = vld [vmem:[%s10908_s5 + $0x250] sm:$0xff]  ;;  %vm4477_vm3 = vcmask 517376  }
 0x786   :  { %v3912_v9 = vpop.permute.xlu1 %3911  ;;  %v4034_v7 = vld [vmem:[#allocation4 + $0xd0] sm:$0xff] }
 0x787   :  { %3929 = vst.msk [vmem:[#allocation4 + $0xf0] sm:$0x7f] %vm3924_vm10, %v3912_v9  ;;  %v3990_v42 = vpop.permute.xlu0 %3989  ;;  %v4035_v29 = vld [vmem:[#allocation4 + $0xd8] sm:$0xff]  ;;  %v4955_v9 = vld [vmem:[%s10908_s5 + $0xe0] sm:$0xff] }
 0x788   :  { %4007 = vst.msk [vmem:[#allocation4 + $0xf8] sm:$0x1f] %vm4002_vm4, %v3990_v42  ;;  %5735 = vmatprep.mubr.msk.f32.mxu0 %vm3395_vm11, %v4035_v29  ;;  %v5021_v42 = vld [vmem:[%s10908_s5 + $0x2f0] sm:$0xff]  ;;  %5242 = vmatpush1.msra.mxu1 %v4955_v9 }
 0x789   :  { %4320 = vmatmul.mubr.f32.gmra.mxu0 %v4034_v7  ;;  %v4954_v7 = vld [vmem:[%s10908_s5 + $0xd8] sm:$0xff] }
 0x78a   :  { %5311 = vmatpush1.msra.mxu0 %v5021_v42  ;;  %5243 = vmatprep.subr.mxu1 %v4954_v7  ;;  %v5000_v7 = vld [vmem:[%s10908_s5 + $0x248] sm:$0xff] }
 0x78e   :  { %v4038_v60 = vld [vmem:[#allocation4 + $0xf0] sm:$0xff] }
 0x78f   :  { %v4039_v49 = vld [vmem:[#allocation4 + $0xf8] sm:$0xff] }
 0x790   :  { %5736 = vmatprep.mubr.msk.f32.mxu0 %vm3395_vm11, %v4039_v49  ;;  %v5020_v49 = vld [vmem:[%s10908_s5 + $0x2e8] sm:$0xff]  ;;  %vm4458_vm11 = vcmask 1043459  }
 0x791   :  { %4325 = vmatmul.mubr.f32.gmra.mxu0 %v4038_v60  ;;  %5312 = vmatprep.subr.mxu0 %v5020_v49  ;;  %v4934_v49 = vld [vmem:[%s10908_s5 + $0x38] sm:$0xff] }
 0x7bd   :  { %v5801_v4 = vpop.f32.mrf.mxu0 }
 0x7bf   :  { %v5802_v43 = vpop.f32.mrf.mxu0 }
 0x7c0   :  { %v5803_v30 = vadd.f32 %v5802_v43, %v5801_v4  ;;  %v4953_v43 = vld [vmem:[%s10908_s5 + $0xd0] sm:$0xff] }
 0x7c1   :  { %5244 = vmatpush1.msra.mxu1 %v4953_v43 }
 0x7c9   :  { %v5804_v20 = vpop.f32.mrf.mxu0 }
 0x7cb   :  { %v5805_v38 = vpop.f32.mrf.mxu0 }
 0x7cc   :  { %v5806_v50 = vadd.f32 %v5805_v38, %v5804_v20  ;;  %v5018_v20 = vld [vmem:[%s10908_s5 + $0x2d8] sm:$0xff] }
 0x7d5   :  { %v5807_v18 = vpop.f32.mrf.mxu0 }
 0x7d7   :  { %v5808_v46 = vpop.f32.mrf.mxu0 }
 0x7d8   :  { %v5809_v40 = vadd.f32 %v5808_v46, %v5807_v18  ;;  %v5017_v18 = vld [vmem:[%s10908_s5 + $0x2d0] sm:$0xff] }
 0x7e1   :  { %v5810_v24 = vpop.f32.mrf.mxu0 }
 0x7e3   :  { %v5811_v11 = vpop.f32.mrf.mxu0 }
 0x7e4   :  { %v5812_v12 = vadd.f32 %v5811_v11, %v5810_v24  ;;  %v5016_v24 = vld [vmem:[%s10908_s5 + $0x2c8] sm:$0xff] }
 0x7ed   :  { %v5813_v52 = vpop.f32.mrf.mxu0 }
 0x7ef   :  { %v5814_v37 = vpop.f32.mrf.mxu0 }
 0x7f0   :  { %v5815_v15 = vadd.f32 %v5814_v37, %v5813_v52  ;;  %v5015_v52 = vld [vmem:[%s10908_s5 + $0x2c0] sm:$0xff]  ;;  %v4949_v37 = vld [vmem:[%s10908_s5 + $0xb0] sm:$0xff] }
 0x7f9   :  { %v9512_v55 = vpop.f32.mrf.mxu0 }
 0x7fb   :  { %v9514_v62 = vpop.f32.mrf.mxu0 }
 0x805   :  { %v9516_v19 = vpop.f32.mrf.mxu0 }
 0x807   :  { %v9518_v26 = vpop.f32.mrf.mxu0 }
 0x811   :  { %v9520_v57 = vpop.f32.mrf.mxu0 }
 0x813   :  { %v9522_v23 = vpop.f32.mrf.mxu0 }
 0x819   :  { %v4291_v36 = vpop.f32.mrf.mxu0 }
 0x81a   :  { %v9524_v3 = vadd.f32 %v5803_v30, %v4291_v36  ;;  %v5019_v30 = vld [vmem:[%s10908_s5 + $0x2e0] sm:$0xff]  ;;  %v5014_v36 = vld [vmem:[%s10908_s5 + $0x2b8] sm:$0xff] }
 0x81b   :  { %v4293_v10 = vpop.f32.mrf.mxu0  ;;  %5313 = vmatpush1.msra.mxu0 %v5019_v30 }
 0x81c   :  { %v4353_v47 = vmul.f32 %v9524_v3, %v9524_v3  ;;  %v4330_v27 = vsel %vm3204_vm0, %v9524_v3, 0.0  ;;  %5314 = vmatprep.subr.mxu0 %v5018_v20  ;;  %v4933_v20 = vld [vmem:[%s10908_s5 + $0x30] sm:$0xff] }
 0x81d   :  { %5315 = vmatpush1.msra.mxu0 %v5017_v18 }
 0x81e   :  { %v4361_v6 = vsel %vm3204_vm0, %v4353_v47, 0.0  ;;  %5316 = vmatprep.subr.mxu0 %v5016_v24  ;;  %v5013_v47 = vld [vmem:[%s10908_s5 + $0x2b0] sm:$0xff] }
 0x81f   :  { %5317 = vmatpush1.msra.mxu0 %v5015_v52 }
 0x820   :  { %5318 = vmatprep.subr.mxu0 %v5014_v36 }
 0x821   :  { %v4296_v13 = vpop.f32.mrf.mxu0  ;;  %5319 = vmatpush1.msra.mxu0 %v5013_v47 }
 0x822   :  { %v9528_v56 = vadd.f32 %v5806_v50, %v4296_v13  ;;  %v4952_v50 = vld [vmem:[%s10908_s5 + $0xc8] sm:$0xff] }
 0x823   :  { %v4298_v8 = vpop.f32.mrf.mxu0  ;;  %5245 = vmatprep.subr.mxu1 %v4952_v50  ;;  %v4948_v13 = vld [vmem:[%s10908_s5 + $0xa8] sm:$0xff]  ;;  %v4998_v50 = vld [vmem:[%s10908_s5 + $0x238] sm:$0xff] }
 0x824   :  { %v4331_v39 = vsel %vm3204_vm0, %v9528_v56, 0.0  ;;  %v4354_v33 = vmul.f32 %v9528_v56, %v9528_v56  ;;  %v4947_v8 = vld [vmem:[%s10908_s5 + $0xa0] sm:$0xff] }
 0x825   :  { %v4332_v32 = vadd.f32 %v4331_v39, %v4330_v27  ;;  %v5012_v27 = vld [vmem:[%s10908_s5 + $0x2a8] sm:$0xff] }
 0x826   :  { %v4362_v53 = vsel %vm3204_vm0, %v4354_v33, 0.0  ;;  %v4946_v33 = vld [vmem:[%s10908_s5 + $0x98] sm:$0xff]  ;;  %5320 = vmatprep.subr.mxu0 %v5012_v27 }
 0x827   :  { %v4363_v44 = vadd.f32 %v4362_v53, %v4361_v6  ;;  %v4945_v6 = vld [vmem:[%s10908_s5 + $0x90] sm:$0xff]  ;;  %v5010_v53 = vld [vmem:[%s10908_s5 + $0x298] sm:$0xff] }
 0x829   :  { %v4301_v17 = vpop.f32.mrf.mxu0 }
 0x82a   :  { %v9538_v5 = vadd.f32 %v5809_v40, %v4301_v17  ;;  %v4951_v40 = vld [vmem:[%s10908_s5 + $0xc0] sm:$0xff]  ;;  %v5009_v17 = vld [vmem:[%s10908_s5 + $0x290] sm:$0xff] }
 0x82b   :  { %v4303_v34 = vpop.f32.mrf.mxu0  ;;  %5246 = vmatpush1.msra.mxu1 %v4951_v40 }
 0x82c   :  { %v4333_v61 = vsel %vm3204_vm0, %v9538_v5, 0.0  ;;  %v4355_v0 = vmul.f32 %v9538_v5, %v9538_v5  ;;  %v5818_v34 = vadd.f32 %v9514_v62, %v9512_v55  ;;  %v5007_v55 = vld [vmem:[%s10908_s5 + $0x280] sm:$0xff]  ;;  %v5821_v62 = vadd.f32 %v9518_v26, %v9516_v19  ;;  %v5005_v19 = vld [vmem:[%s10908_s5 + $0x270] sm:$0xff] }
 0x82d   :  { %v4334_v16 = vadd.f32 %v4333_v61, %v4332_v32  ;;  %v5011_v32 = vld [vmem:[%s10908_s5 + $0x2a0] sm:$0xff] }
 0x82e   :  { %v4364_v54 = vsel %vm3204_vm0, %v4355_v0, 0.0  ;;  %5321 = vmatpush1.msra.mxu0 %v5011_v32  ;;  %v4943_v61 = vld [vmem:[%s10908_s5 + $0x80] sm:$0xff]  ;;  %v5008_v0 = vld [vmem:[%s10908_s5 + $0x288] sm:$0xff] }
 0x82f   :  { %v4365_v63 = vadd.f32 %v4364_v54, %v4363_v44  ;;  %v4944_v44 = vld [vmem:[%s10908_s5 + $0x88] sm:$0xff]  ;;  %5322 = vmatprep.subr.mxu0 %v5010_v53 }
 0x830   :  { %5323 = vmatpush1.msra.mxu0 %v5009_v17 }
 0x831   :  { %v4306_v51 = vpop.f32.mrf.mxu0  ;;  %5324 = vmatprep.subr.mxu0 %v5008_v0 }
 0x832   :  { %v9545_v59 = vadd.f32 %v5812_v12, %v4306_v51  ;;  %v4950_v12 = vld [vmem:[%s10908_s5 + $0xb8] sm:$0xff]  ;;  %5325 = vmatpush1.msra.mxu0 %v5007_v55 }
 0x833   :  { %v4308_v45 = vpop.f32.mrf.mxu0  ;;  %5247 = vmatprep.subr.mxu1 %v4950_v12  ;;  %v5006_v51 = vld [vmem:[%s10908_s5 + $0x278] sm:$0xff]  ;;  %v4996_v12 = vld [vmem:[%s10908_s5 + $0x228] sm:$0xff] }
 0x834   :  { %v4335_v28 = vsel %vm3204_vm0, %v9545_v59, 0.0  ;;  %v4356_v25 = vmul.f32 %v9545_v59, %v9545_v59  ;;  %5248 = vmatpush1.msra.mxu1 %v4949_v37  ;;  %5326 = vmatprep.subr.mxu0 %v5006_v51 }
 0x835   :  { %v4336_v58 = vadd.f32 %v4335_v28, %v4334_v16  ;;  %5249 = vmatprep.subr.mxu1 %v4948_v13  ;;  %v4942_v16 = vld [vmem:[%s10908_s5 + $0x78] sm:$0xff]  ;;  %v4940_v28 = vld [vmem:[%s10908_s5 + $0x68] sm:$0xff]  ;;  %5327 = vmatpush1.msra.mxu0 %v5005_v19  ;;  %v4995_v13 = vld [vmem:[%s10908_s5 + $0x220] sm:$0xff] }
 0x836   :  { %v4366_v48 = vsel %vm3204_vm0, %v4356_v25, 0.0  ;;  %5250 = vmatpush1.msra.mxu1 %v4947_v8  ;;  %v4939_v25 = vld [vmem:[%s10908_s5 + $0x60] sm:$0xff] }
 0x837   :  { %v4367_v21 = vadd.f32 %v4366_v48, %v4365_v63  ;;  %5251 = vmatprep.subr.mxu1 %v4946_v33  ;;  %v4941_v63 = vld [vmem:[%s10908_s5 + $0x70] sm:$0xff] }
 0x838   :  { %5252 = vmatpush1.msra.mxu1 %v4945_v6 }
 0x839   :  { %v4311_v2 = vpop.f32.mrf.mxu0  ;;  %5253 = vmatprep.subr.mxu1 %v4944_v44 }
 0x83a   :  { %v9561_v1 = vadd.f32 %v5815_v15, %v4311_v2  ;;  %5254 = vmatpush1.msra.mxu1 %v4943_v61  ;;  %v5003_v15 = vld [vmem:[%s10908_s5 + $0x260] sm:$0xff] }
 0x83b   :  { %v4313_v29 = vpop.f32.mrf.mxu0  ;;  %5255 = vmatprep.subr.mxu1 %v4942_v16 }
 0x83c   :  { %v4337_v60 = vsel %vm3204_vm0, %v9561_v1, 0.0  ;;  %v4357_v4 = vmul.f32 %v9561_v1, %v9561_v1  ;;  %5256 = vmatpush1.msra.mxu1 %v4941_v63  ;;  %v4935_v29 = vld [vmem:[%s10908_s5 + $0x40] sm:$0xff] }
 0x83d   :  { %v9591_v38 = vadd.f32 %v4337_v60, %v4336_v58  ;;  %v5004_v58 = vld [vmem:[%s10908_s5 + $0x268] sm:$0xff]  ;;  %5257 = vmatprep.subr.mxu1 %v4940_v28  ;;  %v4999_v60 = vld [vmem:[%s10908_s5 + $0x240] sm:$0xff] }
 0x83e   :  { %v4368_v46 = vsel %vm3204_vm0, %v4357_v4, 0.0  ;;  %5258 = vmatpush1.msra.mxu1 %v4939_v25  ;;  %5328 = vmatprep.subr.mxu0 %v5004_v58  ;;  %v5824_v4 = vadd.f32 %v9522_v23, %v9520_v57  ;;  %v4932_v57 = vld [vmem:[%s10908_s5 + $0x28] sm:$0xff]  ;;  %v4997_v23 = vld [vmem:[%s10908_s5 + $0x230] sm:$0xff] }
 0x83f   :  { %v9606_v11 = vadd.f32 %v4368_v46, %v4367_v21  ;;  %v4938_v21 = vld [vmem:[%s10908_s5 + $0x58] sm:$0xff]  ;;  %5329 = vmatpush1.msra.mxu0 %v5003_v15 }
 0x840   :  { %5259 = vmatprep.subr.mxu1 %v4938_v21  ;;  %5330 = vmatprep.subr.mxu0 %v5002_v41 }
 0x841   :  { %v4316_v10 = vpop.f32.mrf.mxu0  ;;  %5260 = vmatpush1.msra.mxu1 %v4937_v14  ;;  %5331 = vmatpush1.msra.mxu0 %v5001_v22  ;;  %v5935_v22 = vmov 1983009808  }
 0x842   :  { %v9666_v54 = vadd.f32 %v5818_v34, %v4316_v10  ;;  %5261 = vmatprep.subr.mxu1 %v4936_v35  ;;  %5332 = vmatprep.subr.mxu0 %v5000_v7  ;;  %v4930_v10 = vld [vmem:[%s10908_s5 + $0x18] sm:$0xff] }
 0x843   :  { %v4318_v39 = vpop.f32.mrf.mxu0  ;;  %5262 = vmatpush1.msra.mxu1 %v4935_v29  ;;  %5333 = vmatpush1.msra.mxu0 %v4999_v60 }
 0x844   :  { %v4358_v2 = vmul.f32 %v9666_v54, %v9666_v54  ;;  %v4339_v9 = vsel %vm3204_vm0, %v9666_v54, 0.0  ;;  %5263 = vmatprep.subr.mxu1 %v4934_v49  ;;  %5334 = vmatprep.subr.mxu0 %v4998_v50 }
 0x845   :  { %v4340_v18 = vadd.f32 %v4339_v9, %v9591_v38  ;;  %v4931_v38 = vld [vmem:[%s10908_s5 + $0x20] sm:$0xff]  ;;  %5264 = vmatpush1.msra.mxu1 %v4933_v20  ;;  %5335 = vmatpush1.msra.mxu0 %v4997_v23  ;;  %v4438_v9 = vunpack.c.l.s4 %v5935_v22 }
 0x846   :  { %v4370_v43 = vsel %vm3204_vm0, %v4358_v2, 0.0  ;;  %5265 = vmatprep.subr.mxu1 %v4932_v57  ;;  %5336 = vmatprep.subr.mxu0 %v4996_v12  ;;  %v4928_v12 = vld [vmem:[%s10908_s5 + $0x8] sm:$0xff] }
 0x847   :  { %v4371_v52 = vadd.f32 %v4370_v43, %v9606_v11  ;;  %v4929_v11 = vld [vmem:[%s10908_s5 + $0x10] sm:$0xff]  ;;  %5266 = vmatpush1.msra.mxu1 %v4931_v38  ;;  %5337 = vmatpush1.msra.mxu0 %v4995_v13  ;;  %v4439_v29 = vunpack.c.0.s8 %v4438_v9 }
 0x848   :  { %5267 = vmatprep.subr.mxu1 %v4930_v10 }
 0x849   :  { %v4321_v45 = vpop.f32.mrf.mxu0  ;;  %5268 = vmatpush1.msra.mxu1 %v4929_v11 }
 0x84a   :  { %v9680_v26 = vadd.f32 %v5821_v62, %v4321_v45  ;;  %5269 = vmatprep.subr.mxu1 %v4928_v12 }
 0x84b   :  { %v4323_v48 = vpop.f32.mrf.mxu0 }
 0x84c   :  { %v4359_v42 = vmul.f32 %v9680_v26, %v9680_v26  ;;  %v4341_v30 = vsel %vm3204_vm0, %v9680_v26, 0.0 }
 0x84d   :  { %v4342_v37 = vadd.f32 %v4341_v30, %v4340_v18 }
 0x84e   :  { %v4372_v40 = vsel %vm3204_vm0, %v4359_v42, 0.0  ;;  %v4440_v42 = vlaneseq }
 0x84f   :  { %v4373_v27 = vadd.f32 %v4372_v40, %v4371_v52  ;;  %v4994_v52 = vld [vmem:[%s10908_s5 + $0x218] sm:$0xff] }
 0x850   :  { %v9768_v7 = vshrl.u32 %v4440_v42, 7  ;;  %5338 = vmatprep.subr.mxu0 %v4994_v52 }
 0x851   :  { %v4326_v46 = vpop.f32.mrf.mxu0 }
 0x852   :  { %v4327_v24 = vadd.f32 %v5824_v4, %v4326_v46  ;;  %v5738_v4 = vld [vmem:[%s10906_s7 + $0x5] ss:$0 sm:$0xff] }
 0x853   :  { %v4328_v36 = vpop.f32.mrf.mxu0 }
 0x854   :  { %v4343_v47 = vsel %vm3204_vm0, %v4327_v24, 0.0  ;;  %v4360_v8 = vmul.f32 %v4327_v24, %v4327_v24 }
 0x855   :  { %v4344_v39 = vadd.f32 %v4343_v47, %v4342_v37  ;;  %v4927_v37 = vld [vmem:[%s10908_s5] sm:$0xff] }
 0x856   :  { %v4374_v33 = vsel %vm3204_vm0, %v4360_v8, 0.0  ;;  %vm4456_vm0 = vcmask 1041409   ;;  %v4993_v8 = vld [vmem:[%s10908_s5 + $0x210] sm:$0xff]  ;;  %5270 = vmatpush1.msra.mxu1 %v4927_v37  ;;  %v4983_v37 = vld [vmem:[%s10908_s5 + $0x1c0] sm:$0xff] }
 0x857   :  { %v4345_v32 = vrot.slane %v4344_v39, 4  ;;  %v4375_v6 = vadd.f32 %v4374_v33, %v4373_v27  ;;  %5339 = vmatpush1.msra.mxu0 %v4993_v8 }
 0x859   :  { %v4346_v53 = vadd.f32 %v4345_v32, %v4344_v39  ;;  %v4376_v44 = vrot.slane %v4375_v6, 4 }
 0x85b   :  { %v4347_v17 = vrot.slane %v4346_v53, 2  ;;  %v4377_v34 = vadd.f32 %v4376_v44, %v4375_v6 }
 0x85d   :  { %v4348_v61 = vadd.f32 %v4347_v17, %v4346_v53  ;;  %v4378_v0 = vrot.slane %v4377_v34, 2  ;;  %v4990_v17 = vld [vmem:[%s10908_s5 + $0x1f8] sm:$0xff] }
 0x85e   :  { %5271 = vmatprep.subr.mxu1 %v4990_v17 }
 0x85f   :  { %v4349_v16 = vrot.slane %v4348_v61, 1  ;;  %v4379_v55 = vadd.f32 %v4378_v0, %v4377_v34  ;;  %v4992_v34 = vld [vmem:[%s10908_s5 + $0x208] sm:$0xff] }
 0x860   :  { %5340 = vmatprep.subr.mxu0 %v4992_v34  ;;  %v5048_v34 = vld [vmem:[%s10908_s5 + $0x3c8] sm:$0xff] }
 0x861   :  { %v4350_v62 = vadd.f32 %v4349_v16, %v4348_v61  ;;  %v4380_v63 = vrot.slane %v4379_v55, 1 }
 0x863   :  { %v4352_v51 = vmul.f32 0.015625, %v4350_v62  ;;  %v4381_v45 = vadd.f32 %v4380_v63, %v4379_v55  ;;  %v4989_v62 = vld [vmem:[%s10908_s5 + $0x1f0] sm:$0xff]  ;;  %v4991_v63 = vld [vmem:[%s10908_s5 + $0x200] sm:$0xff] }
 0x864   :  { %5272 = vmatpush2.msra.mxu1 %v4989_v62  ;;  %5341 = vmatpush1.msra.mxu0 %v4991_v63 }
 0x865   :  { %v4382_v28 = vmul.f32 0.015625, %v4381_v45  ;;  %v4383_v19 = vmul.f32 %v4352_v51, %v4352_v51  ;;  %v4392_v25 = vsub.f32 %v4327_v24, %v4352_v51  ;;  %v4385_v58 = vsub.f32 %v9524_v3, %v4352_v51 }
 0x866   :  { %v4389_v48 = vsub.f32 %v9561_v1, %v4352_v51  ;;  %v4386_v21 = vsub.f32 %v9528_v56, %v4352_v51  ;;  %v4387_v15 = vsub.f32 %v9538_v5, %v4352_v51  ;;  %v4391_v14 = vsub.f32 %v9680_v26, %v4352_v51  ;;  %v5737_v56 = vld [vmem:[%s10906_s7 + $0x4] ss:$0 sm:$0xff] }
 0x867   :  { %v4384_v2 = vsub.f32 %v4382_v28, %v4383_v19  ;;  %v4388_v41 = vsub.f32 %v9545_v59, %v4352_v51  ;;  %v9774_v5 = vsub.s32 %v4439_v29, %v9768_v7  ;;  %v4390_v1 = vsub.f32 %v9666_v54, %v4352_v51 }
 0x869   :  { %v4393_v35 = vadd.f32 1e-05, %v4384_v2 }
 0x86b   :  { %5899 = vrsqrt.f32 %v4393_v35 }
 0x878   :  { %v5900_v3 = vpop.eup %5899 }
 0x879   :  { %v4402_v59 = vmul.f32 %v5900_v3, %v4392_v25  ;;  %v4395_v26 = vmul.f32 %v5900_v3, %v4385_v58  ;;  %v4399_v49 = vmul.f32 %v5900_v3, %v4389_v48  ;;  %v4396_v60 = vmul.f32 %v5900_v3, %v4386_v21  ;;  %v4988_v25 = vld [vmem:[%s10908_s5 + $0x1e8] sm:$0xff]  ;;  %v5054_v58 = vld [vmem:[%s10908_s5 + $0x3f8] sm:$0xff]  ;;  %v4987_v48 = vld [vmem:[%s10908_s5 + $0x1e0] sm:$0xff] }
 0x87a   :  { %v4400_v43 = vmul.f32 %v5900_v3, %v4390_v1  ;;  %v4397_v30 = vmul.f32 %v5900_v3, %v4387_v15  ;;  %v4401_v20 = vmul.f32 %v5900_v3, %v4391_v14  ;;  %v4398_v50 = vmul.f32 %v5900_v3, %v4388_v41  ;;  %v5053_v41 = vld [vmem:[%s10908_s5 + $0x3f0] sm:$0xff]  ;;  %5273 = vmatprep.subr.mxu1 %v4988_v25  ;;  %v4986_v3 = vld [vmem:[%s10908_s5 + $0x1d8] sm:$0xff] }
 0x87b   :  { %v4414_v18 = vmul.f32 %v5737_v56, %v4402_v59  ;;  %v4407_v46 = vmul.f32 %v5737_v56, %v4395_v26  ;;  %v4411_v57 = vmul.f32 %v5737_v56, %v4399_v49  ;;  %v4408_v23 = vmul.f32 %v5737_v56, %v4396_v60  ;;  %5342 = vmatprep.subr.mxu0 %v5054_v58  ;;  %v4985_v1 = vld [vmem:[%s10908_s5 + $0x1d0] sm:$0xff]  ;;  %v5047_v58 = vld [vmem:[%s10908_s5 + $0x3c0] sm:$0xff] }
 0x87c   :  { %v4412_v54 = vmul.f32 %v5737_v56, %v4400_v43  ;;  %v4409_v40 = vmul.f32 %v5737_v56, %v4397_v30  ;;  %v4413_v24 = vmul.f32 %v5737_v56, %v4401_v20  ;;  %v4410_v38 = vmul.f32 %v5737_v56, %v4398_v50  ;;  %v5052_v56 = vld [vmem:[%s10908_s5 + $0x3e8] sm:$0xff]  ;;  %5274 = vmatpush2.msra.mxu1 %v4987_v48  ;;  %v4981_v25 = vld [vmem:[%s10908_s5 + $0x1b0] sm:$0xff] }
 0x87d   :  { %v4426_v36 = vadd.f32 %v5738_v4, %v4414_v18  ;;  %v4419_v10 = vadd.f32 %v5738_v4, %v4407_v46  ;;  %v4423_v13 = vadd.f32 %v5738_v4, %v4411_v57  ;;  %v4420_v47 = vadd.f32 %v5738_v4, %v4408_v23  ;;  %5343 = vmatpush2.msra.mxu0 %v5053_v41  ;;  %v4984_v43 = vld [vmem:[%s10908_s5 + $0x1c8] sm:$0xff]  ;;  %v5050_v46 = vld [vmem:[%s10908_s5 + $0x3d8] sm:$0xff] }
 0x87e   :  { %v4424_v11 = vadd.f32 %v5738_v4, %v4412_v54  ;;  %v4421_v27 = vadd.f32 %v5738_v4, %v4409_v40  ;;  %v4425_v39 = vadd.f32 %v5738_v4, %v4413_v24  ;;  %v4422_v33 = vadd.f32 %v5738_v4, %v4410_v38  ;;  %v5051_v4 = vld [vmem:[%s10908_s5 + $0x3e0] sm:$0xff]  ;;  %5275 = vmatprep.subr.mxu1 %v4986_v3 }
 0x87f   :  { %v4434_v32 = vmax.f32 %v4426_v36, 0.0  ;;  %v4427_v6 = vmax.f32 %v4419_v10, 0.0  ;;  %v4431_v53 = vmax.f32 %v4423_v13, 0.0  ;;  %v4428_v44 = vmax.f32 %v4420_v47, 0.0  ;;  %5344 = vmatprep.subr.mxu0 %v5052_v56  ;;  %5276 = vmatpush2.msra.mxu1 %v4985_v1  ;;  %v5049_v36 = vld [vmem:[%s10908_s5 + $0x3d0] sm:$0xff] }
 0x880   :  { %v4432_v61 = vmax.f32 %v4424_v11, 0.0  ;;  %v9798_v0 = vmax.f32 %v4421_v27, 0.0  ;;  %v9800_v16 = vmax.f32 %v4425_v39, 0.0  ;;  %v9802_v55 = vmax.f32 %v4422_v33, 0.0  ;;  %5345 = vmatpush2.msra.mxu0 %v5051_v4  ;;  %5277 = vmatprep.subr.mxu1 %v4984_v43  ;;  %v4982_v11 = vld [vmem:[%s10908_s5 + $0x1b8] sm:$0xff] }
 0x881   :  { %v9811_v51 = vrot.slane %v4434_v32, %v9774_v5  ;;  %v4873_v45 = vcombine.high %v4434_v32, %v4434_v32  ;;  %v9814_v28 = vrot.slane %v4427_v6, %v9774_v5  ;;  %v9817_v19 = vrot.slane %v4431_v53, %v9774_v5  ;;  %5346 = vmatprep.subr.mxu0 %v5050_v46 }
 0x882   :  { %v4505_v21 = vcombine.high %v4427_v6, %v4427_v6  ;;  %v4513_v15 = vcombine.high %v4431_v53, %v4431_v53  ;;  %v9829_v2 = vrot.slane %v4428_v44, %v9774_v5  ;;  %v9832_v14 = vrot.slane %v4432_v61, %v9774_v5  ;;  %5278 = vmatpush2.msra.mxu1 %v4983_v37 }
 0x883   :  { %v9838_v35 = vrot.slane %v4873_v45, %v9774_v5  ;;  %v4467_v22 = vrot.slane %v9814_v28, 1  ;;  %v4625_v9 = vcombine.high %v4428_v44, %v4428_v44  ;;  %v4633_v29 = vcombine.high %v4432_v61, %v4432_v61  ;;  %5347 = vmatpush2.msra.mxu0 %v5049_v36  ;;  %5279 = vmatprep.subr.mxu1 %v4982_v11 }
 0x884   :  { %v9851_v59 = vrot.slane %v4505_v21, %v9774_v5  ;;  %v9854_v26 = vrot.slane %v4513_v15, %v9774_v5  ;;  %v4590_v49 = vrot.slane %v9829_v2, 1  ;;  %v9859_v60 = vcombine.high %v9814_v28, %v9814_v28  ;;  %5348 = vmatprep.subr.mxu0 %v5048_v34  ;;  %5280 = vmatpush2.msra.mxu1 %v4981_v25 }
 0x885   :  { %v4470_v30 = vsel %vm4456_vm0, %v9817_v19, %v4467_v22  ;;  %v9870_v20 = vrot.slane %v4625_v9, %v9774_v5  ;;  %v9873_v50 = vrot.slane %v4633_v29, %v9774_v5  ;;  %v9877_v18 = vcombine.high %v9817_v19, %v9817_v19  ;;  %v4980_v22 = vld [vmem:[%s10908_s5 + $0x1a8] sm:$0xff]  ;;  %v5046_v9 = vld [vmem:[%s10908_s5 + $0x3b8] sm:$0xff]  ;;  %5349 = vmatpush2.msra.mxu0 %v5047_v58 }
 0x886   :  { %v4471_v57 = vsel %vm4458_vm11, %v9817_v19, %v4470_v30  ;;  %v4530_v23 = vrot.slane %v9851_v59, 1  ;;  %v4593_v54 = vsel %vm4456_vm0, %v9832_v14, %v4590_v49  ;;  %v9889_v40 = vcombine.high %v9851_v59, %v9851_v59  ;;  %5281 = vmatprep.subr.mxu1 %v4980_v22  ;;  %5350 = vmatprep.subr.mxu0 %v5046_v9 }
 0x887   :  { %v4472_v24 = vsel %vm4460_vm9, %v9817_v19, %v4471_v57  ;;  %v4594_v38 = vsel %vm4458_vm11, %v9832_v14, %v4593_v54  ;;  %v4650_v12 = vrot.slane %v9870_v20, 1  ;;  %v4483_v52 = vrot.slane %v9877_v18, 7 }
 0x888   :  { %v4473_v10 = vsel %vm4462_vm8, %v9817_v19, %v4472_v24  ;;  %v4533_v13 = vsel %vm4456_vm0, %v9854_v26, %v4530_v23  ;;  %v4595_v47 = vsel %vm4460_vm9, %v9832_v14, %v4594_v38  ;;  %v9911_v8 = vcombine.high %v9854_v26, %v9854_v26 }
 0x889   :  { %4474 = vrot.lane.b32.xlu0 %v4473_v10, %s5929_s17  ;;  %v4534_v27 = vsel %vm4458_vm11, %v9854_v26, %v4533_v13  ;;  %v4596_v39 = vsel %vm4462_vm8, %v9832_v14, %v4595_v47  ;;  %v4653_v33 = vsel %vm4456_vm0, %v9873_v50, %v4650_v12  ;;  %v4484_v32 = vsel %vm4456_vm0, %v4483_v52, %v9859_v60 }
 0x88a   :  { %v4535_v6 = vsel %vm4460_vm9, %v9854_v26, %v4534_v27  ;;  %v4654_v53 = vsel %vm4458_vm11, %v9873_v50, %v4653_v33  ;;  %v4485_v44 = vsel %vm4458_vm11, %v4483_v52, %v4484_v32  ;;  %v4545_v17 = vrot.slane %v9911_v8, 7 }
 0x88b   :  { %v4536_v61 = vsel %vm4462_vm8, %v9854_v26, %v4535_v6  ;;  %v4655_v62 = vsel %vm4460_vm9, %v9873_v50, %v4654_v53  ;;  %v4486_v63 = vsel %vm4460_vm9, %v4483_v52, %v4485_v44  ;;  %v4601_v45 = vcombine.high %v9829_v2, %v9829_v2  ;;  %v4978_v44 = vld [vmem:[%s10908_s5 + $0x198] sm:$0xff] }
 0x88c   :  { %4537 = vrot.lane.b32.xlu1 %v4536_v61, %s5929_s17  ;;  %v4656_v48 = vsel %vm4462_vm8, %v9873_v50, %v4655_v62  ;;  %v4487_v21 = vsel %vm4462_vm8, %v4483_v52, %v4486_v63  ;;  %v4546_v15 = vsel %vm4456_vm0, %v4545_v17, %v9889_v40  ;;  %v4602_v41 = vcombine.high %v9832_v14, %v9832_v14  ;;  %v5045_v52 = vld [vmem:[%s10908_s5 + $0x3b0] sm:$0xff] }
 0x88d   :  { %4597 = vrot.lane.b32.xlu0 %v4596_v39, %s5929_s17  ;;  %v4547_v29 = vsel %vm4458_vm11, %v4545_v17, %v4546_v15  ;;  %v4661_v3 = vcombine.high %v9870_v20, %v9870_v20  ;;  %v4662_v56 = vcombine.high %v9873_v50, %v9873_v50  ;;  %v4493_v1 = vrot.slane %v9859_v60, 1  ;;  %v4979_v60 = vld [vmem:[%s10908_s5 + $0x1a0] sm:$0xff]  ;;  %5351 = vmatpush2.msra.mxu0 %v5045_v52  ;;  %v4977_v62 = vld [vmem:[%s10908_s5 + $0x190] sm:$0xff] }
 0x88e   :  { %v4548_v49 = vsel %vm4460_vm9, %v4545_v17, %v4547_v29  ;;  %v4605_v4 = vrot.slane %v4602_v41, 7  ;;  %v4554_v43 = vrot.slane %v9889_v40, 1  ;;  %v4614_v30 = vrot.slane %v4601_v45, 1  ;;  %5282 = vmatpush2.msra.mxu1 %v4979_v60 }
 0x88f   :  { %v4549_v46 = vsel %vm4462_vm8, %v4545_v17, %v4548_v49  ;;  %v4665_v57 = vrot.slane %v4662_v56, 7  ;;  %v4496_v23 = vsel %vm4456_vm0, %v9877_v18, %v4493_v1  ;;  %v4674_v54 = vrot.slane %v4661_v3, 1  ;;  %5283 = vmatprep.subr.mxu1 %v4978_v44  ;;  %v5042_v1 = vld [vmem:[%s10908_s5 + $0x398] sm:$0xff]  ;;  %v4975_v49 = vld [vmem:[%s10908_s5 + $0x180] sm:$0xff] }
 0x890   :  { %4657 = vrot.lane.b32.xlu1 %v4656_v48, %s5929_s17  ;;  %v4606_v40 = vsel %vm4456_vm0, %v4605_v4, %v4601_v45  ;;  %v4497_v24 = vsel %vm4458_vm11, %v9877_v18, %v4496_v23  ;;  %v4557_v38 = vsel %vm4456_vm0, %v9911_v8, %v4554_v43  ;;  %v4617_v12 = vsel %vm4456_vm0, %v4602_v41, %v4614_v30  ;;  %v5043_v48 = vld [vmem:[%s10908_s5 + $0x3a0] sm:$0xff]  ;;  %v5041_v30 = vld [vmem:[%s10908_s5 + $0x390] sm:$0xff] }
 0x891   :  { %4488 = vrot.lane.b32.xlu0 %v4487_v21, %s5931_s24  ;;  %v4607_v37 = vsel %vm4458_vm11, %v4605_v4, %v4606_v40  ;;  %v4666_v36 = vsel %vm4456_vm0, %v4665_v57, %v4661_v3  ;;  %v4498_v10 = vsel %vm4460_vm9, %v9877_v18, %v4497_v24  ;;  %v4558_v13 = vsel %vm4458_vm11, %v9911_v8, %v4557_v38  ;;  %v5040_v40 = vld [vmem:[%s10908_s5 + $0x388] sm:$0xff] }
 0x892   :  { %v4608_v47 = vsel %vm4460_vm9, %v4605_v4, %v4607_v37  ;;  %v4667_v11 = vsel %vm4458_vm11, %v4665_v57, %v4666_v36  ;;  %v4499_v27 = vsel %vm4462_vm8, %v9877_v18, %v4498_v10  ;;  %v4559_v39 = vsel %vm4460_vm9, %v9911_v8, %v4558_v13  ;;  %v5044_v18 = vld [vmem:[%s10908_s5 + $0x3a8] sm:$0xff]  ;;  %5284 = vmatpush2.msra.mxu1 %v4977_v62 }
 0x893   :  { %v4609_v33 = vsel %vm4462_vm8, %v4605_v4, %v4608_v47  ;;  %v4668_v32 = vsel %vm4460_vm9, %v4665_v57, %v4667_v11  ;;  %v4560_v6 = vsel %vm4462_vm8, %v9911_v8, %v4559_v39  ;;  %v4618_v53 = vsel %vm4458_vm11, %v4602_v41, %v4617_v12  ;;  %5352 = vmatprep.subr.mxu0 %v5044_v18  ;;  %v4973_v47 = vld [vmem:[%s10908_s5 + $0x170] sm:$0xff] }
 0x894   :  { %4550 = vrot.lane.b32.xlu1 %v4549_v46, %s5931_s24  ;;  %v4669_v17 = vsel %vm4462_vm8, %v4665_v57, %v4668_v32  ;;  %v4619_v34 = vsel %vm4460_vm9, %v4602_v41, %v4618_v53  ;;  %v4677_v61 = vsel %vm4456_vm0, %v4662_v56, %v4674_v54  ;;  %v10016_v8 = vrot.slane %v9798_v0, %v9774_v5  ;;  %v4974_v46 = vld [vmem:[%s10908_s5 + $0x178] sm:$0xff]  ;;  %v5039_v32 = vld [vmem:[%s10908_s5 + $0x380] sm:$0xff] }
 0x895   :  { %4610 = vrot.lane.b32.xlu0 %v4609_v33, %s5931_s24  ;;  %v4620_v63 = vsel %vm4462_vm8, %v4602_v41, %v4619_v34  ;;  %v4678_v45 = vsel %vm4458_vm11, %v4662_v56, %v4677_v61  ;;  %v10026_v25 = vrot.slane %v9800_v16, %v9774_v5  ;;  %v4745_v58 = vcombine.high %v9798_v0, %v9798_v0  ;;  %v4976_v0 = vld [vmem:[%s10908_s5 + $0x188] sm:$0xff] }
 0x896   :  { %v4679_v21 = vsel %vm4460_vm9, %v4662_v56, %v4678_v45  ;;  %v4710_v15 = vrot.slane %v10016_v8, 1  ;;  %v4753_v41 = vcombine.high %v9800_v16, %v9800_v16  ;;  %v10039_v22 = vrot.slane %v9802_v55, %v9774_v5  ;;  %5353 = vmatpush2.msra.mxu0 %v5043_v48  ;;  %5285 = vmatprep.subr.mxu1 %v4976_v0 }
 0x897   :  { %v4680_v9 = vsel %vm4462_vm8, %v4662_v56, %v4679_v21  ;;  %v10046_v29 = vrot.slane %v4745_v58, %v9774_v5  ;;  %v4865_v3 = vcombine.high %v9802_v55, %v9802_v55  ;;  %v10052_v16 = vcombine.high %v10016_v8, %v10016_v8  ;;  %5354 = vmatprep.subr.mxu0 %v5042_v1 }
 0x898   :  { %4670 = vrot.lane.b32.xlu1 %v4669_v17, %s5931_s24  ;;  %v4713_v56 = vsel %vm4456_vm0, %v10026_v25, %v4710_v15  ;;  %v10064_v55 = vrot.slane %v4753_v41, %v9774_v5  ;;  %v4830_v4 = vrot.slane %v10039_v22, 1  ;;  %v10069_v43 = vcombine.high %v10026_v25, %v10026_v25  ;;  %5286 = vmatpush2.msra.mxu1 %v4975_v49  ;;  %v5038_v15 = vld [vmem:[%s10908_s5 + $0x378] sm:$0xff]  ;;  %v4971_v41 = vld [vmem:[%s10908_s5 + $0x160] sm:$0xff] }
 0x899   :  { %4500 = vrot.lane.b32.xlu0 %v4499_v27, %s5933_s23  ;;  %v4714_v57 = vsel %vm4458_vm11, %v10026_v25, %v4713_v56  ;;  %v4770_v23 = vrot.slane %v10046_v29, 1  ;;  %v10082_v54 = vrot.slane %v4865_v3, %v9774_v5  ;;  %v10086_v60 = vcombine.high %v10046_v29, %v10046_v29  ;;  %5355 = vmatpush2.msra.mxu0 %v5041_v30  ;;  %v5037_v56 = vld [vmem:[%s10908_s5 + $0x370] sm:$0xff] }
 0x89a   :  { %v4715_v24 = vsel %vm4460_vm9, %v10026_v25, %v4714_v57  ;;  %v4833_v38 = vsel %vm4456_vm0, %v9811_v51, %v4830_v4  ;;  %v4725_v12 = vrot.slane %v10069_v43, 7  ;;  %v10098_v52 = vcombine.high %v10064_v55, %v10064_v55  ;;  %5287 = vmatprep.subr.mxu1 %v4974_v46  ;;  %5356 = vmatprep.subr.mxu0 %v5040_v40  ;;  %v4970_v4 = vld [vmem:[%s10908_s5 + $0x158] sm:$0xff] }
 0x89b   :  { %v4716_v37 = vsel %vm4462_vm8, %v10026_v25, %v4715_v24  ;;  %v4773_v36 = vsel %vm4456_vm0, %v10064_v55, %v4770_v23  ;;  %v4834_v10 = vsel %vm4458_vm11, %v9811_v51, %v4833_v38  ;;  %v4890_v13 = vrot.slane %v10082_v54, 1  ;;  %5288 = vmatpush2.msra.mxu1 %v4973_v47  ;;  %5357 = vmatpush2.msra.mxu0 %v5039_v32 }
 0x89c   :  { %4561 = vrot.lane.b32.xlu1 %v4560_v6, %s5933_s23  ;;  %v4774_v11 = vsel %vm4458_vm11, %v10064_v55, %v4773_v36  ;;  %v4835_v27 = vsel %vm4460_vm9, %v9811_v51, %v4834_v10  ;;  %v4726_v39 = vsel %vm4456_vm0, %v4725_v12, %v10052_v16  ;;  %v4785_v33 = vrot.slane %v10098_v52, 7  ;;  %5358 = vmatprep.subr.mxu0 %v5038_v15  ;;  %v4967_v15 = vld [vmem:[%s10908_s5 + $0x140] sm:$0xff] }
 0x89d   :  { %4621 = vrot.lane.b32.xlu0 %v4620_v63, %s5933_s23  ;;  %v4775_v6 = vsel %vm4460_vm9, %v10064_v55, %v4774_v11  ;;  %v4836_v53 = vsel %vm4462_vm8, %v9811_v51, %v4835_v27  ;;  %v4893_v44 = vsel %vm4456_vm0, %v9838_v35, %v4890_v13  ;;  %v4727_v18 = vsel %vm4458_vm11, %v4725_v12, %v4726_v39  ;;  %v4972_v63 = vld [vmem:[%s10908_s5 + $0x168] sm:$0xff] }
 0x89e   :  { %v4776_v17 = vsel %vm4462_vm8, %v10064_v55, %v4775_v6  ;;  %v4894_v34 = vsel %vm4458_vm11, %v9838_v35, %v4893_v44  ;;  %v4728_v61 = vsel %vm4460_vm9, %v4725_v12, %v4727_v18  ;;  %v4786_v62 = vsel %vm4456_vm0, %v4785_v33, %v10086_v60  ;;  %5289 = vmatprep.subr.mxu1 %v4972_v63 }
 0x89f   :  { %v4895_v45 = vsel %vm4460_vm9, %v9838_v35, %v4894_v34  ;;  %v4729_v58 = vsel %vm4462_vm8, %v4725_v12, %v4728_v61  ;;  %v4787_v48 = vsel %vm4458_vm11, %v4785_v33, %v4786_v62  ;;  %v4841_v21 = vcombine.high %v10039_v22, %v10039_v22  ;;  %5290 = vmatpush2.msra.mxu1 %v4971_v41  ;;  %v5035_v62 = vld [vmem:[%s10908_s5 + $0x360] sm:$0xff] }
 0x8a0   :  { %4681 = vrot.lane.b32.xlu1 %v4680_v9, %s5933_s23  ;;  %v4896_v0 = vsel %vm4462_vm8, %v9838_v35, %v4895_v45  ;;  %v4788_v3 = vsel %vm4460_vm9, %v4785_v33, %v4787_v48  ;;  %v4842_v1 = vcombine.high %v9811_v51, %v9811_v51  ;;  %v4901_v49 = vcombine.high %v10082_v54, %v10082_v54 }
 0x8a1   :  { %4717 = vrot.lane.b32.xlu0 %v4716_v37, %s5929_s17  ;;  %v10167_v9 = vsel %vm4462_vm8, %v4785_v33, %v4788_v3  ;;  %v4902_v30 = vcombine.high %v9838_v35, %v9838_v35  ;;  %v4734_v46 = vrot.slane %v10052_v16, 1  ;;  %v4794_v57 = vrot.slane %v10086_v60, 1  ;;  %5359 = vmatpush2.msra.mxu0 %v5037_v56  ;;  %v5036_v60 = vld [vmem:[%s10908_s5 + $0x368] sm:$0xff] }
 0x8a2   :  { %v4845_v23 = vrot.slane %v4842_v1, 7  ;;  %v4854_v40 = vrot.slane %v4841_v21, 1  ;;  %v4914_v24 = vrot.slane %v4901_v49, 1  ;;  %v4455_v38 = vrot.slane %v9817_v19, 7  ;;  %5291 = vmatprep.subr.mxu1 %v4970_v4  ;;  %5360 = vmatprep.subr.mxu0 %v5036_v60  ;;  %v4964_v60 = vld [vmem:[%s10908_s5 + $0x128] sm:$0xff] }
 0x8a3   :  { %v4905_v12 = vrot.slane %v4902_v30, 7  ;;  %v4737_v37 = vsel %vm4456_vm0, %v10069_v43, %v4734_v46  ;;  %v4797_v36 = vsel %vm4456_vm0, %v10098_v52, %v4794_v57  ;;  %v4523_v16 = vrot.slane %v9854_v26, 7  ;;  %v4969_v26 = vld [vmem:[%s10908_s5 + $0x150] sm:$0xff]  ;;  %5361 = vmatpush2.msra.mxu0 %v5035_v62  ;;  %v4966_v46 = vld [vmem:[%s10908_s5 + $0x138] sm:$0xff]  ;;  %v5027_v62 = vld [vmem:[%s10908_s5 + $0x320] sm:$0xff] }
 0x8a4   :  { %4777 = vrot.lane.b32.xlu1 %v4776_v17, %s5929_s17  ;;  %v4846_v19 = vsel %vm4456_vm0, %v4845_v23, %v4841_v21  ;;  %v4738_v10 = vsel %vm4458_vm11, %v10069_v43, %v4737_v37  ;;  %v4798_v13 = vsel %vm4458_vm11, %v10098_v52, %v4797_v36  ;;  %v4857_v47 = vsel %vm4456_vm0, %v4842_v1, %v4854_v40  ;;  %v5034_v21 = vld [vmem:[%s10908_s5 + $0x358] sm:$0xff] }
 0x8a5   :  { %4837 = vrot.lane.b32.xlu0 %v4836_v53, %s5929_s17  ;;  %v4847_v11 = vsel %vm4458_vm11, %v4845_v23, %v4846_v19  ;;  %v4906_v27 = vsel %vm4456_vm0, %v4905_v12, %v4901_v49  ;;  %v4739_v39 = vsel %vm4460_vm9, %v10069_v43, %v4738_v10  ;;  %v4799_v33 = vsel %vm4460_vm9, %v10098_v52, %v4798_v13  ;;  %v5033_v49 = vld [vmem:[%s10908_s5 + $0x350] sm:$0xff]  ;;  %v4963_v13 = vld [vmem:[%s10908_s5 + $0x120] sm:$0xff] }
 0x8a6   :  { %v4848_v32 = vsel %vm4460_vm9, %v4845_v23, %v4847_v11  ;;  %v4907_v6 = vsel %vm4458_vm11, %v4905_v12, %v4906_v27  ;;  %v10203_v44 = vsel %vm4462_vm8, %v10069_v43, %v4739_v39  ;;  %v10207_v53 = vsel %vm4462_vm8, %v10098_v52, %v4799_v33  ;;  %5292 = vmatpush2.msra.mxu1 %v4969_v26  ;;  %v4968_v43 = vld [vmem:[%s10908_s5 + $0x148] sm:$0xff]  ;;  %v5029_v11 = vld [vmem:[%s10908_s5 + $0x330] sm:$0xff]  ;;  %v4962_v27 = vld [vmem:[%s10908_s5 + $0x118] sm:$0xff] }
 0x8a7   :  { %v4849_v18 = vsel %vm4462_vm8, %v4845_v23, %v4848_v32  ;;  %v4908_v17 = vsel %vm4460_vm9, %v4905_v12, %v4907_v6  ;;  %v4858_v34 = vsel %vm4458_vm11, %v4842_v1, %v4857_v47  ;;  %v4917_v61 = vsel %vm4456_vm0, %v4902_v30, %v4914_v24  ;;  %5293 = vmatprep.subr.mxu1 %v4968_v43 }
 0x8a8   :  { %4897 = vrot.lane.b32.xlu1 %v4896_v0, %s5929_s17  ;;  %v4909_v52 = vsel %vm4462_vm8, %v4905_v12, %v4908_v17  ;;  %v4859_v63 = vsel %vm4460_vm9, %v4842_v1, %v4858_v34  ;;  %v4918_v45 = vsel %vm4458_vm11, %v4902_v30, %v4917_v61  ;;  %v4457_v48 = vsel %vm4456_vm0, %v4455_v38, %v9814_v28  ;;  %v4961_v17 = vld [vmem:[%s10908_s5 + $0x110] sm:$0xff] }
 0x8a9   :  { %4730 = vrot.lane.b32.xlu0 %v4729_v58, %s5931_s24  ;;  %v10233_v41 = vsel %vm4462_vm8, %v4842_v1, %v4859_v63  ;;  %v4919_v0 = vsel %vm4460_vm9, %v4902_v30, %v4918_v45  ;;  %v4459_v3 = vsel %vm4458_vm11, %v4455_v38, %v4457_v48  ;;  %v4524_v28 = vsel %vm4456_vm0, %v4523_v16, %v9851_v59  ;;  %v4959_v63 = vld [vmem:[%s10908_s5 + $0x100] sm:$0xff]  ;;  %v5024_v48 = vld [vmem:[%s10908_s5 + $0x308] sm:$0xff] }
 0x8aa   :  { %v10243_v56 = vsel %vm4462_vm8, %v4902_v30, %v4919_v0  ;;  %v4461_v4 = vsel %vm4460_vm9, %v4455_v38, %v4459_v3  ;;  %v4525_v58 = vsel %vm4458_vm11, %v4523_v16, %v4524_v28  ;;  %v4583_v1 = vrot.slane %v9832_v14, 7  ;;  %5362 = vmatprep.subr.mxu0 %v5034_v21  ;;  %5294 = vmatpush2.msra.mxu1 %v4967_v15  ;;  %v5032_v30 = vld [vmem:[%s10908_s5 + $0x348] sm:$0xff]  ;;  %v4965_v14 = vld [vmem:[%s10908_s5 + $0x130] sm:$0xff]  ;;  %v5086_v21 = vld [vmem:[%s10908_s5 + $0x4f8] sm:$0xff] }
 0x8ab   :  { %v4463_v59 = vsel %vm4462_vm8, %v4455_v38, %v4461_v4  ;;  %v4526_v57 = vsel %vm4460_vm9, %v4523_v16, %v4525_v58  ;;  %v4643_v23 = vrot.slane %v9873_v50, 7  ;;  %v4703_v24 = vrot.slane %v10026_v25, 7  ;;  %5363 = vmatpush2.msra.mxu0 %v5033_v49  ;;  %v5031_v38 = vld [vmem:[%s10908_s5 + $0x340] sm:$0xff]  ;;  %5295 = vmatprep.subr.mxu1 %v4966_v46 }
 0x8ac   :  { %4790 = vrot.lane.b32.xlu1 %v10167_v9, %s5931_s24  ;;  %4466 = vst.msk [vmem:[#allocation5] sm:$0x3] %vm4465_vm7, %v4463_v59  ;;  %v4527_v40 = vsel %vm4462_vm8, %v4523_v16, %v4526_v57  ;;  %v4584_v50 = vsel %vm4456_vm0, %v4583_v1, %v9829_v2  ;;  %v4763_v37 = vrot.slane %v10064_v55, 7  ;;  %v4823_v2 = vrot.slane %v9811_v51, 7  ;;  %5364 = vmatprep.subr.mxu0 %v5032_v30  ;;  %v5023_v15 = vld [vmem:[%s10908_s5 + $0x300] sm:$0xff] }
 0x8ad   :  { %4850 = vrot.lane.b32.xlu0 %v4849_v18, %s5931_s24  ;;  %4529 = vst.msk [vmem:[#allocation5 + $0x2] sm:$0x3] %vm4465_vm7, %v4527_v40  ;;  %v4585_v9 = vsel %vm4458_vm11, %v4583_v1, %v4584_v50  ;;  %v4644_v12 = vsel %vm4456_vm0, %v4643_v23, %v9870_v20  ;;  %v4704_v16 = vsel %vm4456_vm0, %v4703_v24, %v10016_v8  ;;  %v4883_v20 = vrot.slane %v9838_v35, 7  ;;  %v5030_v8 = vld [vmem:[%s10908_s5 + $0x338] sm:$0xff] }
 0x8ae   :  { %v4586_v25 = vsel %vm4460_vm9, %v4583_v1, %v4585_v9  ;;  %v4645_v36 = vsel %vm4458_vm11, %v4643_v23, %v4644_v12  ;;  %5296 = vmatpush2.msra.mxu1 %v4965_v14  ;;  %v4705_v51 = vsel %vm4458_vm11, %v4703_v24, %v4704_v16  ;;  %v4764_v10 = vsel %vm4456_vm0, %v4763_v37, %v10046_v29 }
 0x8af   :  { %v4587_v55 = vsel %vm4462_vm8, %v4583_v1, %v4586_v25  ;;  %v4646_v19 = vsel %vm4460_vm9, %v4643_v23, %v4645_v36  ;;  %5365 = vmatpush2.msra.mxu0 %v5031_v38  ;;  %v4706_v47 = vsel %vm4460_vm9, %v4703_v24, %v4705_v51  ;;  %v4765_v26 = vsel %vm4458_vm11, %v4763_v37, %v4764_v10  ;;  %v5085_v36 = vld [vmem:[%s10908_s5 + $0x4f0] sm:$0xff]  ;;  %v5082_v51 = vld [vmem:[%s10908_s5 + $0x4d8] sm:$0xff]  ;;  %v5148_v10 = vld [vmem:[%s10908_s5 + $0x6e8] sm:$0xff] }
 0x8b0   :  { %4910 = vrot.lane.b32.xlu1 %v4909_v52, %s5931_s24  ;;  %4589 = vst.msk [vmem:[#allocation5 + $0x4] sm:$0x3] %vm4465_vm7, %v4587_v55  ;;  %v4647_v35 = vsel %vm4462_vm8, %v4643_v23, %v4646_v19  ;;  %v4824_v29 = vsel %vm4456_vm0, %v4823_v2, %v10039_v22  ;;  %v4707_v39 = vsel %vm4462_vm8, %v4703_v24, %v4706_v47  ;;  %v5028_v22 = vld [vmem:[%s10908_s5 + $0x328] sm:$0xff]  ;;  %v5026_v52 = vld [vmem:[%s10908_s5 + $0x318] sm:$0xff]  ;;  %v5083_v55 = vld [vmem:[%s10908_s5 + $0x4e0] sm:$0xff] }
 0x8b1   :  { %4741 = vrot.lane.b32.xlu0 %v10203_v44, %s5933_s23  ;;  %4649 = vst.msk [vmem:[#allocation5 + $0x6] sm:$0x3] %vm4465_vm7, %v4647_v35  ;;  %v4766_v33 = vsel %vm4460_vm9, %v4763_v37, %v4765_v26  ;;  %v4825_v32 = vsel %vm4458_vm11, %v4823_v2, %v4824_v29  ;;  %5297 = vmatprep.subr.mxu1 %v4964_v60  ;;  %4709 = vst.msk [vmem:[#allocation5 + $0x8] sm:$0x3] %vm4465_vm7, %v4707_v39  ;;  %v5149_v19 = vld [vmem:[%s10908_s5 + $0x6f0] sm:$0xff]  ;;  %v5147_v35 = vld [vmem:[%s10908_s5 + $0x6e0] sm:$0xff] }
 0x8b2   :  { %v4767_v6 = vsel %vm4462_vm8, %v4763_v37, %v4766_v33  ;;  %v4826_v18 = vsel %vm4460_vm9, %v4823_v2, %v4825_v32  ;;  %5366 = vmatprep.subr.mxu0 %v5030_v8  ;;  %5298 = vmatpush2.msra.mxu1 %v4963_v13  ;;  %v4884_v44 = vsel %vm4456_vm0, %v4883_v20, %v10082_v54  ;;  %v4960_v54 = vld [vmem:[%s10908_s5 + $0x108] sm:$0xff]  ;;  %v5081_v13 = vld [vmem:[%s10908_s5 + $0x4d0] sm:$0xff]  ;;  %v5146_v29 = vld [vmem:[%s10908_s5 + $0x6d8] sm:$0xff] }
 0x8b3   :  { %4769 = vst.msk [vmem:[#allocation5 + $0xa] sm:$0x3] %vm4465_vm7, %v4767_v6  ;;  %v4827_v34 = vsel %vm4462_vm8, %v4823_v2, %v4826_v18  ;;  %5367 = vmatpush2.msra.mxu0 %v5029_v11  ;;  %v4885_v61 = vsel %vm4458_vm11, %v4883_v20, %v4884_v44  ;;  %5299 = vmatprep.subr.mxu1 %v4962_v27  ;;  %v5080_v26 = vld [vmem:[%s10908_s5 + $0x4c8] sm:$0xff]  ;;  %v5079_v11 = vld [vmem:[%s10908_s5 + $0x4c0] sm:$0xff]  ;;  %v5145_v27 = vld [vmem:[%s10908_s5 + $0x6d0] sm:$0xff] }
 0x8b4   :  { %4801 = vrot.lane.b32.xlu1 %v10207_v53, %s5933_s23  ;;  %4829 = vst.msk [vmem:[#allocation5 + $0xc] sm:$0x3] %vm4465_vm7, %v4827_v34  ;;  %v4886_v43 = vsel %vm4460_vm9, %v4883_v20, %v4885_v61  ;;  %5368 = vmatprep.subr.mxu0 %v5028_v22  ;;  %v5025_v53 = vld [vmem:[%s10908_s5 + $0x310] sm:$0xff]  ;;  %v5078_v39 = vld [vmem:[%s10908_s5 + $0x4b8] sm:$0xff]  ;;  %v5144_v33 = vld [vmem:[%s10908_s5 + $0x6c8] sm:$0xff] }
 0x8b5   :  { %4861 = vrot.lane.b32.xlu0 %v10233_v41, %s5933_s23  ;;  %v4887_v45 = vsel %vm4462_vm8, %v4883_v20, %v4886_v43  ;;  %5300 = vmatpush2.msra.mxu1 %v4961_v17  ;;  %v5150_v41 = vld [vmem:[%s10908_s5 + $0x6f8] sm:$0xff]  ;;  %v5084_v20 = vld [vmem:[%s10908_s5 + $0x4e8] sm:$0xff]  ;;  %v5077_v22 = vld [vmem:[%s10908_s5 + $0x4b0] sm:$0xff] }
 0x8b6   :  { %4889 = vst.msk [vmem:[#allocation5 + $0xe] sm:$0x3] %vm4465_vm7, %v4887_v45  ;;  %5369 = vmatpush2.msra.mxu0 %v5027_v62  ;;  %5301 = vmatprep.subr.mxu1 %v4960_v54  ;;  %v5143_v6 = vld [vmem:[%s10908_s5 + $0x6c0] sm:$0xff]  ;;  %v5076_v44 = vld [vmem:[%s10908_s5 + $0x4a8] sm:$0xff]  ;;  %v5142_v17 = vld [vmem:[%s10908_s5 + $0x6b8] sm:$0xff] }
 0x8b7   :  { %5370 = vmatprep.subr.mxu0 %v5026_v52  ;;  %5302 = vmatpush2.msra.mxu1 %v4959_v63  ;;  %v5075_v34 = vld [vmem:[%s10908_s5 + $0x4a0] sm:$0xff]  ;;  %v5141_v61 = vld [vmem:[%s10908_s5 + $0x6b0] sm:$0xff]  ;;  %v5074_v62 = vld [vmem:[%s10908_s5 + $0x498] sm:$0xff] }
 0x8b8   :  { %4921 = vrot.lane.b32.xlu1 %v10243_v56, %s5933_s23  ;;  %5371 = vmatpush2.msra.mxu0 %v5025_v53  ;;  %v5140_v54 = vld [vmem:[%s10908_s5 + $0x6a8] sm:$0xff]  ;;  %v5073_v52 = vld [vmem:[%s10908_s5 + $0x490] sm:$0xff]  ;;  %v5139_v63 = vld [vmem:[%s10908_s5 + $0x6a0] sm:$0xff] }
 0x8b9   :  { %5372 = vmatprep.subr.mxu0 %v5024_v48  ;;  %5381 = vmatprep.subr.mxu1 %v5086_v21  ;;  %v5072_v45 = vld [vmem:[%s10908_s5 + $0x488] sm:$0xff]  ;;  %v5138_v53 = vld [vmem:[%s10908_s5 + $0x698] sm:$0xff]  ;;  %v5071_v48 = vld [vmem:[%s10908_s5 + $0x480] sm:$0xff] }
 0x8ba   :  { %5373 = vmatpush2.msra.mxu0 %v5023_v15  ;;  %v5137_v21 = vld [vmem:[%s10908_s5 + $0x690] sm:$0xff]  ;;  %v5070_v15 = vld [vmem:[%s10908_s5 + $0x478] sm:$0xff] }
 0x8bb   :  { %5452 = vmatprep.subr.mxu0 %v5150_v41  ;;  %v5136_v41 = vld [vmem:[%s10908_s5 + $0x688] sm:$0xff] }
 0x8fb   :  { %v4475_v0 = vpop.permute.xlu0 %4474 }
 0x8fc   :  { %4478 = vst.msk [vmem:[#allocation5] sm:$0x3] %vm4477_vm3, %v4475_v0  ;;  %v5069_v0 = vld [vmem:[%s10908_s5 + $0x470] sm:$0xff] }
 0x8fe   :  { %v4538_v3 = vpop.permute.xlu1 %4537 }
 0x8ff   :  { %4540 = vst.msk [vmem:[#allocation5 + $0x2] sm:$0x3] %vm4477_vm3, %v4538_v3  ;;  %v4598_v28 = vpop.permute.xlu0 %4597  ;;  %v5135_v3 = vld [vmem:[%s10908_s5 + $0x680] sm:$0xff] }
 0x900   :  { %4600 = vst.msk [vmem:[#allocation5 + $0x4] sm:$0x3] %vm4477_vm3, %v4598_v28  ;;  %v5068_v28 = vld [vmem:[%s10908_s5 + $0x468] sm:$0xff] }
 0x902   :  { %v4658_v49 = vpop.permute.xlu1 %4657 }
 0x903   :  { %4660 = vst.msk [vmem:[#allocation5 + $0x6] sm:$0x3] %vm4477_vm3, %v4658_v49  ;;  %v4489_v56 = vpop.permute.xlu0 %4488  ;;  %v5134_v49 = vld [vmem:[%s10908_s5 + $0x678] sm:$0xff] }
 0x904   :  { %4492 = vst.msk [vmem:[#allocation5] sm:$0x3] %vm4491_vm15, %v4489_v56  ;;  %v5067_v56 = vld [vmem:[%s10908_s5 + $0x460] sm:$0xff] }
 0x906   :  { %v4551_v4 = vpop.permute.xlu1 %4550 }
 0x907   :  { %4553 = vst.msk [vmem:[#allocation5 + $0x2] sm:$0x3] %vm4491_vm15, %v4551_v4  ;;  %v4611_v58 = vpop.permute.xlu0 %4610  ;;  %v5133_v4 = vld [vmem:[%s10908_s5 + $0x670] sm:$0xff] }
 0x908   :  { %4613 = vst.msk [vmem:[#allocation5 + $0x4] sm:$0x3] %vm4491_vm15, %v4611_v58  ;;  %v5066_v58 = vld [vmem:[%s10908_s5 + $0x458] sm:$0xff] }
 0x90a   :  { %v4671_v1 = vpop.permute.xlu1 %4670 }
 0x90b   :  { %4673 = vst.msk [vmem:[#allocation5 + $0x6] sm:$0x3] %vm4491_vm15, %v4671_v1  ;;  %v4501_v46 = vpop.permute.xlu0 %4500  ;;  %v5132_v1 = vld [vmem:[%s10908_s5 + $0x668] sm:$0xff] }
 0x90c   :  { %4504 = vst.msk [vmem:[#allocation5] sm:$0x3] %vm4503_vm14, %v4501_v46  ;;  %v5065_v46 = vld [vmem:[%s10908_s5 + $0x450] sm:$0xff] }
 0x90e   :  { %v4562_v59 = vpop.permute.xlu1 %4561 }
 0x90f   :  { %4564 = vst.msk [vmem:[#allocation5 + $0x2] sm:$0x3] %vm4503_vm14, %v4562_v59  ;;  %v4622_v57 = vpop.permute.xlu0 %4621  ;;  %v5131_v59 = vld [vmem:[%s10908_s5 + $0x660] sm:$0xff] }
 0x910   :  { %4624 = vst.msk [vmem:[#allocation5 + $0x4] sm:$0x3] %vm4503_vm14, %v4622_v57 }
 0x912   :  { %v4682_v23 = vpop.permute.xlu1 %4681 }
 0x913   :  { %4684 = vst.msk [vmem:[#allocation5 + $0x6] sm:$0x3] %vm4503_vm14, %v4682_v23  ;;  %v4718_v30 = vpop.permute.xlu0 %4717  ;;  %v5064_v23 = vld [vmem:[%s10908_s5 + $0x448] sm:$0xff] }
 0x914   :  { %4720 = vst.msk [vmem:[#allocation5 + $0x8] sm:$0x3] %vm4477_vm3, %v4718_v30  ;;  %v5130_v30 = vld [vmem:[%s10908_s5 + $0x658] sm:$0xff] }
 0x916   :  { %v4778_v14 = vpop.permute.xlu1 %4777 }
 0x917   :  { %4780 = vst.msk [vmem:[#allocation5 + $0xa] sm:$0x3] %vm4477_vm3, %v4778_v14  ;;  %v4838_v40 = vpop.permute.xlu0 %4837 }
 0x918   :  { %4840 = vst.msk [vmem:[#allocation5 + $0xc] sm:$0x3] %vm4477_vm3, %v4838_v40 }
 0x91a   :  { %v4898_v50 = vpop.permute.xlu1 %4897  ;;  %v4925_v24 = vld [vmem:[#allocation5] sm:$0xff] }
 0x91b   :  { %4900 = vst.msk [vmem:[#allocation5 + $0xe] sm:$0x3] %vm4477_vm3, %v4898_v50  ;;  %v4731_v38 = vpop.permute.xlu0 %4730  ;;  %v5204_v9 = vrot.slane %v4925_v24, %v9774_v5  ;;  %v5197_v12 = vcombine.high %v4925_v24, %v4925_v24  ;;  %v5063_v50 = vld [vmem:[%s10908_s5 + $0x440] sm:$0xff]  ;;  %v5129_v24 = vld [vmem:[%s10908_s5 + $0x650] sm:$0xff] }
 0x91c   :  { %4733 = vst.msk [vmem:[#allocation5 + $0x8] sm:$0x3] %vm4491_vm15, %v4731_v38  ;;  %v5062_v38 = vld [vmem:[%s10908_s5 + $0x438] sm:$0xff] }
 0x91d   :  { %v5212_v37 = vcombine.high %v5204_v9, %v5204_v9  ;;  %v5211_v2 = vrot.slane %v5197_v12, %v9774_v5 }
 0x91e   :  { %v4791_v25 = vpop.permute.xlu1 %4790 }
 0x91f   :  { %4793 = vst.msk [vmem:[#allocation5 + $0xa] sm:$0x3] %vm4491_vm15, %v4791_v25  ;;  %5303 = vmatprep.mubr.f32.mxu1 %v5212_v37  ;;  %v4851_v16 = vpop.permute.xlu0 %4850  ;;  %v5213_v60 = vcombine.high %v5211_v2, %v5211_v2  ;;  %v5128_v37 = vld [vmem:[%s10908_s5 + $0x648] sm:$0xff]  ;;  %v5127_v25 = vld [vmem:[%s10908_s5 + $0x640] sm:$0xff] }
 0x920   :  { %4853 = vst.msk [vmem:[#allocation5 + $0xc] sm:$0x3] %vm4491_vm15, %v4851_v16  ;;  %5304 = vmatmul.mubr.f32.vlgmr.msra.gmra.mxu1 %v5204_v9  ;;  %v5126_v16 = vld [vmem:[%s10908_s5 + $0x638] sm:$0xff] }
 0x921   :  { %5382 = vmatpush1.msra.mxu1 %v5085_v36  ;;  %5374 = vmatprep.mubr.f32.mxu0 %v5213_v60  ;;  %v5059_v60 = vld [vmem:[%s10908_s5 + $0x420] sm:$0xff] }
 0x922   :  { %5383 = vmatprep.subr.mxu1 %v5084_v20  ;;  %v4911_v8 = vpop.permute.xlu1 %4910  ;;  %5375 = vmatmul.mubr.f32.vlgmr.msra.gmra.mxu0 %v5211_v2  ;;  %v5061_v2 = vld [vmem:[%s10908_s5 + $0x430] sm:$0xff] }
 0x923   :  { %4913 = vst.msk [vmem:[#allocation5 + $0xe] sm:$0x3] %vm4491_vm15, %v4911_v8  ;;  %5384 = vmatpush1.msra.mxu1 %v5083_v55  ;;  %5453 = vmatpush1.msra.mxu0 %v5149_v19  ;;  %v4742_v47 = vpop.permute.xlu0 %4741  ;;  %v5125_v20 = vld [vmem:[%s10908_s5 + $0x630] sm:$0xff]  ;;  %v5058_v55 = vld [vmem:[%s10908_s5 + $0x418] sm:$0xff]  ;;  %v5124_v19 = vld [vmem:[%s10908_s5 + $0x628] sm:$0xff] }
 0x924   :  { %5385 = vmatprep.subr.mxu1 %v5082_v51  ;;  %5454 = vmatprep.subr.mxu0 %v5148_v10  ;;  %4744 = vst.msk [vmem:[#allocation5 + $0x8] sm:$0x3] %vm4503_vm14, %v4742_v47  ;;  %v5057_v51 = vld [vmem:[%s10908_s5 + $0x410] sm:$0xff]  ;;  %v5123_v10 = vld [vmem:[%s10908_s5 + $0x620] sm:$0xff]  ;;  %v5056_v8 = vld [vmem:[%s10908_s5 + $0x408] sm:$0xff] }
 0x925   :  { %5386 = vmatpush1.msra.mxu1 %v5081_v13  ;;  %5455 = vmatpush1.msra.mxu0 %v5147_v35  ;;  %v5122_v13 = vld [vmem:[%s10908_s5 + $0x618] sm:$0xff]  ;;  %v5055_v35 = vld [vmem:[%s10908_s5 + $0x400] sm:$0xff]  ;;  %v5121_v47 = vld [vmem:[%s10908_s5 + $0x610] sm:$0xff] }
 0x926   :  { %5387 = vmatprep.subr.mxu1 %v5080_v26  ;;  %5456 = vmatprep.subr.mxu0 %v5146_v29  ;;  %v4802_v32 = vpop.permute.xlu1 %4801  ;;  %v5118_v26 = vld [vmem:[%s10908_s5 + $0x5f8] sm:$0xff]  ;;  %v5120_v29 = vld [vmem:[%s10908_s5 + $0x608] sm:$0xff] }
 0x927   :  { %4804 = vst.msk [vmem:[#allocation5 + $0xa] sm:$0x3] %vm4503_vm14, %v4802_v32  ;;  %5388 = vmatpush1.msra.mxu1 %v5079_v11  ;;  %5457 = vmatpush1.msra.mxu0 %v5145_v27  ;;  %v4862_v18 = vpop.permute.xlu0 %4861  ;;  %v5117_v11 = vld [vmem:[%s10908_s5 + $0x5f0] sm:$0xff]  ;;  %v5119_v27 = vld [vmem:[%s10908_s5 + $0x600] sm:$0xff] }
 0x928   :  { %5389 = vmatprep.subr.mxu1 %v5078_v39  ;;  %5458 = vmatprep.subr.mxu0 %v5144_v33  ;;  %4864 = vst.msk [vmem:[#allocation5 + $0xc] sm:$0x3] %vm4503_vm14, %v4862_v18  ;;  %v5116_v39 = vld [vmem:[%s10908_s5 + $0x5e8] sm:$0xff]  ;;  %v5182_v33 = vld [vmem:[%s10908_s5 + $0x7f8] sm:$0xff]  ;;  %v5115_v32 = vld [vmem:[%s10908_s5 + $0x5e0] sm:$0xff] }
 0x929   :  { %5390 = vmatpush1.msra.mxu1 %v5077_v22  ;;  %5459 = vmatpush1.msra.mxu0 %v5143_v6  ;;  %v5181_v22 = vld [vmem:[%s10908_s5 + $0x7f0] sm:$0xff]  ;;  %v5114_v6 = vld [vmem:[%s10908_s5 + $0x5d8] sm:$0xff]  ;;  %v5180_v18 = vld [vmem:[%s10908_s5 + $0x7e8] sm:$0xff] }
 0x92a   :  { %5391 = vmatprep.subr.mxu1 %v5076_v44  ;;  %5460 = vmatprep.subr.mxu0 %v5142_v17  ;;  %v4922_v43 = vpop.permute.xlu1 %4921  ;;  %v5113_v44 = vld [vmem:[%s10908_s5 + $0x5d0] sm:$0xff]  ;;  %v5179_v17 = vld [vmem:[%s10908_s5 + $0x7e0] sm:$0xff] }
 0x92b   :  { %4924 = vst.msk [vmem:[#allocation5 + $0xe] sm:$0x3] %vm4503_vm14, %v4922_v43  ;;  %5392 = vmatpush1.msra.mxu1 %v5075_v34  ;;  %5461 = vmatpush1.msra.mxu0 %v5141_v61  ;;  %v5112_v34 = vld [vmem:[%s10908_s5 + $0x5c8] sm:$0xff]  ;;  %v5178_v61 = vld [vmem:[%s10908_s5 + $0x7d8] sm:$0xff] }
 0x92c   :  { %5393 = vmatprep.subr.mxu1 %v5074_v62  ;;  %5462 = vmatprep.subr.mxu0 %v5140_v54  ;;  %v5111_v62 = vld [vmem:[%s10908_s5 + $0x5c0] sm:$0xff]  ;;  %v5177_v54 = vld [vmem:[%s10908_s5 + $0x7d0] sm:$0xff]  ;;  %v5110_v43 = vld [vmem:[%s10908_s5 + $0x5b8] sm:$0xff] }
 0x92d   :  { %5394 = vmatpush1.msra.mxu1 %v5073_v52  ;;  %5463 = vmatpush1.msra.mxu0 %v5139_v63  ;;  %v5176_v52 = vld [vmem:[%s10908_s5 + $0x7c8] sm:$0xff]  ;;  %v5109_v63 = vld [vmem:[%s10908_s5 + $0x5b0] sm:$0xff] }
 0x92e   :  { %5395 = vmatprep.subr.mxu1 %v5072_v45  ;;  %5464 = vmatprep.subr.mxu0 %v5138_v53  ;;  %v5175_v45 = vld [vmem:[%s10908_s5 + $0x7c0] sm:$0xff]  ;;  %v5108_v53 = vld [vmem:[%s10908_s5 + $0x5a8] sm:$0xff] }
 0x92f   :  { %5396 = vmatpush1.msra.mxu1 %v5071_v48  ;;  %5465 = vmatpush1.msra.mxu0 %v5137_v21  ;;  %v5174_v48 = vld [vmem:[%s10908_s5 + $0x7b8] sm:$0xff]  ;;  %v5107_v21 = vld [vmem:[%s10908_s5 + $0x5a0] sm:$0xff] }
 0x930   :  { %5397 = vmatprep.subr.mxu1 %v5070_v15  ;;  %5466 = vmatprep.subr.mxu0 %v5136_v41  ;;  %v5173_v15 = vld [vmem:[%s10908_s5 + $0x7b0] sm:$0xff]  ;;  %v5106_v41 = vld [vmem:[%s10908_s5 + $0x598] sm:$0xff] }
 0x931   :  { %5398 = vmatpush1.msra.mxu1 %v5069_v0  ;;  %5467 = vmatpush1.msra.mxu0 %v5135_v3  ;;  %v5172_v0 = vld [vmem:[%s10908_s5 + $0x7a8] sm:$0xff]  ;;  %v5105_v3 = vld [vmem:[%s10908_s5 + $0x590] sm:$0xff] }
 0x932   :  { %5399 = vmatprep.subr.mxu1 %v5068_v28  ;;  %5468 = vmatprep.subr.mxu0 %v5134_v49  ;;  %v4926_v57 = vld [vmem:[#allocation5 + $0x8] sm:$0xff]  ;;  %v5171_v28 = vld [vmem:[%s10908_s5 + $0x7a0] sm:$0xff] }
 0x933   :  { %5400 = vmatpush1.msra.mxu1 %v5067_v56  ;;  %5469 = vmatpush1.msra.mxu0 %v5133_v4  ;;  %v10519_v14 = vrot.slane %v4926_v57, %v9774_v5  ;;  %v5214_v40 = vcombine.high %v4926_v57, %v4926_v57  ;;  %v5104_v49 = vld [vmem:[%s10908_s5 + $0x588] sm:$0xff]  ;;  %v5170_v56 = vld [vmem:[%s10908_s5 + $0x798] sm:$0xff]  ;;  %v5103_v4 = vld [vmem:[%s10908_s5 + $0x580] sm:$0xff] }
 0x934   :  { %5401 = vmatprep.subr.mxu1 %v5066_v58  ;;  %5470 = vmatprep.subr.mxu0 %v5132_v1  ;;  %v5169_v58 = vld [vmem:[%s10908_s5 + $0x790] sm:$0xff]  ;;  %v5102_v1 = vld [vmem:[%s10908_s5 + $0x578] sm:$0xff]  ;;  %v5167_v57 = vld [vmem:[%s10908_s5 + $0x780] sm:$0xff] }
 0x935   :  { %5402 = vmatpush1.msra.mxu1 %v5065_v46  ;;  %5471 = vmatpush1.msra.mxu0 %v5131_v59  ;;  %v5229_v9 = vcombine.high %v10519_v14, %v10519_v14  ;;  %v10533_v12 = vrot.slane %v5214_v40, %v9774_v5  ;;  %v5060_v5 = vld [vmem:[%s10908_s5 + $0x428] sm:$0xff]  ;;  %v5101_v59 = vld [vmem:[%s10908_s5 + $0x570] sm:$0xff]  ;;  %v5099_v40 = vld [vmem:[%s10908_s5 + $0x560] sm:$0xff] }
 0x936   :  { %5403 = vmatprep.subr.mxu1 %v5064_v23  ;;  %5472 = vmatprep.subr.mxu0 %v5130_v30  ;;  %v5168_v46 = vld [vmem:[%s10908_s5 + $0x788] sm:$0xff]  ;;  %v5166_v30 = vld [vmem:[%s10908_s5 + $0x778] sm:$0xff] }
 0x937   :  { %5404 = vmatpush1.msra.mxu1 %v5063_v50  ;;  %5473 = vmatpush1.msra.mxu0 %v5129_v24  ;;  %v5230_v36 = vcombine.high %v10533_v12, %v10533_v12  ;;  %v5100_v23 = vld [vmem:[%s10908_s5 + $0x568] sm:$0xff]  ;;  %v5165_v50 = vld [vmem:[%s10908_s5 + $0x770] sm:$0xff]  ;;  %v5098_v24 = vld [vmem:[%s10908_s5 + $0x558] sm:$0xff] }
 0x938   :  { %5405 = vmatprep.subr.mxu1 %v5062_v38  ;;  %5445 = vmatprep.mubr.f32.mxu1 %v5229_v9  ;;  %v5164_v38 = vld [vmem:[%s10908_s5 + $0x768] sm:$0xff]  ;;  %v5097_v9 = vld [vmem:[%s10908_s5 + $0x550] sm:$0xff] }
 0x939   :  { %5474 = vmatprep.subr.mxu0 %v5128_v37  ;;  %5406 = vmatpush1.msra.mxu1 %v5061_v2  ;;  %v5163_v37 = vld [vmem:[%s10908_s5 + $0x760] sm:$0xff]  ;;  %v5096_v2 = vld [vmem:[%s10908_s5 + $0x548] sm:$0xff] }
 0x93a   :  { %5475 = vmatpush1.msra.mxu0 %v5127_v25  ;;  %5407 = vmatprep.subr.mxu1 %v5060_v5  ;;  %v5162_v25 = vld [vmem:[%s10908_s5 + $0x758] sm:$0xff]  ;;  %v5095_v5 = vld [vmem:[%s10908_s5 + $0x540] sm:$0xff] }
 0x93b   :  { %5476 = vmatprep.subr.mxu0 %v5126_v16  ;;  %5516 = vmatprep.mubr.f32.mxu0 %v5230_v36  ;;  %v5161_v36 = vld [vmem:[%s10908_s5 + $0x750] sm:$0xff]  ;;  %v5094_v16 = vld [vmem:[%s10908_s5 + $0x538] sm:$0xff] }
 0x93c   :  { %5408 = vmatpush1.msra.mxu1 %v5059_v60  ;;  %5477 = vmatpush1.msra.mxu0 %v5125_v20  ;;  %v5160_v60 = vld [vmem:[%s10908_s5 + $0x748] sm:$0xff]  ;;  %v5093_v20 = vld [vmem:[%s10908_s5 + $0x530] sm:$0xff] }
 0x93d   :  { %5409 = vmatprep.subr.mxu1 %v5058_v55  ;;  %5478 = vmatprep.subr.mxu0 %v5124_v19  ;;  %v5159_v55 = vld [vmem:[%s10908_s5 + $0x740] sm:$0xff]  ;;  %v5092_v19 = vld [vmem:[%s10908_s5 + $0x528] sm:$0xff] }
 0x93e   :  { %5410 = vmatpush1.msra.mxu1 %v5057_v51  ;;  %5479 = vmatpush1.msra.mxu0 %v5123_v10  ;;  %v5158_v51 = vld [vmem:[%s10908_s5 + $0x738] sm:$0xff]  ;;  %v5091_v10 = vld [vmem:[%s10908_s5 + $0x520] sm:$0xff] }
 0x93f   :  { %5411 = vmatprep.subr.mxu1 %v5056_v8  ;;  %5480 = vmatprep.subr.mxu0 %v5122_v13  ;;  %v5157_v8 = vld [vmem:[%s10908_s5 + $0x730] sm:$0xff]  ;;  %v5090_v13 = vld [vmem:[%s10908_s5 + $0x518] sm:$0xff] }
 0x940   :  { %5412 = vmatpush1.msra.mxu1 %v5055_v35  ;;  %5481 = vmatpush1.msra.mxu0 %v5121_v47  ;;  %v5156_v35 = vld [vmem:[%s10908_s5 + $0x728] sm:$0xff]  ;;  %v5089_v47 = vld [vmem:[%s10908_s5 + $0x510] sm:$0xff] }
 0x941   :  { %5413 = vmatprep.subr.mxu1 %v5118_v26  ;;  %5482 = vmatprep.subr.mxu0 %v5120_v29  ;;  %v5155_v26 = vld [vmem:[%s10908_s5 + $0x720] sm:$0xff]  ;;  %v5088_v29 = vld [vmem:[%s10908_s5 + $0x508] sm:$0xff] }
 0x942   :  { %5414 = vmatpush2.msra.mxu1 %v5117_v11  ;;  %5483 = vmatpush1.msra.mxu0 %v5119_v27  ;;  %v5154_v11 = vld [vmem:[%s10908_s5 + $0x718] sm:$0xff]  ;;  %v5087_v27 = vld [vmem:[%s10908_s5 + $0x500] sm:$0xff] }
 0x943   :  { %5415 = vmatprep.subr.mxu1 %v5116_v39  ;;  %5484 = vmatprep.subr.mxu0 %v5182_v33  ;;  %v5153_v39 = vld [vmem:[%s10908_s5 + $0x710] sm:$0xff]  ;;  %v5152_v33 = vld [vmem:[%s10908_s5 + $0x708] sm:$0xff] }
 0x944   :  { %5416 = vmatpush2.msra.mxu1 %v5115_v32  ;;  %5485 = vmatpush2.msra.mxu0 %v5181_v22  ;;  %v5151_v32 = vld [vmem:[%s10908_s5 + $0x700] sm:$0xff]  ;;  %v5540_v22 = vld [vmem:[%s10909_s6 + $0x78] sm:$0xff] }
 0x945   :  { %5417 = vmatprep.subr.mxu1 %v5114_v6  ;;  %5486 = vmatprep.subr.mxu0 %v5180_v18  ;;  %v5539_v6 = vld [vmem:[%s10909_s6 + $0x70] sm:$0xff]  ;;  %v5536_v18 = vld [vmem:[%s10909_s6 + $0x58] sm:$0xff] }
 0x946   :  { %5418 = vmatpush2.msra.mxu1 %v5113_v44  ;;  %5487 = vmatpush2.msra.mxu0 %v5179_v17  ;;  %v5535_v44 = vld [vmem:[%s10909_s6 + $0x50] sm:$0xff]  ;;  %v5534_v17 = vld [vmem:[%s10909_s6 + $0x48] sm:$0xff] }
 0x947   :  { %5419 = vmatprep.subr.mxu1 %v5112_v34  ;;  %5488 = vmatprep.subr.mxu0 %v5178_v61  ;;  %v5533_v34 = vld [vmem:[%s10909_s6 + $0x40] sm:$0xff]  ;;  %v5532_v61 = vld [vmem:[%s10909_s6 + $0x38] sm:$0xff] }
 0x948   :  { %5420 = vmatpush2.msra.mxu1 %v5111_v62  ;;  %5489 = vmatpush2.msra.mxu0 %v5177_v54  ;;  %v5531_v62 = vld [vmem:[%s10909_s6 + $0x30] sm:$0xff]  ;;  %v5530_v54 = vld [vmem:[%s10909_s6 + $0x28] sm:$0xff] }
 0x949   :  { %5421 = vmatprep.subr.mxu1 %v5110_v43  ;;  %5490 = vmatprep.subr.mxu0 %v5176_v52  ;;  %v5529_v43 = vld [vmem:[%s10909_s6 + $0x20] sm:$0xff]  ;;  %v5528_v52 = vld [vmem:[%s10909_s6 + $0x18] sm:$0xff] }
 0x94a   :  { %5422 = vmatpush2.msra.mxu1 %v5109_v63  ;;  %5491 = vmatpush2.msra.mxu0 %v5175_v45  ;;  %v5527_v63 = vld [vmem:[%s10909_s6 + $0x10] sm:$0xff]  ;;  %v5526_v45 = vld [vmem:[%s10909_s6 + $0x8] sm:$0xff] }
 0x94b   :  { %5423 = vmatprep.subr.mxu1 %v5108_v53  ;;  %5492 = vmatprep.subr.mxu0 %v5174_v48  ;;  %v5525_v53 = vld [vmem:[%s10909_s6] sm:$0xff] }
 0x94c   :  { %5424 = vmatpush2.msra.mxu1 %v5107_v21  ;;  %5493 = vmatpush2.msra.mxu0 %v5173_v15  ;;  %v5549_v48 = vld [vmem:[%s10909_s6 + $0xc0] sm:$0xff]  ;;  %v5548_v21 = vld [vmem:[%s10909_s6 + $0xb8] sm:$0xff]  ;;  %v5547_v15 = vld [vmem:[%s10909_s6 + $0xb0] sm:$0xff] }
 0x94d   :  { %5425 = vmatprep.subr.mxu1 %v5106_v41  ;;  %5494 = vmatprep.subr.mxu0 %v5172_v0  ;;  %v5546_v41 = vld [vmem:[%s10909_s6 + $0xa8] sm:$0xff]  ;;  %v5545_v0 = vld [vmem:[%s10909_s6 + $0xa0] sm:$0xff] }
 0x94e   :  { %5426 = vmatpush2.msra.mxu1 %v5105_v3  ;;  %5495 = vmatpush2.msra.mxu0 %v5171_v28  ;;  %v5544_v3 = vld [vmem:[%s10909_s6 + $0x98] sm:$0xff]  ;;  %v5543_v28 = vld [vmem:[%s10909_s6 + $0x90] sm:$0xff] }
 0x94f   :  { %5427 = vmatprep.subr.mxu1 %v5104_v49  ;;  %5496 = vmatprep.subr.mxu0 %v5170_v56  ;;  %v5542_v49 = vld [vmem:[%s10909_s6 + $0x88] sm:$0xff]  ;;  %v5541_v56 = vld [vmem:[%s10909_s6 + $0x80] sm:$0xff] }
 0x950   :  { %5428 = vmatpush2.msra.mxu1 %v5103_v4  ;;  %5497 = vmatpush2.msra.mxu0 %v5169_v58  ;;  %v5187_v4 = vsub.s32 0, %v9768_v7  ;;  %v5183_v58 = vld [vmem:[%s10910_s8] ss:$2 sm:$0x3] }
 0x951   :  { %5429 = vmatprep.subr.mxu1 %v5102_v1  ;;  %5498 = vmatprep.subr.mxu0 %v5168_v46  ;;  %v5191_v1 = vsub.s32 1, %v9768_v7 }
 0x952   :  { %5430 = vmatpush2.msra.mxu1 %v5101_v59  ;;  %5499 = vmatpush2.msra.mxu0 %v5167_v57  ;;  %v5188_v59 = vrot.slane %v5183_v58, %v5187_v4 }
 0x953   :  { %5431 = vmatprep.subr.mxu1 %v5100_v23  ;;  %5500 = vmatprep.subr.mxu0 %v5166_v30  ;;  %v5192_v57 = vrot.slane %v5183_v58, %v5191_v1 }
 0x954   :  { %5432 = vmatpush2.msra.mxu1 %v5099_v40  ;;  %5501 = vmatpush2.msra.mxu0 %v5165_v50 }
 0x955   :  { %5433 = vmatprep.subr.mxu1 %v5098_v24  ;;  %5502 = vmatprep.subr.mxu0 %v5164_v38 }
 0x956   :  { %5434 = vmatpush2.msra.mxu1 %v5097_v9  ;;  %5503 = vmatpush2.msra.mxu0 %v5163_v37 }
 0x957   :  { %5435 = vmatprep.subr.mxu1 %v5096_v2  ;;  %5504 = vmatprep.subr.mxu0 %v5162_v25 }
 0x958   :  { %5436 = vmatpush2.msra.mxu1 %v5095_v5  ;;  %5505 = vmatpush2.msra.mxu0 %v5161_v36 }
 0x959   :  { %5437 = vmatprep.subr.mxu1 %v5094_v16  ;;  %5506 = vmatprep.subr.mxu0 %v5160_v60 }
 0x95a   :  { %5438 = vmatpush2.msra.mxu1 %v5093_v20  ;;  %5507 = vmatpush2.msra.mxu0 %v5159_v55 }
 0x95b   :  { %5439 = vmatprep.subr.mxu1 %v5092_v19  ;;  %5508 = vmatprep.subr.mxu0 %v5158_v51  ;;  %v5936_v19 = vmov 3   ;;  %v5739_v51 = vld [vmem:[%s10910_s8 + $0x1] ss:$0 sm:$0xff] }
 0x95c   :  { %5440 = vmatpush2.msra.mxu1 %v5091_v10  ;;  %5509 = vmatpush2.msra.mxu0 %v5157_v8 }
 0x95d   :  { %5441 = vmatprep.subr.mxu1 %v5090_v13  ;;  %5510 = vmatprep.subr.mxu0 %v5156_v35 }
 0x95e   :  { %5442 = vmatpush2.msra.mxu1 %v5089_v47  ;;  %5511 = vmatpush2.msra.mxu0 %v5155_v26 }
 0x95f   :  { %5443 = vmatprep.subr.mxu1 %v5088_v29  ;;  %5512 = vmatprep.subr.mxu0 %v5154_v11 }
 0x960   :  { %5444 = vmatpush2.msra.mxu1 %v5087_v27  ;;  %5513 = vmatpush2.msra.mxu0 %v5153_v39 }
 0x961   :  { %5446 = vmatmul.mubr.f32.vlgmr.msra.gmra.mxu1 %v10519_v14  ;;  %5514 = vmatprep.subr.mxu0 %v5152_v33  ;;  %v5538_v14 = vld [vmem:[%s10909_s6 + $0x68] sm:$0xff] }
 0x962   :  { %5515 = vmatpush2.msra.mxu0 %v5151_v32  ;;  %5559 = vmatprep.subr.mxu1 %v8752_v31 }
 0x963   :  { %5517 = vmatmul.mubr.f32.vlgmr.msra.gmra.mxu0 %v10533_v12  ;;  %5560 = vmatpush1.msra.mxu1 %v5540_v22  ;;  %v5537_v12 = vld [vmem:[%s10909_s6 + $0x60] sm:$0xff] }
 0x964   :  { %5561 = vmatprep.subr.mxu1 %v8752_v31  ;;  %5893 = vset.pattern.permute.xlu0 %v5936_v19  ;;  %v5635_v22 = vld [vmem:[%s10911_s1] sm:$0x3] }
 0x965   :  { %5562 = vmatpush1.msra.mxu1 %v5539_v6 }
 0x966   :  { %5563 = vmatprep.subr.mxu1 %v8752_v31 }
 0x967   :  { %5564 = vmatpush1.msra.mxu1 %v5538_v14 }
 0x968   :  { %5565 = vmatprep.subr.mxu1 %v8752_v31 }
 0x969   :  { %5566 = vmatpush1.msra.mxu1 %v5537_v12  ;;  %v5657_v12 = vand.u32 127, %v4440_v42 }
 0x96a   :  { %5567 = vmatprep.subr.mxu1 %v8752_v31 }
 0x96b   :  { %5568 = vmatpush1.msra.mxu1 %v5536_v18  ;;  %vm5658_vm13 = vcmp.lt.s32.totalorder %v5657_v12, 3  ;;  %vm5669_vm5 = vcmp.eq.s32.totalorder %v5657_v12, 5  ;;  %vm5668_vm10 = vcmp.eq.s32.totalorder %v5657_v12, 4  ;;  %vm5667_vm4 = vcmp.eq.s32.totalorder %v5657_v12, 3 }
 0x96c   :  { %5569 = vmatprep.subr.mxu1 %v8752_v31 }
 0x96d   :  { %5570 = vmatpush1.msra.mxu1 %v5535_v44 }
 0x96e   :  { %5571 = vmatprep.subr.mxu1 %v8752_v31 }
 0x96f   :  { %5572 = vmatpush1.msra.mxu1 %v5534_v17 }
 0x970   :  { %5573 = vmatprep.subr.mxu1 %v8752_v31 }
 0x971   :  { %5574 = vmatpush1.msra.mxu1 %v5533_v34 }
 0x972   :  { %5575 = vmatprep.subr.mxu1 %v8752_v31 }
 0x973   :  { %5576 = vmatpush1.msra.mxu1 %v5532_v61 }
 0x974   :  { %5577 = vmatprep.subr.mxu1 %v8752_v31 }
 0x975   :  { %5578 = vmatpush1.msra.mxu1 %v5531_v62 }
 0x976   :  { %5579 = vmatprep.subr.mxu1 %v8752_v31 }
 0x977   :  { %5580 = vmatpush1.msra.mxu1 %v5530_v54 }
 0x978   :  { %5581 = vmatprep.subr.mxu1 %v8752_v31 }
 0x979   :  { %5582 = vmatpush1.msra.mxu1 %v5529_v43 }
 0x97a   :  { %5583 = vmatprep.subr.mxu1 %v8752_v31 }
 0x97b   :  { %5584 = vmatpush1.msra.mxu1 %v5528_v52 }
 0x97c   :  { %5585 = vmatprep.subr.mxu1 %v8752_v31 }
 0x97d   :  { %5586 = vmatpush1.msra.mxu1 %v5527_v63 }
 0x97e   :  { %5587 = vmatprep.subr.mxu1 %v8752_v31 }
 0x97f   :  { %5588 = vmatpush1.msra.mxu1 %v5526_v45 }
 0x980   :  { %5589 = vmatprep.subr.mxu1 %v8752_v31 }
 0x981   :  { %5590 = vmatpush1.msra.mxu1 %v5525_v53 }
 0x982   :  { %5605 = vmatprep.subr.mxu1 %v8752_v31 }
 0x983   :  { %5606 = vmatpush2.msra.mxu1 %v5549_v48 }
 0x984   :  { %5607 = vmatprep.subr.mxu1 %v8752_v31 }
 0x985   :  { %5608 = vmatpush2.msra.mxu1 %v5548_v21 }
 0x986   :  { %5609 = vmatprep.subr.mxu1 %v8752_v31 }
 0x987   :  { %5610 = vmatpush2.msra.mxu1 %v5547_v15 }
 0x988   :  { %5611 = vmatprep.subr.mxu1 %v8752_v31 }
 0x989   :  { %5612 = vmatpush2.msra.mxu1 %v5546_v41 }
 0x98a   :  { %5613 = vmatprep.subr.mxu1 %v8752_v31 }
 0x98b   :  { %5614 = vmatpush2.msra.mxu1 %v5545_v0 }
 0x98c   :  { %5615 = vmatprep.subr.mxu1 %v8752_v31 }
 0x98d   :  { %5616 = vmatpush2.msra.mxu1 %v5544_v3 }
 0x98e   :  { %5617 = vmatprep.subr.mxu1 %v8752_v31 }
 0x98f   :  { %5618 = vmatpush2.msra.mxu1 %v5543_v28 }
 0x990   :  { %5619 = vmatprep.subr.mxu1 %v8752_v31 }
 0x991   :  { %5620 = vmatpush2.msra.mxu1 %v5542_v49 }
 0x992   :  { %5621 = vmatprep.subr.mxu1 %v8752_v31 }
 0x993   :  { %5622 = vmatpush2.msra.mxu1 %v5541_v56 }
 0x9e0   :  { %v5305_v46 = vpop.f32.mrf.mxu1 }
 0x9e1   :  { %v5306_v40 = vadd.f32 %v5305_v46, %v5188_v59 }
 0x9e2   :  { %v5307_v23 = vpop.f32.mrf.mxu1  ;;  %v5376_v30 = vpop.f32.mrf.mxu0 }
 0x9e3   :  { %v5308_v50 = vadd.f32 %v5307_v23, %v5192_v57  ;;  %v5377_v38 = vadd.f32 %v5376_v30, %v5306_v40 }
 0x9e4   :  { %v5378_v24 = vpop.f32.mrf.mxu0 }
 0x9e5   :  { %v5379_v37 = vadd.f32 %v5378_v24, %v5308_v50 }
 0xa21   :  { %v5447_v9 = vpop.f32.mrf.mxu1 }
 0xa22   :  { %v5448_v2 = vadd.f32 %v5447_v9, %v5377_v38 }
 0xa23   :  { %v5449_v25 = vpop.f32.mrf.mxu1  ;;  %v5518_v5 = vpop.f32.mrf.mxu0 }
 0xa24   :  { %v5450_v36 = vadd.f32 %v5449_v25, %v5379_v37  ;;  %v5519_v16 = vadd.f32 %v5518_v5, %v5448_v2 }
 0xa25   :  { %v5520_v60 = vpop.f32.mrf.mxu0 }
 0xa26   :  { %v5521_v20 = vadd.f32 %v5520_v60, %v5450_v36  ;;  %v5523_v55 = vmax.f32 %v5519_v16, 0.0 }
 0xa28   :  { %v5524_v7 = vmax.f32 %v5521_v20, 0.0 }
 0xa2a   :  { %5740 = vmatprep.mubr.msk.f32.mxu1 %vm5555_vm12, %v5524_v7 }
 0xa2b   :  { %5624 = vmatmul.mubr.f32.vlgmr.msra.gmra.mxu1 %v5523_v55 }
 0xaeb   :  { %v5625_v10 = vpop.f32.mrf.mxu1 }
 0xaec   :  { %v5626_v8 = vadd.f32 %v5739_v51, %v5625_v10 }
 0xaed   :  { %v5627_v13 = vpop.f32.mrf.mxu1 }
 0xaee   :  { %v5629_v35 = vsub.f32 0.0, %v5626_v8  ;;  %v5640_v47 = vand.u32 2147483647, %v5626_v8  ;;  %v5639_v18 = vmax.f32 %v5626_v8, 0.0 }
 0xaf0   :  { %v5630_v26 = vmul.f32 1.442695, %v5629_v35  ;;  %v5641_v29 = vsub.f32 0.0, %v5640_v47 }
 0xaf2   :  { %5901 = vpow2.f32 %v5630_v26  ;;  %v5642_v11 = vmul.f32 1.442695, %v5641_v29 }
 0xaf4   :  { %5903 = vpow2.f32 %v5642_v11 }
 0xaff   :  { %v5902_v27 = vpop.eup %5901 }
 0xb00   :  { %v5632_v39 = vadd.f32 1.0, %v5902_v27 }
 0xb01   :  { %v5904_v33 = vpop.eup %5903 }
 0xb02   :  { %5905 = vrcp.f32 %v5632_v39  ;;  %v5644_v32 = vadd.f32 1.0, %v5904_v33 }
 0xb04   :  { %5907 = vlog2.f32 %v5644_v32 }
 0xb0f   :  { %v5906_v6 = vpop.eup %5905 }
 0xb10   :  { %vm5636_vm6 = vcmp.lt.f32.partialorder %v5635_v22, %v5906_v6  ;;  %v5654_v61 = vmul.f32 %v5906_v6, %v5626_v8 }
 0xb11   :  { %v5908_v14 = vpop.eup %5907  ;;  %v5741_v17 = vsel %vm5636_vm6, 1.0, %v8752_v31 }
 0xb12   :  { %v5646_v44 = vmul.f32 0.6931472, %v5908_v14  ;;  %v5650_v43 = vsub.f32 1.0, %v5741_v17 }
 0xb14   :  { %v5647_v34 = vadd.f32 %v5646_v44, %v5639_v18 }
 0xb16   :  { %v5655_v62 = vsub.f32 %v5647_v34, %v5654_v61  ;;  %v5648_v54 = vsub.f32 %v5647_v34, %v5626_v8  ;;  %v5651_v45 = vmul.f32 %v5650_v43, %v5647_v34 }
 0xb18   :  { %v5663_v52 = vsel %vm5658_vm13, %v5655_v62, 0.0  ;;  %v5649_v63 = vmul.f32 %v5741_v17, %v5648_v54 }
 0xb19   :  { %v5664_v53 = vsel %vm11184_vm1, %v5663_v52, 0.0 }
 0xb1a   :  { %5665 = vadd.xlane.f32.xlu0 %v5664_v53  ;;  %v5652_v48 = vadd.f32 %v5651_v45, %v5649_v63 }
 0xb1c   :  { %v5653_v21 = vsub.f32 0.0, %v5652_v48 }
 0xb1e   :  { %v5659_v42 = vsel %vm5658_vm13, %v5653_v21, 0.0 }
 0xb1f   :  { %v5660_v15 = vsel %vm11185_vm2, %v5659_v42, 0.0 }
 0xb20   :  { %5661 = vadd.xlane.f32.xlu1 %v5660_v15 }
 0xb30   :  { %5672 = vperm.xlu0 %5893, %v5626_v8  }
 0xba3   :  { %v5666_v31 = vpop.xlane.xlu0 %5665 }
 0xba9   :  { %v5662_v3 = vpop.xlane.xlu1 %5661 }
 0xbab   :  { %v5673_v41 = vpop.permute.xlu0 %5672 }
 0xbac   :  { %v5675_v0 = vsel %vm5669_vm5, %v5673_v41, 0.0 }
 0xbad   :  { %v5676_v28 = vsel %vm5668_vm10, %v5666_v31, %v5675_v0 }
 0xbae   :  { %v5677_v49 = vsel %vm5667_vm4, %v5662_v3, %v5676_v28 }
 0xbaf   :  { %v5678_v56 = vsel %vm5658_vm13, %v5741_v17, %v5677_v49 }
 0xbb0   :  { %5679 = vst [vmem:[%s10912_s9] sm:$0x3] %v5678_v56 }

</bundles_post_ra>
